<compile_context>
chip_gen: v6e
topology: v6e:2x2x1
jax: 0.10.0
libtpu: 0.0.40
codegen_flags: <defaults>
</compile_context>

<pallas_src>
import functools

import jax
import jax.numpy as jnp
import numpy as np
from jax.experimental import pallas as pl
from jax.experimental.pallas import tpu as pltpu


# ----------------------------------------------------------------------------
# Fused SCConv kernel
# ----------------------------------------------------------------------------
def _make_scconv_kernel(H, W, C, r):
    Hp, Wp = H // r, W // r

    def conv3x3(xpad, w, out_h, out_w):
        """xpad: (out_h+2, out_w+2, C) zero-padded value, w: (3,3,C,C).
        Returns (out_h*out_w, C) f32 (SAME conv, stride 1)."""
        acc = jnp.zeros((out_h * out_w, C), jnp.float32)
        for dy in range(3):
            for dx in range(3):
                patch = jax.lax.slice(xpad, (dy, dx, 0),
                                      (dy + out_h, dx + out_w, C))
                acc = acc + jnp.dot(patch.reshape(out_h * out_w, C), w[dy, dx],
                                    preferred_element_type=jnp.float32)
        return acc

    def kernel(x_ref, pool_ref, up_ref, w2_ref, w3_ref, w4_ref, ss_ref,
               out_ref, pad_ref, ppad_ref):
        # Build zero halos in VMEM scratch (interiors are fully overwritten).
        pad_ref[...] = jnp.zeros_like(pad_ref)
        ppad_ref[...] = jnp.zeros_like(ppad_ref)

        x = x_ref[...][0]                              # (H, W, C)
        x_flat = x.reshape(H * W, C)                   # (H*W, C)
        ss = ss_ref[...]                               # (6, C) folded BN scale/shift

        # ---- k2 branch: avg-pool (matmul) -> conv3x3 -> BN ---------------------
        pooled = jnp.dot(pool_ref[...], x_flat,
                         preferred_element_type=jnp.float32)        # (Hp*Wp, C)
        ppad_ref[pl.ds(1, Hp), pl.ds(1, Wp), :] = pooled.reshape(Hp, Wp, C)
        y2 = conv3x3(ppad_ref[...], w2_ref[...], Hp, Wp)             # (Hp*Wp, C)
        y2 = y2 * ss[0:1] + ss[1:2]

        # nearest-neighbor upsample back to (H, W): one-hot matmul
        up = jnp.dot(up_ref[...], y2,
                     preferred_element_type=jnp.float32)             # (H*W, C)

        # ---- k3 branch: conv3x3 on x -> BN -------------------------------------
        pad_ref[pl.ds(1, H), pl.ds(1, W), :] = x
        y3 = conv3x3(pad_ref[...], w3_ref[...], H, W)                # (H*W, C)
        y3 = y3 * ss[2:3] + ss[3:4]

        # ---- gate and multiply (identity reuses the resident x block) ----------
        t = y3 * jax.nn.sigmoid(x_flat + up)                         # (H*W, C)

        # ---- k4: conv3x3 on gated features -> BN (stride=1) --------------------
        pad_ref[pl.ds(1, H), pl.ds(1, W), :] = t.reshape(H, W, C)
        y4 = conv3x3(pad_ref[...], w4_ref[...], H, W)                # (H*W, C)
        y4 = y4 * ss[4:5] + ss[5:6]

        out_ref[...] = y4.reshape(1, H, W, C).astype(out_ref.dtype)

    return kernel


def _pool_upsample_mats(H, W, r):
    """pool_mat: (Hp*Wp, H*W) averaging matrix; up_mat: (H*W, Hp*Wp) one-hot
    nearest-neighbor upsample matrix (both host-precomputed constants)."""
    Hp, Wp = H // r, W // r
    k = np.arange(H * W)
    i, j = k // W, k % W
    pooled_idx = (i // r) * Wp + (j // r)
    up = np.zeros((H * W, Hp * Wp), np.float32)
    up[k, pooled_idx] = 1.0
    pool = (up.T / float(r * r)).astype(np.float32)
    return jnp.asarray(pool), jnp.asarray(up)


def scconv_forward(x_nchw, params, pooling_r):
    """x_nchw: (N, C, H, W) f32 -> (N, C, H, W) f32."""
    x = jnp.transpose(x_nchw, (0, 2, 3, 1)).astype(jnp.float32)   # NCHW -> NHWC
    N, H, W, C = x.shape
    r = pooling_r
    Hp, Wp = H // r, W // r

    pool_mat, up_mat = _pool_upsample_mats(H, W, r)

    # Fold eval-mode BatchNorm into per-channel scale/shift and pack into (6, C).
    eps = 1e-5
    def fold(name):
        s = params[name + "_gamma"] / jnp.sqrt(params[name + "_var"] + eps)
        return s, params[name + "_beta"] - params[name + "_mean"] * s
    s2, t2 = fold("bn2")
    s3, t3 = fold("bn3")
    s4, t4 = fold("bn4")
    ss = jnp.stack([s2, t2, s3, t3, s4, t4], axis=0).astype(jnp.float32)  # (6, C)

    kernel = _make_scconv_kernel(H, W, C, r)
    grid_spec = pltpu.PrefetchScalarGridSpec(
        num_scalar_prefetch=0,
        grid=(N,),
        in_specs=[
            pl.BlockSpec((1, H, W, C), lambda n: (n, 0, 0, 0)),     # x
            pl.BlockSpec((Hp * Wp, H * W), lambda n: (0, 0)),       # pool matrix
            pl.BlockSpec((H * W, Hp * Wp), lambda n: (0, 0)),       # upsample matrix
            pl.BlockSpec((3, 3, C, C), lambda n: (0, 0, 0, 0)),     # w2
            pl.BlockSpec((3, 3, C, C), lambda n: (0, 0, 0, 0)),     # w3
            pl.BlockSpec((3, 3, C, C), lambda n: (0, 0, 0, 0)),     # w4
            pl.BlockSpec((6, C), lambda n: (0, 0)),                 # folded BN consts
        ],
        out_specs=pl.BlockSpec((1, H, W, C), lambda n: (n, 0, 0, 0)),
        scratch_shapes=[
            pltpu.VMEM((H + 2, W + 2, C), jnp.float32),     # full-res halo buffer
            pltpu.VMEM((Hp + 2, Wp + 2, C), jnp.float32),   # pooled halo buffer
        ],
    )
    out = pl.pallas_call(
        kernel,
        out_shape=jax.ShapeDtypeStruct((N, H, W, C), jnp.float32),
        grid_spec=grid_spec,
        compiler_params=pltpu.CompilerParams(dimension_semantics=("parallel",)),
    )(x, pool_mat, up_mat,
      params["w2"].astype(jnp.float32),
      params["w3"].astype(jnp.float32),
      params["w4"].astype(jnp.float32),
      ss)
    return jnp.transpose(out, (0, 3, 1, 2))               # NHWC -> NCHW


# ----------------------------------------------------------------------------
# Parameters (deterministic, synthetic)
# ----------------------------------------------------------------------------
def init_params(key, channels):
    C = channels
    ks = jax.random.split(key, 15)
    p = {
        "w2": 0.1 * jax.random.normal(ks[0], (3, 3, C, C), jnp.float32),
        "w3": 0.1 * jax.random.normal(ks[1], (3, 3, C, C), jnp.float32),
        "w4": 0.1 * jax.random.normal(ks[2], (3, 3, C, C), jnp.float32),
    }
    for name, base in (("bn2", 3), ("bn3", 7), ("bn4", 11)):
        p[name + "_gamma"] = 1.0 + 0.1 * jax.random.normal(ks[base], (C,), jnp.float32)
        p[name + "_beta"] = 0.05 * jax.random.normal(ks[base + 1], (C,), jnp.float32)
        p[name + "_mean"] = 0.1 * jax.random.normal(ks[base + 2], (C,), jnp.float32)
        p[name + "_var"] = 0.5 + jax.random.uniform(ks[base + 3], (C,), jnp.float32)
    return p


# ----------------------------------------------------------------------------
# Pure-JAX reference (for the correctness check)
# ----------------------------------------------------------------------------
def _conv3x3_ref(x, w):
    return jax.lax.conv_general_dilated(
        x, w, window_strides=(1, 1), padding="SAME",
        dimension_numbers=("NHWC", "HWIO", "NHWC"))


def scconv_ref(x_nchw, params, pooling_r):
    x = jnp.transpose(x_nchw, (0, 2, 3, 1)).astype(jnp.float32)
    r = pooling_r
    eps = 1e-5

    def bn(y, name):
        s = params[name + "_gamma"] / jnp.sqrt(params[name + "_var"] + eps)
        return y * s + (params[name + "_beta"] - params[name + "_mean"] * s)

    pooled = jax.lax.reduce_window(x, 0.0, jax.lax.add,
                                   (1, r, r, 1), (1, r, r, 1),
                                   "VALID") / float(r * r)
    y2 = bn(_conv3x3_ref(pooled, params["w2"]), "bn2")
    up = jnp.repeat(jnp.repeat(y2, r, axis=1), r, axis=2)      # nearest upsample
    gate = jax.nn.sigmoid(x + up)
    y3 = bn(_conv3x3_ref(x, params["w3"]), "bn3")
    y4 = bn(_conv3x3_ref(y3 * gate, params["w4"]), "bn4")
    return jnp.transpose(y4, (0, 3, 1, 2))


if __name__ == "__main__":
    N, C, H, W = 2, 4, 16, 16
    pooling_r = 4

    key = jax.random.PRNGKey(0)
    k_x, k_p = jax.random.split(key)
    x = jax.random.normal(k_x, (N, C, H, W), jnp.float32)
    params = init_params(k_p, C)

    fwd = jax.jit(functools.partial(scconv_forward, pooling_r=pooling_r))
    out = jax.block_until_ready(fwd(x, params))
    assert out.shape == (N, C, H, W), out.shape

    ref = jax.block_until_ready(scconv_ref(x, params, pooling_r))
    np.testing.assert_allclose(np.asarray(out), np.asarray(ref),
                               rtol=1e-2, atol=1e-2)

    print("KERNEL_OK")
</pallas_src>

<mosaic_0001>
module attributes {stable_mosaic.version = 11 : i64} {
  func.func @kernel(%arg0: i32, %arg1: memref<1x16x16x4xf32, #tpu.memory_space<vmem>>, %arg2: memref<16x256xf32, #tpu.memory_space<vmem>>, %arg3: memref<256x16xf32, #tpu.memory_space<vmem>>, %arg4: memref<3x3x4x4xf32, #tpu.memory_space<vmem>>, %arg5: memref<3x3x4x4xf32, #tpu.memory_space<vmem>>, %arg6: memref<3x3x4x4xf32, #tpu.memory_space<vmem>>, %arg7: memref<6x4xf32, #tpu.memory_space<vmem>>, %arg8: memref<1x16x16x4xf32, #tpu.memory_space<vmem>>, %arg9: memref<18x18x4xf32, #tpu.memory_space<vmem>>, %arg10: memref<6x6x4xf32, #tpu.memory_space<vmem>>) attributes {dimension_semantics = [#tpu.dimension_semantics<parallel>], iteration_bounds = array<i64: 2>, scalar_prefetch = 0 : i64, scratch_operands = 2 : i64, tpu.core_type = #tpu.core_type<tc>, window_params = [{transform_indices = @transform_0, window_bounds = array<i64: 1, 16, 16, 4>}, {pipeline_mode = #tpu.pipeline_mode<synchronous>, transform_indices = @transform_1, window_bounds = array<i64: 16, 256>}, {pipeline_mode = #tpu.pipeline_mode<synchronous>, transform_indices = @transform_2, window_bounds = array<i64: 256, 16>}, {pipeline_mode = #tpu.pipeline_mode<synchronous>, transform_indices = @transform_3, window_bounds = array<i64: 3, 3, 4, 4>}, {pipeline_mode = #tpu.pipeline_mode<synchronous>, transform_indices = @transform_4, window_bounds = array<i64: 3, 3, 4, 4>}, {pipeline_mode = #tpu.pipeline_mode<synchronous>, transform_indices = @transform_5, window_bounds = array<i64: 3, 3, 4, 4>}, {pipeline_mode = #tpu.pipeline_mode<synchronous>, transform_indices = @transform_6, window_bounds = array<i64: 6, 4>}, {transform_indices = @transform_7, window_bounds = array<i64: 1, 16, 16, 4>}]} {
    %cst = arith.constant 0.000000e+00 : f32
    %0 = vector.broadcast %cst : f32 to vector<18x18x4xf32>
    %c0 = arith.constant 0 : index
    %c0_0 = arith.constant 0 : index
    %c0_1 = arith.constant 0 : index
    %1 = vector.load %arg9[%c0, %c0_0, %c0_1] : memref<18x18x4xf32, #tpu.memory_space<vmem>>, vector<18x18x4xf32>
    tpu.vector_store %arg9[%c0, %c0_0, %c0_1], %0 {strides = array<i32>} : memref<18x18x4xf32, #tpu.memory_space<vmem>>, vector<18x18x4xf32>,
    %cst_2 = arith.constant 0.000000e+00 : f32
    %2 = vector.broadcast %cst_2 : f32 to vector<6x6x4xf32>
    %c0_3 = arith.constant 0 : index
    %c0_4 = arith.constant 0 : index
    %c0_5 = arith.constant 0 : index
    %3 = vector.load %arg10[%c0_3, %c0_4, %c0_5] : memref<6x6x4xf32, #tpu.memory_space<vmem>>, vector<6x6x4xf32>
    tpu.vector_store %arg10[%c0_3, %c0_4, %c0_5], %2 {strides = array<i32>} : memref<6x6x4xf32, #tpu.memory_space<vmem>>, vector<6x6x4xf32>,
    %c0_6 = arith.constant 0 : index
    %c0_7 = arith.constant 0 : index
    %c0_8 = arith.constant 0 : index
    %c0_9 = arith.constant 0 : index
    %4 = vector.load %arg1[%c0_6, %c0_7, %c0_8, %c0_9] : memref<1x16x16x4xf32, #tpu.memory_space<vmem>>, vector<1x16x16x4xf32>
    %5 = vector.shape_cast %4 : vector<1x16x16x4xf32> to vector<16x16x4xf32>
    %6 = vector.shape_cast %5 : vector<16x16x4xf32> to vector<256x4xf32>
    %c0_10 = arith.constant 0 : index
    %c0_11 = arith.constant 0 : index
    %7 = vector.load %arg7[%c0_10, %c0_11] : memref<6x4xf32, #tpu.memory_space<vmem>>, vector<6x4xf32>
    %c0_12 = arith.constant 0 : index
    %c0_13 = arith.constant 0 : index
    %8 = vector.load %arg2[%c0_12, %c0_13] : memref<16x256xf32, #tpu.memory_space<vmem>>, vector<16x256xf32>
    %cst_14 = arith.constant dense<0.000000e+00> : vector<16x4xf32>
    %9 = tpu.matmul %8, %6, %cst_14 {dimension_numbers = #tpu.dot_dimension_numbers<[1], [0], [0], [1], [0, 0, 1, 1], [], []>} : vector<16x256xf32>, vector<256x4xf32>, vector<16x4xf32> -> vector<16x4xf32>
    %10 = vector.shape_cast %9 : vector<16x4xf32> to vector<4x4x4xf32>
    %c1 = arith.constant 1 : index
    %c1_15 = arith.constant 1 : index
    %c0_16 = arith.constant 0 : index
    %11 = vector.load %arg10[%c1, %c1_15, %c0_16] : memref<6x6x4xf32, #tpu.memory_space<vmem>>, vector<4x4x4xf32>
    tpu.vector_store %arg10[%c1, %c1_15, %c0_16], %10 {strides = array<i32>} : memref<6x6x4xf32, #tpu.memory_space<vmem>>, vector<4x4x4xf32>,
    %c0_17 = arith.constant 0 : index
    %c0_18 = arith.constant 0 : index
    %c0_19 = arith.constant 0 : index
    %12 = vector.load %arg10[%c0_17, %c0_18, %c0_19] : memref<6x6x4xf32, #tpu.memory_space<vmem>>, vector<6x6x4xf32>
    %c0_20 = arith.constant 0 : index
    %c0_21 = arith.constant 0 : index
    %c0_22 = arith.constant 0 : index
    %c0_23 = arith.constant 0 : index
    %13 = vector.load %arg4[%c0_20, %c0_21, %c0_22, %c0_23] : memref<3x3x4x4xf32, #tpu.memory_space<vmem>>, vector<3x3x4x4xf32>
    %cst_24 = arith.constant 0.000000e+00 : f32
    %14 = vector.broadcast %cst_24 : f32 to vector<16x4xf32>
    %15 = vector.extract_strided_slice %12 {offsets = [0, 0, 0], sizes = [4, 4, 4], strides = [1, 1, 1]} : vector<6x6x4xf32> to vector<4x4x4xf32>
    %16 = vector.shape_cast %15 : vector<4x4x4xf32> to vector<16x4xf32>
    %17 = vector.extract_strided_slice %13 {offsets = [0, 0, 0, 0], sizes = [1, 1, 4, 4], strides = [1, 1, 1, 1]} : vector<3x3x4x4xf32> to vector<1x1x4x4xf32>
    %18 = vector.shape_cast %17 : vector<1x1x4x4xf32> to vector<4x4xf32>
    %cst_25 = arith.constant dense<0.000000e+00> : vector<16x4xf32>
    %19 = tpu.matmul %16, %18, %cst_25 {dimension_numbers = #tpu.dot_dimension_numbers<[1], [0], [0], [1], [0, 0, 1, 1], [], []>} : vector<16x4xf32>, vector<4x4xf32>, vector<16x4xf32> -> vector<16x4xf32>
    %20 = arith.addf %14, %19 : vector<16x4xf32>
    %21 = vector.extract_strided_slice %12 {offsets = [0, 1, 0], sizes = [4, 4, 4], strides = [1, 1, 1]} : vector<6x6x4xf32> to vector<4x4x4xf32>
    %22 = vector.shape_cast %21 : vector<4x4x4xf32> to vector<16x4xf32>
    %23 = vector.extract_strided_slice %13 {offsets = [0, 1, 0, 0], sizes = [1, 1, 4, 4], strides = [1, 1, 1, 1]} : vector<3x3x4x4xf32> to vector<1x1x4x4xf32>
    %24 = vector.shape_cast %23 : vector<1x1x4x4xf32> to vector<4x4xf32>
    %cst_26 = arith.constant dense<0.000000e+00> : vector<16x4xf32>
    %25 = tpu.matmul %22, %24, %cst_26 {dimension_numbers = #tpu.dot_dimension_numbers<[1], [0], [0], [1], [0, 0, 1, 1], [], []>} : vector<16x4xf32>, vector<4x4xf32>, vector<16x4xf32> -> vector<16x4xf32>
    %26 = arith.addf %20, %25 : vector<16x4xf32>
    %27 = vector.extract_strided_slice %12 {offsets = [0, 2, 0], sizes = [4, 4, 4], strides = [1, 1, 1]} : vector<6x6x4xf32> to vector<4x4x4xf32>
    %28 = vector.shape_cast %27 : vector<4x4x4xf32> to vector<16x4xf32>
    %29 = vector.extract_strided_slice %13 {offsets = [0, 2, 0, 0], sizes = [1, 1, 4, 4], strides = [1, 1, 1, 1]} : vector<3x3x4x4xf32> to vector<1x1x4x4xf32>
    %30 = vector.shape_cast %29 : vector<1x1x4x4xf32> to vector<4x4xf32>
    %cst_27 = arith.constant dense<0.000000e+00> : vector<16x4xf32>
    %31 = tpu.matmul %28, %30, %cst_27 {dimension_numbers = #tpu.dot_dimension_numbers<[1], [0], [0], [1], [0, 0, 1, 1], [], []>} : vector<16x4xf32>, vector<4x4xf32>, vector<16x4xf32> -> vector<16x4xf32>
    %32 = arith.addf %26, %31 : vector<16x4xf32>
    %33 = vector.extract_strided_slice %12 {offsets = [1, 0, 0], sizes = [4, 4, 4], strides = [1, 1, 1]} : vector<6x6x4xf32> to vector<4x4x4xf32>
    %34 = vector.shape_cast %33 : vector<4x4x4xf32> to vector<16x4xf32>
    %35 = vector.extract_strided_slice %13 {offsets = [1, 0, 0, 0], sizes = [1, 1, 4, 4], strides = [1, 1, 1, 1]} : vector<3x3x4x4xf32> to vector<1x1x4x4xf32>
    %36 = vector.shape_cast %35 : vector<1x1x4x4xf32> to vector<4x4xf32>
    %cst_28 = arith.constant dense<0.000000e+00> : vector<16x4xf32>
    %37 = tpu.matmul %34, %36, %cst_28 {dimension_numbers = #tpu.dot_dimension_numbers<[1], [0], [0], [1], [0, 0, 1, 1], [], []>} : vector<16x4xf32>, vector<4x4xf32>, vector<16x4xf32> -> vector<16x4xf32>
    %38 = arith.addf %32, %37 : vector<16x4xf32>
    %39 = vector.extract_strided_slice %12 {offsets = [1, 1, 0], sizes = [4, 4, 4], strides = [1, 1, 1]} : vector<6x6x4xf32> to vector<4x4x4xf32>
    %40 = vector.shape_cast %39 : vector<4x4x4xf32> to vector<16x4xf32>
    %41 = vector.extract_strided_slice %13 {offsets = [1, 1, 0, 0], sizes = [1, 1, 4, 4], strides = [1, 1, 1, 1]} : vector<3x3x4x4xf32> to vector<1x1x4x4xf32>
    %42 = vector.shape_cast %41 : vector<1x1x4x4xf32> to vector<4x4xf32>
    %cst_29 = arith.constant dense<0.000000e+00> : vector<16x4xf32>
    %43 = tpu.matmul %40, %42, %cst_29 {dimension_numbers = #tpu.dot_dimension_numbers<[1], [0], [0], [1], [0, 0, 1, 1], [], []>} : vector<16x4xf32>, vector<4x4xf32>, vector<16x4xf32> -> vector<16x4xf32>
    %44 = arith.addf %38, %43 : vector<16x4xf32>
    %45 = vector.extract_strided_slice %12 {offsets = [1, 2, 0], sizes = [4, 4, 4], strides = [1, 1, 1]} : vector<6x6x4xf32> to vector<4x4x4xf32>
    %46 = vector.shape_cast %45 : vector<4x4x4xf32> to vector<16x4xf32>
    %47 = vector.extract_strided_slice %13 {offsets = [1, 2, 0, 0], sizes = [1, 1, 4, 4], strides = [1, 1, 1, 1]} : vector<3x3x4x4xf32> to vector<1x1x4x4xf32>
    %48 = vector.shape_cast %47 : vector<1x1x4x4xf32> to vector<4x4xf32>
    %cst_30 = arith.constant dense<0.000000e+00> : vector<16x4xf32>
    %49 = tpu.matmul %46, %48, %cst_30 {dimension_numbers = #tpu.dot_dimension_numbers<[1], [0], [0], [1], [0, 0, 1, 1], [], []>} : vector<16x4xf32>, vector<4x4xf32>, vector<16x4xf32> -> vector<16x4xf32>
    %50 = arith.addf %44, %49 : vector<16x4xf32>
    %51 = vector.extract_strided_slice %12 {offsets = [2, 0, 0], sizes = [4, 4, 4], strides = [1, 1, 1]} : vector<6x6x4xf32> to vector<4x4x4xf32>
    %52 = vector.shape_cast %51 : vector<4x4x4xf32> to vector<16x4xf32>
    %53 = vector.extract_strided_slice %13 {offsets = [2, 0, 0, 0], sizes = [1, 1, 4, 4], strides = [1, 1, 1, 1]} : vector<3x3x4x4xf32> to vector<1x1x4x4xf32>
    %54 = vector.shape_cast %53 : vector<1x1x4x4xf32> to vector<4x4xf32>
    %cst_31 = arith.constant dense<0.000000e+00> : vector<16x4xf32>
    %55 = tpu.matmul %52, %54, %cst_31 {dimension_numbers = #tpu.dot_dimension_numbers<[1], [0], [0], [1], [0, 0, 1, 1], [], []>} : vector<16x4xf32>, vector<4x4xf32>, vector<16x4xf32> -> vector<16x4xf32>
    %56 = arith.addf %50, %55 : vector<16x4xf32>
    %57 = vector.extract_strided_slice %12 {offsets = [2, 1, 0], sizes = [4, 4, 4], strides = [1, 1, 1]} : vector<6x6x4xf32> to vector<4x4x4xf32>
    %58 = vector.shape_cast %57 : vector<4x4x4xf32> to vector<16x4xf32>
    %59 = vector.extract_strided_slice %13 {offsets = [2, 1, 0, 0], sizes = [1, 1, 4, 4], strides = [1, 1, 1, 1]} : vector<3x3x4x4xf32> to vector<1x1x4x4xf32>
    %60 = vector.shape_cast %59 : vector<1x1x4x4xf32> to vector<4x4xf32>
    %cst_32 = arith.constant dense<0.000000e+00> : vector<16x4xf32>
    %61 = tpu.matmul %58, %60, %cst_32 {dimension_numbers = #tpu.dot_dimension_numbers<[1], [0], [0], [1], [0, 0, 1, 1], [], []>} : vector<16x4xf32>, vector<4x4xf32>, vector<16x4xf32> -> vector<16x4xf32>
    %62 = arith.addf %56, %61 : vector<16x4xf32>
    %63 = vector.extract_strided_slice %12 {offsets = [2, 2, 0], sizes = [4, 4, 4], strides = [1, 1, 1]} : vector<6x6x4xf32> to vector<4x4x4xf32>
    %64 = vector.shape_cast %63 : vector<4x4x4xf32> to vector<16x4xf32>
    %65 = vector.extract_strided_slice %13 {offsets = [2, 2, 0, 0], sizes = [1, 1, 4, 4], strides = [1, 1, 1, 1]} : vector<3x3x4x4xf32> to vector<1x1x4x4xf32>
    %66 = vector.shape_cast %65 : vector<1x1x4x4xf32> to vector<4x4xf32>
    %cst_33 = arith.constant dense<0.000000e+00> : vector<16x4xf32>
    %67 = tpu.matmul %64, %66, %cst_33 {dimension_numbers = #tpu.dot_dimension_numbers<[1], [0], [0], [1], [0, 0, 1, 1], [], []>} : vector<16x4xf32>, vector<4x4xf32>, vector<16x4xf32> -> vector<16x4xf32>
    %68 = arith.addf %62, %67 : vector<16x4xf32>
    %69 = vector.extract_strided_slice %7 {offsets = [0, 0], sizes = [1, 4], strides = [1, 1]} : vector<6x4xf32> to vector<1x4xf32>
    %70 = vector.broadcast %69 : vector<1x4xf32> to vector<16x4xf32>
    %71 = arith.mulf %68, %70 : vector<16x4xf32>
    %72 = vector.extract_strided_slice %7 {offsets = [1, 0], sizes = [1, 4], strides = [1, 1]} : vector<6x4xf32> to vector<1x4xf32>
    %73 = vector.broadcast %72 : vector<1x4xf32> to vector<16x4xf32>
    %74 = arith.addf %71, %73 : vector<16x4xf32>
    %c0_34 = arith.constant 0 : index
    %c0_35 = arith.constant 0 : index
    %75 = vector.load %arg3[%c0_34, %c0_35] : memref<256x16xf32, #tpu.memory_space<vmem>>, vector<256x16xf32>
    %cst_36 = arith.constant dense<0.000000e+00> : vector<256x4xf32>
    %76 = tpu.matmul %75, %74, %cst_36 {dimension_numbers = #tpu.dot_dimension_numbers<[1], [0], [0], [1], [0, 0, 1, 1], [], []>} : vector<256x16xf32>, vector<16x4xf32>, vector<256x4xf32> -> vector<256x4xf32>
    %c1_37 = arith.constant 1 : index
    %c1_38 = arith.constant 1 : index
    %c0_39 = arith.constant 0 : index
    %77 = vector.load %arg9[%c1_37, %c1_38, %c0_39] : memref<18x18x4xf32, #tpu.memory_space<vmem>>, vector<16x16x4xf32>
    tpu.vector_store %arg9[%c1_37, %c1_38, %c0_39], %5 {strides = array<i32>} : memref<18x18x4xf32, #tpu.memory_space<vmem>>, vector<16x16x4xf32>,
    %c0_40 = arith.constant 0 : index
    %c0_41 = arith.constant 0 : index
    %c0_42 = arith.constant 0 : index
    %78 = vector.load %arg9[%c0_40, %c0_41, %c0_42] : memref<18x18x4xf32, #tpu.memory_space<vmem>>, vector<18x18x4xf32>
    %c0_43 = arith.constant 0 : index
    %c0_44 = arith.constant 0 : index
    %c0_45 = arith.constant 0 : index
    %c0_46 = arith.constant 0 : index
    %79 = vector.load %arg5[%c0_43, %c0_44, %c0_45, %c0_46] : memref<3x3x4x4xf32, #tpu.memory_space<vmem>>, vector<3x3x4x4xf32>
    %cst_47 = arith.constant 0.000000e+00 : f32
    %80 = vector.broadcast %cst_47 : f32 to vector<256x4xf32>
    %81 = vector.extract_strided_slice %78 {offsets = [0, 0, 0], sizes = [16, 16, 4], strides = [1, 1, 1]} : vector<18x18x4xf32> to vector<16x16x4xf32>
    %82 = vector.shape_cast %81 : vector<16x16x4xf32> to vector<256x4xf32>
    %83 = vector.extract_strided_slice %79 {offsets = [0, 0, 0, 0], sizes = [1, 1, 4, 4], strides = [1, 1, 1, 1]} : vector<3x3x4x4xf32> to vector<1x1x4x4xf32>
    %84 = vector.shape_cast %83 : vector<1x1x4x4xf32> to vector<4x4xf32>
    %cst_48 = arith.constant dense<0.000000e+00> : vector<256x4xf32>
    %85 = tpu.matmul %82, %84, %cst_48 {dimension_numbers = #tpu.dot_dimension_numbers<[1], [0], [0], [1], [0, 0, 1, 1], [], []>} : vector<256x4xf32>, vector<4x4xf32>, vector<256x4xf32> -> vector<256x4xf32>
    %86 = arith.addf %80, %85 : vector<256x4xf32>
    %87 = vector.extract_strided_slice %78 {offsets = [0, 1, 0], sizes = [16, 16, 4], strides = [1, 1, 1]} : vector<18x18x4xf32> to vector<16x16x4xf32>
    %88 = vector.shape_cast %87 : vector<16x16x4xf32> to vector<256x4xf32>
    %89 = vector.extract_strided_slice %79 {offsets = [0, 1, 0, 0], sizes = [1, 1, 4, 4], strides = [1, 1, 1, 1]} : vector<3x3x4x4xf32> to vector<1x1x4x4xf32>
    %90 = vector.shape_cast %89 : vector<1x1x4x4xf32> to vector<4x4xf32>
    %cst_49 = arith.constant dense<0.000000e+00> : vector<256x4xf32>
    %91 = tpu.matmul %88, %90, %cst_49 {dimension_numbers = #tpu.dot_dimension_numbers<[1], [0], [0], [1], [0, 0, 1, 1], [], []>} : vector<256x4xf32>, vector<4x4xf32>, vector<256x4xf32> -> vector<256x4xf32>
    %92 = arith.addf %86, %91 : vector<256x4xf32>
    %93 = vector.extract_strided_slice %78 {offsets = [0, 2, 0], sizes = [16, 16, 4], strides = [1, 1, 1]} : vector<18x18x4xf32> to vector<16x16x4xf32>
    %94 = vector.shape_cast %93 : vector<16x16x4xf32> to vector<256x4xf32>
    %95 = vector.extract_strided_slice %79 {offsets = [0, 2, 0, 0], sizes = [1, 1, 4, 4], strides = [1, 1, 1, 1]} : vector<3x3x4x4xf32> to vector<1x1x4x4xf32>
    %96 = vector.shape_cast %95 : vector<1x1x4x4xf32> to vector<4x4xf32>
    %cst_50 = arith.constant dense<0.000000e+00> : vector<256x4xf32>
    %97 = tpu.matmul %94, %96, %cst_50 {dimension_numbers = #tpu.dot_dimension_numbers<[1], [0], [0], [1], [0, 0, 1, 1], [], []>} : vector<256x4xf32>, vector<4x4xf32>, vector<256x4xf32> -> vector<256x4xf32>
    %98 = arith.addf %92, %97 : vector<256x4xf32>
    %99 = vector.extract_strided_slice %78 {offsets = [1, 0, 0], sizes = [16, 16, 4], strides = [1, 1, 1]} : vector<18x18x4xf32> to vector<16x16x4xf32>
    %100 = vector.shape_cast %99 : vector<16x16x4xf32> to vector<256x4xf32>
    %101 = vector.extract_strided_slice %79 {offsets = [1, 0, 0, 0], sizes = [1, 1, 4, 4], strides = [1, 1, 1, 1]} : vector<3x3x4x4xf32> to vector<1x1x4x4xf32>
    %102 = vector.shape_cast %101 : vector<1x1x4x4xf32> to vector<4x4xf32>
    %cst_51 = arith.constant dense<0.000000e+00> : vector<256x4xf32>
    %103 = tpu.matmul %100, %102, %cst_51 {dimension_numbers = #tpu.dot_dimension_numbers<[1], [0], [0], [1], [0, 0, 1, 1], [], []>} : vector<256x4xf32>, vector<4x4xf32>, vector<256x4xf32> -> vector<256x4xf32>
    %104 = arith.addf %98, %103 : vector<256x4xf32>
    %105 = vector.extract_strided_slice %78 {offsets = [1, 1, 0], sizes = [16, 16, 4], strides = [1, 1, 1]} : vector<18x18x4xf32> to vector<16x16x4xf32>
    %106 = vector.shape_cast %105 : vector<16x16x4xf32> to vector<256x4xf32>
    %107 = vector.extract_strided_slice %79 {offsets = [1, 1, 0, 0], sizes = [1, 1, 4, 4], strides = [1, 1, 1, 1]} : vector<3x3x4x4xf32> to vector<1x1x4x4xf32>
    %108 = vector.shape_cast %107 : vector<1x1x4x4xf32> to vector<4x4xf32>
    %cst_52 = arith.constant dense<0.000000e+00> : vector<256x4xf32>
    %109 = tpu.matmul %106, %108, %cst_52 {dimension_numbers = #tpu.dot_dimension_numbers<[1], [0], [0], [1], [0, 0, 1, 1], [], []>} : vector<256x4xf32>, vector<4x4xf32>, vector<256x4xf32> -> vector<256x4xf32>
    %110 = arith.addf %104, %109 : vector<256x4xf32>
    %111 = vector.extract_strided_slice %78 {offsets = [1, 2, 0], sizes = [16, 16, 4], strides = [1, 1, 1]} : vector<18x18x4xf32> to vector<16x16x4xf32>
    %112 = vector.shape_cast %111 : vector<16x16x4xf32> to vector<256x4xf32>
    %113 = vector.extract_strided_slice %79 {offsets = [1, 2, 0, 0], sizes = [1, 1, 4, 4], strides = [1, 1, 1, 1]} : vector<3x3x4x4xf32> to vector<1x1x4x4xf32>
    %114 = vector.shape_cast %113 : vector<1x1x4x4xf32> to vector<4x4xf32>
    %cst_53 = arith.constant dense<0.000000e+00> : vector<256x4xf32>
    %115 = tpu.matmul %112, %114, %cst_53 {dimension_numbers = #tpu.dot_dimension_numbers<[1], [0], [0], [1], [0, 0, 1, 1], [], []>} : vector<256x4xf32>, vector<4x4xf32>, vector<256x4xf32> -> vector<256x4xf32>
    %116 = arith.addf %110, %115 : vector<256x4xf32>
    %117 = vector.extract_strided_slice %78 {offsets = [2, 0, 0], sizes = [16, 16, 4], strides = [1, 1, 1]} : vector<18x18x4xf32> to vector<16x16x4xf32>
    %118 = vector.shape_cast %117 : vector<16x16x4xf32> to vector<256x4xf32>
    %119 = vector.extract_strided_slice %79 {offsets = [2, 0, 0, 0], sizes = [1, 1, 4, 4], strides = [1, 1, 1, 1]} : vector<3x3x4x4xf32> to vector<1x1x4x4xf32>
    %120 = vector.shape_cast %119 : vector<1x1x4x4xf32> to vector<4x4xf32>
    %cst_54 = arith.constant dense<0.000000e+00> : vector<256x4xf32>
    %121 = tpu.matmul %118, %120, %cst_54 {dimension_numbers = #tpu.dot_dimension_numbers<[1], [0], [0], [1], [0, 0, 1, 1], [], []>} : vector<256x4xf32>, vector<4x4xf32>, vector<256x4xf32> -> vector<256x4xf32>
    %122 = arith.addf %116, %121 : vector<256x4xf32>
    %123 = vector.extract_strided_slice %78 {offsets = [2, 1, 0], sizes = [16, 16, 4], strides = [1, 1, 1]} : vector<18x18x4xf32> to vector<16x16x4xf32>
    %124 = vector.shape_cast %123 : vector<16x16x4xf32> to vector<256x4xf32>
    %125 = vector.extract_strided_slice %79 {offsets = [2, 1, 0, 0], sizes = [1, 1, 4, 4], strides = [1, 1, 1, 1]} : vector<3x3x4x4xf32> to vector<1x1x4x4xf32>
    %126 = vector.shape_cast %125 : vector<1x1x4x4xf32> to vector<4x4xf32>
    %cst_55 = arith.constant dense<0.000000e+00> : vector<256x4xf32>
    %127 = tpu.matmul %124, %126, %cst_55 {dimension_numbers = #tpu.dot_dimension_numbers<[1], [0], [0], [1], [0, 0, 1, 1], [], []>} : vector<256x4xf32>, vector<4x4xf32>, vector<256x4xf32> -> vector<256x4xf32>
    %128 = arith.addf %122, %127 : vector<256x4xf32>
    %129 = vector.extract_strided_slice %78 {offsets = [2, 2, 0], sizes = [16, 16, 4], strides = [1, 1, 1]} : vector<18x18x4xf32> to vector<16x16x4xf32>
    %130 = vector.shape_cast %129 : vector<16x16x4xf32> to vector<256x4xf32>
    %131 = vector.extract_strided_slice %79 {offsets = [2, 2, 0, 0], sizes = [1, 1, 4, 4], strides = [1, 1, 1, 1]} : vector<3x3x4x4xf32> to vector<1x1x4x4xf32>
    %132 = vector.shape_cast %131 : vector<1x1x4x4xf32> to vector<4x4xf32>
    %cst_56 = arith.constant dense<0.000000e+00> : vector<256x4xf32>
    %133 = tpu.matmul %130, %132, %cst_56 {dimension_numbers = #tpu.dot_dimension_numbers<[1], [0], [0], [1], [0, 0, 1, 1], [], []>} : vector<256x4xf32>, vector<4x4xf32>, vector<256x4xf32> -> vector<256x4xf32>
    %134 = arith.addf %128, %133 : vector<256x4xf32>
    %135 = vector.extract_strided_slice %7 {offsets = [2, 0], sizes = [1, 4], strides = [1, 1]} : vector<6x4xf32> to vector<1x4xf32>
    %136 = vector.broadcast %135 : vector<1x4xf32> to vector<256x4xf32>
    %137 = arith.mulf %134, %136 : vector<256x4xf32>
    %138 = vector.extract_strided_slice %7 {offsets = [3, 0], sizes = [1, 4], strides = [1, 1]} : vector<6x4xf32> to vector<1x4xf32>
    %139 = vector.broadcast %138 : vector<1x4xf32> to vector<256x4xf32>
    %140 = arith.addf %137, %139 : vector<256x4xf32>
    %141 = arith.addf %6, %76 : vector<256x4xf32>
    %142 = arith.negf %141 : vector<256x4xf32>
    %143 = math.exp %142 : vector<256x4xf32>
    %cst_57 = arith.constant 1.000000e+00 : f32
    %144 = vector.broadcast %cst_57 : f32 to vector<256x4xf32>
    %145 = arith.addf %144, %143 : vector<256x4xf32>
    %146 = arith.divf %144, %145 : vector<256x4xf32>
    %147 = arith.mulf %140, %146 : vector<256x4xf32>
    %148 = vector.shape_cast %147 : vector<256x4xf32> to vector<16x16x4xf32>
    %c1_58 = arith.constant 1 : index
    %c1_59 = arith.constant 1 : index
    %c0_60 = arith.constant 0 : index
    %149 = vector.load %arg9[%c1_58, %c1_59, %c0_60] : memref<18x18x4xf32, #tpu.memory_space<vmem>>, vector<16x16x4xf32>
    tpu.vector_store %arg9[%c1_58, %c1_59, %c0_60], %148 {strides = array<i32>} : memref<18x18x4xf32, #tpu.memory_space<vmem>>, vector<16x16x4xf32>,
    %c0_61 = arith.constant 0 : index
    %c0_62 = arith.constant 0 : index
    %c0_63 = arith.constant 0 : index
    %150 = vector.load %arg9[%c0_61, %c0_62, %c0_63] : memref<18x18x4xf32, #tpu.memory_space<vmem>>, vector<18x18x4xf32>
    %c0_64 = arith.constant 0 : index
    %c0_65 = arith.constant 0 : index
    %c0_66 = arith.constant 0 : index
    %c0_67 = arith.constant 0 : index
    %151 = vector.load %arg6[%c0_64, %c0_65, %c0_66, %c0_67] : memref<3x3x4x4xf32, #tpu.memory_space<vmem>>, vector<3x3x4x4xf32>
    %cst_68 = arith.constant 0.000000e+00 : f32
    %152 = vector.broadcast %cst_68 : f32 to vector<256x4xf32>
    %153 = vector.extract_strided_slice %150 {offsets = [0, 0, 0], sizes = [16, 16, 4], strides = [1, 1, 1]} : vector<18x18x4xf32> to vector<16x16x4xf32>
    %154 = vector.shape_cast %153 : vector<16x16x4xf32> to vector<256x4xf32>
    %155 = vector.extract_strided_slice %151 {offsets = [0, 0, 0, 0], sizes = [1, 1, 4, 4], strides = [1, 1, 1, 1]} : vector<3x3x4x4xf32> to vector<1x1x4x4xf32>
    %156 = vector.shape_cast %155 : vector<1x1x4x4xf32> to vector<4x4xf32>
    %cst_69 = arith.constant dense<0.000000e+00> : vector<256x4xf32>
    %157 = tpu.matmul %154, %156, %cst_69 {dimension_numbers = #tpu.dot_dimension_numbers<[1], [0], [0], [1], [0, 0, 1, 1], [], []>} : vector<256x4xf32>, vector<4x4xf32>, vector<256x4xf32> -> vector<256x4xf32>
    %158 = arith.addf %152, %157 : vector<256x4xf32>
    %159 = vector.extract_strided_slice %150 {offsets = [0, 1, 0], sizes = [16, 16, 4], strides = [1, 1, 1]} : vector<18x18x4xf32> to vector<16x16x4xf32>
    %160 = vector.shape_cast %159 : vector<16x16x4xf32> to vector<256x4xf32>
    %161 = vector.extract_strided_slice %151 {offsets = [0, 1, 0, 0], sizes = [1, 1, 4, 4], strides = [1, 1, 1, 1]} : vector<3x3x4x4xf32> to vector<1x1x4x4xf32>
    %162 = vector.shape_cast %161 : vector<1x1x4x4xf32> to vector<4x4xf32>
    %cst_70 = arith.constant dense<0.000000e+00> : vector<256x4xf32>
    %163 = tpu.matmul %160, %162, %cst_70 {dimension_numbers = #tpu.dot_dimension_numbers<[1], [0], [0], [1], [0, 0, 1, 1], [], []>} : vector<256x4xf32>, vector<4x4xf32>, vector<256x4xf32> -> vector<256x4xf32>
    %164 = arith.addf %158, %163 : vector<256x4xf32>
    %165 = vector.extract_strided_slice %150 {offsets = [0, 2, 0], sizes = [16, 16, 4], strides = [1, 1, 1]} : vector<18x18x4xf32> to vector<16x16x4xf32>
    %166 = vector.shape_cast %165 : vector<16x16x4xf32> to vector<256x4xf32>
    %167 = vector.extract_strided_slice %151 {offsets = [0, 2, 0, 0], sizes = [1, 1, 4, 4], strides = [1, 1, 1, 1]} : vector<3x3x4x4xf32> to vector<1x1x4x4xf32>
    %168 = vector.shape_cast %167 : vector<1x1x4x4xf32> to vector<4x4xf32>
    %cst_71 = arith.constant dense<0.000000e+00> : vector<256x4xf32>
    %169 = tpu.matmul %166, %168, %cst_71 {dimension_numbers = #tpu.dot_dimension_numbers<[1], [0], [0], [1], [0, 0, 1, 1], [], []>} : vector<256x4xf32>, vector<4x4xf32>, vector<256x4xf32> -> vector<256x4xf32>
    %170 = arith.addf %164, %169 : vector<256x4xf32>
    %171 = vector.extract_strided_slice %150 {offsets = [1, 0, 0], sizes = [16, 16, 4], strides = [1, 1, 1]} : vector<18x18x4xf32> to vector<16x16x4xf32>
    %172 = vector.shape_cast %171 : vector<16x16x4xf32> to vector<256x4xf32>
    %173 = vector.extract_strided_slice %151 {offsets = [1, 0, 0, 0], sizes = [1, 1, 4, 4], strides = [1, 1, 1, 1]} : vector<3x3x4x4xf32> to vector<1x1x4x4xf32>
    %174 = vector.shape_cast %173 : vector<1x1x4x4xf32> to vector<4x4xf32>
    %cst_72 = arith.constant dense<0.000000e+00> : vector<256x4xf32>
    %175 = tpu.matmul %172, %174, %cst_72 {dimension_numbers = #tpu.dot_dimension_numbers<[1], [0], [0], [1], [0, 0, 1, 1], [], []>} : vector<256x4xf32>, vector<4x4xf32>, vector<256x4xf32> -> vector<256x4xf32>
    %176 = arith.addf %170, %175 : vector<256x4xf32>
    %177 = vector.extract_strided_slice %150 {offsets = [1, 1, 0], sizes = [16, 16, 4], strides = [1, 1, 1]} : vector<18x18x4xf32> to vector<16x16x4xf32>
    %178 = vector.shape_cast %177 : vector<16x16x4xf32> to vector<256x4xf32>
    %179 = vector.extract_strided_slice %151 {offsets = [1, 1, 0, 0], sizes = [1, 1, 4, 4], strides = [1, 1, 1, 1]} : vector<3x3x4x4xf32> to vector<1x1x4x4xf32>
    %180 = vector.shape_cast %179 : vector<1x1x4x4xf32> to vector<4x4xf32>
    %cst_73 = arith.constant dense<0.000000e+00> : vector<256x4xf32>
    %181 = tpu.matmul %178, %180, %cst_73 {dimension_numbers = #tpu.dot_dimension_numbers<[1], [0], [0], [1], [0, 0, 1, 1], [], []>} : vector<256x4xf32>, vector<4x4xf32>, vector<256x4xf32> -> vector<256x4xf32>
    %182 = arith.addf %176, %181 : vector<256x4xf32>
    %183 = vector.extract_strided_slice %150 {offsets = [1, 2, 0], sizes = [16, 16, 4], strides = [1, 1, 1]} : vector<18x18x4xf32> to vector<16x16x4xf32>
    %184 = vector.shape_cast %183 : vector<16x16x4xf32> to vector<256x4xf32>
    %185 = vector.extract_strided_slice %151 {offsets = [1, 2, 0, 0], sizes = [1, 1, 4, 4], strides = [1, 1, 1, 1]} : vector<3x3x4x4xf32> to vector<1x1x4x4xf32>
    %186 = vector.shape_cast %185 : vector<1x1x4x4xf32> to vector<4x4xf32>
    %cst_74 = arith.constant dense<0.000000e+00> : vector<256x4xf32>
    %187 = tpu.matmul %184, %186, %cst_74 {dimension_numbers = #tpu.dot_dimension_numbers<[1], [0], [0], [1], [0, 0, 1, 1], [], []>} : vector<256x4xf32>, vector<4x4xf32>, vector<256x4xf32> -> vector<256x4xf32>
    %188 = arith.addf %182, %187 : vector<256x4xf32>
    %189 = vector.extract_strided_slice %150 {offsets = [2, 0, 0], sizes = [16, 16, 4], strides = [1, 1, 1]} : vector<18x18x4xf32> to vector<16x16x4xf32>
    %190 = vector.shape_cast %189 : vector<16x16x4xf32> to vector<256x4xf32>
    %191 = vector.extract_strided_slice %151 {offsets = [2, 0, 0, 0], sizes = [1, 1, 4, 4], strides = [1, 1, 1, 1]} : vector<3x3x4x4xf32> to vector<1x1x4x4xf32>
    %192 = vector.shape_cast %191 : vector<1x1x4x4xf32> to vector<4x4xf32>
    %cst_75 = arith.constant dense<0.000000e+00> : vector<256x4xf32>
    %193 = tpu.matmul %190, %192, %cst_75 {dimension_numbers = #tpu.dot_dimension_numbers<[1], [0], [0], [1], [0, 0, 1, 1], [], []>} : vector<256x4xf32>, vector<4x4xf32>, vector<256x4xf32> -> vector<256x4xf32>
    %194 = arith.addf %188, %193 : vector<256x4xf32>
    %195 = vector.extract_strided_slice %150 {offsets = [2, 1, 0], sizes = [16, 16, 4], strides = [1, 1, 1]} : vector<18x18x4xf32> to vector<16x16x4xf32>
    %196 = vector.shape_cast %195 : vector<16x16x4xf32> to vector<256x4xf32>
    %197 = vector.extract_strided_slice %151 {offsets = [2, 1, 0, 0], sizes = [1, 1, 4, 4], strides = [1, 1, 1, 1]} : vector<3x3x4x4xf32> to vector<1x1x4x4xf32>
    %198 = vector.shape_cast %197 : vector<1x1x4x4xf32> to vector<4x4xf32>
    %cst_76 = arith.constant dense<0.000000e+00> : vector<256x4xf32>
    %199 = tpu.matmul %196, %198, %cst_76 {dimension_numbers = #tpu.dot_dimension_numbers<[1], [0], [0], [1], [0, 0, 1, 1], [], []>} : vector<256x4xf32>, vector<4x4xf32>, vector<256x4xf32> -> vector<256x4xf32>
    %200 = arith.addf %194, %199 : vector<256x4xf32>
    %201 = vector.extract_strided_slice %150 {offsets = [2, 2, 0], sizes = [16, 16, 4], strides = [1, 1, 1]} : vector<18x18x4xf32> to vector<16x16x4xf32>
    %202 = vector.shape_cast %201 : vector<16x16x4xf32> to vector<256x4xf32>
    %203 = vector.extract_strided_slice %151 {offsets = [2, 2, 0, 0], sizes = [1, 1, 4, 4], strides = [1, 1, 1, 1]} : vector<3x3x4x4xf32> to vector<1x1x4x4xf32>
    %204 = vector.shape_cast %203 : vector<1x1x4x4xf32> to vector<4x4xf32>
    %cst_77 = arith.constant dense<0.000000e+00> : vector<256x4xf32>
    %205 = tpu.matmul %202, %204, %cst_77 {dimension_numbers = #tpu.dot_dimension_numbers<[1], [0], [0], [1], [0, 0, 1, 1], [], []>} : vector<256x4xf32>, vector<4x4xf32>, vector<256x4xf32> -> vector<256x4xf32>
    %206 = arith.addf %200, %205 : vector<256x4xf32>
    %207 = vector.extract_strided_slice %7 {offsets = [4, 0], sizes = [1, 4], strides = [1, 1]} : vector<6x4xf32> to vector<1x4xf32>
    %208 = vector.broadcast %207 : vector<1x4xf32> to vector<256x4xf32>
    %209 = arith.mulf %206, %208 : vector<256x4xf32>
    %210 = vector.extract_strided_slice %7 {offsets = [5, 0], sizes = [1, 4], strides = [1, 1]} : vector<6x4xf32> to vector<1x4xf32>
    %211 = vector.broadcast %210 : vector<1x4xf32> to vector<256x4xf32>
    %212 = arith.addf %209, %211 : vector<256x4xf32>
    %213 = vector.shape_cast %212 : vector<256x4xf32> to vector<1x16x16x4xf32>
    %c0_78 = arith.constant 0 : index
    %c0_79 = arith.constant 0 : index
    %c0_80 = arith.constant 0 : index
    %c0_81 = arith.constant 0 : index
    %214 = vector.load %arg8[%c0_78, %c0_79, %c0_80, %c0_81] : memref<1x16x16x4xf32, #tpu.memory_space<vmem>>, vector<1x16x16x4xf32>
    tpu.vector_store %arg8[%c0_78, %c0_79, %c0_80, %c0_81], %213 {strides = array<i32>} : memref<1x16x16x4xf32, #tpu.memory_space<vmem>>, vector<1x16x16x4xf32>,
    return
  }
  func.func @transform_0(%arg0: i32) -> (i32, i32, i32, i32) {
    %c0_i32 = arith.constant 0 : i32
    %c0_i32_0 = arith.constant 0 : i32
    %c0_i32_1 = arith.constant 0 : i32
    %c0_i32_2 = arith.constant 0 : i32
    return %arg0, %c0_i32, %c0_i32_0, %c0_i32_1 : i32, i32, i32, i32
  }
  func.func @transform_1(%arg0: i32) -> (i32, i32) {
    %c0_i32 = arith.constant 0 : i32
    %c0_i32_0 = arith.constant 0 : i32
    %c0_i32_1 = arith.constant 0 : i32
    return %c0_i32, %c0_i32_0 : i32, i32
  }
  func.func @transform_2(%arg0: i32) -> (i32, i32) {
    %c0_i32 = arith.constant 0 : i32
    %c0_i32_0 = arith.constant 0 : i32
    %c0_i32_1 = arith.constant 0 : i32
    return %c0_i32, %c0_i32_0 : i32, i32
  }
  func.func @transform_3(%arg0: i32) -> (i32, i32, i32, i32) {
    %c0_i32 = arith.constant 0 : i32
    %c0_i32_0 = arith.constant 0 : i32
    %c0_i32_1 = arith.constant 0 : i32
    %c0_i32_2 = arith.constant 0 : i32
    %c0_i32_3 = arith.constant 0 : i32
    return %c0_i32, %c0_i32_0, %c0_i32_1, %c0_i32_2 : i32, i32, i32, i32
  }
  func.func @transform_4(%arg0: i32) -> (i32, i32, i32, i32) {
    %c0_i32 = arith.constant 0 : i32
    %c0_i32_0 = arith.constant 0 : i32
    %c0_i32_1 = arith.constant 0 : i32
    %c0_i32_2 = arith.constant 0 : i32
    %c0_i32_3 = arith.constant 0 : i32
    return %c0_i32, %c0_i32_0, %c0_i32_1, %c0_i32_2 : i32, i32, i32, i32
  }
  func.func @transform_5(%arg0: i32) -> (i32, i32, i32, i32) {
    %c0_i32 = arith.constant 0 : i32
    %c0_i32_0 = arith.constant 0 : i32
    %c0_i32_1 = arith.constant 0 : i32
    %c0_i32_2 = arith.constant 0 : i32
    %c0_i32_3 = arith.constant 0 : i32
    return %c0_i32, %c0_i32_0, %c0_i32_1, %c0_i32_2 : i32, i32, i32, i32
  }
  func.func @transform_6(%arg0: i32) -> (i32, i32) {
    %c0_i32 = arith.constant 0 : i32
    %c0_i32_0 = arith.constant 0 : i32
    %c0_i32_1 = arith.constant 0 : i32
    return %c0_i32, %c0_i32_0 : i32, i32
  }
  func.func @transform_7(%arg0: i32) -> (i32, i32, i32, i32) {
    %c0_i32 = arith.constant 0 : i32
    %c0_i32_0 = arith.constant 0 : i32
    %c0_i32_1 = arith.constant 0 : i32
    %c0_i32_2 = arith.constant 0 : i32
    return %arg0, %c0_i32, %c0_i32_0, %c0_i32_1 : i32, i32, i32, i32
  }
}

</mosaic_0001>

<bundles_post_ra>
// kernel: scconv_forward.1
= control target key start
LH: loop header
LB: loop body
LE: loop exit
PB: predicated region body
PF: predicated region fallthrough
CT: control target
= control target key end

     0   :  { %s10419_s24 = smov 0   ;;  %s14904_s0 = inlined_call_operand.vmem [shape: f32[2,16,16,4], index: 0, kind: input, shape index: {}]   ;;  %s14905_s1 = inlined_call_operand.vmem [shape: f32[16,256], index: 1, kind: input, shape index: {}]   ;;  %s14906_s2 = inlined_call_operand.vmem [shape: f32[256,16], index: 2, kind: input, shape index: {}]   ;;  %s14907_s3 = inlined_call_operand.vmem [shape: f32[3,3,4,4], index: 3, kind: input, shape index: {}]   ;;  %s14908_s4 = inlined_call_operand.vmem [shape: f32[3,3,4,4], index: 4, kind: input, shape index: {}]   ;;  %s14909_s5 = inlined_call_operand.vmem [shape: f32[3,3,4,4], index: 5, kind: input, shape index: {}]   ;;  %s14910_s6 = inlined_call_operand.vmem [shape: f32[6,4], index: 6, kind: input, shape index: {}]   ;;  %s14911_s7 = inlined_call_operand.vmem [shape: f32[2,16,16,4], index: 7, kind: output, shape index: {}]  }
   0x1 LB: > { %s7807_s25 = sadd.s32 4294967295, %s10376_s24   ;;  %p7811_p0 = scmp.ge.s32.totalorder %s10376_s24, 1  ;;  %s10376_s24 = sphi %s10419_s24, %s17_s24  }
   0x2   : > { %p237_p1 = scmp.lt.s32.totalorder %s10376_s24, 3 }
   0x4   : > { %p238_p2 = pnand %p7811_p0, %p237_p1 }
   0x6   : > { %241 = sbr.rel (%p238_p2) target bundleno = 1512 (0x5e8), region = 48 }
   0xb   : > { %p10429_p3 = scmp.lt.s32.totalorder %s7807_s25, 1  ;;  %vm279_vm0 = vcmask 31744   ;;  %vm282_vm1 = vcmask 25600   ;;  %v376_v0 = vld [vmem:[%s14905_s1 + $0x8] sm:$0xff]  ;;  %v10378_v1 = vmov 0.0   ;;  %v375_v34 = vld [vmem:[%s14905_s1] sm:$0xff] }
   0xc   : > { %330 = vst.msk [vmem:[#allocation2 + $0x188] sm:$0xff] %vm279_vm0, %v10378_v1  ;;  %280 = vst.msk [vmem:[#allocation2] sm:$0xff] %vm279_vm0, %v10378_v1  ;;  %443 = vmatprep.mubr.f32.mxu0 %v376_v0  ;;  %v378_v35 = vld [vmem:[%s14905_s1 + $0x18] sm:$0xff]  ;;  %v377_v36 = vld [vmem:[%s14905_s1 + $0x10] sm:$0xff]  ;;  %vm335_vm2 = vcmask 29696   ;;  %vm514_vm3 = vcmask 1043456  }
   0xd   : > { %331 = vst.msk [vmem:[#allocation2 + $0x190] sm:$0x3] %vm282_vm1, %v10378_v1  ;;  %283 = vst.msk [vmem:[#allocation2 + $0x10] sm:$0x3] %vm282_vm1, %v10378_v1  ;;  %s15840_s25 = smov (!%p10429_p3, %s7807_s25), 1  ;;  %vm461_vm4 = vcmask 27648  }
   0xe   : > { %281 = vst.msk [vmem:[#allocation2 + $0x8] sm:$0xff] %vm279_vm0, %v10378_v1  ;;  %284 = vst.msk [vmem:[#allocation2 + $0x18] sm:$0xff] %vm279_vm0, %v10378_v1  ;;  %s8515_s29 = sshll.u32 %s15840_s25, 8  ;;  %v472_v37 = vld [vmem:[%s14907_s3] sm:$0xf]  ;;  %vm489_vm5 = vcmask 1042432  }
   0xf   : > { %285 = vst.msk [vmem:[#allocation2 + $0x20] sm:$0xff] %vm279_vm0, %v10378_v1  ;;  %287 = vst.msk [vmem:[#allocation2 + $0x30] sm:$0xff] %vm279_vm0, %v10378_v1  ;;  %s10556_s9 = scalar_lea.vmem %s14904_s0, %s8515_s29  ;;  %9215 = vmatprep.subr.msk.mxu1 %vm514_vm3, %v472_v37  ;;  %v474_v38 = vld [vmem:[%s14907_s3 + $0x8] sm:$0xf]  ;;  %v473_v39 = vld [vmem:[%s14907_s3 + $0x4] sm:$0xf]  ;;  %s14658_s26 = scalar_lea.vmem %s14911_s7, %s8515_s29 }
  0x10   : > { %286 = vst.msk [vmem:[#allocation2 + $0x28] sm:$0x3] %vm282_vm1, %v10378_v1  ;;  %289 = vst.msk [vmem:[#allocation2 + $0x40] sm:$0x3] %vm282_vm1, %v10378_v1  ;;  %v10559_v2 = vld [vmem:[%s10556_s9 + $0xf8] sm:$0xff]  ;;  %v10565_v4 = vld [vmem:[%s10556_s9 + $0xf0] sm:$0xff]  ;;  %9216 = vmatpush3.msk.msra.mxu1 %vm514_vm3, %v472_v37 }
  0x11   : > { %288 = vst.msk [vmem:[#allocation2 + $0x38] sm:$0xff] %vm279_vm0, %v10378_v1  ;;  %290 = vst.msk [vmem:[#allocation2 + $0x48] sm:$0xff] %vm279_vm0, %v10378_v1  ;;  %v10562_v3 = vld [vmem:[%s10556_s9 + $0x78] sm:$0xff]  ;;  %8517 = vmatprep.subr.mxu0 %v10559_v2  ;;  %v10575_v5 = vld [vmem:[%s10556_s9 + $0x70] sm:$0xff]  ;;  %9220 = vmatprep.subr.msk.mxu1 %vm514_vm3, %v474_v38  ;;  %vm490_vm6 = vcmask 1046532   ;;  %vm677_vm7 = vcmask 1041408  }
  0x12   : > { %291 = vst.msk [vmem:[#allocation2 + $0x50] sm:$0xff] %vm279_vm0, %v10378_v1  ;;  %293 = vst.msk [vmem:[#allocation2 + $0x60] sm:$0xff] %vm279_vm0, %v10378_v1  ;;  %v10578_v6 = vld [vmem:[%s10556_s9 + $0xe8] sm:$0xff]  ;;  %8518 = vmatpush3.msra.mxu0 %v10562_v3  ;;  %v10591_v8 = vld [vmem:[%s10556_s9 + $0xe0] sm:$0xff]  ;;  %vm678_vm8 = vcmask 1045508   ;;  %vm1353_vm11 = vcmask 130048  }
  0x13   : > { %292 = vst.msk [vmem:[#allocation2 + $0x58] sm:$0x3] %vm282_vm1, %v10378_v1  ;;  %295 = vst.msk [vmem:[#allocation2 + $0x70] sm:$0x3] %vm282_vm1, %v10378_v1  ;;  %v10581_v7 = vld [vmem:[%s10556_s9 + $0x68] sm:$0xff]  ;;  %v10594_v9 = vld [vmem:[%s10556_s9 + $0x60] sm:$0xff]  ;;  %8519 = vmatprep.subr.mxu0 %v10565_v4 }
  0x14   : > { %294 = vst.msk [vmem:[#allocation2 + $0x68] sm:$0xff] %vm279_vm0, %v10378_v1  ;;  %296 = vst.msk [vmem:[#allocation2 + $0x78] sm:$0xff] %vm279_vm0, %v10378_v1  ;;  %v10597_v10 = vld [vmem:[%s10556_s9 + $0xd8] sm:$0xff]  ;;  %v10610_v12 = vld [vmem:[%s10556_s9 + $0xd0] sm:$0xff]  ;;  %8520 = vmatpush3.msra.mxu0 %v10575_v5  ;;  %vm2484_vm12 = vcmask 1045504   ;;  %vm1819_vm13 = vcmask 1046528  }
  0x15   : > { %297 = vst.msk [vmem:[#allocation2 + $0x80] sm:$0xff] %vm279_vm0, %v10378_v1  ;;  %299 = vst.msk [vmem:[#allocation2 + $0x90] sm:$0xff] %vm279_vm0, %v10378_v1  ;;  %v10607_v11 = vld [vmem:[%s10556_s9 + $0x58] sm:$0xff]  ;;  %v10613_v13 = vld [vmem:[%s10556_s9 + $0x50] sm:$0xff]  ;;  %8521 = vmatprep.subr.mxu0 %v10578_v6 }
  0x16   : > { %298 = vst.msk [vmem:[#allocation2 + $0x88] sm:$0x3] %vm282_vm1, %v10378_v1  ;;  %301 = vst.msk [vmem:[#allocation2 + $0xa0] sm:$0x3] %vm282_vm1, %v10378_v1  ;;  %v10623_v14 = vld [vmem:[%s10556_s9 + $0xc8] sm:$0xff]  ;;  %v10629_v16 = vld [vmem:[%s10556_s9 + $0xc0] sm:$0xff]  ;;  %8522 = vmatpush3.msra.mxu0 %v10581_v7 }
  0x17   : > { %300 = vst.msk [vmem:[#allocation2 + $0x98] sm:$0xff] %vm279_vm0, %v10378_v1  ;;  %302 = vst.msk [vmem:[#allocation2 + $0xa8] sm:$0xff] %vm279_vm0, %v10378_v1  ;;  %v10626_v15 = vld [vmem:[%s10556_s9 + $0x48] sm:$0xff]  ;;  %v10639_v17 = vld [vmem:[%s10556_s9 + $0x40] sm:$0xff]  ;;  %8523 = vmatprep.subr.mxu0 %v10591_v8 }
  0x18   : > { %303 = vst.msk [vmem:[#allocation2 + $0xb0] sm:$0xff] %vm279_vm0, %v10378_v1  ;;  %305 = vst.msk [vmem:[#allocation2 + $0xc0] sm:$0xff] %vm279_vm0, %v10378_v1  ;;  %v10642_v18 = vld [vmem:[%s10556_s9 + $0xb8] sm:$0xff]  ;;  %v10655_v20 = vld [vmem:[%s10556_s9 + $0xb0] sm:$0xff]  ;;  %8524 = vmatpush3.msra.mxu0 %v10594_v9 }
  0x19   : > { %304 = vst.msk [vmem:[#allocation2 + $0xb8] sm:$0x3] %vm282_vm1, %v10378_v1  ;;  %307 = vst.msk [vmem:[#allocation2 + $0xd0] sm:$0x3] %vm282_vm1, %v10378_v1  ;;  %v10645_v19 = vld [vmem:[%s10556_s9 + $0x38] sm:$0xff]  ;;  %v10658_v21 = vld [vmem:[%s10556_s9 + $0x30] sm:$0xff]  ;;  %8525 = vmatprep.subr.mxu0 %v10597_v10 }
  0x1a   : > { %306 = vst.msk [vmem:[#allocation2 + $0xc8] sm:$0xff] %vm279_vm0, %v10378_v1  ;;  %308 = vst.msk [vmem:[#allocation2 + $0xd8] sm:$0xff] %vm279_vm0, %v10378_v1  ;;  %v10661_v22 = vld [vmem:[%s10556_s9 + $0xa8] sm:$0xff]  ;;  %v10674_v24 = vld [vmem:[%s10556_s9 + $0xa0] sm:$0xff]  ;;  %8526 = vmatpush3.msra.mxu0 %v10607_v11 }
  0x1b   : > { %309 = vst.msk [vmem:[#allocation2 + $0xe0] sm:$0xff] %vm279_vm0, %v10378_v1  ;;  %311 = vst.msk [vmem:[#allocation2 + $0xf0] sm:$0xff] %vm279_vm0, %v10378_v1  ;;  %v10671_v23 = vld [vmem:[%s10556_s9 + $0x28] sm:$0xff]  ;;  %v10677_v25 = vld [vmem:[%s10556_s9 + $0x20] sm:$0xff]  ;;  %8527 = vmatprep.subr.mxu0 %v10610_v12 }
  0x1c   : > { %310 = vst.msk [vmem:[#allocation2 + $0xe8] sm:$0x3] %vm282_vm1, %v10378_v1  ;;  %313 = vst.msk [vmem:[#allocation2 + $0x100] sm:$0x3] %vm282_vm1, %v10378_v1  ;;  %v10687_v26 = vld [vmem:[%s10556_s9 + $0x98] sm:$0xff]  ;;  %v10693_v28 = vld [vmem:[%s10556_s9 + $0x90] sm:$0xff]  ;;  %8528 = vmatpush3.msra.mxu0 %v10613_v13 }
  0x1d   : > { %312 = vst.msk [vmem:[#allocation2 + $0xf8] sm:$0xff] %vm279_vm0, %v10378_v1  ;;  %314 = vst.msk [vmem:[#allocation2 + $0x108] sm:$0xff] %vm279_vm0, %v10378_v1  ;;  %v10690_v27 = vld [vmem:[%s10556_s9 + $0x18] sm:$0xff]  ;;  %v10703_v29 = vld [vmem:[%s10556_s9 + $0x10] sm:$0xff]  ;;  %8529 = vmatprep.subr.mxu0 %v10623_v14 }
  0x1e   : > { %315 = vst.msk [vmem:[#allocation2 + $0x110] sm:$0xff] %vm279_vm0, %v10378_v1  ;;  %317 = vst.msk [vmem:[#allocation2 + $0x120] sm:$0xff] %vm279_vm0, %v10378_v1  ;;  %v10706_v30 = vld [vmem:[%s10556_s9 + $0x88] sm:$0xff]  ;;  %v10719_v32 = vld [vmem:[%s10556_s9 + $0x80] sm:$0xff]  ;;  %8530 = vmatpush3.msra.mxu0 %v10626_v15 }
  0x1f   : > { %316 = vst.msk [vmem:[#allocation2 + $0x118] sm:$0x3] %vm282_vm1, %v10378_v1  ;;  %319 = vst.msk [vmem:[#allocation2 + $0x130] sm:$0x3] %vm282_vm1, %v10378_v1  ;;  %v10709_v31 = vld [vmem:[%s10556_s9 + $0x8] sm:$0xff]  ;;  %v10722_v33 = vld [vmem:[%s10556_s9] sm:$0xff]  ;;  %8531 = vmatprep.subr.mxu0 %v10629_v16 }
  0x20   : > { %318 = vst.msk [vmem:[#allocation2 + $0x128] sm:$0xff] %vm279_vm0, %v10378_v1  ;;  %320 = vst.msk [vmem:[#allocation2 + $0x138] sm:$0xff] %vm279_vm0, %v10378_v1  ;;  %8532 = vmatpush3.msra.mxu0 %v10639_v17 }
  0x21   : > { %321 = vst.msk [vmem:[#allocation2 + $0x140] sm:$0xff] %vm279_vm0, %v10378_v1  ;;  %323 = vst.msk [vmem:[#allocation2 + $0x150] sm:$0xff] %vm279_vm0, %v10378_v1  ;;  %8533 = vmatprep.subr.mxu0 %v10642_v18 }
  0x22   : > { %322 = vst.msk [vmem:[#allocation2 + $0x148] sm:$0x3] %vm282_vm1, %v10378_v1  ;;  %325 = vst.msk [vmem:[#allocation2 + $0x160] sm:$0x3] %vm282_vm1, %v10378_v1  ;;  %8534 = vmatpush3.msra.mxu0 %v10645_v19 }
  0x23   : > { %324 = vst.msk [vmem:[#allocation2 + $0x158] sm:$0xff] %vm279_vm0, %v10378_v1  ;;  %326 = vst.msk [vmem:[#allocation2 + $0x168] sm:$0xff] %vm279_vm0, %v10378_v1  ;;  %8535 = vmatprep.subr.mxu0 %v10655_v20 }
  0x24   : > { %327 = vst.msk [vmem:[#allocation2 + $0x170] sm:$0xff] %vm279_vm0, %v10378_v1  ;;  %329 = vst.msk [vmem:[#allocation2 + $0x180] sm:$0xff] %vm279_vm0, %v10378_v1  ;;  %8536 = vmatpush3.msra.mxu0 %v10658_v21 }
  0x25   : > { %328 = vst.msk [vmem:[#allocation2 + $0x178] sm:$0x3] %vm282_vm1, %v10378_v1  ;;  %334 = vst.msk [vmem:[#allocation2 + $0x1a8] sm:$0x3] %vm282_vm1, %v10378_v1  ;;  %8537 = vmatprep.subr.mxu0 %v10661_v22 }
  0x26   : > { %332 = vst.msk [vmem:[#allocation2 + $0x198] sm:$0xff] %vm279_vm0, %v10378_v1  ;;  %333 = vst.msk [vmem:[#allocation2 + $0x1a0] sm:$0xff] %vm279_vm0, %v10378_v1  ;;  %8538 = vmatpush3.msra.mxu0 %v10671_v23 }
  0x27   : > { %15092 = vst [vmem:[#allocation4_spill] sm:$0xff] %v10559_v2  ;;  %15093 = vst [vmem:[#allocation5_spill] sm:$0xff] %v10562_v3  ;;  %8539 = vmatprep.subr.mxu0 %v10674_v24 }
  0x28   : > { %15094 = vst [vmem:[#allocation6_spill] sm:$0xff] %v10565_v4  ;;  %1707 = vst.msk [vmem:[#allocation2 + $0x189] sm:$0xff] %vm279_vm0, %v10559_v2  ;;  %8540 = vmatpush3.msra.mxu0 %v10677_v25 }
  0x29   : > { %1691 = vst.msk [vmem:[#allocation2 + $0xc9] sm:$0xff] %vm279_vm0, %v10562_v3  ;;  %1706 = vst.msk [vmem:[#allocation2 + $0x181] sm:$0xff] %vm279_vm0, %v10565_v4  ;;  %8541 = vmatprep.subr.mxu0 %v10687_v26 }
  0x2a   : > { %15095 = vst [vmem:[#allocation7_spill] sm:$0xff] %v10575_v5  ;;  %15096 = vst [vmem:[#allocation8_spill] sm:$0xff] %v10578_v6  ;;  %8542 = vmatpush3.msra.mxu0 %v10690_v27 }
  0x2b   : > { %15097 = vst [vmem:[#allocation9_spill] sm:$0xff] %v10581_v7  ;;  %1690 = vst.msk [vmem:[#allocation2 + $0xc1] sm:$0xff] %vm279_vm0, %v10575_v5  ;;  %8543 = vmatprep.subr.mxu0 %v10693_v28 }
  0x2c   : > { %1705 = vst.msk [vmem:[#allocation2 + $0x171] sm:$0xff] %vm279_vm0, %v10578_v6  ;;  %1689 = vst.msk [vmem:[#allocation2 + $0xb1] sm:$0xff] %vm279_vm0, %v10581_v7  ;;  %8544 = vmatpush3.msra.mxu0 %v10703_v29 }
  0x2d   : > { %15098 = vst [vmem:[#allocation10_spill] sm:$0xff] %v10591_v8  ;;  %15099 = vst [vmem:[#allocation11_spill] sm:$0xff] %v10594_v9  ;;  %8545 = vmatprep.subr.mxu0 %v10706_v30 }
  0x2e   : > { %15100 = vst [vmem:[#allocation12_spill] sm:$0xff] %v10597_v10  ;;  %1704 = vst.msk [vmem:[#allocation2 + $0x169] sm:$0xff] %vm279_vm0, %v10591_v8  ;;  %8546 = vmatpush3.msra.mxu0 %v10709_v31 }
  0x2f   : > { %1688 = vst.msk [vmem:[#allocation2 + $0xa9] sm:$0xff] %vm279_vm0, %v10594_v9  ;;  %1703 = vst.msk [vmem:[#allocation2 + $0x159] sm:$0xff] %vm279_vm0, %v10597_v10  ;;  %8547 = vmatprep.subr.mxu0 %v10719_v32 }
  0x30   : > { %15101 = vst [vmem:[#allocation13_spill] sm:$0xff] %v10607_v11  ;;  %15102 = vst [vmem:[#allocation14_spill] sm:$0xff] %v10610_v12  ;;  %8548 = vmatpush3.msra.mxu0 %v10722_v33 }
  0x31   : > { %15103 = vst [vmem:[#allocation15_spill] sm:$0xff] %v10613_v13  ;;  %1687 = vst.msk [vmem:[#allocation2 + $0x99] sm:$0xff] %vm279_vm0, %v10607_v11  ;;  %444 = vmatmul.mubr.f32.vlgmr.msra.gmra.mxu0 %v375_v34  ;;  %9210 = vmatprep.subr.msk.mxu0 %vm514_vm3, %v473_v39 }
  0x32   : > { %1702 = vst.msk [vmem:[#allocation2 + $0x151] sm:$0xff] %vm279_vm0, %v10610_v12  ;;  %1686 = vst.msk [vmem:[#allocation2 + $0x91] sm:$0xff] %vm279_vm0, %v10613_v13  ;;  %448 = vmatprep.mubr.f32.mxu0 %v378_v35  ;;  %9211 = vmatpush3.msk.msra.mxu0 %vm514_vm3, %v473_v39  ;;  %v11198_v11 = vld [vmem:[#allocation2 + $0xc0] sm:$0xff] }
  0x33   : > { %15104 = vst [vmem:[#allocation16_spill] sm:$0xff] %v10623_v14  ;;  %15105 = vst [vmem:[#allocation17_spill] sm:$0xff] %v10626_v15 }
  0x34   : > { %15106 = vst [vmem:[#allocation18_spill] sm:$0xff] %v10629_v16  ;;  %1701 = vst.msk [vmem:[#allocation2 + $0x141] sm:$0xff] %vm279_vm0, %v10623_v14  ;;  %v11196_v14 = vld [vmem:[#allocation2 + $0xb8] sm:$0x3] }
  0x35   : > { %1685 = vst.msk [vmem:[#allocation2 + $0x81] sm:$0xff] %vm279_vm0, %v10626_v15  ;;  %1700 = vst.msk [vmem:[#allocation2 + $0x139] sm:$0xff] %vm279_vm0, %v10629_v16  ;;  %449 = vmatmul.mubr.f32.gmra.mxu0 %v377_v36  ;;  %v11219_v15 = vld [vmem:[#allocation2 + $0xd0] sm:$0x3] }
  0x36   : > { %15107 = vst [vmem:[#allocation19_spill] sm:$0xff] %v10639_v17  ;;  %15108 = vst [vmem:[#allocation20_spill] sm:$0xff] %v10642_v18  ;;  %v11175_v10 = vld [vmem:[#allocation2 + $0xa8] sm:$0xff]  ;;  %v11177_v7 = vld [vmem:[#allocation2 + $0xb0] sm:$0xff] }
  0x37   : > { %15109 = vst [vmem:[#allocation21_spill] sm:$0xff] %v10645_v19  ;;  %1684 = vst.msk [vmem:[#allocation2 + $0x79] sm:$0xff] %vm279_vm0, %v10639_v17  ;;  %v1855_v16 = vrot.slane %v11175_v10, 1  ;;  %v1856_v13 = vrot.slane %v11177_v7, 1  ;;  %v1860_v17 = vrot.slane %v11198_v11, 1 }
  0x38   : > { %1699 = vst.msk [vmem:[#allocation2 + $0x129] sm:$0xff] %vm279_vm0, %v10642_v18  ;;  %1683 = vst.msk [vmem:[#allocation2 + $0x69] sm:$0xff] %vm279_vm0, %v10645_v19  ;;  %v11173_v9 = vld [vmem:[#allocation2 + $0xa0] sm:$0x3] }
  0x39   : > { %15110 = vst [vmem:[#allocation22_spill] sm:$0xff] %v10655_v20  ;;  %15111 = vst [vmem:[#allocation23_spill] sm:$0xff] %v10658_v21  ;;  %v11150_v8 = vld [vmem:[#allocation2 + $0x90] sm:$0xff]  ;;  %v11152_v6 = vld [vmem:[#allocation2 + $0x98] sm:$0xff] }
  0x3a   : > { %15112 = vst [vmem:[#allocation24_spill] sm:$0xff] %v10661_v22  ;;  %1698 = vst.msk [vmem:[#allocation2 + $0x121] sm:$0xff] %vm279_vm0, %v10655_v20  ;;  %v1851_v12 = vrot.slane %v11152_v6, 1  ;;  %v11200_v20 = vld [vmem:[#allocation2 + $0xc8] sm:$0xff] }
  0x3b   : > { %1682 = vst.msk [vmem:[#allocation2 + $0x61] sm:$0xff] %vm279_vm0, %v10658_v21  ;;  %1697 = vst.msk [vmem:[#allocation2 + $0x111] sm:$0xff] %vm279_vm0, %v10661_v22  ;;  %v1861_v18 = vrot.slane %v11200_v20, 1 }
  0x3c   : > { %15113 = vst [vmem:[#allocation25_spill] sm:$0xff] %v10671_v23  ;;  %15114 = vst [vmem:[#allocation26_spill] sm:$0xff] %v10674_v24  ;;  %v11146_v2 = vld [vmem:[#allocation2 + $0x88] sm:$0x3] }
  0x3d   : > { %15115 = vst [vmem:[#allocation27_spill] sm:$0xff] %v10677_v25  ;;  %1681 = vst.msk [vmem:[#allocation2 + $0x51] sm:$0xff] %vm279_vm0, %v10671_v23 }
  0x3e   : > { %1696 = vst.msk [vmem:[#allocation2 + $0x109] sm:$0xff] %vm279_vm0, %v10674_v24  ;;  %1680 = vst.msk [vmem:[#allocation2 + $0x49] sm:$0xff] %vm279_vm0, %v10677_v25 }
  0x3f   : > { %15116 = vst [vmem:[#allocation28_spill] sm:$0xff] %v10687_v26  ;;  %15117 = vst [vmem:[#allocation29_spill] sm:$0xff] %v10690_v27 }
  0x40   : > { %15118 = vst [vmem:[#allocation30_spill] sm:$0xff] %v10693_v28  ;;  %1695 = vst.msk [vmem:[#allocation2 + $0xf9] sm:$0xff] %vm279_vm0, %v10687_v26 }
  0x41   : > { %1679 = vst.msk [vmem:[#allocation2 + $0x39] sm:$0xff] %vm279_vm0, %v10690_v27  ;;  %1694 = vst.msk [vmem:[#allocation2 + $0xf1] sm:$0xff] %vm279_vm0, %v10693_v28 }
  0x42   : > { %15119 = vst [vmem:[#allocation31_spill] sm:$0xff] %v10703_v29  ;;  %15120 = vst [vmem:[#allocation32_spill] sm:$0xff] %v10706_v30  ;;  %v11288_v3 = vld [vmem:[#allocation2 + $0x118] sm:$0x3] }
  0x43   : > { %15121 = vst [vmem:[#allocation33_spill] sm:$0xff] %v10709_v31  ;;  %1678 = vst.msk [vmem:[#allocation2 + $0x31] sm:$0xff] %vm279_vm0, %v10703_v29 }
  0x44   : > { %1693 = vst.msk [vmem:[#allocation2 + $0xe1] sm:$0xff] %vm279_vm0, %v10706_v30  ;;  %1677 = vst.msk [vmem:[#allocation2 + $0x21] sm:$0xff] %vm279_vm0, %v10709_v31  ;;  %v11290_v31 = vld [vmem:[#allocation2 + $0x120] sm:$0xff] }
  0x45   : > { %15122 = vst [vmem:[#allocation34_spill] sm:$0xff] %v10719_v32  ;;  %15123 = vst [vmem:[#allocation35_spill] sm:$0xff] %v10722_v33  ;;  %v11267_v30 = vld [vmem:[#allocation2 + $0x108] sm:$0xff]  ;;  %v11269_v27 = vld [vmem:[#allocation2 + $0x110] sm:$0xff] }
  0x46   : > { %1692 = vst.msk [vmem:[#allocation2 + $0xd9] sm:$0xff] %vm279_vm0, %v10719_v32  ;;  %1676 = vst.msk [vmem:[#allocation2 + $0x19] sm:$0xff] %vm279_vm0, %v10722_v33  ;;  %v1875_v5 = vrot.slane %v11267_v30, 1  ;;  %v1876_v33 = vrot.slane %v11269_v27, 1 }
  0x47   : > { %336 = vst.msk [vmem:[#allocation3] sm:$0x3f] %vm335_vm2, %v10378_v1  ;;  %337 = vst.msk [vmem:[#allocation3 + $0x8] sm:$0x3f] %vm335_vm2, %v10378_v1  ;;  %v11265_v29 = vld [vmem:[#allocation2 + $0x100] sm:$0x3] }
  0x48   : > { %338 = vst.msk [vmem:[#allocation3 + $0x10] sm:$0x3f] %vm335_vm2, %v10378_v1  ;;  %341 = vst.msk [vmem:[#allocation3 + $0x28] sm:$0x3f] %vm335_vm2, %v10378_v1  ;;  %v11244_v25 = vld [vmem:[#allocation2 + $0xf0] sm:$0xff]  ;;  %v11246_v26 = vld [vmem:[#allocation2 + $0xf8] sm:$0xff] }
  0x49   : > { %339 = vst.msk [vmem:[#allocation3 + $0x18] sm:$0x3f] %vm335_vm2, %v10378_v1  ;;  %340 = vst.msk [vmem:[#allocation3 + $0x20] sm:$0x3f] %vm335_vm2, %v10378_v1  ;;  %v1870_v23 = vrot.slane %v11244_v25, 1  ;;  %v1871_v32 = vrot.slane %v11246_v26, 1 }
  0x4a   : > { %vm10783_vm9 = vmor %vm489_vm5, %vm490_vm6  ;;  %15134 = vst [vmem:[#allocation42_spill] sm:$0xff] %v11150_v8 }
  0x4b   : > { %vm10787_vm10 = vmor %vm677_vm7, %vm678_vm8  ;;  %15137 = vst [vmem:[#allocation45_spill] sm:$0xff] %v11175_v10  ;;  %v11242_v28 = vld [vmem:[#allocation2 + $0xe8] sm:$0x3] }
  0x4c   : > { %15140 = vst [vmem:[#allocation48_spill] sm:$0xff] %v11198_v11  ;;  %15146 = vst [vmem:[#allocation54_spill] sm:$0xff] %v11244_v25 }
  0x4d   : > { %v11221_v24 = vld [vmem:[#allocation2 + $0xd8] sm:$0xff]  ;;  %v11223_v21 = vld [vmem:[#allocation2 + $0xe0] sm:$0xff]  ;;  %15149 = vst [vmem:[#allocation57_spill] sm:$0xff] %v11267_v30 }
  0x4e   : > { %v466_v45 = vld [vmem:[#allocation3] sm:$0x3f]  ;;  %15143 = vst [vmem:[#allocation51_spill] sm:$0xff] %v11221_v24  ;;  %v1865_v22 = vrot.slane %v11221_v24, 1  ;;  %v1866_v19 = vrot.slane %v11223_v21, 1 }
  0x4f   : > { %v485_v48 = vcombine.high %v466_v45, %v466_v45  ;;  %v7816_v51 = vrot.slane %v466_v45, 9  ;;  %v7826_v53 = vrot.slane %v466_v45, 10 }
  0x51   : > { %v494_v52 = vrot.slane %v485_v48, 5  ;;  %v682_v54 = vrot.slane %v485_v48, 6 }
  0x53   : > { %v495_v0 = vsel %vm10783_vm9, %v7816_v51, %v494_v52  ;;  %v683_v34 = vsel %vm10787_vm10, %v7826_v53, %v682_v54 }
  0xf1   : > { %v8549_v40 = vpop.f32.mrf.mxu0 }
  0xf3   : > { %v8550_v41 = vpop.f32.mrf.mxu0 }
  0xf4   : > { %v8551_v42 = vadd.f32 %v8550_v41, %v8549_v40 }
  0xf5   : > { %v8552_v43 = vpop.f32.mrf.mxu0 }
  0xf6   : > { %v456_v44 = vcombine.high %v8551_v42, %v8551_v42  ;;  %462 = vst.msk [vmem:[#allocation3 + $0x9] sm:$0xf] %vm461_vm4, %v8551_v42 }
  0xf7   : > { %v8553_v46 = vpop.f32.mrf.mxu0 }
  0xf8   : > { %463 = vst.msk [vmem:[#allocation3 + $0x11] sm:$0xf] %vm461_vm4, %v456_v44  ;;  %v8554_v47 = vadd.f32 %v8553_v46, %v8552_v43 }
  0xfa   : > { %v457_v49 = vcombine.high %v8554_v47, %v8554_v47  ;;  %464 = vst.msk [vmem:[#allocation3 + $0x19] sm:$0xf] %vm461_vm4, %v8554_v47 }
  0xfc   : > { %465 = vst.msk [vmem:[#allocation3 + $0x21] sm:$0xf] %vm461_vm4, %v457_v49  ;;  %v475_v49 = vld [vmem:[%s14907_s3 + $0xc] sm:$0xf] }
  0xfd   : > { %v467_v50 = vld [vmem:[#allocation3 + $0x8] sm:$0x3f] }
  0xfe   : > { %v486_v56 = vcombine.high %v467_v50, %v467_v50  ;;  %v593_v57 = vcombine.low %v466_v45, %v467_v50  ;;  %v7817_v1 = vrot.slane %v467_v50, 9  ;;  %v7827_v35 = vrot.slane %v467_v50, 10 }
  0xff   : > { %v468_v59 = vld [vmem:[#allocation3 + $0x10] sm:$0x3f] }
 0x100   : > { %9217 = vmatprep.mubr.msk.f32.mxu1 %vm279_vm0, %v593_v57  ;;  %v487_v60 = vcombine.high %v468_v59, %v468_v59  ;;  %v498_v61 = vrot.slane %v486_v56, 5  ;;  %v686_v62 = vrot.slane %v486_v56, 6  ;;  %v7818_v40 = vrot.slane %v468_v59, 9 }
 0x101   : > { %v469_v63 = vld [vmem:[#allocation3 + $0x18] sm:$0x3f]  ;;  %v7828_v51 = vrot.slane %v468_v59, 10 }
 0x102   : > { %v488_v36 = vcombine.high %v469_v63, %v469_v63  ;;  %v502_v37 = vrot.slane %v487_v60, 5  ;;  %v594_v39 = vcombine.low %v468_v59, %v469_v63  ;;  %v499_v41 = vsel %vm10783_vm9, %v7817_v1, %v498_v61  ;;  %v476_v1 = vld [vmem:[%s14907_s3 + $0x10] sm:$0xf] }
 0x103   : > { %v687_v42 = vsel %vm10787_vm10, %v7827_v35, %v686_v62  ;;  %v690_v43 = vrot.slane %v487_v60, 6  ;;  %v10800_v44 = vld [vmem:[#allocation3 + $0x20] sm:$0x3f]  ;;  %v7819_v45 = vrot.slane %v469_v63, 9  ;;  %v508_v47 = vcombine.low %v495_v0, %v499_v41 }
 0x104   : > { %v506_v46 = vrot.slane %v488_v36, 5  ;;  %9218 = vmatmul.mubr.msk.f32.vlgmr.msra.gmra.mxu1 %vm279_vm0, %v594_v39  ;;  %v696_v48 = vcombine.low %v683_v34, %v687_v42  ;;  %v7829_v52 = vrot.slane %v469_v63, 10  ;;  %v694_v53 = vrot.slane %v488_v36, 6 }
 0x105   : > { %9221 = vmatpush3.msk.msra.mxu1 %vm514_vm3, %v474_v38  ;;  %9212 = vmatprep.mubr.msk.f32.mxu0 %vm279_vm0, %v508_v47  ;;  %v503_v54 = vsel %vm10783_vm9, %v7818_v40, %v502_v37  ;;  %v869_v57 = vcombine.high %v10800_v44, %v10800_v44  ;;  %v691_v38 = vsel %vm10787_vm10, %v7828_v51, %v690_v43  ;;  %v7836_v35 = vrot.slane %v10800_v44, 9  ;;  %v471_v43 = vld [vmem:[#allocation3 + $0x28] sm:$0x3f] }
 0x106   : > { %9222 = vmatprep.mubr.msk.f32.mxu1 %vm279_vm0, %v696_v48  ;;  %v507_v56 = vsel %vm10783_vm9, %v7819_v45, %v506_v46  ;;  %v695_v61 = vsel %vm10787_vm10, %v7829_v52, %v694_v53  ;;  %9225 = vmatprep.subr.msk.mxu1 %vm514_vm3, %v475_v49  ;;  %v783_v0 = vcombine.low %v467_v50, %v468_v59  ;;  %v477_v59 = vld [vmem:[%s14907_s3 + $0x14] sm:$0xf]  ;;  %v478_v47 = vld [vmem:[%s14907_s3 + $0x18] sm:$0xf]  ;;  %v7847_v51 = vrot.slane %v471_v43, 9 }
 0x107   : > { %v509_v60 = vcombine.low %v503_v54, %v507_v56  ;;  %v697_v62 = vcombine.low %v691_v38, %v695_v61  ;;  %v872_v34 = vrot.slane %v869_v57, 5  ;;  %v784_v36 = vcombine.low %v469_v63, %v10800_v44 }
 0x108   : > { %v874_v37 = vcombine.low %v499_v41, %v503_v54  ;;  %v962_v40 = vrot.slane %v869_v57, 6  ;;  %v7840_v63 = vrot.slane %v10800_v44, 10  ;;  %v964_v41 = vcombine.low %v687_v42, %v691_v38  ;;  %v479_v42 = vld [vmem:[%s14907_s3 + $0x1c] sm:$0xf] }
 0x109   : > { %9213 = vmatmul.mubr.msk.f32.vlgmr.msra.gmra.mxu0 %vm279_vm0, %v509_v60  ;;  %9223 = vmatmul.mubr.msk.f32.vlgmr.msra.gmra.mxu1 %vm279_vm0, %v697_v62  ;;  %v873_v50 = vsel %vm10783_vm9, %v7836_v35, %v872_v34  ;;  %v1134_v48 = vcombine.high %v471_v43, %v471_v43  ;;  %v1051_v53 = vcombine.low %v10800_v44, %v471_v43  ;;  %v7851_v57 = vrot.slane %v471_v43, 10 }
 0x10a   : > { %9226 = vmatpush3.msk.msra.mxu1 %vm514_vm3, %v475_v49  ;;  %9227 = vmatprep.mubr.msk.f32.mxu1 %vm279_vm0, %v783_v0  ;;  %v875_v45 = vcombine.low %v507_v56, %v873_v50  ;;  %v963_v46 = vsel %vm10787_vm10, %v7840_v63, %v962_v40  ;;  %v480_v56 = vld [vmem:[%s14907_s3 + $0x20] sm:$0xf] }
 0x10b   : > { %9230 = vmatprep.subr.msk.mxu1 %vm514_vm3, %v476_v1  ;;  %v965_v49 = vcombine.low %v695_v61, %v963_v46  ;;  %v1137_v52 = vrot.slane %v1134_v48, 5  ;;  %v1224_v38 = vrot.slane %v1134_v48, 6  ;;  %v1321_v61 = vld [vmem:[%s14906_s2] sm:$0xff] }
 0x10c   : > { %9259 = vmatprep.mubr.msk.f32.mxu0 %vm1353_vm11, %v1321_v61  ;;  %v10880_v0 = vld [vmem:[#allocation2] sm:$0xff] }
 0x10d   : > { %9228 = vmatmul.mubr.msk.f32.vlgmr.msra.gmra.mxu1 %vm279_vm0, %v784_v36  ;;  %v1138_v54 = vsel %vm10783_vm9, %v7847_v51, %v1137_v52  ;;  %v1225_v44 = vsel %vm10787_vm10, %v7851_v57, %v1224_v38  ;;  %v2485_v34 = vrot.slane %v10880_v0, 2  ;;  %v10886_v36 = vld [vmem:[#allocation2 + $0x10] sm:$0x3]  ;;  %v1309_v52 = vlaneseq }
 0x10e   : > { %9231 = vmatpush3.msk.msra.mxu1 %vm514_vm3, %v476_v1  ;;  %9232 = vmatprep.mubr.msk.f32.mxu1 %vm279_vm0, %v874_v37  ;;  %v1226_v55 = vcombine.low %v963_v46, %v1225_v44 }
 0x10f   : > { %9235 = vmatprep.subr.msk.mxu1 %vm514_vm3, %v477_v59  ;;  %v10895_v38 = vshrl.u32 %v1309_v52, 7 }
 0x111   : > { %9233 = vmatmul.mubr.msk.f32.vlgmr.msra.gmra.mxu1 %vm279_vm0, %v875_v45  ;;  %15128 = vst [vmem:[#allocation36_spill] sm:$0xff] %v10895_v38 }
 0x112   : > { %9236 = vmatpush3.msk.msra.mxu1 %vm514_vm3, %v477_v59  ;;  %9237 = vmatprep.mubr.msk.f32.mxu1 %vm279_vm0, %v964_v41 }
 0x113   : > { %9240 = vmatprep.subr.msk.mxu1 %vm514_vm3, %v478_v47 }
 0x115   : > { %9238 = vmatmul.mubr.msk.f32.vlgmr.msra.gmra.mxu1 %vm279_vm0, %v965_v49 }
 0x116   : > { %9241 = vmatpush3.msk.msra.mxu1 %vm514_vm3, %v478_v47  ;;  %9242 = vmatprep.mubr.msk.f32.mxu1 %vm279_vm0, %v594_v39  ;;  %v1139_v39 = vcombine.low %v873_v50, %v1138_v54  ;;  %v2488_v50 = vrot.slane %v10886_v36, 2 }
 0x117   : > { %9245 = vmatprep.subr.msk.mxu1 %vm514_vm3, %v479_v42 }
 0x119   : > { %9243 = vmatmul.mubr.msk.f32.vlgmr.msra.gmra.mxu1 %vm279_vm0, %v1051_v53 }
 0x11a   : > { %9246 = vmatpush3.msk.msra.mxu1 %vm514_vm3, %v479_v42  ;;  %9247 = vmatprep.mubr.msk.f32.mxu1 %vm279_vm0, %v509_v60  ;;  %v1335_v60 = vld [vmem:[%s14906_s2 + $0x70] sm:$0xff] }
 0x11b   : > { %9250 = vmatprep.subr.msk.mxu1 %vm514_vm3, %v480_v56 }
 0x11d   : > { %9248 = vmatmul.mubr.msk.f32.vlgmr.msra.gmra.mxu1 %vm279_vm0, %v1139_v39 }
 0x11e   : > { %9251 = vmatpush3.msk.msra.mxu1 %vm514_vm3, %v480_v56  ;;  %9252 = vmatprep.mubr.msk.f32.mxu1 %vm279_vm0, %v697_v62  ;;  %v10882_v62 = vld [vmem:[#allocation2 + $0x8] sm:$0xff] }
 0x11f   : > { %v2486_v35 = vrot.slane %v10882_v62, 2 }
 0x121   : > { %9253 = vmatmul.mubr.msk.f32.vlgmr.msra.gmra.mxu1 %vm279_vm0, %v1226_v55  ;;  %v10889_v37 = vsel %vm2484_vm12, %v2485_v34, %v2486_v35  ;;  %v10893_v40 = vsel %vm2484_vm12, %v2486_v35, %v2488_v50  ;;  %v1311_v35 = vsub.s32 0, %v10895_v38 }
 0x122   : > { %9280 = vmatprep.mubr.msk.f32.mxu1 %vm1353_vm11, %v1335_v60 }
 0x1c4   : > { %v9219_v58 = vpop.f32.mrf.mxu1 }
 0x1c6   : > { %v668_v1 = vpop.f32.mrf.mxu1 }
 0x1c9   : > { %v9224_v59 = vpop.f32.mrf.mxu1  ;;  %v9214_v43 = vpop.f32.mrf.mxu0 }
 0x1ca   : > { %v674_v47 = vadd.f32 %v9219_v58, %v9214_v43  ;;  %v1317_v43 = vsub.s32 1, %v10895_v38  ;;  %v11122_v38 = vld [vmem:[#allocation2 + $0x80] sm:$0xff] }
 0x1cb   : > { %v771_v63 = vpop.f32.mrf.mxu1  ;;  %v584_v41 = vpop.f32.mrf.mxu0  ;;  %v1846_v4 = vrot.slane %v11122_v38, 1 }
 0x1cc   : > { %v669_v49 = vadd.f32 %v668_v1, %v584_v41  ;;  %v781_v51 = vadd.f32 %v9224_v59, %v674_v47  ;;  %v374_v1 = vld [vmem:[%s14910_s6] sm:$0x3f] }
 0x1cd   : > { %v9229_v45 = vpop.f32.mrf.mxu1  ;;  %v1312_v47 = vrot.slane %v374_v1, %v1311_v35  ;;  %v1762_v35 = vld [vmem:[%s14908_s4] sm:$0xf] }
 0x1ce   : > { %v780_v54 = vadd.f32 %v771_v63, %v669_v49  ;;  %v868_v57 = vadd.f32 %v9229_v45, %v781_v51 }
 0x1cf   : > { %v858_v46 = vpop.f32.mrf.mxu1 }
 0x1d0   : > { %v867_v44 = vadd.f32 %v858_v46, %v780_v54 }
 0x1d1   : > { %v9234_v48 = vpop.f32.mrf.mxu1 }
 0x1d2   : > { %v959_v55 = vadd.f32 %v9234_v48, %v868_v57 }
 0x1d3   : > { %v949_v42 = vpop.f32.mrf.mxu1 }
 0x1d4   : > { %v958_v60 = vadd.f32 %v949_v42, %v867_v44  ;;  %v1318_v42 = vrot.slane %v374_v1, %v1317_v43  ;;  %v1338_v1 = vld [vmem:[%s14906_s2 + $0x88] sm:$0xff] }
 0x1d5   : > { %v9239_v53 = vpop.f32.mrf.mxu1  ;;  %v10951_v43 = vld [vmem:[%s14908_s4 + $0xc] sm:$0xf] }
 0x1d6   : > { %v1049_v34 = vadd.f32 %v9239_v53, %v959_v55  ;;  %v1763_v55 = vld [vmem:[%s14908_s4 + $0x4] sm:$0xf] }
 0x1d7   : > { %v1039_v56 = vpop.f32.mrf.mxu1 }
 0x1d8   : > { %v1048_v50 = vadd.f32 %v1039_v56, %v958_v60  ;;  %v1322_v56 = vld [vmem:[%s14906_s2 + $0x8] sm:$0xff]  ;;  %v1337_v60 = vld [vmem:[%s14906_s2 + $0x80] sm:$0xff] }
 0x1d9   : > { %v9244_v39 = vpop.f32.mrf.mxu1 }
 0x1da   : > { %v1133_v59 = vadd.f32 %v9244_v39, %v1049_v34  ;;  %v1336_v39 = vld [vmem:[%s14906_s2 + $0x78] sm:$0xff]  ;;  %v10922_v34 = vld [vmem:[%s14908_s4 + $0x8] sm:$0xf] }
 0x1db   : > { %v1123_v61 = vpop.f32.mrf.mxu1 }
 0x1dc   : > { %v1132_v45 = vadd.f32 %v1123_v61, %v1048_v50  ;;  %v1323_v61 = vld [vmem:[%s14906_s2 + $0x10] sm:$0xff]  ;;  %v1325_v50 = vld [vmem:[%s14906_s2 + $0x20] sm:$0xff] }
 0x1dd   : > { %v9249_v58 = vpop.f32.mrf.mxu1 }
 0x1de   : > { %v1221_v41 = vadd.f32 %v9249_v58, %v1133_v59  ;;  %v1324_v58 = vld [vmem:[%s14906_s2 + $0x18] sm:$0xff]  ;;  %v1339_v59 = vld [vmem:[%s14906_s2 + $0x90] sm:$0xff] }
 0x1df   : > { %v1211_v63 = vpop.f32.mrf.mxu1 }
 0x1e0   : > { %v1220_v48 = vadd.f32 %v1211_v63, %v1132_v45  ;;  %v1326_v63 = vld [vmem:[%s14906_s2 + $0x28] sm:$0xff]  ;;  %v1340_v45 = vld [vmem:[%s14906_s2 + $0x98] sm:$0xff] }
 0x1e1   : > { %v9254_v46 = vpop.f32.mrf.mxu1 }
 0x1e2   : > { %v1308_v49 = vadd.f32 %v9254_v46, %v1221_v41  ;;  %v1327_v41 = vld [vmem:[%s14906_s2 + $0x30] sm:$0xff]  ;;  %v1328_v46 = vld [vmem:[%s14906_s2 + $0x38] sm:$0xff] }
 0x1e3   : > { %v1298_v51 = vpop.f32.mrf.mxu1 }
 0x1e4   : > { %v1314_v52 = vmul.f32 %v1312_v47, %v1308_v49  ;;  %v1307_v53 = vadd.f32 %v1298_v51, %v1220_v48  ;;  %v1342_v48 = vld [vmem:[%s14906_s2 + $0xa8] sm:$0xff]  ;;  %v1329_v49 = vld [vmem:[%s14906_s2 + $0x40] sm:$0xff] }
 0x1e5   : > { %v1330_v51 = vld [vmem:[%s14906_s2 + $0x48] sm:$0xff] }
 0x1e6   : > { %v1320_v54 = vadd.f32 %v1318_v42, %v1314_v52  ;;  %v1313_v57 = vmul.f32 %v1312_v47, %v1307_v53  ;;  %v1341_v47 = vld [vmem:[%s14906_s2 + $0xa0] sm:$0xff]  ;;  %v1344_v52 = vld [vmem:[%s14906_s2 + $0xb8] sm:$0xff]  ;;  %v1331_v53 = vld [vmem:[%s14906_s2 + $0x50] sm:$0xff] }
 0x1e8   : > { %v1319_v44 = vadd.f32 %v1318_v42, %v1313_v57  ;;  %9255 = vmatprep.subr.mxu0 %v1320_v54  ;;  %10207 = vmatprep.subr.mxu1 %v1320_v54  ;;  %v1343_v42 = vld [vmem:[%s14906_s2 + $0xb0] sm:$0xff]  ;;  %v1332_v57 = vld [vmem:[%s14906_s2 + $0x58] sm:$0xff] }
 0x1e9   : > { %9256 = vmatpush3.msra.mxu0 %v1320_v54  ;;  %10209 = vmatpush3.msra.mxu1 %v1320_v54  ;;  %v1345_v54 = vld [vmem:[%s14906_s2 + $0xc0] sm:$0xff] }
 0x1ea   : > { %9257 = vmatprep.subr.mxu0 %v1319_v44  ;;  %10208 = vmatprep.subr.mxu1 %v1319_v44 }
 0x1eb   : > { %9258 = vmatpush3.msra.mxu0 %v1319_v44  ;;  %10210 = vmatpush3.msra.mxu1 %v1319_v44  ;;  %v1346_v44 = vld [vmem:[%s14906_s2 + $0xc8] sm:$0xff] }
 0x1ec   : > { %9260 = vmatmul.mubr.msk.f32.vlgmr.msra.gmra.mxu0 %vm1353_vm11, %v1322_v56  ;;  %9281 = vmatmul.mubr.msk.f32.vlgmr.msra.gmra.mxu1 %vm1353_vm11, %v1336_v39  ;;  %v1333_v56 = vld [vmem:[%s14906_s2 + $0x60] sm:$0xff]  ;;  %v1347_v39 = vld [vmem:[%s14906_s2 + $0xd0] sm:$0xff] }
 0x1ed   : > { %9307 = vmatprep.subr.msk.mxu0 %vm514_vm3, %v1763_v55  ;;  %9262 = vmatprep.mubr.msk.f32.mxu0 %vm1353_vm11, %v1323_v61  ;;  %v1821_v61 = vrot.slane %v10882_v62, 1 }
 0x1ee   : > { %9308 = vmatpush3.msk.msra.mxu0 %vm514_vm3, %v1763_v55  ;;  %9283 = vmatprep.mubr.msk.f32.mxu1 %vm1353_vm11, %v1337_v60  ;;  %v1820_v55 = vrot.slane %v10880_v0, 1  ;;  %v11022_v60 = vld [vmem:[#allocation2 + $0x18] sm:$0xff] }
 0x1ef   : > { %9407 = vmatprep.subr.msk.mxu0 %vm514_vm3, %v10922_v34  ;;  %9357 = vmatprep.subr.msk.mxu1 %vm514_vm3, %v1762_v35 }
 0x1f0   : > { %9263 = vmatmul.mubr.msk.f32.gmra.mxu0 %vm1353_vm11, %v1324_v58  ;;  %9284 = vmatmul.mubr.msk.f32.gmra.mxu1 %vm1353_vm11, %v1338_v1  ;;  %v1334_v58 = vld [vmem:[%s14906_s2 + $0x68] sm:$0xff]  ;;  %v1348_v1 = vld [vmem:[%s14906_s2 + $0xd8] sm:$0xff] }
 0x1f1   : > { %9265 = vmatprep.mubr.msk.f32.mxu0 %vm1353_vm11, %v1325_v50  ;;  %9286 = vmatprep.mubr.msk.f32.mxu1 %vm1353_vm11, %v1339_v59  ;;  %v1823_v50 = vrot.slane %v10886_v36, 1  ;;  %v1349_v59 = vld [vmem:[%s14906_s2 + $0xe0] sm:$0xff]  ;;  %v1350_v36 = vld [vmem:[%s14906_s2 + $0xe8] sm:$0xff] }
 0x1f2   : > { %9358 = vmatpush3.msk.msra.mxu1 %vm514_vm3, %v1762_v35  ;;  %v11024_v35 = vld [vmem:[#allocation2 + $0x20] sm:$0xff] }
 0x1f3   : > { %9457 = vmatprep.subr.msk.mxu1 %vm514_vm3, %v10951_v43 }
 0x1f4   : > { %9266 = vmatmul.mubr.msk.f32.gmra.mxu0 %vm1353_vm11, %v1326_v63  ;;  %9287 = vmatmul.mubr.msk.f32.gmra.mxu1 %vm1353_vm11, %v1340_v45  ;;  %v1822_v63 = vsel %vm1819_vm13, %v1820_v55, %v1821_v61  ;;  %v11039_v45 = vld [vmem:[#allocation2 + $0x28] sm:$0x3]  ;;  %v1352_v55 = vld [vmem:[%s14906_s2 + $0xf8] sm:$0xff] }
 0x1f5   : > { %9268 = vmatprep.mubr.msk.f32.mxu0 %vm1353_vm11, %v1327_v41  ;;  %9289 = vmatprep.mubr.msk.f32.mxu1 %vm1353_vm11, %v1341_v47  ;;  %v1825_v41 = vrot.slane %v11022_v60, 1  ;;  %v1826_v47 = vrot.slane %v11024_v35, 1 }
 0x1f8   : > { %9269 = vmatmul.mubr.msk.f32.gmra.mxu0 %vm1353_vm11, %v1328_v46  ;;  %9290 = vmatmul.mubr.msk.f32.gmra.mxu1 %vm1353_vm11, %v1342_v48  ;;  %v11043_v46 = vld [vmem:[#allocation2 + $0x30] sm:$0xff]  ;;  %v11045_v48 = vld [vmem:[#allocation2 + $0x38] sm:$0xff] }
 0x1f9   : > { %9271 = vmatprep.mubr.msk.f32.mxu0 %vm1353_vm11, %v1329_v49  ;;  %9292 = vmatprep.mubr.msk.f32.mxu1 %vm1353_vm11, %v1343_v42  ;;  %v1824_v49 = vsel %vm1819_vm13, %v1821_v61, %v1823_v50  ;;  %v1828_v42 = vrot.slane %v11039_v45, 1 }
 0x1fb   : > { %v11084_v61 = vsel %vm1819_vm13, %v1826_v47, %v1828_v42 }
 0x1fc   : > { %9272 = vmatmul.mubr.msk.f32.gmra.mxu0 %vm1353_vm11, %v1330_v51  ;;  %9293 = vmatmul.mubr.msk.f32.gmra.mxu1 %vm1353_vm11, %v1344_v52  ;;  %v1351_v51 = vld [vmem:[%s14906_s2 + $0xf0] sm:$0xff]  ;;  %v1830_v52 = vrot.slane %v11043_v46, 1 }
 0x1fd   : > { %9274 = vmatprep.mubr.msk.f32.mxu0 %vm1353_vm11, %v1331_v53  ;;  %9295 = vmatprep.mubr.msk.f32.mxu1 %vm1353_vm11, %v1345_v54  ;;  %v1831_v53 = vrot.slane %v11045_v48, 1  ;;  %v11061_v54 = vld [vmem:[#allocation2 + $0x40] sm:$0x3] }
 0x200   : > { %9275 = vmatmul.mubr.msk.f32.gmra.mxu0 %vm1353_vm11, %v1332_v57  ;;  %9296 = vmatmul.mubr.msk.f32.gmra.mxu1 %vm1353_vm11, %v1346_v44  ;;  %v11064_v57 = vsel %vm1819_vm13, %v1825_v41, %v1826_v47  ;;  %v11066_v44 = vld [vmem:[#allocation2 + $0x48] sm:$0xff] }
 0x201   : > { %9277 = vmatprep.mubr.msk.f32.mxu0 %vm1353_vm11, %v1333_v56  ;;  %9298 = vmatprep.mubr.msk.f32.mxu1 %vm1353_vm11, %v1347_v39  ;;  %v11068_v56 = vld [vmem:[#allocation2 + $0x50] sm:$0xff]  ;;  %v1835_v50 = vrot.slane %v11066_v44, 1  ;;  %v11100_v41 = vld [vmem:[#allocation2 + $0x68] sm:$0xff] }
 0x202   : > { %v11073_v39 = vld [vmem:[%s14908_s4 + $0x10] sm:$0xf]  ;;  %15130 = vst [vmem:[#allocation38_spill] sm:$0xff] %v11100_v41 }
 0x204   : > { %9278 = vmatmul.mubr.msk.f32.gmra.mxu0 %vm1353_vm11, %v1334_v58  ;;  %9299 = vmatmul.mubr.msk.f32.gmra.mxu1 %vm1353_vm11, %v1348_v1  ;;  %v1833_v58 = vrot.slane %v11061_v54, 1  ;;  %v11090_v1 = vsel %vm1819_vm13, %v1830_v52, %v1831_v53  ;;  %v11118_v52 = vld [vmem:[#allocation2 + $0x70] sm:$0x3] }
 0x205   : > { %9301 = vmatprep.mubr.msk.f32.mxu1 %vm1353_vm11, %v1349_v59  ;;  %9309 = vmatprep.mubr.msk.f32.mxu0 %vm279_vm0, %v1822_v63  ;;  %v11094_v59 = vld [vmem:[#allocation2 + $0x58] sm:$0x3]  ;;  %v11098_v63 = vld [vmem:[#allocation2 + $0x60] sm:$0xff] }
 0x206   : > { %15129 = vst [vmem:[#allocation37_spill] sm:$0xff] %v11098_v63  ;;  %v11110_v47 = vsel %vm1819_vm13, %v1831_v53, %v1833_v58  ;;  %v1840_v42 = vrot.slane %v11098_v63, 1  ;;  %v1843_v58 = vrot.slane %v11118_v52, 1 }
 0x208   : > { %9302 = vmatmul.mubr.msk.f32.gmra.mxu1 %vm1353_vm11, %v1350_v36  ;;  %9310 = vmatmul.mubr.msk.f32.vlgmr.msra.gmra.mxu0 %vm279_vm0, %v1824_v49  ;;  %v1838_v36 = vrot.slane %v11094_v59, 1 }
 0x209   : > { %9408 = vmatpush3.msk.msra.mxu0 %vm514_vm3, %v10922_v34  ;;  %9304 = vmatprep.mubr.msk.f32.mxu1 %vm1353_vm11, %v1351_v51  ;;  %v1836_v34 = vrot.slane %v11068_v56, 1  ;;  %v1841_v51 = vrot.slane %v11100_v41, 1 }
 0x20a   : > { %9312 = vmatprep.mubr.msk.f32.mxu0 %vm279_vm0, %v11064_v57  ;;  %9507 = vmatprep.subr.msk.mxu0 %vm514_vm3, %v11073_v39 }
 0x20b   : > { %v11114_v49 = vsel %vm1819_vm13, %v1835_v50, %v1836_v34  ;;  %v11138_v53 = vsel %vm1819_vm13, %v1836_v34, %v1838_v36  ;;  %v11142_v50 = vsel %vm1819_vm13, %v1840_v42, %v1841_v51  ;;  %v1848_v34 = vrot.slane %v11146_v2, 1 }
 0x20c   : > { %9305 = vmatmul.mubr.msk.f32.gmra.mxu1 %vm1353_vm11, %v1352_v55  ;;  %9313 = vmatmul.mubr.msk.f32.gmra.mxu0 %vm279_vm0, %v11084_v61  ;;  %v11120_v55 = vld [vmem:[#allocation2 + $0x78] sm:$0xff]  ;;  %15132 = vst [vmem:[#allocation40_spill] sm:$0xff] %v11138_v53  ;;  %15133 = vst [vmem:[#allocation41_spill] sm:$0xff] %v11142_v50  ;;  %v1850_v42 = vrot.slane %v11150_v8, 1 }
 0x20d   : > { %9315 = vmatprep.mubr.msk.f32.mxu0 %vm279_vm0, %v11090_v1  ;;  %9359 = vmatprep.mubr.msk.f32.mxu1 %vm279_vm0, %v10880_v0  ;;  %15131 = vst [vmem:[#allocation39_spill] sm:$0xff] %v11120_v55  ;;  %v11131_v0 = vld [vmem:[%s14908_s4 + $0x14] sm:$0xf] }
 0x210   : > { %9316 = vmatmul.mubr.msk.f32.gmra.mxu0 %vm279_vm0, %v11110_v47  ;;  %9360 = vmatmul.mubr.msk.f32.vlgmr.msra.gmra.mxu1 %vm279_vm0, %v10882_v62  ;;  %v1845_v62 = vrot.slane %v11120_v55, 1 }
 0x211   : > { %9318 = vmatprep.mubr.msk.f32.mxu0 %vm279_vm0, %v11114_v49  ;;  %9362 = vmatprep.mubr.msk.f32.mxu1 %vm279_vm0, %v11022_v60 }
 0x212   : > { %9458 = vmatpush3.msk.msra.mxu1 %vm514_vm3, %v10951_v43  ;;  %v11165_v43 = vsel %vm1819_vm13, %v1841_v51, %v1843_v58  ;;  %v11169_v36 = vsel %vm1819_vm13, %v1845_v62, %v1846_v4  ;;  %v11188_v51 = vsel %vm1819_vm13, %v1846_v4, %v1848_v34  ;;  %v1853_v58 = vrot.slane %v11173_v9, 1 }
 0x213   : > { %9557 = vmatprep.subr.msk.mxu1 %vm514_vm3, %v11131_v0  ;;  %15135 = vst [vmem:[#allocation43_spill] sm:$0xff] %v11165_v43  ;;  %15136 = vst [vmem:[#allocation44_spill] sm:$0xff] %v11169_v36  ;;  %v11192_v62 = vsel %vm1819_vm13, %v1850_v42, %v1851_v12  ;;  %v1858_v34 = vrot.slane %v11196_v14, 1  ;;  %v11215_v42 = vsel %vm1819_vm13, %v1855_v16, %v1856_v13  ;;  %v1863_v16 = vrot.slane %v11219_v15, 1 }
 0x214   : > { %9319 = vmatmul.mubr.msk.f32.gmra.mxu0 %vm279_vm0, %v11138_v53  ;;  %9363 = vmatmul.mubr.msk.f32.gmra.mxu1 %vm279_vm0, %v11024_v35  ;;  %15138 = vst [vmem:[#allocation46_spill] sm:$0xff] %v11188_v51  ;;  %15139 = vst [vmem:[#allocation47_spill] sm:$0xff] %v11192_v62  ;;  %v11211_v4 = vsel %vm1819_vm13, %v1851_v12, %v1853_v58  ;;  %v11238_v58 = vsel %vm1819_vm13, %v1860_v17, %v1861_v18  ;;  %v1868_v17 = vrot.slane %v11242_v28, 1  ;;  %v11380_v53 = vld [vmem:[#allocation2 + $0x178] sm:$0x3] }
 0x215   : > { %9321 = vmatprep.mubr.msk.f32.mxu0 %vm279_vm0, %v11142_v50  ;;  %9365 = vmatprep.mubr.msk.f32.mxu1 %vm279_vm0, %v11043_v46  ;;  %15141 = vst [vmem:[#allocation49_spill] sm:$0xff] %v11211_v4  ;;  %15142 = vst [vmem:[#allocation50_spill] sm:$0xff] %v11215_v42  ;;  %v11234_v12 = vsel %vm1819_vm13, %v1856_v13, %v1858_v34  ;;  %v11257_v13 = vsel %vm1819_vm13, %v1861_v18, %v1863_v16 }
 0x216   : > { %15144 = vst [vmem:[#allocation52_spill] sm:$0xff] %v11234_v12  ;;  %15145 = vst [vmem:[#allocation53_spill] sm:$0xff] %v11238_v58  ;;  %v11261_v34 = vsel %vm1819_vm13, %v1865_v22, %v1866_v19  ;;  %v11280_v18 = vsel %vm1819_vm13, %v1866_v19, %v1868_v17  ;;  %v1873_v22 = vrot.slane %v11265_v29, 1  ;;  %v11284_v16 = vsel %vm1819_vm13, %v1870_v23, %v1871_v32 }
 0x217   : > { %15147 = vst [vmem:[#allocation55_spill] sm:$0xff] %v11257_v13  ;;  %15148 = vst [vmem:[#allocation56_spill] sm:$0xff] %v11261_v34  ;;  %v1878_v23 = vrot.slane %v11288_v3, 1  ;;  %v11307_v17 = vsel %vm1819_vm13, %v1875_v5, %v1876_v33 }
 0x218   : > { %9322 = vmatmul.mubr.msk.f32.gmra.mxu0 %vm279_vm0, %v11165_v43  ;;  %9366 = vmatmul.mubr.msk.f32.gmra.mxu1 %vm279_vm0, %v11045_v48  ;;  %15150 = vst [vmem:[#allocation58_spill] sm:$0xff] %v11280_v18  ;;  %15151 = vst [vmem:[#allocation59_spill] sm:$0xff] %v11284_v16  ;;  %v11303_v19 = vsel %vm1819_vm13, %v1871_v32, %v1873_v22  ;;  %v11359_v43 = vld [vmem:[#allocation2 + $0x168] sm:$0xff] }
 0x219   : > { %9324 = vmatprep.mubr.msk.f32.mxu0 %vm279_vm0, %v11169_v36  ;;  %9368 = vmatprep.mubr.msk.f32.mxu1 %vm279_vm0, %v11066_v44  ;;  %15152 = vst [vmem:[#allocation60_spill] sm:$0xff] %v11303_v19  ;;  %15153 = vst [vmem:[#allocation61_spill] sm:$0xff] %v11307_v17  ;;  %v11326_v5 = vsel %vm1819_vm13, %v1876_v33, %v1878_v23  ;;  %v11357_v36 = vld [vmem:[#allocation2 + $0x160] sm:$0x3]  ;;  %v1895_v50 = vrot.slane %v11359_v43, 1 }
 0x21a   : > { %15154 = vst [vmem:[#allocation62_spill] sm:$0xff] %v11326_v5 }
 0x21c   : > { %9325 = vmatmul.mubr.msk.f32.gmra.mxu0 %vm279_vm0, %v11188_v51  ;;  %9369 = vmatmul.mubr.msk.f32.gmra.mxu1 %vm279_vm0, %v11068_v56 }
 0x21d   : > { %9327 = vmatprep.mubr.msk.f32.mxu0 %vm279_vm0, %v11192_v62  ;;  %9371 = vmatprep.mubr.msk.f32.mxu1 %vm279_vm0, %v11098_v63  ;;  %v11336_v62 = vld [vmem:[#allocation2 + $0x150] sm:$0xff] }
 0x21e   : > { %v1890_v51 = vrot.slane %v11336_v62, 1 }
 0x220   : > { %9328 = vmatmul.mubr.msk.f32.gmra.mxu0 %vm279_vm0, %v11211_v4  ;;  %9372 = vmatmul.mubr.msk.f32.gmra.mxu1 %vm279_vm0, %v11100_v41  ;;  %v11334_v4 = vld [vmem:[#allocation2 + $0x148] sm:$0x3] }
 0x221   : > { %9330 = vmatprep.mubr.msk.f32.mxu0 %vm279_vm0, %v11215_v42  ;;  %9374 = vmatprep.mubr.msk.f32.mxu1 %vm279_vm0, %v11120_v55 }
 0x224   : > { %9331 = vmatmul.mubr.msk.f32.gmra.mxu0 %vm279_vm0, %v11234_v12  ;;  %9375 = vmatmul.mubr.msk.f32.gmra.mxu1 %vm279_vm0, %v11122_v38  ;;  %v11313_v12 = vld [vmem:[#allocation2 + $0x138] sm:$0xff] }
 0x225   : > { %9333 = vmatprep.mubr.msk.f32.mxu0 %vm279_vm0, %v11238_v58  ;;  %9377 = vmatprep.mubr.msk.f32.mxu1 %vm279_vm0, %v11150_v8  ;;  %v11311_v58 = vld [vmem:[#allocation2 + $0x130] sm:$0x3]  ;;  %v1885_v42 = vrot.slane %v11313_v12, 1 }
 0x226   : > { %v1883_v32 = vrot.slane %v11311_v58, 1 }
 0x228   : > { %9334 = vmatmul.mubr.msk.f32.gmra.mxu0 %vm279_vm0, %v11257_v13  ;;  %9378 = vmatmul.mubr.msk.f32.gmra.mxu1 %vm279_vm0, %v11152_v6  ;;  %v1880_v13 = vrot.slane %v11290_v31, 1 }
 0x229   : > { %9336 = vmatprep.mubr.msk.f32.mxu0 %vm279_vm0, %v11261_v34  ;;  %9380 = vmatprep.mubr.msk.f32.mxu1 %vm279_vm0, %v11175_v10  ;;  %v11292_v34 = vld [vmem:[#allocation2 + $0x128] sm:$0xff] }
 0x22c   : > { %9337 = vmatmul.mubr.msk.f32.gmra.mxu0 %vm279_vm0, %v11280_v18  ;;  %9381 = vmatmul.mubr.msk.f32.gmra.mxu1 %vm279_vm0, %v11177_v7  ;;  %v1881_v18 = vrot.slane %v11292_v34, 1 }
 0x22d   : > { %9339 = vmatprep.mubr.msk.f32.mxu0 %vm279_vm0, %v11284_v16  ;;  %9383 = vmatprep.mubr.msk.f32.mxu1 %vm279_vm0, %v11198_v11  ;;  %v11315_v16 = vld [vmem:[#allocation2 + $0x140] sm:$0xff] }
 0x22e   : > { %v11330_v22 = vsel %vm1819_vm13, %v1880_v13, %v1881_v18  ;;  %v11349_v33 = vsel %vm1819_vm13, %v1881_v18, %v1883_v32  ;;  %v1888_v13 = vrot.slane %v11334_v4, 1  ;;  %v1893_v18 = vrot.slane %v11357_v36, 1 }
 0x22f   : > { %15155 = vst [vmem:[#allocation63_spill] sm:$0xff] %v11330_v22  ;;  %15156 = vst [vmem:[#allocation64_spill] sm:$0xff] %v11349_v33 }
 0x230   : > { %9340 = vmatmul.mubr.msk.f32.gmra.mxu0 %vm279_vm0, %v11303_v19  ;;  %9384 = vmatmul.mubr.msk.f32.gmra.mxu1 %vm279_vm0, %v11200_v20  ;;  %v1886_v19 = vrot.slane %v11315_v16, 1 }
 0x231   : > { %9342 = vmatprep.mubr.msk.f32.mxu0 %vm279_vm0, %v11307_v17  ;;  %9386 = vmatprep.mubr.msk.f32.mxu1 %vm279_vm0, %v11221_v24  ;;  %v11338_v17 = vld [vmem:[#allocation2 + $0x158] sm:$0xff] }
 0x232   : > { %v11353_v23 = vsel %vm1819_vm13, %v1885_v42, %v1886_v19  ;;  %v11372_v42 = vsel %vm1819_vm13, %v1886_v19, %v1888_v13  ;;  %v1898_v19 = vrot.slane %v11380_v53, 1 }
 0x234   : > { %9343 = vmatmul.mubr.msk.f32.gmra.mxu0 %vm279_vm0, %v11326_v5  ;;  %9387 = vmatmul.mubr.msk.f32.gmra.mxu1 %vm279_vm0, %v11223_v21  ;;  %v1891_v5 = vrot.slane %v11338_v17, 1 }
 0x235   : > { %9345 = vmatprep.mubr.msk.f32.mxu0 %vm279_vm0, %v11330_v22  ;;  %9389 = vmatprep.mubr.msk.f32.mxu1 %vm279_vm0, %v11244_v25  ;;  %v11361_v22 = vld [vmem:[#allocation2 + $0x170] sm:$0xff] }
 0x236   : > { %v11376_v32 = vsel %vm1819_vm13, %v1890_v51, %v1891_v5  ;;  %v11391_v51 = vsel %vm1819_vm13, %v1891_v5, %v1893_v18  ;;  %v2490_v18 = vrot.slane %v11022_v60, 2 }
 0x237   : > { %15157 = vst [vmem:[#allocation65_spill] sm:$0xff] %v11376_v32  ;;  %15158 = vst [vmem:[#allocation66_spill] sm:$0xff] %v11391_v51 }
 0x238   : > { %9346 = vmatmul.mubr.msk.f32.gmra.mxu0 %vm279_vm0, %v11349_v33  ;;  %9390 = vmatmul.mubr.msk.f32.gmra.mxu1 %vm279_vm0, %v11246_v26  ;;  %v1896_v33 = vrot.slane %v11361_v22, 1 }
 0x239   : > { %9348 = vmatprep.mubr.msk.f32.mxu0 %vm279_vm0, %v11353_v23  ;;  %9392 = vmatprep.mubr.msk.f32.mxu1 %vm279_vm0, %v11267_v30 }
 0x23a   : > { %v11395_v13 = vsel %vm1819_vm13, %v1895_v50, %v1896_v33  ;;  %v11406_v5 = vsel %vm1819_vm13, %v1896_v33, %v1898_v19  ;;  %v2491_v50 = vrot.slane %v11024_v35, 2  ;;  %v2495_v33 = vrot.slane %v11043_v46, 2 }
 0x23b   : > { %15159 = vst [vmem:[#allocation67_spill] sm:$0xff] %v11395_v13  ;;  %15160 = vst [vmem:[#allocation68_spill] sm:$0xff] %v11406_v5  ;;  %v2496_v19 = vrot.slane %v11045_v48, 2 }
 0x23c   : > { %9349 = vmatmul.mubr.msk.f32.gmra.mxu0 %vm279_vm0, %v11372_v42  ;;  %9393 = vmatmul.mubr.msk.f32.gmra.mxu1 %vm279_vm0, %v11269_v27 }
 0x23d   : > { %9351 = vmatprep.mubr.msk.f32.mxu0 %vm279_vm0, %v11376_v32  ;;  %9395 = vmatprep.mubr.msk.f32.mxu1 %vm279_vm0, %v11290_v31  ;;  %v2500_v32 = vrot.slane %v11066_v44, 2 }
 0x240   : > { %9352 = vmatmul.mubr.msk.f32.gmra.mxu0 %vm279_vm0, %v11391_v51  ;;  %9396 = vmatmul.mubr.msk.f32.gmra.mxu1 %vm279_vm0, %v11292_v34  ;;  %v11422_v51 = vsel %vm2484_vm12, %v2490_v18, %v2491_v50  ;;  %v11444_v18 = vsel %vm2484_vm12, %v2495_v33, %v2496_v19  ;;  %v2506_v33 = vrot.slane %v11100_v41, 2 }
 0x241   : > { %9354 = vmatprep.mubr.msk.f32.mxu0 %vm279_vm0, %v11395_v13  ;;  %9398 = vmatprep.mubr.msk.f32.mxu1 %vm279_vm0, %v11313_v12  ;;  %v2493_v13 = vrot.slane %v11039_v45, 2  ;;  %v2498_v45 = vrot.slane %v11061_v54, 2  ;;  %15161 = vst [vmem:[#allocation69_spill] sm:$0xff] %v11444_v18 }
 0x243   : > { %v11459_v54 = vsel %vm2484_vm12, %v2496_v19, %v2498_v45  ;;  %v2510_v19 = vrot.slane %v11120_v55, 2  ;;  %v2511_v45 = vrot.slane %v11122_v38, 2 }
 0x244   : > { %9355 = vmatmul.mubr.msk.f32.gmra.mxu0 %vm279_vm0, %v11406_v5  ;;  %9399 = vmatmul.mubr.msk.f32.gmra.mxu1 %vm279_vm0, %v11315_v16  ;;  %v11427_v5 = vld [vmem:[%s14908_s4 + $0x18] sm:$0xf]  ;;  %15162 = vst [vmem:[#allocation70_spill] sm:$0xff] %v11459_v54 }
 0x245   : > { %9401 = vmatprep.mubr.msk.f32.mxu1 %vm279_vm0, %v11336_v62  ;;  %9409 = vmatprep.mubr.msk.f32.mxu0 %vm279_vm0, %v10889_v37  ;;  %v11438_v37 = vsel %vm2484_vm12, %v2491_v50, %v2493_v13  ;;  %v2505_v50 = vrot.slane %v11098_v63, 2 }
 0x248   : > { %9402 = vmatmul.mubr.msk.f32.gmra.mxu1 %vm279_vm0, %v11338_v17  ;;  %9410 = vmatmul.mubr.msk.f32.vlgmr.msra.gmra.mxu0 %vm279_vm0, %v10893_v40  ;;  %v2501_v40 = vrot.slane %v11068_v56, 2 }
 0x249   : > { %9508 = vmatpush3.msk.msra.mxu0 %vm514_vm3, %v11073_v39  ;;  %9404 = vmatprep.mubr.msk.f32.mxu1 %vm279_vm0, %v11359_v43  ;;  %v2503_v39 = vrot.slane %v11094_v59, 2  ;;  %v2508_v59 = vrot.slane %v11118_v52, 2  ;;  %v2513_v52 = vrot.slane %v11146_v2, 2 }
 0x24a   : > { %9412 = vmatprep.mubr.msk.f32.mxu0 %vm279_vm0, %v11422_v51  ;;  %9607 = vmatprep.subr.msk.mxu0 %vm514_vm3, %v11427_v5  ;;  %v11463_v13 = vsel %vm2484_vm12, %v2500_v32, %v2501_v40  ;;  %v11480_v32 = vsel %vm2484_vm12, %v2505_v50, %v2506_v33  ;;  %v2518_v50 = vrot.slane %v11173_v9, 2 }
 0x24b   : > { %15163 = vst [vmem:[#allocation71_spill] sm:$0xff] %v11463_v13  ;;  %15165 = vst [vmem:[#allocation73_spill] sm:$0xff] %v11480_v32  ;;  %v11512_v2 = vsel %vm2484_vm12, %v2511_v45, %v2513_v52  ;;  %v11535_v52 = vld [vmem:[%s14908_s4 + $0x1c] sm:$0xf] }
 0x24c   : > { %9405 = vmatmul.mubr.msk.f32.gmra.mxu1 %vm279_vm0, %v11361_v22  ;;  %9413 = vmatmul.mubr.msk.f32.gmra.mxu0 %vm279_vm0, %v11438_v37  ;;  %15168 = vst [vmem:[#allocation76_spill] sm:$0xff] %v11512_v2 }
 0x24d   : > { %9415 = vmatprep.mubr.msk.f32.mxu0 %vm279_vm0, %v11444_v18  ;;  %9459 = vmatprep.mubr.msk.f32.mxu1 %vm279_vm0, %v11022_v60  ;;  %v11476_v60 = vsel %vm2484_vm12, %v2501_v40, %v2503_v39  ;;  %v11499_v40 = vsel %vm2484_vm12, %v2510_v19, %v2511_v45  ;;  %v2516_v39 = vrot.slane %v11152_v6, 2  ;;  %v2521_v19 = vrot.slane %v11177_v7, 2 }
 0x24e   : > { %15164 = vst [vmem:[#allocation72_spill] sm:$0xff] %v11476_v60  ;;  %15167 = vst [vmem:[#allocation75_spill] sm:$0xff] %v11499_v40  ;;  %v2523_v45 = vrot.slane %v11196_v14, 2 }
 0x24f   : > { %v11529_v9 = vsel %vm2484_vm12, %v2516_v39, %v2518_v50 }
 0x250   : > { %9416 = vmatmul.mubr.msk.f32.gmra.mxu0 %vm279_vm0, %v11459_v54  ;;  %9460 = vmatmul.mubr.msk.f32.vlgmr.msra.gmra.mxu1 %vm279_vm0, %v11024_v35  ;;  %v11495_v35 = vsel %vm2484_vm12, %v2506_v33, %v2508_v59  ;;  %v2520_v59 = vrot.slane %v11175_v10, 2  ;;  %15170 = vst [vmem:[#allocation78_spill] sm:$0xff] %v11529_v9  ;;  %v11553_v14 = vsel %vm2484_vm12, %v2521_v19, %v2523_v45  ;;  %v2535_v45 = vrot.slane %v11244_v25, 2 }
 0x251   : > { %9418 = vmatprep.mubr.msk.f32.mxu0 %vm279_vm0, %v11463_v13  ;;  %9462 = vmatprep.mubr.msk.f32.mxu1 %vm279_vm0, %v11043_v46  ;;  %15166 = vst [vmem:[#allocation74_spill] sm:$0xff] %v11495_v35  ;;  %15172 = vst [vmem:[#allocation80_spill] sm:$0xff] %v11553_v14 }
 0x252   : > { %9558 = vmatpush3.msk.msra.mxu1 %vm514_vm3, %v11131_v0  ;;  %v2515_v0 = vrot.slane %v11150_v8, 2 }
 0x253   : > { %9657 = vmatprep.subr.msk.mxu1 %vm514_vm3, %v11535_v52 }
 0x254   : > { %9419 = vmatmul.mubr.msk.f32.gmra.mxu0 %vm279_vm0, %v11476_v60  ;;  %9463 = vmatmul.mubr.msk.f32.gmra.mxu1 %vm279_vm0, %v11045_v48  ;;  %v11516_v33 = vsel %vm2484_vm12, %v2515_v0, %v2516_v39  ;;  %v11538_v0 = vsel %vm2484_vm12, %v2520_v59, %v2521_v19  ;;  %v2528_v39 = vrot.slane %v11219_v15, 2  ;;  %v2530_v59 = vrot.slane %v11221_v24, 2 }
 0x255   : > { %9421 = vmatprep.mubr.msk.f32.mxu0 %vm279_vm0, %v11480_v32  ;;  %9465 = vmatprep.mubr.msk.f32.mxu1 %vm279_vm0, %v11066_v44  ;;  %15169 = vst [vmem:[#allocation77_spill] sm:$0xff] %v11516_v33  ;;  %15171 = vst [vmem:[#allocation79_spill] sm:$0xff] %v11538_v0 }
 0x258   : > { %9422 = vmatmul.mubr.msk.f32.gmra.mxu0 %vm279_vm0, %v11495_v35  ;;  %9466 = vmatmul.mubr.msk.f32.gmra.mxu1 %vm279_vm0, %v11068_v56 }
 0x259   : > { %9424 = vmatprep.mubr.msk.f32.mxu0 %vm279_vm0, %v11499_v40  ;;  %9468 = vmatprep.mubr.msk.f32.mxu1 %vm279_vm0, %v11098_v63  ;;  %v2526_v63 = vrot.slane %v11200_v20, 2 }
 0x25b   : > { %v11570_v15 = vsel %vm2484_vm12, %v2526_v63, %v2528_v39 }
 0x25c   : > { %9425 = vmatmul.mubr.msk.f32.gmra.mxu0 %vm279_vm0, %v11512_v2  ;;  %9469 = vmatmul.mubr.msk.f32.gmra.mxu1 %vm279_vm0, %v11100_v41  ;;  %v2525_v41 = vrot.slane %v11198_v11, 2  ;;  %15174 = vst [vmem:[#allocation82_spill] sm:$0xff] %v11570_v15 }
 0x25d   : > { %9427 = vmatprep.mubr.msk.f32.mxu0 %vm279_vm0, %v11516_v33  ;;  %9471 = vmatprep.mubr.msk.f32.mxu1 %vm279_vm0, %v11120_v55  ;;  %v2531_v55 = vrot.slane %v11223_v21, 2 }
 0x25e   : > { %v11557_v50 = vsel %vm2484_vm12, %v2525_v41, %v2526_v63  ;;  %v2533_v41 = vrot.slane %v11242_v28, 2  ;;  %v2538_v63 = vrot.slane %v11265_v29, 2 }
 0x25f   : > { %15173 = vst [vmem:[#allocation81_spill] sm:$0xff] %v11557_v50  ;;  %v11574_v19 = vsel %vm2484_vm12, %v2530_v59, %v2531_v55  ;;  %v2540_v59 = vrot.slane %v11267_v30, 2 }
 0x260   : > { %9428 = vmatmul.mubr.msk.f32.gmra.mxu0 %vm279_vm0, %v11529_v9  ;;  %9472 = vmatmul.mubr.msk.f32.gmra.mxu1 %vm279_vm0, %v11122_v38  ;;  %15175 = vst [vmem:[#allocation83_spill] sm:$0xff] %v11574_v19  ;;  %v11587_v28 = vsel %vm2484_vm12, %v2531_v55, %v2533_v41  ;;  %v2543_v55 = vrot.slane %v11288_v3, 2 }
 0x261   : > { %9430 = vmatprep.mubr.msk.f32.mxu0 %vm279_vm0, %v11538_v0  ;;  %9474 = vmatprep.mubr.msk.f32.mxu1 %vm279_vm0, %v11150_v8  ;;  %v2536_v8 = vrot.slane %v11246_v26, 2  ;;  %15176 = vst [vmem:[#allocation84_spill] sm:$0xff] %v11587_v28 }
 0x263   : > { %v11591_v39 = vsel %vm2484_vm12, %v2535_v45, %v2536_v8  ;;  %v11604_v29 = vsel %vm2484_vm12, %v2536_v8, %v2538_v63  ;;  %v2545_v45 = vrot.slane %v11290_v31, 2  ;;  %v2548_v8 = vrot.slane %v11311_v58, 2 }
 0x264   : > { %9431 = vmatmul.mubr.msk.f32.gmra.mxu0 %vm279_vm0, %v11553_v14  ;;  %9475 = vmatmul.mubr.msk.f32.gmra.mxu1 %vm279_vm0, %v11152_v6  ;;  %15177 = vst [vmem:[#allocation85_spill] sm:$0xff] %v11591_v39  ;;  %15178 = vst [vmem:[#allocation86_spill] sm:$0xff] %v11604_v29  ;;  %v2553_v58 = vrot.slane %v11334_v4, 2  ;;  %v2558_v4 = vrot.slane %v11357_v36, 2  ;;  %v2563_v36 = vrot.slane %v11380_v53, 2  ;;  %v11697_v53 = vld [vmem:[#allocation2 + $0x180] sm:$0xff] }
 0x265   : > { %9433 = vmatprep.mubr.msk.f32.mxu0 %vm279_vm0, %v11557_v50  ;;  %9477 = vmatprep.mubr.msk.f32.mxu1 %vm279_vm0, %v11175_v10  ;;  %v2541_v10 = vrot.slane %v11269_v27, 2 }
 0x267   : > { %v11608_v41 = vsel %vm2484_vm12, %v2540_v59, %v2541_v10  ;;  %v11621_v3 = vsel %vm2484_vm12, %v2541_v10, %v2543_v55  ;;  %v2550_v59 = vrot.slane %v11313_v12, 2 }
 0x268   : > { %9434 = vmatmul.mubr.msk.f32.gmra.mxu0 %vm279_vm0, %v11570_v15  ;;  %9478 = vmatmul.mubr.msk.f32.gmra.mxu1 %vm279_vm0, %v11177_v7  ;;  %15179 = vst [vmem:[#allocation87_spill] sm:$0xff] %v11608_v41  ;;  %15180 = vst [vmem:[#allocation88_spill] sm:$0xff] %v11621_v3 }
 0x269   : > { %9436 = vmatprep.mubr.msk.f32.mxu0 %vm279_vm0, %v11574_v19  ;;  %9480 = vmatprep.mubr.msk.f32.mxu1 %vm279_vm0, %v11198_v11  ;;  %v2546_v11 = vrot.slane %v11292_v34, 2 }
 0x26b   : > { %v11625_v63 = vsel %vm2484_vm12, %v2545_v45, %v2546_v11  ;;  %v11638_v10 = vsel %vm2484_vm12, %v2546_v11, %v2548_v8  ;;  %v2555_v45 = vrot.slane %v11336_v62, 2 }
 0x26c   : > { %9437 = vmatmul.mubr.msk.f32.gmra.mxu0 %vm279_vm0, %v11587_v28  ;;  %9481 = vmatmul.mubr.msk.f32.gmra.mxu1 %vm279_vm0, %v11200_v20  ;;  %15181 = vst [vmem:[#allocation89_spill] sm:$0xff] %v11625_v63 }
 0x26d   : > { %9439 = vmatprep.mubr.msk.f32.mxu0 %vm279_vm0, %v11591_v39  ;;  %9483 = vmatprep.mubr.msk.f32.mxu1 %vm279_vm0, %v11221_v24  ;;  %v2551_v24 = vrot.slane %v11315_v16, 2 }
 0x26f   : > { %v11642_v55 = vsel %vm2484_vm12, %v2550_v59, %v2551_v24  ;;  %v11655_v11 = vsel %vm2484_vm12, %v2551_v24, %v2553_v58  ;;  %v2560_v59 = vrot.slane %v11359_v43, 2 }
 0x270   : > { %9440 = vmatmul.mubr.msk.f32.gmra.mxu0 %vm279_vm0, %v11604_v29  ;;  %9484 = vmatmul.mubr.msk.f32.gmra.mxu1 %vm279_vm0, %v11223_v21  ;;  %15182 = vst [vmem:[#allocation90_spill] sm:$0xff] %v11642_v55  ;;  %15183 = vst [vmem:[#allocation91_spill] sm:$0xff] %v11655_v11 }
 0x271   : > { %9442 = vmatprep.mubr.msk.f32.mxu0 %vm279_vm0, %v11608_v41  ;;  %9486 = vmatprep.mubr.msk.f32.mxu1 %vm279_vm0, %v11244_v25  ;;  %v2556_v25 = vrot.slane %v11338_v17, 2 }
 0x273   : > { %v11659_v8 = vsel %vm2484_vm12, %v2555_v45, %v2556_v25  ;;  %v11672_v24 = vsel %vm2484_vm12, %v2556_v25, %v2558_v4  ;;  %v11702_v45 = vld [vmem:[%s14908_s4 + $0x20] sm:$0xf]  ;;  %v15189_v4 = vld [vmem:[#allocation47_spill] sm:$0xff] }
 0x274   : > { %9443 = vmatmul.mubr.msk.f32.gmra.mxu0 %vm279_vm0, %v11621_v3  ;;  %9487 = vmatmul.mubr.msk.f32.gmra.mxu1 %vm279_vm0, %v11246_v26 }
 0x275   : > { %9445 = vmatprep.mubr.msk.f32.mxu0 %vm279_vm0, %v11625_v63  ;;  %9489 = vmatprep.mubr.msk.f32.mxu1 %vm279_vm0, %v11267_v30  ;;  %v2561_v30 = vrot.slane %v11361_v22, 2 }
 0x277   : > { %v11676_v58 = vsel %vm2484_vm12, %v2560_v59, %v2561_v30  ;;  %v11687_v25 = vsel %vm2484_vm12, %v2561_v30, %v2563_v36  ;;  %v11712_v30 = vld [vmem:[#allocation2 + $0x188] sm:$0xff]  ;;  %v15191_v59 = vld [vmem:[#allocation50_spill] sm:$0xff]  ;;  %v15192_v36 = vld [vmem:[#allocation52_spill] sm:$0xff] }
 0x278   : > { %9446 = vmatmul.mubr.msk.f32.gmra.mxu0 %vm279_vm0, %v11638_v10  ;;  %9490 = vmatmul.mubr.msk.f32.gmra.mxu1 %vm279_vm0, %v11269_v27 }
 0x279   : > { %9448 = vmatprep.mubr.msk.f32.mxu0 %vm279_vm0, %v11642_v55  ;;  %9492 = vmatprep.mubr.msk.f32.mxu1 %vm279_vm0, %v11290_v31 }
 0x27c   : > { %9449 = vmatmul.mubr.msk.f32.gmra.mxu0 %vm279_vm0, %v11655_v11  ;;  %9493 = vmatmul.mubr.msk.f32.gmra.mxu1 %vm279_vm0, %v11292_v34 }
 0x27d   : > { %9451 = vmatprep.mubr.msk.f32.mxu0 %vm279_vm0, %v11659_v8  ;;  %9495 = vmatprep.mubr.msk.f32.mxu1 %vm279_vm0, %v11313_v12 }
 0x280   : > { %9452 = vmatmul.mubr.msk.f32.gmra.mxu0 %vm279_vm0, %v11672_v24  ;;  %9496 = vmatmul.mubr.msk.f32.gmra.mxu1 %vm279_vm0, %v11315_v16 }
 0x281   : > { %9454 = vmatprep.mubr.msk.f32.mxu0 %vm279_vm0, %v11676_v58  ;;  %9498 = vmatprep.mubr.msk.f32.mxu1 %vm279_vm0, %v11336_v62 }
 0x284   : > { %9455 = vmatmul.mubr.msk.f32.gmra.mxu0 %vm279_vm0, %v11687_v25  ;;  %9499 = vmatmul.mubr.msk.f32.gmra.mxu1 %vm279_vm0, %v11338_v17 }
 0x285   : > { %9501 = vmatprep.mubr.msk.f32.mxu1 %vm279_vm0, %v11359_v43  ;;  %9509 = vmatprep.mubr.msk.f32.mxu0 %vm279_vm0, %v11064_v57  ;;  %v15184_v57 = vld [vmem:[#allocation40_spill] sm:$0xff] }
 0x288   : > { %9502 = vmatmul.mubr.msk.f32.gmra.mxu1 %vm279_vm0, %v11361_v22  ;;  %9510 = vmatmul.mubr.msk.f32.vlgmr.msra.gmra.mxu0 %vm279_vm0, %v11084_v61  ;;  %v15185_v61 = vld [vmem:[#allocation41_spill] sm:$0xff] }
 0x289   : > { %9608 = vmatpush3.msk.msra.mxu0 %vm514_vm3, %v11427_v5  ;;  %9504 = vmatprep.mubr.msk.f32.mxu1 %vm279_vm0, %v11697_v53  ;;  %v15186_v5 = vld [vmem:[#allocation43_spill] sm:$0xff] }
 0x28a   : > { %9512 = vmatprep.mubr.msk.f32.mxu0 %vm279_vm0, %v11090_v1  ;;  %9707 = vmatprep.subr.msk.mxu0 %vm514_vm3, %v11702_v45 }
 0x28c   : > { %9505 = vmatmul.mubr.msk.f32.gmra.mxu1 %vm279_vm0, %v11712_v30  ;;  %9513 = vmatmul.mubr.msk.f32.gmra.mxu0 %vm279_vm0, %v11110_v47 }
 0x28d   : > { %9515 = vmatprep.mubr.msk.f32.mxu0 %vm279_vm0, %v11114_v49  ;;  %9559 = vmatprep.mubr.msk.f32.mxu1 %vm279_vm0, %v11422_v51  ;;  %v15187_v51 = vld [vmem:[#allocation44_spill] sm:$0xff] }
 0x290   : > { %9516 = vmatmul.mubr.msk.f32.gmra.mxu0 %vm279_vm0, %v15184_v57  ;;  %9560 = vmatmul.mubr.msk.f32.vlgmr.msra.gmra.mxu1 %vm279_vm0, %v11438_v37  ;;  %v15188_v37 = vld [vmem:[#allocation46_spill] sm:$0xff] }
 0x291   : > { %9518 = vmatprep.mubr.msk.f32.mxu0 %vm279_vm0, %v15185_v61  ;;  %9562 = vmatprep.mubr.msk.f32.mxu1 %vm279_vm0, %v11444_v18 }
 0x292   : > { %9658 = vmatpush3.msk.msra.mxu1 %vm514_vm3, %v11535_v52  ;;  %v15190_v52 = vld [vmem:[#allocation49_spill] sm:$0xff] }
 0x294   : > { %9519 = vmatmul.mubr.msk.f32.gmra.mxu0 %vm279_vm0, %v15186_v5  ;;  %9563 = vmatmul.mubr.msk.f32.gmra.mxu1 %vm279_vm0, %v11459_v54 }
 0x295   : > { %9521 = vmatprep.mubr.msk.f32.mxu0 %vm279_vm0, %v15187_v51  ;;  %9565 = vmatprep.mubr.msk.f32.mxu1 %vm279_vm0, %v11463_v13  ;;  %v15200_v13 = vld [vmem:[#allocation60_spill] sm:$0xff] }
 0x298   : > { %9522 = vmatmul.mubr.msk.f32.gmra.mxu0 %vm279_vm0, %v15188_v37  ;;  %9566 = vmatmul.mubr.msk.f32.gmra.mxu1 %vm279_vm0, %v11476_v60  ;;  %v15193_v60 = vld [vmem:[#allocation53_spill] sm:$0xff] }
 0x299   : > { %9524 = vmatprep.mubr.msk.f32.mxu0 %vm279_vm0, %v15189_v4  ;;  %9568 = vmatprep.mubr.msk.f32.mxu1 %vm279_vm0, %v11480_v32  ;;  %v15194_v32 = vld [vmem:[#allocation55_spill] sm:$0xff] }
 0x29c   : > { %9525 = vmatmul.mubr.msk.f32.gmra.mxu0 %vm279_vm0, %v15190_v52  ;;  %9569 = vmatmul.mubr.msk.f32.gmra.mxu1 %vm279_vm0, %v11495_v35  ;;  %v15195_v35 = vld [vmem:[#allocation56_spill] sm:$0xff] }
 0x29d   : > { %9527 = vmatprep.mubr.msk.f32.mxu0 %vm279_vm0, %v15191_v59  ;;  %9571 = vmatprep.mubr.msk.f32.mxu1 %vm279_vm0, %v11499_v40  ;;  %v15196_v40 = vld [vmem:[#allocation58_spill] sm:$0xff] }
 0x2a0   : > { %9528 = vmatmul.mubr.msk.f32.gmra.mxu0 %vm279_vm0, %v15192_v36  ;;  %9572 = vmatmul.mubr.msk.f32.gmra.mxu1 %vm279_vm0, %v11512_v2  ;;  %v15197_v2 = vld [vmem:[#allocation59_spill] sm:$0xff] }
 0x2a1   : > { %9530 = vmatprep.mubr.msk.f32.mxu0 %vm279_vm0, %v15193_v60  ;;  %9574 = vmatprep.mubr.msk.f32.mxu1 %vm279_vm0, %v11516_v33 }
 0x2a4   : > { %9531 = vmatmul.mubr.msk.f32.gmra.mxu0 %vm279_vm0, %v15194_v32  ;;  %9575 = vmatmul.mubr.msk.f32.gmra.mxu1 %vm279_vm0, %v11529_v9 }
 0x2a5   : > { %9533 = vmatprep.mubr.msk.f32.mxu0 %vm279_vm0, %v15195_v35  ;;  %9577 = vmatprep.mubr.msk.f32.mxu1 %vm279_vm0, %v11538_v0  ;;  %v15201_v0 = vld [vmem:[#allocation61_spill] sm:$0xff] }
 0x2a8   : > { %9534 = vmatmul.mubr.msk.f32.gmra.mxu0 %vm279_vm0, %v15196_v40  ;;  %9578 = vmatmul.mubr.msk.f32.gmra.mxu1 %vm279_vm0, %v11553_v14 }
 0x2a9   : > { %9536 = vmatprep.mubr.msk.f32.mxu0 %vm279_vm0, %v15197_v2  ;;  %9580 = vmatprep.mubr.msk.f32.mxu1 %vm279_vm0, %v11557_v50 }
 0x2ac   : > { %v11784_v33 = vpop.f32.mrf.mxu0  ;;  %v11786_v9 = vpop.f32.mrf.mxu1  ;;  %9537 = vmatmul.mubr.msk.f32.gmra.mxu0 %vm279_vm0, %v15200_v13  ;;  %9581 = vmatmul.mubr.msk.f32.gmra.mxu1 %vm279_vm0, %v11570_v15  ;;  %v15207_v15 = vld [vmem:[#allocation63_spill] sm:$0xff] }
 0x2ad   : > { %15198 = vst [vmem:[#allocation40_spill] sm:$0xff] %v11784_v33  ;;  %15199 = vst [vmem:[#allocation41_spill] sm:$0xff] %v11786_v9  ;;  %9539 = vmatprep.mubr.msk.f32.mxu0 %vm279_vm0, %v15201_v0  ;;  %9583 = vmatprep.mubr.msk.f32.mxu1 %vm279_vm0, %v11574_v19  ;;  %v15206_v9 = vld [vmem:[#allocation62_spill] sm:$0xff] }
 0x2ae   : > { %v11796_v14 = vpop.f32.mrf.mxu0  ;;  %v11798_v54 = vpop.f32.mrf.mxu1 }
 0x2af   : > { %15202 = vst [vmem:[#allocation43_spill] sm:$0xff] %v11796_v14  ;;  %15203 = vst [vmem:[#allocation44_spill] sm:$0xff] %v11798_v54 }
 0x2b0   : > { %v11800_v50 = vpop.f32.mrf.mxu0  ;;  %v11802_v33 = vpop.f32.mrf.mxu1  ;;  %9540 = vmatmul.mubr.msk.f32.gmra.mxu0 %vm279_vm0, %v15206_v9  ;;  %9584 = vmatmul.mubr.msk.f32.gmra.mxu1 %vm279_vm0, %v11587_v28 }
 0x2b1   : > { %15204 = vst [vmem:[#allocation46_spill] sm:$0xff] %v11800_v50  ;;  %15205 = vst [vmem:[#allocation47_spill] sm:$0xff] %v11802_v33  ;;  %9542 = vmatprep.mubr.msk.f32.mxu0 %vm279_vm0, %v15207_v15  ;;  %9586 = vmatprep.mubr.msk.f32.mxu1 %vm279_vm0, %v11591_v39  ;;  %v15212_v33 = vld [vmem:[#allocation64_spill] sm:$0xff] }
 0x2b2   : > { %v11812_v19 = vpop.f32.mrf.mxu0  ;;  %v11814_v14 = vpop.f32.mrf.mxu1 }
 0x2b3   : > { %15208 = vst [vmem:[#allocation49_spill] sm:$0xff] %v11812_v19  ;;  %15209 = vst [vmem:[#allocation50_spill] sm:$0xff] %v11814_v14 }
 0x2b4   : > { %v11816_v54 = vpop.f32.mrf.mxu0  ;;  %v11818_v50 = vpop.f32.mrf.mxu1  ;;  %9543 = vmatmul.mubr.msk.f32.gmra.mxu0 %vm279_vm0, %v15212_v33  ;;  %9587 = vmatmul.mubr.msk.f32.gmra.mxu1 %vm279_vm0, %v11604_v29 }
 0x2b5   : > { %15210 = vst [vmem:[#allocation52_spill] sm:$0xff] %v11816_v54  ;;  %15211 = vst [vmem:[#allocation53_spill] sm:$0xff] %v11818_v50  ;;  %9545 = vmatprep.mubr.msk.f32.mxu0 %vm279_vm0, %v11353_v23  ;;  %9589 = vmatprep.mubr.msk.f32.mxu1 %vm279_vm0, %v11608_v41  ;;  %v15217_v50 = vld [vmem:[#allocation65_spill] sm:$0xff] }
 0x2b6   : > { %v11828_v39 = vpop.f32.mrf.mxu0  ;;  %v11830_v19 = vpop.f32.mrf.mxu1 }
 0x2b7   : > { %15213 = vst [vmem:[#allocation55_spill] sm:$0xff] %v11828_v39  ;;  %15214 = vst [vmem:[#allocation56_spill] sm:$0xff] %v11830_v19  ;;  %v1758_v19 = vld [vmem:[#allocation2 + $0x190] sm:$0x3] }
 0x2b8   : > { %v11832_v14 = vpop.f32.mrf.mxu0  ;;  %v11834_v54 = vpop.f32.mrf.mxu1  ;;  %9546 = vmatmul.mubr.msk.f32.gmra.mxu0 %vm279_vm0, %v11372_v42  ;;  %9590 = vmatmul.mubr.msk.f32.gmra.mxu1 %vm279_vm0, %v11621_v3  ;;  %v15222_v3 = vld [vmem:[#allocation66_spill] sm:$0xff] }
 0x2b9   : > { %15215 = vst [vmem:[#allocation58_spill] sm:$0xff] %v11832_v14  ;;  %15216 = vst [vmem:[#allocation59_spill] sm:$0xff] %v11834_v54  ;;  %9548 = vmatprep.mubr.msk.f32.mxu0 %vm279_vm0, %v15217_v50  ;;  %9592 = vmatprep.mubr.msk.f32.mxu1 %vm279_vm0, %v11625_v63  ;;  %v3156_v14 = vrot.slane %v11697_v53, 1  ;;  %v3157_v54 = vrot.slane %v11712_v30, 1  ;;  %v15223_v63 = vld [vmem:[#allocation67_spill] sm:$0xff]  ;;  %v15228_v50 = vld [vmem:[#allocation68_spill] sm:$0xff] }
 0x2ba   : > { %v11844_v41 = vpop.f32.mrf.mxu0  ;;  %v11846_v39 = vpop.f32.mrf.mxu1 }
 0x2bb   : > { %15218 = vst [vmem:[#allocation60_spill] sm:$0xff] %v11844_v41  ;;  %15219 = vst [vmem:[#allocation61_spill] sm:$0xff] %v11846_v39  ;;  %v3159_v39 = vrot.slane %v1758_v19, 1 }
 0x2bc   : > { %v11850_v29 = vpop.f32.mrf.mxu0  ;;  %v11852_v28 = vpop.f32.mrf.mxu1  ;;  %9549 = vmatmul.mubr.msk.f32.gmra.mxu0 %vm279_vm0, %v15222_v3  ;;  %9593 = vmatmul.mubr.msk.f32.gmra.mxu1 %vm279_vm0, %v11638_v10 }
 0x2bd   : > { %15220 = vst [vmem:[#allocation62_spill] sm:$0xff] %v11850_v29  ;;  %15221 = vst [vmem:[#allocation63_spill] sm:$0xff] %v11852_v28  ;;  %9551 = vmatprep.mubr.msk.f32.mxu0 %vm279_vm0, %v15223_v63  ;;  %9595 = vmatprep.mubr.msk.f32.mxu1 %vm279_vm0, %v11642_v55  ;;  %v11867_v29 = vsel %vm1819_vm13, %v3156_v14, %v3157_v54 }
 0x2be   : > { %v11862_v41 = vpop.f32.mrf.mxu0  ;;  %v11864_v18 = vpop.f32.mrf.mxu1 }
 0x2bf   : > { %15224 = vst [vmem:[#allocation64_spill] sm:$0xff] %v11862_v41  ;;  %15225 = vst [vmem:[#allocation67_spill] sm:$0xff] %v11864_v18  ;;  %v11882_v18 = vsel %vm1819_vm13, %v3157_v54, %v3159_v39  ;;  %v3426_v41 = vrot.slane %v11712_v30, 2  ;;  %v3428_v54 = vrot.slane %v1758_v19, 2 }
 0x2c0   : > { %v11869_v28 = vpop.f32.mrf.mxu0  ;;  %v11871_v3 = vpop.f32.mrf.mxu1  ;;  %9552 = vmatmul.mubr.msk.f32.gmra.mxu0 %vm279_vm0, %v15228_v50  ;;  %9596 = vmatmul.mubr.msk.f32.gmra.mxu1 %vm279_vm0, %v11655_v11 }
 0x2c1   : > { %15226 = vst [vmem:[#allocation92_spill] sm:$0xff] %v11869_v28  ;;  %15227 = vst [vmem:[#allocation93_spill] sm:$0xff] %v11871_v3  ;;  %9554 = vmatprep.mubr.msk.f32.mxu0 %vm279_vm0, %v11867_v29  ;;  %9598 = vmatprep.mubr.msk.f32.mxu1 %vm279_vm0, %v11659_v8  ;;  %v3425_v3 = vrot.slane %v11697_v53, 2 }
 0x2c2   : > { %v11884_v14 = vpop.f32.mrf.mxu0  ;;  %v11886_v28 = vpop.f32.mrf.mxu1 }
 0x2c3   : > { %15229 = vst [vmem:[#allocation68_spill] sm:$0xff] %v11884_v14  ;;  %15230 = vst [vmem:[#allocation94_spill] sm:$0xff] %v11886_v28 }
 0x2c4   : > { %v11890_v55 = vpop.f32.mrf.mxu0  ;;  %v11892_v11 = vpop.f32.mrf.mxu1  ;;  %9555 = vmatmul.mubr.msk.f32.gmra.mxu0 %vm279_vm0, %v11882_v18  ;;  %9599 = vmatmul.mubr.msk.f32.gmra.mxu1 %vm279_vm0, %v11672_v24 }
 0x2c5   : > { %15231 = vst [vmem:[#allocation95_spill] sm:$0xff] %v11890_v55  ;;  %15232 = vst [vmem:[#allocation96_spill] sm:$0xff] %v11892_v11  ;;  %9601 = vmatprep.mubr.msk.f32.mxu1 %vm279_vm0, %v11676_v58  ;;  %9609 = vmatprep.mubr.msk.f32.mxu0 %vm279_vm0, %v11043_v46  ;;  %v11907_v55 = vsel %vm2484_vm12, %v3425_v3, %v3426_v41  ;;  %v11920_v46 = vsel %vm2484_vm12, %v3426_v41, %v3428_v54 }
 0x2c6   : > { %v11902_v39 = vpop.f32.mrf.mxu0  ;;  %v11904_v28 = vpop.f32.mrf.mxu1  ;;  %15236 = vst [vmem:[#allocation100_spill] sm:$0xff] %v11920_v46 }
 0x2c7   : > { %15233 = vst [vmem:[#allocation97_spill] sm:$0xff] %v11902_v39  ;;  %15234 = vst [vmem:[#allocation98_spill] sm:$0xff] %v11904_v28 }
 0x2c8   : > { %v11909_v11 = vpop.f32.mrf.mxu1  ;;  %v9311_v14 = vpop.f32.mrf.mxu0  ;;  %9602 = vmatmul.mubr.msk.f32.gmra.mxu1 %vm279_vm0, %v11687_v25  ;;  %9610 = vmatmul.mubr.msk.f32.vlgmr.msra.gmra.mxu0 %vm279_vm0, %v11045_v48  ;;  %v15239_v48 = vld [vmem:[#allocation37_spill] sm:$0xff] }
 0x2c9   : > { %15235 = vst [vmem:[#allocation99_spill] sm:$0xff] %v11909_v11  ;;  %9708 = vmatpush3.msk.msra.mxu0 %vm514_vm3, %v11702_v45  ;;  %9604 = vmatprep.mubr.msk.f32.mxu1 %vm279_vm0, %v11907_v55 }
 0x2ca   : > { %v11922_v19 = vpop.f32.mrf.mxu1  ;;  %v2033_v3 = vpop.f32.mrf.mxu0  ;;  %9612 = vmatprep.mubr.msk.f32.mxu0 %vm279_vm0, %v11066_v44 }
 0x2cb   : > { %15237 = vst [vmem:[#allocation101_spill] sm:$0xff] %v11922_v19  ;;  %v15241_v19 = vld [vmem:[#allocation38_spill] sm:$0xff] }
 0x2cc   : > { %v11926_v11 = vpop.f32.mrf.mxu1  ;;  %v9314_v28 = vpop.f32.mrf.mxu0  ;;  %9605 = vmatmul.mubr.msk.f32.gmra.mxu1 %vm279_vm0, %v11920_v46  ;;  %9613 = vmatmul.mubr.msk.f32.gmra.mxu0 %vm279_vm0, %v11068_v56  ;;  %v15242_v56 = vld [vmem:[#allocation39_spill] sm:$0xff] }
 0x2cd   : > { %15238 = vst [vmem:[#allocation102_spill] sm:$0xff] %v11926_v11  ;;  %9615 = vmatprep.mubr.msk.f32.mxu0 %vm279_vm0, %v15239_v48  ;;  %9659 = vmatprep.mubr.msk.f32.mxu1 %vm279_vm0, %v11090_v1 }
 0x2ce   : > { %v11936_v41 = vpop.f32.mrf.mxu1  ;;  %v2043_v45 = vpop.f32.mrf.mxu0 }
 0x2cf   : > { %15240 = vst [vmem:[#allocation37_spill] sm:$0xff] %v11936_v41 }
 0x2d0   : > { %v9317_v54 = vpop.f32.mrf.mxu0  ;;  %v9361_v44 = vpop.f32.mrf.mxu1  ;;  %9616 = vmatmul.mubr.msk.f32.gmra.mxu0 %vm279_vm0, %v15241_v19  ;;  %9660 = vmatmul.mubr.msk.f32.vlgmr.msra.gmra.mxu1 %vm279_vm0, %v11110_v47 }
 0x2d1   : > { %v11942_v11 = vadd.f32 %v9361_v44, %v9311_v14  ;;  %9618 = vmatprep.mubr.msk.f32.mxu0 %vm279_vm0, %v15242_v56  ;;  %9662 = vmatprep.mubr.msk.f32.mxu1 %vm279_vm0, %v11114_v49  ;;  %v15243_v14 = vld [vmem:[#allocation42_spill] sm:$0xff] }
 0x2d2   : > { %v2053_v1 = vpop.f32.mrf.mxu0  ;;  %v2325_v48 = vpop.f32.mrf.mxu1 }
 0x2d3   : > { %v11948_v41 = vadd.f32 %v2325_v48, %v2033_v3 }
 0x2d4   : > { %v9320_v39 = vpop.f32.mrf.mxu0  ;;  %v9364_v46 = vpop.f32.mrf.mxu1  ;;  %9619 = vmatmul.mubr.msk.f32.gmra.mxu0 %vm279_vm0, %v11122_v38  ;;  %9663 = vmatmul.mubr.msk.f32.gmra.mxu1 %vm279_vm0, %v15184_v57 }
 0x2d5   : > { %v11954_v47 = vadd.f32 %v9364_v46, %v9314_v28  ;;  %9621 = vmatprep.mubr.msk.f32.mxu0 %vm279_vm0, %v15243_v14  ;;  %9665 = vmatprep.mubr.msk.f32.mxu1 %vm279_vm0, %v15185_v61  ;;  %v15244_v28 = vld [vmem:[#allocation45_spill] sm:$0xff] }
 0x2d6   : > { %v2063_v49 = vpop.f32.mrf.mxu0  ;;  %v2335_v19 = vpop.f32.mrf.mxu1 }
 0x2d7   : > { %v11960_v3 = vadd.f32 %v2335_v19, %v2043_v45 }
 0x2d8   : > { %v9323_v44 = vpop.f32.mrf.mxu0  ;;  %v9367_v56 = vpop.f32.mrf.mxu1  ;;  %9622 = vmatmul.mubr.msk.f32.gmra.mxu0 %vm279_vm0, %v11152_v6  ;;  %9666 = vmatmul.mubr.msk.f32.gmra.mxu1 %vm279_vm0, %v15186_v5  ;;  %v15245_v5 = vld [vmem:[#allocation48_spill] sm:$0xff] }
 0x2d9   : > { %v11966_v38 = vadd.f32 %v9367_v56, %v9317_v54  ;;  %9624 = vmatprep.mubr.msk.f32.mxu0 %vm279_vm0, %v15244_v28  ;;  %9668 = vmatprep.mubr.msk.f32.mxu1 %vm279_vm0, %v15187_v51 }
 0x2da   : > { %v2073_v57 = vpop.f32.mrf.mxu0  ;;  %v2345_v61 = vpop.f32.mrf.mxu1 }
 0x2db   : > { %v11972_v46 = vadd.f32 %v2345_v61, %v2053_v1 }
 0x2dc   : > { %v9326_v45 = vpop.f32.mrf.mxu0  ;;  %v9370_v48 = vpop.f32.mrf.mxu1  ;;  %9625 = vmatmul.mubr.msk.f32.gmra.mxu0 %vm279_vm0, %v11177_v7  ;;  %9669 = vmatmul.mubr.msk.f32.gmra.mxu1 %vm279_vm0, %v15188_v37  ;;  %v15246_v37 = vld [vmem:[#allocation51_spill] sm:$0xff] }
 0x2dd   : > { %v11978_v6 = vadd.f32 %v9370_v48, %v9320_v39  ;;  %9627 = vmatprep.mubr.msk.f32.mxu0 %vm279_vm0, %v15245_v5  ;;  %9671 = vmatprep.mubr.msk.f32.mxu1 %vm279_vm0, %v15189_v4 }
 0x2de   : > { %v2083_v51 = vpop.f32.mrf.mxu0  ;;  %v2355_v54 = vpop.f32.mrf.mxu1 }
 0x2df   : > { %v11984_v1 = vadd.f32 %v2355_v54, %v2063_v49 }
 0x2e0   : > { %v9329_v14 = vpop.f32.mrf.mxu0  ;;  %v9373_v19 = vpop.f32.mrf.mxu1  ;;  %9628 = vmatmul.mubr.msk.f32.gmra.mxu0 %vm279_vm0, %v11200_v20  ;;  %9672 = vmatmul.mubr.msk.f32.gmra.mxu1 %vm279_vm0, %v15190_v52  ;;  %v15247_v52 = vld [vmem:[#allocation54_spill] sm:$0xff] }
 0x2e1   : > { %v11990_v7 = vadd.f32 %v9373_v19, %v9323_v44  ;;  %9630 = vmatprep.mubr.msk.f32.mxu0 %vm279_vm0, %v15246_v37  ;;  %9674 = vmatprep.mubr.msk.f32.mxu1 %vm279_vm0, %v15191_v59 }
 0x2e2   : > { %v2093_v4 = vpop.f32.mrf.mxu0  ;;  %v2365_v39 = vpop.f32.mrf.mxu1 }
 0x2e3   : > { %v11996_v49 = vadd.f32 %v2365_v39, %v2073_v57 }
 0x2e4   : > { %v9332_v56 = vpop.f32.mrf.mxu0  ;;  %v9376_v28 = vpop.f32.mrf.mxu1  ;;  %9631 = vmatmul.mubr.msk.f32.gmra.mxu0 %vm279_vm0, %v11223_v21  ;;  %9675 = vmatmul.mubr.msk.f32.gmra.mxu1 %vm279_vm0, %v15192_v36  ;;  %v15248_v36 = vld [vmem:[#allocation57_spill] sm:$0xff] }
 0x2e5   : > { %v12002_v20 = vadd.f32 %v9376_v28, %v9326_v45  ;;  %9633 = vmatprep.mubr.msk.f32.mxu0 %vm279_vm0, %v15247_v52  ;;  %9677 = vmatprep.mubr.msk.f32.mxu1 %vm279_vm0, %v15193_v60  ;;  %v12094_v28 = vld [vmem:[#allocation2 + $0x198] sm:$0xff] }
 0x2e6   : > { %v2103_v59 = vpop.f32.mrf.mxu0  ;;  %v2375_v44 = vpop.f32.mrf.mxu1 }
 0x2e7   : > { %v12008_v57 = vadd.f32 %v2375_v44, %v2083_v51 }
 0x2e8   : > { %v9335_v61 = vpop.f32.mrf.mxu0  ;;  %v9379_v48 = vpop.f32.mrf.mxu1  ;;  %9634 = vmatmul.mubr.msk.f32.gmra.mxu0 %vm279_vm0, %v11246_v26  ;;  %9678 = vmatmul.mubr.msk.f32.gmra.mxu1 %vm279_vm0, %v15194_v32 }
 0x2e9   : > { %v12014_v21 = vadd.f32 %v9379_v48, %v9329_v14  ;;  %9636 = vmatprep.mubr.msk.f32.mxu0 %vm279_vm0, %v15248_v36  ;;  %9680 = vmatprep.mubr.msk.f32.mxu1 %vm279_vm0, %v15195_v35  ;;  %v3961_v48 = vrot.slane %v12094_v28, 1  ;;  %v12114_v36 = vld [vmem:[#allocation2 + $0x1a8] sm:$0x3] }
 0x2ea   : > { %v12020_v60 = vpop.f32.mrf.mxu0  ;;  %v2385_v45 = vpop.f32.mrf.mxu1 }
 0x2eb   : > { %v12022_v5 = vadd.f32 %v2385_v45, %v2093_v4 }
 0x2ec   : > { %v9338_v51 = vpop.f32.mrf.mxu0  ;;  %v9382_v54 = vpop.f32.mrf.mxu1  ;;  %9637 = vmatmul.mubr.msk.f32.gmra.mxu0 %vm279_vm0, %v11269_v27  ;;  %9681 = vmatmul.mubr.msk.f32.gmra.mxu1 %vm279_vm0, %v15196_v40 }
 0x2ed   : > { %v12028_v26 = vadd.f32 %v9382_v54, %v9332_v56  ;;  %9639 = vmatprep.mubr.msk.f32.mxu0 %vm279_vm0, %v11290_v31  ;;  %9683 = vmatprep.mubr.msk.f32.mxu1 %vm279_vm0, %v15197_v2  ;;  %v15251_v54 = vld [vmem:[#allocation69_spill] sm:$0xff] }
 0x2ee   : > { %v12034_v32 = vpop.f32.mrf.mxu0  ;;  %v2395_v35 = vpop.f32.mrf.mxu1 }
 0x2ef   : > { %v12036_v14 = vadd.f32 %v2395_v35, %v2103_v59  ;;  %v3964_v35 = vrot.slane %v12114_v36, 1 }
 0x2f0   : > { %v9341_v19 = vpop.f32.mrf.mxu0  ;;  %v9385_v37 = vpop.f32.mrf.mxu1  ;;  %9640 = vmatmul.mubr.msk.f32.gmra.mxu0 %vm279_vm0, %v11292_v34  ;;  %9684 = vmatmul.mubr.msk.f32.gmra.mxu1 %vm279_vm0, %v15200_v13 }
 0x2f1   : > { %v12042_v27 = vadd.f32 %v9385_v37, %v9335_v61  ;;  %9642 = vmatprep.mubr.msk.f32.mxu0 %vm279_vm0, %v11313_v12  ;;  %9686 = vmatprep.mubr.msk.f32.mxu1 %vm279_vm0, %v15201_v0 }
 0x2f2   : > { %v12048_v31 = vpop.f32.mrf.mxu0  ;;  %v12050_v40 = vpop.f32.mrf.mxu1 }
 0x2f4   : > { %v9344_v2 = vpop.f32.mrf.mxu0  ;;  %v9388_v4 = vpop.f32.mrf.mxu1  ;;  %9643 = vmatmul.mubr.msk.f32.gmra.mxu0 %vm279_vm0, %v11315_v16  ;;  %9687 = vmatmul.mubr.msk.f32.gmra.mxu1 %vm279_vm0, %v15206_v9 }
 0x2f5   : > { %v12056_v34 = vadd.f32 %v9388_v4, %v9338_v51  ;;  %9645 = vmatprep.mubr.msk.f32.mxu0 %vm279_vm0, %v11336_v62  ;;  %9689 = vmatprep.mubr.msk.f32.mxu1 %vm279_vm0, %v15207_v15 }
 0x2f6   : > { %v12062_v12 = vpop.f32.mrf.mxu0  ;;  %v12064_v13 = vpop.f32.mrf.mxu1 }
 0x2f8   : > { %v9347_v0 = vpop.f32.mrf.mxu0  ;;  %v9391_v39 = vpop.f32.mrf.mxu1  ;;  %9646 = vmatmul.mubr.msk.f32.gmra.mxu0 %vm279_vm0, %v11338_v17  ;;  %9690 = vmatmul.mubr.msk.f32.gmra.mxu1 %vm279_vm0, %v15212_v33 }
 0x2f9   : > { %v12070_v16 = vadd.f32 %v9391_v39, %v9341_v19  ;;  %9648 = vmatprep.mubr.msk.f32.mxu0 %vm279_vm0, %v11359_v43  ;;  %9692 = vmatprep.mubr.msk.f32.mxu1 %vm279_vm0, %v11353_v23  ;;  %v15249_v43 = vld [vmem:[#allocation65_spill] sm:$0xff] }
 0x2fa   : > { %v12076_v62 = vpop.f32.mrf.mxu0  ;;  %v12078_v9 = vpop.f32.mrf.mxu1 }
 0x2fc   : > { %v9350_v15 = vpop.f32.mrf.mxu0  ;;  %v9394_v56 = vpop.f32.mrf.mxu1  ;;  %9649 = vmatmul.mubr.msk.f32.gmra.mxu0 %vm279_vm0, %v11361_v22  ;;  %9693 = vmatmul.mubr.msk.f32.gmra.mxu1 %vm279_vm0, %v11372_v42  ;;  %v15250_v22 = vld [vmem:[#allocation66_spill] sm:$0xff] }
 0x2fd   : > { %v12084_v17 = vadd.f32 %v9394_v56, %v9344_v2  ;;  %9651 = vmatprep.mubr.msk.f32.mxu0 %vm279_vm0, %v11697_v53  ;;  %9695 = vmatprep.mubr.msk.f32.mxu1 %vm279_vm0, %v15249_v43  ;;  %v12106_v53 = vld [vmem:[#allocation2 + $0x1a0] sm:$0xff] }
 0x2fe   : > { %v12090_v23 = vpop.f32.mrf.mxu0  ;;  %v12092_v33 = vpop.f32.mrf.mxu1 }
 0x300   : > { %v9353_v52 = vpop.f32.mrf.mxu0  ;;  %v9397_v59 = vpop.f32.mrf.mxu1  ;;  %9652 = vmatmul.mubr.msk.f32.gmra.mxu0 %vm279_vm0, %v11712_v30  ;;  %9696 = vmatmul.mubr.msk.f32.gmra.mxu1 %vm279_vm0, %v15250_v22  ;;  %v3962_v30 = vrot.slane %v12106_v53, 1 }
 0x301   : > { %v12100_v42 = vadd.f32 %v9397_v59, %v9347_v0  ;;  %9654 = vmatprep.mubr.msk.f32.mxu0 %vm279_vm0, %v12094_v28  ;;  %9698 = vmatprep.mubr.msk.f32.mxu1 %vm279_vm0, %v15223_v63 }
 0x302   : > { %v12108_v44 = vpop.f32.mrf.mxu0  ;;  %v12110_v61 = vpop.f32.mrf.mxu1  ;;  %v3963_v2 = vsel %vm1819_vm13, %v3961_v48, %v3962_v30  ;;  %v3965_v56 = vsel %vm1819_vm13, %v3962_v30, %v3964_v35 }
 0x304   : > { %v9356_v45 = vpop.f32.mrf.mxu0  ;;  %v9400_v51 = vpop.f32.mrf.mxu1  ;;  %9655 = vmatmul.mubr.msk.f32.gmra.mxu0 %vm279_vm0, %v12106_v53  ;;  %9699 = vmatmul.mubr.msk.f32.gmra.mxu1 %vm279_vm0, %v15228_v50  ;;  %v15252_v50 = vld [vmem:[#allocation70_spill] sm:$0xff] }
 0x305   : > { %v12120_v63 = vadd.f32 %v9400_v51, %v9350_v15  ;;  %9701 = vmatprep.mubr.msk.f32.mxu1 %vm279_vm0, %v11867_v29  ;;  %9709 = vmatprep.mubr.msk.f32.mxu0 %vm279_vm0, %v15251_v54  ;;  %v15253_v15 = vld [vmem:[#allocation71_spill] sm:$0xff]  ;;  %v15255_v54 = vld [vmem:[#allocation73_spill] sm:$0xff] }
 0x306   : > { %v12127_v19 = vpop.f32.mrf.mxu0  ;;  %v12129_v37 = vpop.f32.mrf.mxu1 }
 0x308   : > { %v9403_v4 = vpop.f32.mrf.mxu1  ;;  %v9411_v0 = vpop.f32.mrf.mxu0  ;;  %9702 = vmatmul.mubr.msk.f32.gmra.mxu1 %vm279_vm0, %v11882_v18  ;;  %9710 = vmatmul.mubr.msk.f32.vlgmr.msra.gmra.mxu0 %vm279_vm0, %v15252_v50 }
 0x309   : > { %v12136_v29 = vadd.f32 %v9403_v4, %v9353_v52  ;;  %v2858_v39 = vadd.f32 %v9411_v0, %v11942_v11  ;;  %9704 = vmatprep.mubr.msk.f32.mxu1 %vm279_vm0, %v3963_v2  ;;  %9712 = vmatprep.mubr.msk.f32.mxu0 %vm279_vm0, %v15253_v15  ;;  %v15254_v52 = vld [vmem:[#allocation72_spill] sm:$0xff]  ;;  %v15256_v0 = vld [vmem:[#allocation74_spill] sm:$0xff]  ;;  %v15257_v15 = vld [vmem:[#allocation75_spill] sm:$0xff] }
 0x30a   : > { %v12143_v43 = vpop.f32.mrf.mxu1  ;;  %v2698_v59 = vpop.f32.mrf.mxu0 }
 0x30b   : > { %v12146_v22 = vadd.f32 %v2698_v59, %v11948_v41 }
 0x30c   : > { %v9406_v18 = vpop.f32.mrf.mxu1  ;;  %v9414_v48 = vpop.f32.mrf.mxu0  ;;  %9705 = vmatmul.mubr.msk.f32.gmra.mxu1 %vm279_vm0, %v3965_v56  ;;  %9713 = vmatmul.mubr.msk.f32.gmra.mxu0 %vm279_vm0, %v15254_v52 }
 0x30d   : > { %v12151_v11 = vadd.f32 %v9406_v18, %v9356_v45  ;;  %v2860_v51 = vadd.f32 %v9414_v48, %v11954_v47  ;;  %9715 = vmatprep.mubr.msk.f32.mxu0 %vm279_vm0, %v15255_v54  ;;  %v15258_v48 = vld [vmem:[#allocation76_spill] sm:$0xff] }
 0x30e   : > { %v12156_v30 = vpop.f32.mrf.mxu1  ;;  %v2708_v35 = vpop.f32.mrf.mxu0 }
 0x30f   : > { %v12159_v41 = vadd.f32 %v2708_v35, %v11960_v3 }
 0x310   : > { %v9417_v2 = vpop.f32.mrf.mxu0  ;;  %v9461_v4 = vpop.f32.mrf.mxu1  ;;  %9716 = vmatmul.mubr.msk.f32.gmra.mxu0 %vm279_vm0, %v15256_v0  ;;  %v15260_v0 = vld [vmem:[#allocation78_spill] sm:$0xff] }
 0x311   : > { %v2862_v50 = vadd.f32 %v9417_v2, %v11966_v38  ;;  %v12164_v45 = vadd.f32 %v9461_v4, %v2858_v39  ;;  %9718 = vmatprep.mubr.msk.f32.mxu0 %vm279_vm0, %v15257_v15  ;;  %v15259_v38 = vld [vmem:[#allocation77_spill] sm:$0xff] }
 0x312   : > { %v2718_v47 = vpop.f32.mrf.mxu0  ;;  %v12168_v56 = vpop.f32.mrf.mxu1 }
 0x313   : > { %v12171_v59 = vadd.f32 %v2718_v47, %v11972_v46 }
 0x314   : > { %v9420_v3 = vpop.f32.mrf.mxu0  ;;  %v9464_v18 = vpop.f32.mrf.mxu1  ;;  %9719 = vmatmul.mubr.msk.f32.gmra.mxu0 %vm279_vm0, %v15258_v48 }
 0x315   : > { %v2864_v52 = vadd.f32 %v9420_v3, %v11978_v6  ;;  %v12176_v54 = vadd.f32 %v9464_v18, %v2860_v51  ;;  %9721 = vmatprep.mubr.msk.f32.mxu0 %vm279_vm0, %v15259_v38  ;;  %v15261_v6 = vld [vmem:[#allocation79_spill] sm:$0xff] }
 0x316   : > { %v2728_v39 = vpop.f32.mrf.mxu0  ;;  %v12180_v35 = vpop.f32.mrf.mxu1 }
 0x317   : > { %v12183_v2 = vadd.f32 %v2728_v39, %v11984_v1  ;;  %v4914_v1 = vld [vmem:[%s14909_s5 + $0x4] sm:$0xf] }
 0x318   : > { %v9423_v46 = vpop.f32.mrf.mxu0  ;;  %v9467_v4 = vpop.f32.mrf.mxu1  ;;  %9722 = vmatmul.mubr.msk.f32.gmra.mxu0 %vm279_vm0, %v15260_v0  ;;  %v15263_v39 = vld [vmem:[#allocation80_spill] sm:$0xff]  ;;  %9757 = vmatprep.subr.msk.mxu1 %vm514_vm3, %v4914_v1 }
 0x319   : > { %v2866_v15 = vadd.f32 %v9423_v46, %v11990_v7  ;;  %v12188_v47 = vadd.f32 %v9467_v4, %v2862_v50  ;;  %9724 = vmatprep.mubr.msk.f32.mxu0 %vm279_vm0, %v15261_v6  ;;  %v15264_v46 = vld [vmem:[#allocation81_spill] sm:$0xff]  ;;  %9758 = vmatpush3.msk.msra.mxu1 %vm514_vm3, %v4914_v1 }
 0x31a   : > { %v2738_v51 = vpop.f32.mrf.mxu0  ;;  %v12192_v3 = vpop.f32.mrf.mxu1 }
 0x31b   : > { %v12195_v18 = vadd.f32 %v2738_v51, %v11996_v49 }
 0x31c   : > { %v9426_v48 = vpop.f32.mrf.mxu0  ;;  %v9470_v38 = vpop.f32.mrf.mxu1  ;;  %9725 = vmatmul.mubr.msk.f32.gmra.mxu0 %vm279_vm0, %v15263_v39  ;;  %v15266_v39 = vld [vmem:[#allocation82_spill] sm:$0xff] }
 0x31d   : > { %15262 = vst [vmem:[#allocation38_spill] sm:$0xff] %v12195_v18  ;;  %v2868_v7 = vadd.f32 %v9426_v48, %v12002_v20  ;;  %v12204_v50 = vadd.f32 %v9470_v38, %v2864_v52  ;;  %9727 = vmatprep.mubr.msk.f32.mxu0 %vm279_vm0, %v15264_v46  ;;  %v15267_v48 = vld [vmem:[#allocation83_spill] sm:$0xff] }
 0x31e   : > { %v2748_v49 = vpop.f32.mrf.mxu0  ;;  %v12209_v4 = vpop.f32.mrf.mxu1 }
 0x31f   : > { %v12212_v0 = vadd.f32 %v2748_v49, %v12008_v57 }
 0x320   : > { %v9429_v6 = vpop.f32.mrf.mxu0  ;;  %v9473_v51 = vpop.f32.mrf.mxu1  ;;  %9728 = vmatmul.mubr.msk.f32.gmra.mxu0 %vm279_vm0, %v15266_v39 }
 0x321   : > { %15265 = vst [vmem:[#allocation39_spill] sm:$0xff] %v12212_v0  ;;  %v2870_v20 = vadd.f32 %v9429_v6, %v12014_v21  ;;  %v12217_v52 = vadd.f32 %v9473_v51, %v2866_v15  ;;  %9730 = vmatprep.mubr.msk.f32.mxu0 %vm279_vm0, %v15267_v48  ;;  %v15269_v0 = vld [vmem:[#allocation84_spill] sm:$0xff]  ;;  %v15270_v21 = vld [vmem:[#allocation85_spill] sm:$0xff] }
 0x322   : > { %v2758_v38 = vpop.f32.mrf.mxu0  ;;  %v12221_v1 = vpop.f32.mrf.mxu1 }
 0x323   : > { %v12224_v46 = vadd.f32 %v2758_v38, %v12022_v5  ;;  %v15272_v38 = vld [vmem:[#allocation86_spill] sm:$0xff] }
 0x324   : > { %v9432_v57 = vpop.f32.mrf.mxu0  ;;  %v9476_v49 = vpop.f32.mrf.mxu1  ;;  %9731 = vmatmul.mubr.msk.f32.gmra.mxu0 %vm279_vm0, %v15269_v0  ;;  %v2406_v0 = vadd.f32 %v12050_v40, %v12020_v60 }
 0x325   : > { %15268 = vst [vmem:[#allocation42_spill] sm:$0xff] %v12224_v46  ;;  %v2872_v39 = vadd.f32 %v9432_v57, %v12028_v26  ;;  %v12229_v18 = vadd.f32 %v9476_v49, %v2868_v7  ;;  %9733 = vmatprep.mubr.msk.f32.mxu0 %vm279_vm0, %v15270_v21  ;;  %v15273_v57 = vld [vmem:[#allocation87_spill] sm:$0xff]  ;;  %v15275_v46 = vld [vmem:[#allocation88_spill] sm:$0xff] }
 0x326   : > { %v2768_v15 = vpop.f32.mrf.mxu0  ;;  %v12233_v6 = vpop.f32.mrf.mxu1 }
 0x327   : > { %v12236_v51 = vadd.f32 %v2768_v15, %v12036_v14 }
 0x328   : > { %v9435_v5 = vpop.f32.mrf.mxu0  ;;  %v9479_v48 = vpop.f32.mrf.mxu1  ;;  %9734 = vmatmul.mubr.msk.f32.gmra.mxu0 %vm279_vm0, %v15272_v38 }
 0x329   : > { %15271 = vst [vmem:[#allocation45_spill] sm:$0xff] %v12236_v51  ;;  %v2874_v26 = vadd.f32 %v9435_v5, %v12042_v27  ;;  %v12243_v7 = vadd.f32 %v9479_v48, %v2870_v20  ;;  %9736 = vmatprep.mubr.msk.f32.mxu0 %vm279_vm0, %v15273_v57  ;;  %v15276_v27 = vld [vmem:[#allocation89_spill] sm:$0xff] }
 0x32a   : > { %v2778_v49 = vpop.f32.mrf.mxu0  ;;  %v12247_v21 = vpop.f32.mrf.mxu1 }
 0x32b   : > { %v12249_v14 = vadd.f32 %v2778_v49, %v2406_v0 }
 0x32c   : > { %v9438_v15 = vpop.f32.mrf.mxu0  ;;  %v9482_v51 = vpop.f32.mrf.mxu1  ;;  %9737 = vmatmul.mubr.msk.f32.gmra.mxu0 %vm279_vm0, %v15275_v46  ;;  %v15277_v46 = vld [vmem:[#allocation90_spill] sm:$0xff] }
 0x32d   : > { %15274 = vst [vmem:[#allocation48_spill] sm:$0xff] %v12249_v14  ;;  %v2876_v38 = vadd.f32 %v9438_v15, %v12056_v34  ;;  %v12254_v60 = vadd.f32 %v9482_v51, %v2872_v39  ;;  %9739 = vmatprep.mubr.msk.f32.mxu0 %vm279_vm0, %v15276_v27  ;;  %v15278_v15 = vld [vmem:[#allocation91_spill] sm:$0xff] }
 0x32e   : > { %v12258_v40 = vpop.f32.mrf.mxu0  ;;  %v12260_v20 = vpop.f32.mrf.mxu1 }
 0x330   : > { %v9441_v5 = vpop.f32.mrf.mxu0  ;;  %v9485_v48 = vpop.f32.mrf.mxu1  ;;  %9740 = vmatmul.mubr.msk.f32.gmra.mxu0 %vm279_vm0, %v11638_v10 }
 0x331   : > { %v2878_v0 = vadd.f32 %v9441_v5, %v12070_v16  ;;  %v12265_v57 = vadd.f32 %v9485_v48, %v2874_v26  ;;  %9742 = vmatprep.mubr.msk.f32.mxu0 %vm279_vm0, %v15277_v46 }
 0x332   : > { %v12269_v34 = vpop.f32.mrf.mxu0  ;;  %v12271_v39 = vpop.f32.mrf.mxu1 }
 0x334   : > { %v9444_v51 = vpop.f32.mrf.mxu0  ;;  %v9488_v49 = vpop.f32.mrf.mxu1  ;;  %9743 = vmatmul.mubr.msk.f32.gmra.mxu0 %vm279_vm0, %v15278_v15 }
 0x335   : > { %v2880_v27 = vadd.f32 %v9444_v51, %v12084_v17  ;;  %v12276_v14 = vadd.f32 %v9488_v49, %v2876_v38  ;;  %9745 = vmatprep.mubr.msk.f32.mxu0 %vm279_vm0, %v11659_v8  ;;  %v4230_v17 = vrot.slane %v12094_v28, 2  ;;  %v4231_v51 = vrot.slane %v12106_v53, 2 }
 0x336   : > { %v12280_v10 = vpop.f32.mrf.mxu0  ;;  %v12282_v16 = vpop.f32.mrf.mxu1 }
 0x337   : > { %v4232_v53 = vsel %vm2484_vm12, %v4230_v17, %v4231_v51 }
 0x338   : > { %v9447_v26 = vpop.f32.mrf.mxu0  ;;  %v9491_v5 = vpop.f32.mrf.mxu1  ;;  %9746 = vmatmul.mubr.msk.f32.gmra.mxu0 %vm279_vm0, %v11672_v24 }
 0x339   : > { %v2882_v48 = vadd.f32 %v9447_v26, %v12100_v42  ;;  %v12287_v46 = vadd.f32 %v9491_v5, %v2878_v0  ;;  %9748 = vmatprep.mubr.msk.f32.mxu0 %vm279_vm0, %v11676_v58  ;;  %v4233_v58 = vrot.slane %v12114_v36, 2 }
 0x33a   : > { %v12292_v38 = vpop.f32.mrf.mxu0  ;;  %v12294_v8 = vpop.f32.mrf.mxu1 }
 0x33b   : > { %15279 = vst [vmem:[#allocation51_spill] sm:$0xff] %v12294_v8  ;;  %v15282_v8 = vld [vmem:[#allocation100_spill] sm:$0xff] }
 0x33c   : > { %v9450_v49 = vpop.f32.mrf.mxu0  ;;  %v9494_v15 = vpop.f32.mrf.mxu1  ;;  %9749 = vmatmul.mubr.msk.f32.gmra.mxu0 %vm279_vm0, %v11687_v25 }
 0x33d   : > { %v2884_v24 = vadd.f32 %v9450_v49, %v12120_v63  ;;  %v12300_v42 = vadd.f32 %v9494_v15, %v2880_v27  ;;  %9751 = vmatprep.mubr.msk.f32.mxu0 %vm279_vm0, %v11907_v55  ;;  %v4234_v55 = vsel %vm2484_vm12, %v4231_v51, %v4233_v58 }
 0x33e   : > { %v12305_v28 = vpop.f32.mrf.mxu0  ;;  %v12307_v0 = vpop.f32.mrf.mxu1 }
 0x33f   : > { %15280 = vst [vmem:[#allocation54_spill] sm:$0xff] %v12305_v28  ;;  %15281 = vst [vmem:[#allocation57_spill] sm:$0xff] %v12307_v0 }
 0x340   : > { %v9453_v26 = vpop.f32.mrf.mxu0  ;;  %v9497_v5 = vpop.f32.mrf.mxu1  ;;  %9752 = vmatmul.mubr.msk.f32.gmra.mxu0 %vm279_vm0, %v15282_v8 }
 0x341   : > { %v2886_v25 = vadd.f32 %v9453_v26, %v12136_v29  ;;  %v12313_v63 = vadd.f32 %v9497_v5, %v2882_v48  ;;  %9754 = vmatprep.mubr.msk.f32.mxu0 %vm279_vm0, %v4232_v53 }
 0x342   : > { %v12317_v36 = vpop.f32.mrf.mxu0  ;;  %v12319_v27 = vpop.f32.mrf.mxu1 }
 0x343   : > { %15283 = vst [vmem:[#allocation65_spill] sm:$0xff] %v12317_v36  ;;  %15284 = vst [vmem:[#allocation66_spill] sm:$0xff] %v12319_v27 }
 0x344   : > { %v9456_v49 = vpop.f32.mrf.mxu0  ;;  %v9500_v15 = vpop.f32.mrf.mxu1  ;;  %9755 = vmatmul.mubr.msk.f32.gmra.mxu0 %vm279_vm0, %v4234_v55 }
 0x345   : > { %v2888_v17 = vadd.f32 %v9456_v49, %v12151_v11  ;;  %v12323_v0 = vadd.f32 %v9500_v15, %v2884_v24 }
 0x346   : > { %v12325_v8 = vpop.f32.mrf.mxu0  ;;  %v12327_v29 = vpop.f32.mrf.mxu1 }
 0x347   : > { %15285 = vst [vmem:[#allocation69_spill] sm:$0xff] %v12325_v8  ;;  %15286 = vst [vmem:[#allocation70_spill] sm:$0xff] %v12327_v29  ;;  %v15335_v29 = vld [vmem:[#allocation32_spill] sm:$0xff] }
 0x348   : > { %v9503_v48 = vpop.f32.mrf.mxu1  ;;  %v9511_v53 = vpop.f32.mrf.mxu0 }
 0x349   : > { %v12329_v26 = vadd.f32 %v9503_v48, %v2886_v25  ;;  %v12332_v51 = vadd.f32 %v9511_v53, %v12164_v45 }
 0x34a   : > { %v12334_v58 = vpop.f32.mrf.mxu1  ;;  %v12336_v5 = vpop.f32.mrf.mxu0 }
 0x34b   : > { %15287 = vst [vmem:[#allocation71_spill] sm:$0xff] %v12332_v51  ;;  %15288 = vst [vmem:[#allocation72_spill] sm:$0xff] %v12334_v58  ;;  %v15334_v58 = vld [vmem:[#allocation46_spill] sm:$0xff] }
 0x34c   : > { %15289 = vst [vmem:[#allocation73_spill] sm:$0xff] %v12336_v5  ;;  %v9506_v55 = vpop.f32.mrf.mxu1  ;;  %v9514_v27 = vpop.f32.mrf.mxu0 }
 0x34d   : > { %v12338_v11 = vadd.f32 %v9506_v55, %v2888_v17  ;;  %v12341_v24 = vadd.f32 %v9514_v27, %v12176_v54 }
 0x34e   : > { %v12343_v49 = vpop.f32.mrf.mxu1  ;;  %v12345_v15 = vpop.f32.mrf.mxu0 }
 0x34f   : > { %15290 = vst [vmem:[#allocation74_spill] sm:$0xff] %v12341_v24  ;;  %15291 = vst [vmem:[#allocation75_spill] sm:$0xff] %v12343_v49 }
 0x350   : > { %15292 = vst [vmem:[#allocation76_spill] sm:$0xff] %v12345_v15  ;;  %v9517_v25 = vpop.f32.mrf.mxu0  ;;  %v12347_v48 = vpop.f32.mrf.mxu1 }
 0x351   : > { %15293 = vst [vmem:[#allocation77_spill] sm:$0xff] %v12347_v48  ;;  %v12350_v45 = vadd.f32 %v9517_v25, %v12188_v47 }
 0x352   : > { %v12352_v53 = vpop.f32.mrf.mxu0  ;;  %v12354_v51 = vpop.f32.mrf.mxu1 }
 0x353   : > { %15294 = vst [vmem:[#allocation78_spill] sm:$0xff] %v12350_v45  ;;  %15295 = vst [vmem:[#allocation79_spill] sm:$0xff] %v12352_v53  ;;  %v15326_v53 = vld [vmem:[#allocation35_spill] sm:$0xff] }
 0x354   : > { %15296 = vst [vmem:[#allocation80_spill] sm:$0xff] %v12354_v51  ;;  %v9520_v5 = vpop.f32.mrf.mxu0  ;;  %v12356_v17 = vpop.f32.mrf.mxu1 }
 0x355   : > { %15297 = vst [vmem:[#allocation81_spill] sm:$0xff] %v12356_v17  ;;  %v12359_v54 = vadd.f32 %v9520_v5, %v12204_v50  ;;  %v15324_v17 = vld [vmem:[#allocation41_spill] sm:$0xff] }
 0x356   : > { %v12361_v27 = vpop.f32.mrf.mxu0  ;;  %v12363_v55 = vpop.f32.mrf.mxu1 }
 0x357   : > { %15298 = vst [vmem:[#allocation82_spill] sm:$0xff] %v12359_v54  ;;  %15299 = vst [vmem:[#allocation83_spill] sm:$0xff] %v12361_v27 }
 0x358   : > { %15300 = vst [vmem:[#allocation84_spill] sm:$0xff] %v12363_v55  ;;  %v9523_v24 = vpop.f32.mrf.mxu0  ;;  %v12365_v15 = vpop.f32.mrf.mxu1 }
 0x359   : > { %15301 = vst [vmem:[#allocation85_spill] sm:$0xff] %v12365_v15  ;;  %v12368_v47 = vadd.f32 %v9523_v24, %v12217_v52  ;;  %v4913_v15 = vld [vmem:[%s14909_s5] sm:$0xf] }
 0x35a   : > { %v12370_v25 = vpop.f32.mrf.mxu0  ;;  %v12372_v45 = vpop.f32.mrf.mxu1  ;;  %v12386_v52 = vld [vmem:[#allocation2] sm:$0xff]  ;;  %9807 = vmatprep.subr.msk.mxu0 %vm514_vm3, %v4913_v15 }
 0x35b   : > { %15302 = vst [vmem:[#allocation86_spill] sm:$0xff] %v12368_v47  ;;  %15303 = vst [vmem:[#allocation87_spill] sm:$0xff] %v12370_v25  ;;  %9809 = vmatprep.mubr.msk.f32.mxu0 %vm279_vm0, %v12386_v52  ;;  %9808 = vmatpush3.msk.msra.mxu0 %vm514_vm3, %v4913_v15 }
 0x35c   : > { %15304 = vst [vmem:[#allocation88_spill] sm:$0xff] %v12372_v45  ;;  %v9526_v51 = vpop.f32.mrf.mxu0  ;;  %v12374_v48 = vpop.f32.mrf.mxu1 }
 0x35d   : > { %15305 = vst [vmem:[#allocation89_spill] sm:$0xff] %v12374_v48  ;;  %v12377_v50 = vadd.f32 %v9526_v51, %v12229_v18  ;;  %v4970_v48 = vrot.slane %v12386_v52, 1  ;;  %v12398_v51 = vld [vmem:[#allocation2 + $0x8] sm:$0xff] }
 0x35e   : > { %v12379_v5 = vpop.f32.mrf.mxu0  ;;  %v12381_v54 = vpop.f32.mrf.mxu1  ;;  %9810 = vmatmul.mubr.msk.f32.vlgmr.msra.gmra.mxu0 %vm279_vm0, %v12398_v51 }
 0x35f   : > { %15306 = vst [vmem:[#allocation90_spill] sm:$0xff] %v12377_v50  ;;  %15307 = vst [vmem:[#allocation91_spill] sm:$0xff] %v12379_v5  ;;  %v12407_v5 = vld [vmem:[#allocation2 + $0x10] sm:$0x3] }
 0x360   : > { %15308 = vst [vmem:[#allocation100_spill] sm:$0xff] %v12381_v54  ;;  %v9529_v24 = vpop.f32.mrf.mxu0  ;;  %v12388_v47 = vpop.f32.mrf.mxu1 }
 0x361   : > { %15309 = vst [vmem:[#allocation103_spill] sm:$0xff] %v12388_v47  ;;  %v12395_v18 = vadd.f32 %v9529_v24, %v12243_v7  ;;  %v4971_v47 = vrot.slane %v12398_v51, 1  ;;  %v4915_v7 = vld [vmem:[%s14909_s5 + $0x8] sm:$0xf] }
 0x362   : > { %v12400_v50 = vpop.f32.mrf.mxu0  ;;  %v12402_v54 = vpop.f32.mrf.mxu1  ;;  %9857 = vmatprep.subr.msk.mxu1 %vm514_vm3, %v4915_v7 }
 0x363   : > { %15310 = vst [vmem:[#allocation104_spill] sm:$0xff] %v12395_v18  ;;  %15311 = vst [vmem:[#allocation105_spill] sm:$0xff] %v12400_v50  ;;  %v4972_v15 = vsel %vm1819_vm13, %v4970_v48, %v4971_v47  ;;  %v4973_v50 = vrot.slane %v12407_v5, 1 }
 0x364   : > { %15312 = vst [vmem:[#allocation106_spill] sm:$0xff] %v12402_v54  ;;  %v9532_v24 = vpop.f32.mrf.mxu0  ;;  %v12412_v18 = vpop.f32.mrf.mxu1  ;;  %9759 = vmatprep.mubr.msk.f32.mxu1 %vm279_vm0, %v4972_v15  ;;  %v15321_v15 = vld [vmem:[#allocation33_spill] sm:$0xff] }
 0x365   : > { %15313 = vst [vmem:[#allocation107_spill] sm:$0xff] %v12412_v18  ;;  %v12418_v54 = vadd.f32 %v9532_v24, %v12254_v60  ;;  %v4974_v55 = vsel %vm1819_vm13, %v4971_v47, %v4973_v50 }
 0x366   : > { %v12421_v45 = vpop.f32.mrf.mxu0  ;;  %v12423_v25 = vpop.f32.mrf.mxu1  ;;  %9760 = vmatmul.mubr.msk.f32.vlgmr.msra.gmra.mxu1 %vm279_vm0, %v4974_v55 }
 0x367   : > { %15314 = vst [vmem:[#allocation108_spill] sm:$0xff] %v12418_v54  ;;  %15315 = vst [vmem:[#allocation109_spill] sm:$0xff] %v12421_v45  ;;  %9858 = vmatpush3.msk.msra.mxu1 %vm514_vm3, %v4915_v7  ;;  %v15322_v54 = vld [vmem:[#allocation40_spill] sm:$0xff] }
 0x368   : > { %15316 = vst [vmem:[#allocation110_spill] sm:$0xff] %v12423_v25  ;;  %v9535_v18 = vpop.f32.mrf.mxu0  ;;  %v12427_v27 = vpop.f32.mrf.mxu1  ;;  %v4572_v45 = vadd.f32 %v15322_v54, %v15321_v15  ;;  %v15323_v25 = vld [vmem:[#allocation5_spill] sm:$0xff] }
 0x369   : > { %15317 = vst [vmem:[#allocation111_spill] sm:$0xff] %v12427_v27  ;;  %v12431_v48 = vadd.f32 %v9535_v18, %v12265_v57  ;;  %v4586_v47 = vadd.f32 %v15324_v17, %v15323_v25  ;;  %v15327_v27 = vld [vmem:[#allocation43_spill] sm:$0xff]  ;;  %v15330_v18 = vld [vmem:[#allocation44_spill] sm:$0xff]  ;;  %v15333_v15 = vld [vmem:[#allocation29_spill] sm:$0xff] }
 0x36a   : > { %v12433_v60 = vpop.f32.mrf.mxu0  ;;  %v12435_v24 = vpop.f32.mrf.mxu1  ;;  %v4571_v49 = vadd.f32 %v15327_v27, %v15326_v53  ;;  %v15329_v57 = vld [vmem:[#allocation7_spill] sm:$0xff]  ;;  %v8185_v54 = vmul.f32 -1.442695, %v4572_v45  ;;  %v4574_v17 = vadd.f32 %v15334_v58, %v15333_v15  ;;  %v15342_v45 = vld [vmem:[#allocation50_spill] sm:$0xff] }
 0x36b   : > { %15318 = vst [vmem:[#allocation112_spill] sm:$0xff] %v12431_v48  ;;  %15319 = vst [vmem:[#allocation113_spill] sm:$0xff] %v12433_v60  ;;  %v4585_v48 = vadd.f32 %v15330_v18, %v15329_v57  ;;  %v8199_v25 = vmul.f32 -1.442695, %v4586_v47  ;;  %v15338_v27 = vld [vmem:[#allocation31_spill] sm:$0xff]  ;;  %v15344_v47 = vld [vmem:[#allocation25_spill] sm:$0xff] }
 0x36c   : > { %15320 = vst [vmem:[#allocation114_spill] sm:$0xff] %v12435_v24  ;;  %v9538_v50 = vpop.f32.mrf.mxu0  ;;  %v12441_v55 = vpop.f32.mrf.mxu1  ;;  %10231 = vpow2.f32 %v8185_v54 }
 0x36d   : > { %15325 = vst [vmem:[#allocation33_spill] sm:$0xff] %v12441_v55  ;;  %v12446_v7 = vadd.f32 %v9538_v50, %v12276_v14  ;;  %v15336_v55 = vld [vmem:[#allocation47_spill] sm:$0xff]  ;;  %v8184_v14 = vmul.f32 -1.442695, %v4571_v49  ;;  %v15339_v50 = vld [vmem:[#allocation49_spill] sm:$0xff]  ;;  %10233 = vpow2.f32 %v8199_v25 }
 0x36e   : > { %v12450_v60 = vpop.f32.mrf.mxu0  ;;  %v12452_v24 = vpop.f32.mrf.mxu1  ;;  %v4588_v8 = vadd.f32 %v15336_v55, %v15335_v29  ;;  %v8198_v18 = vmul.f32 -1.442695, %v4585_v48  ;;  %v8187_v29 = vmul.f32 -1.442695, %v4574_v17  ;;  %v15345_v55 = vld [vmem:[#allocation52_spill] sm:$0xff]  ;;  %v15352_v17 = vld [vmem:[#allocation30_spill] sm:$0xff] }
 0x36f   : > { %15328 = vst [vmem:[#allocation40_spill] sm:$0xff] %v12446_v7  ;;  %15331 = vst [vmem:[#allocation5_spill] sm:$0xff] %v12450_v60  ;;  %v4573_v7 = vadd.f32 %v15339_v50, %v15338_v27  ;;  %v4576_v15 = vadd.f32 %v15345_v55, %v15344_v47  ;;  %v15347_v27 = vld [vmem:[#allocation53_spill] sm:$0xff]  ;;  %10235 = vpow2.f32 %v8184_v14  ;;  %v15353_v47 = vld [vmem:[#allocation56_spill] sm:$0xff] }
 0x370   : > { %15332 = vst [vmem:[#allocation41_spill] sm:$0xff] %v12452_v24  ;;  %v9541_v36 = vpop.f32.mrf.mxu0  ;;  %v12458_v53 = vpop.f32.mrf.mxu1  ;;  %v15341_v24 = vld [vmem:[#allocation34_spill] sm:$0xff]  ;;  %v8201_v49 = vmul.f32 -1.442695, %v4588_v8  ;;  %10237 = vpow2.f32 %v8198_v18  ;;  %v4589_v25 = vadd.f32 %v15353_v47, %v15352_v17 }
 0x371   : > { %15337 = vst [vmem:[#allocation35_spill] sm:$0xff] %v12458_v53  ;;  %v12463_v57 = vadd.f32 %v9541_v36, %v12287_v46  ;;  %v4587_v60 = vadd.f32 %v15342_v45, %v15341_v24  ;;  %v15346_v53 = vld [vmem:[#allocation28_spill] sm:$0xff]  ;;  %v8186_v48 = vmul.f32 -1.442695, %v4573_v7  ;;  %v15349_v24 = vld [vmem:[#allocation27_spill] sm:$0xff]  ;;  %10239 = vpow2.f32 %v8187_v29  ;;  %v15361_v29 = vld [vmem:[#allocation58_spill] sm:$0xff] }
 0x372   : > { %v12467_v28 = vpop.f32.mrf.mxu0  ;;  %v12469_v58 = vpop.f32.mrf.mxu1  ;;  %v4590_v50 = vadd.f32 %v15347_v27, %v15346_v53  ;;  %v15350_v45 = vld [vmem:[#allocation55_spill] sm:$0xff]  ;;  %v8189_v53 = vmul.f32 -1.442695, %v4576_v15  ;;  %10241 = vpow2.f32 %v8201_v49  ;;  %v15362_v49 = vld [vmem:[#allocation24_spill] sm:$0xff] }
 0x373   : > { %15340 = vst [vmem:[#allocation43_spill] sm:$0xff] %v12463_v57  ;;  %15343 = vst [vmem:[#allocation7_spill] sm:$0xff] %v12469_v58  ;;  %v4575_v57 = vadd.f32 %v15350_v45, %v15349_v24  ;;  %v8200_v54 = vmul.f32 -1.442695, %v4587_v60  ;;  %10243 = vpow2.f32 %v8186_v48  ;;  %v8202_v60 = vmul.f32 -1.442695, %v4589_v25 }
 0x374   : > { %v9544_v46 = vpop.f32.mrf.mxu0  ;;  %v12475_v36 = vpop.f32.mrf.mxu1  ;;  %v8203_v14 = vmul.f32 -1.442695, %v4590_v50  ;;  %v15360_v45 = vld [vmem:[#allocation21_spill] sm:$0xff]  ;;  %v15363_v50 = vld [vmem:[#allocation59_spill] sm:$0xff] }
 0x375   : > { %15348 = vst [vmem:[#allocation44_spill] sm:$0xff] %v12475_v36  ;;  %v12480_v58 = vadd.f32 %v9544_v46, %v12300_v42  ;;  %v8188_v24 = vmul.f32 -1.442695, %v4575_v57  ;;  %10245 = vpow2.f32 %v8200_v54  ;;  %v4578_v15 = vadd.f32 %v15361_v29, %v15360_v45  ;;  %v15366_v57 = vld [vmem:[#allocation60_spill] sm:$0xff]  ;;  %v15416_v36 = vld [vmem:[#allocation14_spill] sm:$0xff] }
 0x376   : > { %v12484_v8 = vpop.f32.mrf.mxu0  ;;  %v12486_v55 = vpop.f32.mrf.mxu1  ;;  %10247 = vpow2.f32 %v8189_v53  ;;  %v4592_v17 = vadd.f32 %v15363_v50, %v15362_v49  ;;  %v15369_v53 = vld [vmem:[#allocation61_spill] sm:$0xff] }
 0x377   : > { %15351 = vst [vmem:[#allocation29_spill] sm:$0xff] %v12480_v58  ;;  %15354 = vst [vmem:[#allocation46_spill] sm:$0xff] %v12484_v8  ;;  %10249 = vpow2.f32 %v8203_v14  ;;  %v8191_v45 = vmul.f32 -1.442695, %v4578_v15 }
 0x378   : > { %15355 = vst [vmem:[#allocation32_spill] sm:$0xff] %v12486_v55  ;;  %v9547_v7 = vpop.f32.mrf.mxu0  ;;  %v12488_v27 = vpop.f32.mrf.mxu1  ;;  %10251 = vpow2.f32 %v8188_v24  ;;  %v8205_v49 = vmul.f32 -1.442695, %v4592_v17 }
 0x379   : > { %15356 = vst [vmem:[#allocation47_spill] sm:$0xff] %v12488_v27  ;;  %v12491_v42 = vadd.f32 %v9547_v7, %v12313_v63  ;;  %v15365_v63 = vld [vmem:[#allocation23_spill] sm:$0xff]  ;;  %10253 = vpow2.f32 %v8202_v60  ;;  %v15368_v7 = vld [vmem:[#allocation26_spill] sm:$0xff]  ;;  %v10232_v29 = vpop.eup %10231 }
 0x37a   : > { %v12493_v18 = vpop.f32.mrf.mxu0  ;;  %v12495_v46 = vpop.f32.mrf.mxu1  ;;  %v4577_v54 = vadd.f32 %v15366_v57, %v15365_v63  ;;  %10255 = vpow2.f32 %v8191_v45  ;;  %v15392_v27 = vld [vmem:[#allocation67_spill] sm:$0xff] }
 0x37b   : > { %15357 = vst [vmem:[#allocation31_spill] sm:$0xff] %v12491_v42  ;;  %15358 = vst [vmem:[#allocation49_spill] sm:$0xff] %v12493_v18  ;;  %v4591_v42 = vadd.f32 %v15369_v53, %v15368_v7  ;;  %v10234_v24 = vpop.eup %10233  ;;  %v4700_v53 = vadd.f32 1.0, %v10232_v29  ;;  %10257 = vpow2.f32 %v8205_v49 }
 0x37c   : > { %15359 = vst [vmem:[#allocation34_spill] sm:$0xff] %v12495_v46  ;;  %v9550_v47 = vpop.f32.mrf.mxu0  ;;  %v12501_v48 = vpop.f32.mrf.mxu1  ;;  %v8190_v46 = vmul.f32 -1.442695, %v4577_v54 }
 0x37d   : > { %15364 = vst [vmem:[#allocation50_spill] sm:$0xff] %v12501_v48  ;;  %v12506_v25 = vadd.f32 %v9550_v47, %v12323_v0  ;;  %v10236_v0 = vpop.eup %10235  ;;  %v8204_v60 = vmul.f32 -1.442695, %v4591_v42 }
 0x37e   : > { %v12510_v58 = vpop.f32.mrf.mxu0  ;;  %v12512_v14 = vpop.f32.mrf.mxu1  ;;  %v4699_v54 = vadd.f32 1.0, %v10236_v0  ;;  %10259 = vpow2.f32 %v8190_v46 }
 0x37f   : > { %15367 = vst [vmem:[#allocation25_spill] sm:$0xff] %v12506_v25  ;;  %15370 = vst [vmem:[#allocation52_spill] sm:$0xff] %v12510_v58  ;;  %v10238_v7 = vpop.eup %10237  ;;  %v4714_v25 = vadd.f32 1.0, %v10234_v24  ;;  %10261 = vpow2.f32 %v8204_v60 }
 0x380   : > { %15371 = vst [vmem:[#allocation28_spill] sm:$0xff] %v12512_v14  ;;  %v9553_v50 = vpop.f32.mrf.mxu0  ;;  %v12514_v48 = vpop.f32.mrf.mxu1  ;;  %10263 = vrcp.f32 %v4700_v53 }
 0x381   : > { %15372 = vst [vmem:[#allocation53_spill] sm:$0xff] %v12514_v48  ;;  %v12517_v63 = vadd.f32 %v9553_v50, %v12329_v26  ;;  %v10240_v15 = vpop.eup %10239  ;;  %v4713_v50 = vadd.f32 1.0, %v10238_v7  ;;  %10265 = vrcp.f32 %v4714_v25  ;;  %v15384_v25 = vld [vmem:[#allocation62_spill] sm:$0xff] }
 0x382   : > { %v12519_v47 = vpop.f32.mrf.mxu0  ;;  %v12521_v57 = vpop.f32.mrf.mxu1  ;;  %v4702_v29 = vadd.f32 1.0, %v10240_v15  ;;  %10267 = vrcp.f32 %v4699_v54  ;;  %v15383_v15 = vld [vmem:[#allocation17_spill] sm:$0xff] }
 0x383   : > { %15373 = vst [vmem:[#allocation27_spill] sm:$0xff] %v12517_v63  ;;  %15374 = vst [vmem:[#allocation55_spill] sm:$0xff] %v12519_v47  ;;  %v10242_v48 = vpop.eup %10241  ;;  %10269 = vrcp.f32 %v4713_v50  ;;  %v15386_v47 = vld [vmem:[#allocation63_spill] sm:$0xff] }
 0x384   : > { %15375 = vst [vmem:[#allocation30_spill] sm:$0xff] %v12521_v57  ;;  %v9556_v17 = vpop.f32.mrf.mxu0  ;;  %v12523_v14 = vpop.f32.mrf.mxu1  ;;  %v4716_v24 = vadd.f32 1.0, %v10242_v48  ;;  %10271 = vrcp.f32 %v4702_v29  ;;  %v4580_v48 = vadd.f32 %v15384_v25, %v15383_v15 }
 0x385   : > { %15376 = vst [vmem:[#allocation56_spill] sm:$0xff] %v12523_v14  ;;  %v12526_v26 = vadd.f32 %v9556_v17, %v12338_v11  ;;  %v10244_v42 = vpop.eup %10243 }
 0x386   : > { %v12528_v63 = vpop.f32.mrf.mxu0  ;;  %v12530_v57 = vpop.f32.mrf.mxu1  ;;  %v4701_v11 = vadd.f32 1.0, %v10244_v42  ;;  %10273 = vrcp.f32 %v4716_v24 }
 0x387   : > { %15377 = vst [vmem:[#allocation21_spill] sm:$0xff] %v12526_v26  ;;  %15378 = vst [vmem:[#allocation58_spill] sm:$0xff] %v12528_v63  ;;  %v10246_v45 = vpop.eup %10245  ;;  %v15385_v63 = vld [vmem:[#allocation20_spill] sm:$0xff] }
 0x388   : > { %15379 = vst [vmem:[#allocation24_spill] sm:$0xff] %v12530_v57  ;;  %v10248_v49 = vpop.eup %10247  ;;  %v12532_v14 = vpop.f32.mrf.mxu1  ;;  %v4715_v60 = vadd.f32 1.0, %v10246_v45  ;;  %v4594_v58 = vadd.f32 %v15386_v47, %v15385_v63  ;;  %10275 = vrcp.f32 %v4701_v11  ;;  %v15389_v45 = vld [vmem:[#allocation19_spill] sm:$0xff]  ;;  %v8193_v63 = vmul.f32 -1.442695, %v4580_v48  ;;  %v15395_v47 = vld [vmem:[#allocation13_spill] sm:$0xff] }
 0x389   : > { %15380 = vst [vmem:[#allocation59_spill] sm:$0xff] %v12532_v14  ;;  %v12534_v0 = vpop.f32.mrf.mxu0  ;;  %v10250_v46 = vpop.eup %10249  ;;  %v4704_v53 = vadd.f32 1.0, %v10248_v49  ;;  %v15391_v49 = vld [vmem:[#allocation22_spill] sm:$0xff]  ;;  %v15402_v48 = vld [vmem:[#allocation68_spill] sm:$0xff] }
 0x38a   : > { %v10252_v17 = vpop.eup %10251  ;;  %v12536_v7 = vpop.f32.mrf.mxu1  ;;  %v4718_v14 = vadd.f32 1.0, %v10250_v46  ;;  %10277 = vrcp.f32 %v4715_v60  ;;  %v15396_v46 = vld [vmem:[#allocation92_spill] sm:$0xff]  ;;  %v8207_v11 = vmul.f32 -1.442695, %v4594_v58  ;;  %v15404_v58 = vld [vmem:[#allocation94_spill] sm:$0xff] }
 0x38b   : > { %15381 = vst [vmem:[#allocation23_spill] sm:$0xff] %v12536_v7  ;;  %v12538_v26 = vpop.f32.mrf.mxu0  ;;  %v10254_v57 = vpop.eup %10253  ;;  %v4703_v50 = vadd.f32 1.0, %v10252_v17  ;;  %v15390_v7 = vld [vmem:[#allocation64_spill] sm:$0xff]  ;;  %10279 = vrcp.f32 %v4704_v53  ;;  %v4582_v25 = vadd.f32 %v15396_v46, %v15395_v47  ;;  %v15401_v53 = vld [vmem:[#allocation15_spill] sm:$0xff] }
 0x38c   : > { %15382 = vst [vmem:[#allocation60_spill] sm:$0xff] %v12538_v26  ;;  %v12544_v54 = vpop.f32.mrf.mxu1  ;;  %v4579_v18 = vadd.f32 %v15390_v7, %v15389_v45  ;;  %v4717_v29 = vadd.f32 1.0, %v10254_v57  ;;  %v4593_v26 = vadd.f32 %v15392_v27, %v15391_v49  ;;  %10281 = vrcp.f32 %v4718_v14  ;;  %v15397_v17 = vld [vmem:[#allocation16_spill] sm:$0xff]  ;;  %v15398_v7 = vld [vmem:[#allocation93_spill] sm:$0xff]  ;;  %v15403_v14 = vld [vmem:[#allocation18_spill] sm:$0xff] }
 0x38d   : > { %15387 = vst [vmem:[#allocation26_spill] sm:$0xff] %v12544_v54  ;;  %v12546_v42 = vpop.f32.mrf.mxu0  ;;  %v12558_v54 = vpop.eup %10255  ;;  %v4596_v60 = vadd.f32 %v15398_v7, %v15397_v17  ;;  %10283 = vrcp.f32 %v4703_v50  ;;  %v4595_v46 = vadd.f32 %v15404_v58, %v15403_v14  ;;  %v15407_v50 = vld [vmem:[#allocation9_spill] sm:$0xff] }
 0x38e   : > { %15388 = vst [vmem:[#allocation61_spill] sm:$0xff] %v12546_v42  ;;  %v12552_v15 = vpop.f32.mrf.mxu1  ;;  %v12566_v27 = vpop.eup %10257  ;;  %v8192_v49 = vmul.f32 -1.442695, %v4579_v18  ;;  %10285 = vrcp.f32 %v4717_v29  ;;  %v8206_v47 = vmul.f32 -1.442695, %v4593_v26  ;;  %v15408_v18 = vld [vmem:[#allocation95_spill] sm:$0xff] }
 0x38f   : > { %15393 = vst [vmem:[#allocation17_spill] sm:$0xff] %v12552_v15  ;;  %v12554_v24 = vpop.f32.mrf.mxu0  ;;  %v4581_v15 = vadd.f32 %v15402_v48, %v15401_v53  ;;  %10287 = vpow2.f32 %v8193_v63  ;;  %v8209_v53 = vmul.f32 -1.442695, %v4596_v60  ;;  %v15410_v29 = vld [vmem:[#allocation12_spill] sm:$0xff]  ;;  %v15414_v63 = vld [vmem:[#allocation11_spill] sm:$0xff] }
 0x390   : > { %15394 = vst [vmem:[#allocation62_spill] sm:$0xff] %v12554_v24  ;;  %v12564_v45 = vpop.f32.mrf.mxu1  ;;  %v12570_v24 = vpop.eup %10259  ;;  %10289 = vpow2.f32 %v8207_v11  ;;  %v15411_v26 = vld [vmem:[#allocation96_spill] sm:$0xff]  ;;  %v8208_v11 = vmul.f32 -1.442695, %v4595_v46  ;;  %v15425_v46 = vld [vmem:[#allocation10_spill] sm:$0xff] }
 0x391   : > { %v12562_v57 = vpop.f32.mrf.mxu0  ;;  %15400 = vst [vmem:[#allocation63_spill] sm:$0xff] %v12564_v45  ;;  %v12578_v7 = vpop.eup %10261  ;;  %v4584_v45 = vadd.f32 %v15408_v18, %v15407_v50  ;;  %v4598_v48 = vadd.f32 %v15411_v26, %v15410_v29  ;;  %10291 = vpow2.f32 %v8192_v49  ;;  %v15417_v50 = vld [vmem:[#allocation98_spill] sm:$0xff]  ;;  %v4916_v26 = vld [vmem:[%s14909_s5 + $0xc] sm:$0xf] }
 0x392   : > { %15399 = vst [vmem:[#allocation20_spill] sm:$0xff] %v12562_v57  ;;  %v12576_v17 = vpop.f32.mrf.mxu1  ;;  %v8195_v57 = vmul.f32 -1.442695, %v4582_v25  ;;  %v12582_v55 = vpop.eup %10263  ;;  %v15415_v25 = vld [vmem:[#allocation97_spill] sm:$0xff]  ;;  %v4597_v18 = vadd.f32 %v15417_v50, %v15416_v36  ;;  %10293 = vpow2.f32 %v8206_v47  ;;  %9907 = vmatprep.subr.msk.mxu0 %vm514_vm3, %v4916_v26 }
 0x393   : > { %v12574_v42 = vpop.f32.mrf.mxu0  ;;  %15406 = vst [vmem:[#allocation64_spill] sm:$0xff] %v12576_v17  ;;  %15409 = vst [vmem:[#allocation22_spill] sm:$0xff] %v12582_v55  ;;  %v12590_v58 = vpop.eup %10265  ;;  %v4583_v17 = vadd.f32 %v15415_v25, %v15414_v63  ;;  %v15422_v63 = vld [vmem:[#allocation8_spill] sm:$0xff]  ;;  %v15423_v25 = vld [vmem:[#allocation99_spill] sm:$0xff]  ;;  %v8211_v47 = vmul.f32 -1.442695, %v4598_v48  ;;  %9908 = vmatpush3.msk.msra.mxu0 %vm514_vm3, %v4916_v26 }
 0x394   : > { %15405 = vst [vmem:[#allocation19_spill] sm:$0xff] %v12574_v42  ;;  %v12588_v14 = vpop.f32.mrf.mxu1  ;;  %15413 = vst [vmem:[#allocation13_spill] sm:$0xff] %v12590_v58  ;;  %v8194_v42 = vmul.f32 -1.442695, %v4581_v15  ;;  %v12596_v55 = vpop.eup %10267  ;;  %10295 = vpow2.f32 %v8195_v57  ;;  %v8197_v15 = vmul.f32 -1.442695, %v4584_v45  ;;  %v4600_v58 = vadd.f32 %v15423_v25, %v15422_v63 }
 0x395   : > { %v12586_v8 = vpop.f32.mrf.mxu0  ;;  %15418 = vst [vmem:[#allocation92_spill] sm:$0xff] %v12596_v55  ;;  %v12605_v49 = vpop.eup %10269  ;;  %10297 = vpow2.f32 %v8209_v53  ;;  %v15426_v50 = vld [vmem:[#allocation101_spill] sm:$0xff]  ;;  %v8196_v45 = vmul.f32 -1.442695, %v4583_v17  ;;  %v8210_v63 = vmul.f32 -1.442695, %v4597_v18 }
 0x396   : > { %15412 = vst [vmem:[#allocation67_spill] sm:$0xff] %v12586_v8  ;;  %v12600_v29 = vpop.f32.mrf.mxu1  ;;  %15421 = vst [vmem:[#allocation15_spill] sm:$0xff] %v12605_v49  ;;  %v12610_v36 = vpop.eup %10271  ;;  %v4599_v55 = vadd.f32 %v15426_v50, %v15425_v46  ;;  %v5634_v49 = vrot.slane %v12386_v52, 2  ;;  %10299 = vpow2.f32 %v8194_v42  ;;  %v15430_v25 = vld [vmem:[#allocation4_spill] sm:$0xff]  ;;  %v15433_v46 = vld [vmem:[#allocation6_spill] sm:$0xff]  ;;  %v5635_v52 = vrot.slane %v12398_v51, 2 }
 0x397   : > { %v12598_v60 = vpop.f32.mrf.mxu0  ;;  %15420 = vst [vmem:[#allocation93_spill] sm:$0xff] %v12600_v29  ;;  %15424 = vst [vmem:[#allocation68_spill] sm:$0xff] %v12610_v36  ;;  %v12620_v57 = vpop.eup %10273  ;;  %v15431_v36 = vld [vmem:[#allocation102_spill] sm:$0xff]  ;;  %10301 = vpow2.f32 %v8208_v11  ;;  %v15434_v50 = vld [vmem:[#allocation37_spill] sm:$0xff]  ;;  %v5637_v26 = vrot.slane %v12407_v5, 2 }
 0x398   : > { %15419 = vst [vmem:[#allocation16_spill] sm:$0xff] %v12598_v60  ;;  %v12616_v8 = vpop.f32.mrf.mxu1  ;;  %15429 = vst [vmem:[#allocation9_spill] sm:$0xff] %v12620_v57  ;;  %v4602_v53 = vadd.f32 %v15431_v36, %v15430_v25  ;;  %v12624_v48 = vpop.eup %10275  ;;  %10303 = vpow2.f32 %v8197_v15  ;;  %v8213_v17 = vmul.f32 -1.442695, %v4600_v58  ;;  %v8212_v36 = vmul.f32 -1.442695, %v4599_v55 }
 0x399   : > { %v12614_v60 = vpop.f32.mrf.mxu0  ;;  %15428 = vst [vmem:[#allocation94_spill] sm:$0xff] %v12616_v8  ;;  %15432 = vst [vmem:[#allocation95_spill] sm:$0xff] %v12624_v48  ;;  %v12634_v42 = vpop.eup %10277  ;;  %10305 = vpow2.f32 %v8211_v47  ;;  %v12641_v25 = vsel %vm2484_vm12, %v5634_v49, %v5635_v52  ;;  %v4917_v5 = vld [vmem:[%s14909_s5 + $0x10] sm:$0xf] }
 0x39a   : > { %15427 = vst [vmem:[#allocation18_spill] sm:$0xff] %v12614_v60  ;;  %v4601_v60 = vadd.f32 %v15434_v50, %v15433_v46  ;;  %v12630_v8 = vpop.f32.mrf.mxu1  ;;  %15435 = vst [vmem:[#allocation12_spill] sm:$0xff] %v12634_v42  ;;  %v12636_v18 = vpop.eup %10279  ;;  %v12644_v46 = vsel %vm2484_vm12, %v5635_v52, %v5637_v26  ;;  %10307 = vpow2.f32 %v8196_v45  ;;  %v8215_v58 = vmul.f32 -1.442695, %v4602_v53  ;;  %9957 = vmatprep.subr.msk.mxu1 %vm514_vm3, %v4917_v5 }
 0x39b   : > { %v12628_v29 = vpop.f32.mrf.mxu0  ;;  %15436 = vst [vmem:[#allocation96_spill] sm:$0xff] %v12636_v18  ;;  %15437 = vst [vmem:[#allocation11_spill] sm:$0xff] %v12641_v25  ;;  %v12649_v51 = vpop.eup %10281  ;;  %10309 = vpow2.f32 %v8210_v63  ;;  %v4706_v52 = vadd.f32 1.0, %v12558_v54  ;;  %v4705_v5 = vadd.f32 1.0, %v12570_v24  ;;  %v4719_v63 = vadd.f32 1.0, %v12578_v7 }
 0x39c   : > { %15438 = vst [vmem:[#allocation97_spill] sm:$0xff] %v12644_v46  ;;  %15439 = vst [vmem:[#allocation14_spill] sm:$0xff] %v12649_v51  ;;  %v12651_v15 = vpop.f32.mrf.mxu1  ;;  %v12654_v55 = vpop.eup %10283  ;;  %v8214_v49 = vmul.f32 -1.442695, %v4601_v60  ;;  %10311 = vpow2.f32 %v8213_v17  ;;  %v4720_v46 = vadd.f32 1.0, %v12566_v27 }
 0x39d   : > { %v12638_v11 = vpop.f32.mrf.mxu0  ;;  %15440 = vst [vmem:[#allocation98_spill] sm:$0xff] %v12654_v55  ;;  %v12658_v50 = vpop.eup %10285  ;;  %10313 = vpow2.f32 %v8212_v36 }
 0x39e   : > { %15441 = vst [vmem:[#allocation8_spill] sm:$0xff] %v12658_v50  ;;  %v10288_v26 = vpop.eup %10287  ;;  %10315 = vpow2.f32 %v8215_v58  ;;  %v12665_v25 = vpop.f32.mrf.mxu1 }
 0x39f   : > { %v12656_v47 = vpop.f32.mrf.mxu0  ;;  %v10290_v53 = vpop.eup %10289  ;;  %10317 = vpow2.f32 %v8214_v49  ;;  %v4708_v17 = vadd.f32 1.0, %v10288_v26 }
 0x3a0   : > { %v10292_v60 = vpop.eup %10291  ;;  %10319 = vrcp.f32 %v4706_v52  ;;  %v4722_v27 = vadd.f32 1.0, %v10290_v53  ;;  %v12672_v58 = vpop.f32.mrf.mxu1 }
 0x3a1   : > { %v12662_v45 = vpop.f32.mrf.mxu0  ;;  %v10294_v54 = vpop.eup %10293  ;;  %10321 = vrcp.f32 %v4720_v46  ;;  %v4707_v24 = vadd.f32 1.0, %v10292_v60 }
 0x3a2   : > { %v10296_v51 = vpop.eup %10295  ;;  %10323 = vrcp.f32 %v4705_v5  ;;  %v4721_v55 = vadd.f32 1.0, %v10294_v54  ;;  %v12678_v5 = vpop.f32.mrf.mxu1 }
 0x3a3   : > { %v12668_v50 = vpop.f32.mrf.mxu0  ;;  %v10298_v42 = vpop.eup %10297  ;;  %10325 = vrcp.f32 %v4719_v63  ;;  %v4710_v18 = vadd.f32 1.0, %v10296_v51  ;;  %15445 = vst [vmem:[#allocation4_spill] sm:$0xff] %v12678_v5 }
 0x3a4   : > { %v10300_v57 = vpop.eup %10299  ;;  %10327 = vrcp.f32 %v4708_v17  ;;  %v4724_v26 = vadd.f32 1.0, %v10298_v42 }
 0x3a5   : > { %v12670_v36 = vpop.f32.mrf.mxu0  ;;  %v10302_v49 = vpop.eup %10301  ;;  %10329 = vrcp.f32 %v4722_v27  ;;  %v4709_v48 = vadd.f32 1.0, %v10300_v57 }
 0x3a6   : > { %15442 = vst [vmem:[#allocation99_spill] sm:$0xff] %v12670_v36  ;;  %v10304_v52 = vpop.eup %10303  ;;  %10331 = vrcp.f32 %v4707_v24  ;;  %v4723_v36 = vadd.f32 1.0, %v10302_v49  ;;  %v12684_v24 = vpop.f32.mrf.mxu1 }
 0x3a7   : > { %v12674_v7 = vpop.f32.mrf.mxu0  ;;  %v10306_v53 = vpop.eup %10305  ;;  %10333 = vrcp.f32 %v4721_v55 }
 0x3a8   : > { %15443 = vst [vmem:[#allocation10_spill] sm:$0xff] %v12674_v7  ;;  %v10308_v60 = vpop.eup %10307  ;;  %10335 = vrcp.f32 %v4710_v18  ;;  %v4712_v7 = vadd.f32 1.0, %v10304_v52  ;;  %v4726_v51 = vadd.f32 1.0, %v10306_v53 }
 0x3a9   : > { %v12676_v46 = vpop.f32.mrf.mxu0  ;;  %v10310_v54 = vpop.eup %10309  ;;  %10337 = vrcp.f32 %v4724_v26 }
 0x3aa   : > { %15444 = vst [vmem:[#allocation101_spill] sm:$0xff] %v12676_v46  ;;  %v10312_v17 = vpop.eup %10311  ;;  %10339 = vrcp.f32 %v4709_v48  ;;  %v4711_v46 = vadd.f32 1.0, %v10308_v60  ;;  %v4725_v5 = vadd.f32 1.0, %v10310_v54  ;;  %v12694_v60 = vpop.f32.mrf.mxu1 }
 0x3ab   : > { %v12680_v63 = vpop.f32.mrf.mxu0  ;;  %v10314_v42 = vpop.eup %10313  ;;  %10341 = vrcp.f32 %v4723_v36 }
 0x3ac   : > { %15446 = vst [vmem:[#allocation102_spill] sm:$0xff] %v12680_v63  ;;  %v10316_v57 = vpop.eup %10315  ;;  %10343 = vrcp.f32 %v4712_v7  ;;  %v4728_v63 = vadd.f32 1.0, %v10312_v17  ;;  %v4727_v52 = vadd.f32 1.0, %v10314_v42 }
 0x3ad   : > { %v12682_v27 = vpop.f32.mrf.mxu0  ;;  %v10318_v49 = vpop.eup %10317  ;;  %10345 = vrcp.f32 %v4726_v51  ;;  %v4730_v48 = vadd.f32 1.0, %v10316_v57 }
 0x3ae   : > { %15447 = vst [vmem:[#allocation6_spill] sm:$0xff] %v12682_v27  ;;  %v12688_v18 = vpop.eup %10319  ;;  %10347 = vrcp.f32 %v4711_v46  ;;  %v4729_v36 = vadd.f32 1.0, %v10318_v49  ;;  %v12708_v46 = vpop.f32.mrf.mxu1 }
 0x3af   : > { %v12686_v55 = vpop.f32.mrf.mxu0  ;;  %v12692_v53 = vpop.eup %10321  ;;  %10349 = vrcp.f32 %v4725_v5  ;;  %v2416_v5 = vadd.f32 %v12064_v13, %v12034_v32  ;;  %v2466_v32 = vadd.f32 %v12143_v43, %v12108_v44  ;;  %v2476_v13 = vadd.f32 %v12156_v30, %v12127_v19  ;;  %v15461_v44 = vld [vmem:[#allocation38_spill] sm:$0xff]  ;;  %v15462_v19 = vld [vmem:[#allocation39_spill] sm:$0xff] }
 0x3b0   : > { %15449 = vst [vmem:[#allocation115_spill] sm:$0xff] %v12692_v53  ;;  %v12696_v27 = vpop.eup %10323  ;;  %10351 = vrcp.f32 %v4728_v63  ;;  %v2426_v63 = vadd.f32 %v12078_v9, %v12048_v31  ;;  %v3123_v31 = vadd.f32 %v12168_v56, %v12146_v22  ;;  %v12748_v43 = vpop.f32.mrf.mxu1  ;;  %v15464_v30 = vld [vmem:[#allocation42_spill] sm:$0xff] }
 0x3b1   : > { %v12690_v26 = vpop.f32.mrf.mxu0  ;;  %v12700_v7 = vpop.eup %10325  ;;  %10353 = vrcp.f32 %v4727_v52  ;;  %v2436_v52 = vadd.f32 %v12092_v33, %v12062_v12  ;;  %v3125_v12 = vadd.f32 %v12180_v35, %v12159_v41  ;;  %v3129_v33 = vadd.f32 %v12209_v4, %v12183_v2  ;;  %v15465_v35 = vld [vmem:[#allocation45_spill] sm:$0xff]  ;;  %v15467_v2 = vld [vmem:[#allocation36_spill] sm:$0xff] }
 0x3b2   : > { %15448 = vst [vmem:[#allocation37_spill] sm:$0xff] %v12690_v26  ;;  %15451 = vst [vmem:[#allocation117_spill] sm:$0xff] %v12700_v7  ;;  %v12702_v17 = vpop.eup %10327  ;;  %10355 = vrcp.f32 %v4730_v48  ;;  %v2446_v48 = vadd.f32 %v12110_v61, %v12076_v62  ;;  %v3131_v61 = vadd.f32 %v12221_v1, %v15461_v44  ;;  %v3135_v41 = vadd.f32 %v12247_v21, %v15464_v30  ;;  %v15471_v30 = vld [vmem:[#allocation54_spill] sm:$0xff]  ;;  %v15538_v26 = vld [vmem:[#allocation43_spill] sm:$0xff] }
 0x3b3   : > { %v12698_v54 = vpop.f32.mrf.mxu0  ;;  %15452 = vst [vmem:[#allocation118_spill] sm:$0xff] %v12702_v17  ;;  %v12706_v42 = vpop.eup %10329  ;;  %10357 = vrcp.f32 %v4729_v36  ;;  %v2875_v56 = vadd.f32 %v12258_v40, %v2416_v5  ;;  %v4501_v4 = vsub.s32 2, %v15467_v2  ;;  %v2879_v44 = vadd.f32 %v12280_v10, %v2436_v52  ;;  %v15470_v40 = vld [vmem:[#allocation48_spill] sm:$0xff]  ;;  %v15475_v10 = vld [vmem:[#allocation51_spill] sm:$0xff]  ;;  %v15542_v17 = vld [vmem:[#allocation34_spill] sm:$0xff] }
 0x3b4   : > { %15450 = vst [vmem:[#allocation116_spill] sm:$0xff] %v12698_v54  ;;  %15454 = vst [vmem:[#allocation120_spill] sm:$0xff] %v12706_v42  ;;  %v12710_v57 = vpop.eup %10331  ;;  %v2456_v42 = vadd.f32 %v12129_v37, %v12090_v23  ;;  %v3127_v23 = vadd.f32 %v12192_v3, %v12171_v59  ;;  %v3133_v37 = vadd.f32 %v12233_v6, %v15462_v19  ;;  %v15524_v54 = vld [vmem:[#allocation33_spill] sm:$0xff] }
 0x3b5   : > { %v12704_v51 = vpop.f32.mrf.mxu0  ;;  %15455 = vst [vmem:[#allocation121_spill] sm:$0xff] %v12710_v57  ;;  %v12716_v7 = vpop.eup %10333  ;;  %v3137_v59 = vadd.f32 %v12260_v20, %v15465_v35  ;;  %v2877_v6 = vadd.f32 %v12269_v34, %v2426_v63  ;;  %v2881_v19 = vadd.f32 %v12292_v38, %v2446_v48  ;;  %v3139_v5 = vadd.f32 %v12271_v39, %v15470_v40  ;;  %v15476_v38 = vld [vmem:[#allocation57_spill] sm:$0xff]  ;;  %v15477_v48 = vld [vmem:[#allocation66_spill] sm:$0xff] }
 0x3b6   : > { %15453 = vst [vmem:[#allocation119_spill] sm:$0xff] %v12704_v51  ;;  %15457 = vst [vmem:[#allocation123_spill] sm:$0xff] %v12716_v7  ;;  %v12726_v36 = vpop.eup %10335  ;;  %v3141_v20 = vadd.f32 %v12282_v16, %v2875_v56  ;;  %v2883_v35 = vadd.f32 %v15471_v30, %v2456_v42  ;;  %v15472_v7 = vld [vmem:[#allocation65_spill] sm:$0xff]  ;;  %v3145_v52 = vadd.f32 %v15476_v38, %v2879_v44  ;;  %v15480_v16 = vld [vmem:[#allocation70_spill] sm:$0xff] }
 0x3b7   : > { %v12714_v49 = vpop.f32.mrf.mxu0  ;;  %15458 = vst [vmem:[#allocation124_spill] sm:$0xff] %v12726_v36  ;;  %v12738_v62 = vpop.eup %10337  ;;  %v2885_v53 = vadd.f32 %v15472_v7, %v2466_v32  ;;  %v3143_v63 = vadd.f32 %v15475_v10, %v2877_v6  ;;  %v15481_v56 = vld [vmem:[#allocation72_spill] sm:$0xff]  ;;  %v15482_v32 = vld [vmem:[#allocation73_spill] sm:$0xff]  ;;  %v15487_v38 = vld [vmem:[#allocation79_spill] sm:$0xff] }
 0x3b8   : > { %15456 = vst [vmem:[#allocation122_spill] sm:$0xff] %v12714_v49  ;;  %15460 = vst [vmem:[#allocation126_spill] sm:$0xff] %v12738_v62  ;;  %v12750_v22 = vpop.eup %10339  ;;  %v4537_v62 = vsub.s32 3, %v15467_v2  ;;  %v3147_v2 = vadd.f32 %v15477_v48, %v2881_v19  ;;  %v12781_v49 = vpop.f32.mrf.mxu1  ;;  %v3149_v42 = vadd.f32 %v15480_v16, %v2883_v35  ;;  %v3393_v40 = vadd.f32 %v15482_v32, %v3123_v31  ;;  %v10359_v6 = vld [vmem:[%s14910_s6] sm:$0x3f]  ;;  %v15489_v16 = vld [vmem:[#allocation71_spill] sm:$0xff] }
 0x3b9   : > { %v12736_v9 = vpop.f32.mrf.mxu0  ;;  %15463 = vst [vmem:[#allocation38_spill] sm:$0xff] %v12750_v22  ;;  %v12760_v1 = vpop.eup %10341  ;;  %v12787_v7 = vadd.f32 %v15481_v56, %v2885_v53  ;;  %v12795_v44 = vrot.slane %v10359_v6, %v4501_v4  ;;  %v15486_v10 = vld [vmem:[#allocation76_spill] sm:$0xff]  ;;  %v3397_v53 = vadd.f32 %v15487_v38, %v3127_v23  ;;  %v15490_v56 = vld [vmem:[#allocation77_spill] sm:$0xff]  ;;  %v15492_v4 = vld [vmem:[#allocation74_spill] sm:$0xff] }
 0x3ba   : > { %15459 = vst [vmem:[#allocation125_spill] sm:$0xff] %v12736_v9  ;;  %15468 = vst [vmem:[#allocation42_spill] sm:$0xff] %v12760_v1  ;;  %v12766_v21 = vpop.eup %10343  ;;  %v3395_v35 = vadd.f32 %v15486_v10, %v3125_v12  ;;  %v12804_v48 = vrot.slane %v10359_v6, %v4537_v62  ;;  %v3663_v32 = vadd.f32 %v15490_v56, %v15489_v16  ;;  %v15497_v12 = vld [vmem:[#allocation84_spill] sm:$0xff]  ;;  %v15498_v62 = vld [vmem:[#allocation78_spill] sm:$0xff] }
 0x3bb   : > { %v12757_v3 = vpop.f32.mrf.mxu0  ;;  %15469 = vst [vmem:[#allocation45_spill] sm:$0xff] %v12766_v21  ;;  %v12775_v34 = vpop.eup %10345  ;;  %v15499_v6 = vld [vmem:[#allocation85_spill] sm:$0xff]  ;;  %v15500_v38 = vld [vmem:[#allocation87_spill] sm:$0xff]  ;;  %v15501_v51 = vld [vmem:[#allocation88_spill] sm:$0xff] }
 0x3bc   : > { %15466 = vst [vmem:[#allocation39_spill] sm:$0xff] %v12757_v3  ;;  %15474 = vst [vmem:[#allocation54_spill] sm:$0xff] %v12775_v34  ;;  %v15478_v3 = vld [vmem:[#allocation69_spill] sm:$0xff]  ;;  %v12783_v39 = vpop.eup %10347  ;;  %v15491_v34 = vld [vmem:[#allocation80_spill] sm:$0xff]  ;;  %v3664_v23 = vadd.f32 %v15497_v12, %v3395_v35  ;;  %v3667_v10 = vadd.f32 %v15499_v6, %v15498_v62  ;;  %v12823_v16 = vadd.f32 %v15501_v51, %v3397_v53 }
 0x3bd   : > { %v12773_v1 = vpop.f32.mrf.mxu0  ;;  %v2887_v9 = vadd.f32 %v15478_v3, %v2476_v13  ;;  %15479 = vst [vmem:[#allocation65_spill] sm:$0xff] %v12783_v39  ;;  %v12797_v13 = vpop.eup %10349  ;;  %v15485_v3 = vld [vmem:[#allocation75_spill] sm:$0xff]  ;;  %v15508_v12 = vld [vmem:[#allocation105_spill] sm:$0xff]  ;;  %v15511_v51 = vld [vmem:[#allocation86_spill] sm:$0xff] }
 0x3be   : > { %15473 = vst [vmem:[#allocation48_spill] sm:$0xff] %v12773_v1  ;;  %15484 = vst [vmem:[#allocation57_spill] sm:$0xff] %v12797_v13  ;;  %v12806_v31 = vpop.eup %10351  ;;  %v15493_v1 = vld [vmem:[#allocation81_spill] sm:$0xff]  ;;  %v15494_v13 = vld [vmem:[#allocation83_spill] sm:$0xff]  ;;  %v3405_v62 = vadd.f32 %v15508_v12, %v3135_v41 }
 0x3bf   : > { %v12790_v30 = vpop.f32.mrf.mxu0  ;;  %v12800_v19 = vadd.f32 %v15485_v3, %v2887_v9  ;;  %15488 = vst [vmem:[#allocation66_spill] sm:$0xff] %v12806_v31  ;;  %v3665_v39 = vadd.f32 %v15493_v1, %v15492_v4  ;;  %v3399_v21 = vadd.f32 %v15494_v13, %v3129_v33  ;;  %v12816_v3 = vpop.eup %10353  ;;  %v3401_v31 = vadd.f32 %v15500_v38, %v3131_v61  ;;  %v15504_v1 = vld [vmem:[#allocation82_spill] sm:$0xff]  ;;  %v15505_v33 = vld [vmem:[#allocation89_spill] sm:$0xff]  ;;  %v15506_v56 = vld [vmem:[#allocation91_spill] sm:$0xff] }
 0x3c0   : > { %15483 = vst [vmem:[#allocation51_spill] sm:$0xff] %v12790_v30  ;;  %v3662_v30 = vadd.f32 %v15491_v34, %v3393_v40  ;;  %15496 = vst [vmem:[#allocation70_spill] sm:$0xff] %v12816_v3  ;;  %v12825_v34 = vpop.f32.mrf.mxu1  ;;  %v12827_v40 = vpop.eup %10355  ;;  %v12831_v13 = vadd.f32 %v15505_v33, %v15504_v1  ;;  %v3403_v4 = vadd.f32 %v15506_v56, %v3133_v37  ;;  %v15507_v3 = vld [vmem:[#allocation100_spill] sm:$0xff]  ;;  %v15512_v53 = vld [vmem:[#allocation103_spill] sm:$0xff] }
 0x3c1   : > { %v12814_v9 = vpop.f32.mrf.mxu0  ;;  %15502 = vst [vmem:[#allocation72_spill] sm:$0xff] %v12825_v34  ;;  %15503 = vst [vmem:[#allocation73_spill] sm:$0xff] %v12827_v40  ;;  %v12835_v35 = vadd.f32 %v15507_v3, %v3399_v21  ;;  %v12840_v61 = vpop.eup %10357  ;;  %v12844_v38 = vadd.f32 %v15512_v53, %v15511_v51  ;;  %v15513_v40 = vld [vmem:[#allocation106_spill] sm:$0xff]  ;;  %v15515_v33 = vld [vmem:[#allocation107_spill] sm:$0xff] }
 0x3c2   : > { %15495 = vst [vmem:[#allocation69_spill] sm:$0xff] %v12814_v9  ;;  %15510 = vst [vmem:[#allocation76_spill] sm:$0xff] %v12840_v61  ;;  %v12847_v9 = vadd.f32 %v15513_v40, %v3401_v31  ;;  %v15514_v1 = vld [vmem:[#allocation90_spill] sm:$0xff]  ;;  %v15516_v37 = vld [vmem:[#allocation109_spill] sm:$0xff] }
 0x3c3   : > { %v12838_v6 = vpop.f32.mrf.mxu0  ;;  %v12851_v22 = vadd.f32 %v15515_v33, %v15514_v1  ;;  %v3407_v21 = vadd.f32 %v15516_v37, %v3137_v59  ;;  %v15517_v3 = vld [vmem:[#allocation110_spill] sm:$0xff]  ;;  %v15518_v41 = vld [vmem:[#allocation104_spill] sm:$0xff]  ;;  %v15519_v12 = vld [vmem:[#allocation111_spill] sm:$0xff] }
 0x3c4   : > { %15509 = vst [vmem:[#allocation75_spill] sm:$0xff] %v12838_v6  ;;  %v12855_v56 = vadd.f32 %v15517_v3, %v3403_v4  ;;  %v12859_v6 = vadd.f32 %v15519_v12, %v15518_v41  ;;  %v15520_v61 = vld [vmem:[#allocation113_spill] sm:$0xff]  ;;  %v15521_v51 = vld [vmem:[#allocation114_spill] sm:$0xff]  ;;  %v15523_v40 = vld [vmem:[#allocation108_spill] sm:$0xff]  ;;  %v3929_v3 = vadd.f32 %v12534_v0, %v3663_v32  ;;  %v12876_v41 = vpop.f32.mrf.mxu1 }
 0x3c5   : > { %v3409_v36 = vadd.f32 %v15520_v61, %v3139_v5  ;;  %v12863_v53 = vadd.f32 %v15521_v51, %v3405_v62  ;;  %v12865_v31 = vpop.f32.mrf.mxu0  ;;  %v12869_v1 = vadd.f32 %v15524_v54, %v15523_v40  ;;  %v15525_v33 = vld [vmem:[#allocation5_spill] sm:$0xff]  ;;  %15527 = vst [vmem:[#allocation71_spill] sm:$0xff] %v12876_v41  ;;  %v15528_v12 = vld [vmem:[#allocation112_spill] sm:$0xff]  ;;  %v15529_v5 = vld [vmem:[#allocation35_spill] sm:$0xff]  ;;  %v3413_v62 = vadd.f32 %v12467_v28, %v3143_v63 }
 0x3c6   : > { %15522 = vst [vmem:[#allocation79_spill] sm:$0xff] %v12865_v31  ;;  %v3411_v59 = vadd.f32 %v15525_v33, %v3141_v20  ;;  %v15526_v37 = vld [vmem:[#allocation41_spill] sm:$0xff]  ;;  %v12880_v61 = vadd.f32 %v15529_v5, %v15528_v12  ;;  %v15530_v51 = vld [vmem:[#allocation7_spill] sm:$0xff]  ;;  %v15531_v54 = vld [vmem:[#allocation40_spill] sm:$0xff] }
 0x3c7   : > { %v12873_v4 = vadd.f32 %v15526_v37, %v3407_v21  ;;  %v12884_v31 = vadd.f32 %v15530_v51, %v3409_v36  ;;  %v15532_v40 = vld [vmem:[#allocation44_spill] sm:$0xff]  ;;  %v12890_v20 = vpop.f32.mrf.mxu0  ;;  %v15534_v21 = vld [vmem:[#allocation46_spill] sm:$0xff]  ;;  %v15537_v12 = vld [vmem:[#allocation63_spill] sm:$0xff] }
 0x3c8   : > { %v12888_v57 = vadd.f32 %v15532_v40, %v15531_v54  ;;  %15533 = vst [vmem:[#allocation77_spill] sm:$0xff] %v12890_v20  ;;  %v3415_v33 = vadd.f32 %v15534_v21, %v3145_v52  ;;  %v15535_v0 = vld [vmem:[#allocation32_spill] sm:$0xff]  ;;  %v4199_v5 = vadd.f32 %v15537_v12, %v3929_v3  ;;  %v15539_v28 = vld [vmem:[#allocation47_spill] sm:$0xff]  ;;  %v15541_v36 = vld [vmem:[#allocation49_spill] sm:$0xff]  ;;  %v12904_v54 = vadd.f32 %v15542_v17, %v3413_v62  ;;  %v12913_v12 = vpop.f32.mrf.mxu1 }
 0x3c9   : > { %v12894_v32 = vadd.f32 %v15535_v0, %v3411_v59  ;;  %v15536_v37 = vld [vmem:[#allocation60_spill] sm:$0xff]  ;;  %v12900_v63 = vadd.f32 %v15539_v28, %v15538_v26  ;;  %v3417_v51 = vadd.f32 %v15541_v36, %v3147_v2  ;;  %v15543_v40 = vld [vmem:[#allocation29_spill] sm:$0xff]  ;;  %v15544_v20 = vld [vmem:[#allocation50_spill] sm:$0xff]  ;;  %v9711_v52 = vpop.f32.mrf.mxu0 }
 0x3ca   : > { %v3928_v41 = vadd.f32 %v15536_v37, %v3662_v30  ;;  %v12908_v34 = vadd.f32 %v15544_v20, %v15543_v40  ;;  %v15546_v59 = vld [vmem:[#allocation52_spill] sm:$0xff]  ;;  %v15547_v0 = vld [vmem:[#allocation61_spill] sm:$0xff]  ;;  %v4468_v26 = vadd.f32 %v9711_v52, %v4199_v5  ;;  %v15550_v2 = vld [vmem:[#allocation31_spill] sm:$0xff] }
 0x3cb   : > { %15540 = vst [vmem:[#allocation80_spill] sm:$0xff] %v12900_v63  ;;  %v3419_v21 = vadd.f32 %v15546_v59, %v3149_v42  ;;  %v3931_v30 = vadd.f32 %v15547_v0, %v3665_v39  ;;  %v15548_v37 = vld [vmem:[#allocation64_spill] sm:$0xff]  ;;  %v15551_v17 = vld [vmem:[#allocation53_spill] sm:$0xff]  ;;  %v15552_v20 = vld [vmem:[#allocation55_spill] sm:$0xff]  ;;  %v4308_v42 = vpop.f32.mrf.mxu0 }
 0x3cc   : > { %15545 = vst [vmem:[#allocation74_spill] sm:$0xff] %v12908_v34  ;;  %v4198_v3 = vadd.f32 %v15548_v37, %v3928_v41  ;;  %v15549_v28 = vld [vmem:[#allocation28_spill] sm:$0xff]  ;;  %v12920_v62 = vadd.f32 %v15551_v17, %v15550_v2  ;;  %v3421_v36 = vadd.f32 %v15552_v20, %v12787_v7  ;;  %v15553_v40 = vld [vmem:[#allocation30_spill] sm:$0xff]  ;;  %v15555_v39 = vld [vmem:[#allocation25_spill] sm:$0xff] }
 0x3cd   : > { %v12916_v63 = vadd.f32 %v15549_v28, %v3415_v33  ;;  %v12925_v34 = vadd.f32 %v15553_v40, %v3417_v51  ;;  %v15556_v59 = vld [vmem:[#allocation56_spill] sm:$0xff]  ;;  %v4201_v5 = vadd.f32 %v12588_v14, %v3931_v30  ;;  %v4504_v33 = vmul.f32 %v12795_v44, %v4468_v26  ;;  %v15558_v0 = vld [vmem:[#allocation58_spill] sm:$0xff]  ;;  %v15560_v7 = vld [vmem:[#allocation27_spill] sm:$0xff] }
 0x3ce   : > { %v12929_v41 = vadd.f32 %v15556_v59, %v15555_v39  ;;  %v4467_v52 = vadd.f32 %v4308_v42, %v4198_v3  ;;  %v3423_v37 = vadd.f32 %v15558_v0, %v12800_v19  ;;  %v15559_v28 = vld [vmem:[#allocation24_spill] sm:$0xff]  ;;  %v15561_v17 = vld [vmem:[#allocation59_spill] sm:$0xff]  ;;  %v15563_v20 = vld [vmem:[#allocation62_spill] sm:$0xff] }
 0x3cf   : > { %15554 = vst [vmem:[#allocation81_spill] sm:$0xff] %v12925_v34  ;;  %v12936_v2 = vadd.f32 %v15559_v28, %v3419_v21  ;;  %v12940_v51 = vadd.f32 %v15561_v17, %v15560_v7  ;;  %v3930_v40 = vadd.f32 %v15563_v20, %v3664_v23  ;;  %v9714_v34 = vpop.f32.mrf.mxu0  ;;  %v15564_v39 = vld [vmem:[#allocation20_spill] sm:$0xff]  ;;  %v4540_v14 = vadd.f32 %v12804_v48, %v4504_v33  ;;  %v15565_v19 = vld [vmem:[#allocation23_spill] sm:$0xff]  ;;  %v15566_v21 = vld [vmem:[#allocation21_spill] sm:$0xff] }
 0x3d0   : > { %15557 = vst [vmem:[#allocation83_spill] sm:$0xff] %v12929_v41  ;;  %v3933_v59 = vadd.f32 %v15564_v39, %v3667_v10  ;;  %v12944_v41 = vpop.f32.mrf.mxu1  ;;  %v4503_v30 = vmul.f32 %v12795_v44, %v4467_v52  ;;  %v4470_v3 = vadd.f32 %v9714_v34, %v4201_v5  ;;  %v12949_v26 = vadd.f32 %v15565_v19, %v3421_v36  ;;  %v15567_v42 = vld [vmem:[#allocation26_spill] sm:$0xff]  ;;  %v15568_v28 = vld [vmem:[#allocation19_spill] sm:$0xff]  ;;  %v15569_v7 = vld [vmem:[#allocation93_spill] sm:$0xff] }
 0x3d1   : > { %15562 = vst [vmem:[#allocation84_spill] sm:$0xff] %v12940_v51  ;;  %v12953_v0 = vadd.f32 %v15567_v42, %v15566_v21  ;;  %v3932_v23 = vadd.f32 %v15568_v28, %v12823_v16  ;;  %v4200_v17 = vadd.f32 %v15569_v7, %v3930_v40  ;;  %v4318_v10 = vpop.f32.mrf.mxu0  ;;  %v15570_v20 = vld [vmem:[#allocation94_spill] sm:$0xff]  ;;  %v15572_v36 = vld [vmem:[#allocation17_spill] sm:$0xff]  ;;  %v15573_v19 = vld [vmem:[#allocation67_spill] sm:$0xff] }
 0x3d2   : > { %v4203_v39 = vadd.f32 %v15570_v20, %v3933_v59  ;;  %v15571_v51 = vld [vmem:[#allocation22_spill] sm:$0xff]  ;;  %v4539_v52 = vadd.f32 %v12804_v48, %v4503_v30  ;;  %v4506_v34 = vmul.f32 %v12795_v44, %v4470_v3  ;;  %v12963_v5 = vadd.f32 %v15572_v36, %v3423_v37  ;;  %v15574_v42 = vld [vmem:[#allocation16_spill] sm:$0xff]  ;;  %v12970_v59 = vpop.f32.mrf.mxu1 }
 0x3d3   : > { %v4796_v33 = vmul.f32 %v15571_v51, %v4540_v14  ;;  %v3935_v21 = vadd.f32 %v15573_v19, %v12831_v13  ;;  %v3934_v16 = vadd.f32 %v15574_v42, %v12835_v35  ;;  %v4469_v28 = vadd.f32 %v4318_v10, %v4200_v17  ;;  %v9717_v40 = vpop.f32.mrf.mxu0  ;;  %v15575_v51 = vld [vmem:[#allocation92_spill] sm:$0xff]  ;;  %v15576_v3 = vld [vmem:[#allocation18_spill] sm:$0xff]  ;;  %v15580_v42 = vld [vmem:[#allocation95_spill] sm:$0xff] }
 0x3d4   : > { %v4202_v7 = vadd.f32 %v12630_v8, %v3932_v23  ;;  %v4795_v14 = vmul.f32 %v15575_v51, %v4539_v52  ;;  %v4542_v30 = vadd.f32 %v12804_v48, %v4506_v34  ;;  %v4472_v37 = vadd.f32 %v9717_v40, %v4203_v39  ;;  %v15577_v10 = vld [vmem:[#allocation68_spill] sm:$0xff]  ;;  %v12993_v34 = vpop.f32.mrf.mxu1 }
 0x3d5   : > { %4828 = vst.msk [vmem:[#allocation2 + $0x21] sm:$0xff] %vm279_vm0, %v4796_v33  ;;  %v3937_v20 = vadd.f32 %v15576_v3, %v12844_v38  ;;  %v3936_v13 = vadd.f32 %v12628_v29, %v12847_v9  ;;  %v3939_v35 = vadd.f32 %v12638_v11, %v12851_v22  ;;  %v4505_v8 = vmul.f32 %v12795_v44, %v4469_v28  ;;  %v4328_v23 = vpop.f32.mrf.mxu0  ;;  %v13007_v28 = vld [vmem:[%s14909_s5 + $0x14] sm:$0xf]  ;;  %v15581_v40 = vld [vmem:[#allocation96_spill] sm:$0xff]  ;;  %v15583_v3 = vld [vmem:[#allocation101_spill] sm:$0xff] }
 0x3d6   : > { %v4205_v17 = vadd.f32 %v12651_v15, %v3935_v21  ;;  %4827 = vst.msk [vmem:[#allocation2 + $0x19] sm:$0xff] %vm279_vm0, %v4795_v14  ;;  %v4798_v33 = vmul.f32 %v15577_v10, %v4542_v30  ;;  %v4508_v39 = vmul.f32 %v12795_v44, %v4472_v37  ;;  %v4471_v52 = vadd.f32 %v4328_v23, %v4202_v7  ;;  %v15584_v23 = vld [vmem:[#allocation98_spill] sm:$0xff] }
 0x3d7   : > { %v3938_v38 = vadd.f32 %v12656_v47, %v12855_v56  ;;  %v4204_v29 = vadd.f32 %v12665_v25, %v3934_v16  ;;  %v3941_v11 = vadd.f32 %v12662_v45, %v12859_v6  ;;  %v4541_v22 = vadd.f32 %v12804_v48, %v4505_v8  ;;  %v9720_v9 = vpop.f32.mrf.mxu0  ;;  %v15578_v47 = vld [vmem:[#allocation4_spill] sm:$0xff]  ;;  %v15579_v45 = vld [vmem:[#allocation99_spill] sm:$0xff]  ;;  %10007 = vmatprep.subr.msk.mxu0 %vm514_vm3, %v13007_v28  ;;  %v13023_v8 = vpop.f32.mrf.mxu1 }
 0x3d8   : > { %v4207_v15 = vadd.f32 %v12672_v58, %v3937_v20  ;;  %4830 = vst.msk [vmem:[#allocation2 + $0x39] sm:$0xff] %vm279_vm0, %v4798_v33  ;;  %v4544_v36 = vadd.f32 %v12804_v48, %v4508_v39  ;;  %v4507_v19 = vmul.f32 %v12795_v44, %v4471_v52  ;;  %v4474_v21 = vadd.f32 %v9720_v9, %v4205_v17  ;;  %v15586_v52 = vld [vmem:[#allocation6_spill] sm:$0xff] }
 0x3d9   : > { %v3940_v25 = vadd.f32 %v12668_v50, %v12863_v53  ;;  %v4206_v56 = vadd.f32 %v15578_v47, %v3936_v13  ;;  %v3943_v6 = vadd.f32 %v15579_v45, %v12869_v1  ;;  %v4797_v16 = vmul.f32 %v15580_v42, %v4541_v22  ;;  %v4338_v58 = vpop.f32.mrf.mxu0  ;;  %v15582_v1 = vld [vmem:[#allocation10_spill] sm:$0xff]  ;;  %v15587_v42 = vld [vmem:[#allocation72_spill] sm:$0xff] }
 0x3da   : > { %v4800_v7 = vmul.f32 %v15581_v40, %v4544_v36  ;;  %v4543_v51 = vadd.f32 %v12804_v48, %v4507_v19  ;;  %v4510_v14 = vmul.f32 %v12795_v44, %v4474_v21  ;;  %v4473_v50 = vadd.f32 %v4338_v58, %v4204_v29  ;;  %v13061_v21 = vpop.f32.mrf.mxu1 }
 0x3db   : > { %v4209_v53 = vadd.f32 %v12684_v24, %v3939_v35  ;;  %v3942_v30 = vadd.f32 %v15582_v1, %v12873_v4  ;;  %v4208_v37 = vadd.f32 %v12694_v60, %v3938_v38  ;;  %v13020_v20 = vadd.f32 %v15583_v3, %v12880_v61  ;;  %4829 = vst.msk [vmem:[#allocation2 + $0x31] sm:$0xff] %vm279_vm0, %v4797_v16  ;;  %v9723_v13 = vpop.f32.mrf.mxu0  ;;  %v15585_v61 = vld [vmem:[#allocation102_spill] sm:$0xff]  ;;  %v15589_v1 = vld [vmem:[#allocation80_spill] sm:$0xff] }
 0x3dc   : > { %4832 = vst.msk [vmem:[#allocation2 + $0x51] sm:$0xff] %vm279_vm0, %v4800_v7  ;;  %v4799_v17 = vmul.f32 %v15584_v23, %v4543_v51  ;;  %v4546_v24 = vadd.f32 %v12804_v48, %v4510_v14  ;;  %v4509_v35 = vmul.f32 %v12795_v44, %v4473_v50  ;;  %v4476_v4 = vadd.f32 %v9723_v13, %v4207_v15  ;;  %v13029_v10 = vld [vmem:[#allocation2 + $0x28] sm:$0x3]  ;;  %v15588_v7 = vld [vmem:[#allocation118_spill] sm:$0xff] }
 0x3dd   : > { %v4211_v60 = vadd.f32 %v12708_v46, %v3941_v11  ;;  %v13034_v33 = vadd.f32 %v15585_v61, %v12884_v31  ;;  %v13037_v39 = vadd.f32 %v12748_v43, %v3940_v25  ;;  %v13041_v38 = vadd.f32 %v15586_v52, %v12888_v57  ;;  %v4348_v29 = vpop.f32.mrf.mxu0  ;;  %v13043_v22 = vld [vmem:[#allocation2 + $0x18] sm:$0xff]  ;;  %v13045_v9 = vld [vmem:[#allocation2 + $0x20] sm:$0xff] }
 0x3de   : > { %4831 = vst.msk [vmem:[#allocation2 + $0x49] sm:$0xff] %vm279_vm0, %v4799_v17  ;;  %v4802_v46 = vmul.f32 %v12688_v18, %v4546_v24  ;;  %v4545_v11 = vadd.f32 %v12804_v48, %v4509_v35  ;;  %v4512_v31 = vmul.f32 %v12795_v44, %v4476_v4  ;;  %v4475_v15 = vadd.f32 %v4348_v29, %v4206_v56  ;;  %v13103_v24 = vpop.f32.mrf.mxu1  ;;  %v15591_v35 = vld [vmem:[#allocation121_spill] sm:$0xff] }
 0x3df   : > { %9812 = vmatprep.mubr.msk.f32.mxu0 %vm279_vm0, %v13043_v22  ;;  %v13054_v57 = vadd.f32 %v12781_v49, %v3943_v6  ;;  %v4975_v43 = vrot.slane %v13043_v22, 1  ;;  %v9726_v36 = vpop.f32.mrf.mxu0  ;;  %v4976_v19 = vrot.slane %v13045_v9, 1  ;;  %v4978_v18 = vrot.slane %v13029_v10, 1  ;;  %v13067_v45 = vld [vmem:[#allocation2 + $0x40] sm:$0x3] }
 0x3e0   : > { %9813 = vmatmul.mubr.msk.f32.gmra.mxu0 %vm279_vm0, %v13045_v9  ;;  %4834 = vst.msk [vmem:[#allocation2 + $0x69] sm:$0xff] %vm279_vm0, %v4802_v46  ;;  %v4801_v25 = vmul.f32 %v12696_v27, %v4545_v11  ;;  %v4548_v47 = vadd.f32 %v12804_v48, %v4512_v31  ;;  %v4511_v49 = vmul.f32 %v12795_v44, %v4475_v15  ;;  %v4983_v17 = vrot.slane %v13067_v45, 1  ;;  %v15592_v11 = vld [vmem:[#allocation71_spill] sm:$0xff]  ;;  %v15593_v15 = vld [vmem:[#allocation116_spill] sm:$0xff] }
 0x3e1   : > { %v4478_v56 = vadd.f32 %v9726_v36, %v4209_v53  ;;  %v13071_v6 = vadd.f32 %v12686_v55, %v12894_v32  ;;  %v13074_v16 = vadd.f32 %v15587_v42, %v3942_v30  ;;  %v4358_v58 = vpop.f32.mrf.mxu0  ;;  %v13077_v40 = vsel %vm1819_vm13, %v4975_v43, %v4976_v19  ;;  %v15590_v30 = vld [vmem:[#allocation37_spill] sm:$0xff] }
 0x3e2   : > { %v13080_v27 = vsel %vm1819_vm13, %v4976_v19, %v4978_v18  ;;  %4833 = vst.msk [vmem:[#allocation2 + $0x61] sm:$0xff] %vm279_vm0, %v4801_v25  ;;  %v4804_v51 = vmul.f32 %v15588_v7, %v4548_v47  ;;  %v4547_v14 = vadd.f32 %v12804_v48, %v4511_v49  ;;  %v4477_v55 = vadd.f32 %v4358_v58, %v4208_v37  ;;  %v13088_v32 = vld [vmem:[#allocation2 + $0x30] sm:$0xff]  ;;  %v13090_v53 = vld [vmem:[#allocation2 + $0x38] sm:$0xff]  ;;  %v15594_v47 = vld [vmem:[#allocation124_spill] sm:$0xff] }
 0x3e3   : > { %v4514_v50 = vmul.f32 %v12795_v44, %v4478_v56  ;;  %9762 = vmatprep.mubr.msk.f32.mxu1 %vm279_vm0, %v13077_v40  ;;  %v13094_v3 = vadd.f32 %v15590_v30, %v15589_v1  ;;  %9815 = vmatprep.mubr.msk.f32.mxu0 %vm279_vm0, %v13088_v32  ;;  %v9729_v13 = vpop.f32.mrf.mxu0  ;;  %v4980_v37 = vrot.slane %v13088_v32, 1  ;;  %v4981_v23 = vrot.slane %v13090_v53, 1  ;;  %v13111_v46 = vld [vmem:[#allocation2 + $0x58] sm:$0x3] }
 0x3e4   : > { %9763 = vmatmul.mubr.msk.f32.gmra.mxu1 %vm279_vm0, %v13080_v27  ;;  %4836 = vst.msk [vmem:[#allocation2 + $0x81] sm:$0xff] %vm279_vm0, %v4804_v51  ;;  %v4803_v4 = vmul.f32 %v15591_v35, %v4547_v14  ;;  %v4513_v52 = vmul.f32 %v12795_v44, %v4477_v55  ;;  %v4480_v29 = vadd.f32 %v9729_v13, %v4211_v60  ;;  %v4988_v14 = vrot.slane %v13111_v46, 1  ;;  %v15596_v13 = vld [vmem:[#allocation74_spill] sm:$0xff] }
 0x3e5   : > { %v4550_v61 = vadd.f32 %v12804_v48, %v4514_v50  ;;  %9816 = vmatmul.mubr.msk.f32.gmra.mxu0 %vm279_vm0, %v13090_v53  ;;  %v4215_v31 = vadd.f32 %v15592_v11, %v13020_v20  ;;  %v13117_v43 = vadd.f32 %v15593_v15, %v12904_v54  ;;  %v4368_v36 = vpop.f32.mrf.mxu0  ;;  %v13120_v19 = vsel %vm1819_vm13, %v4980_v37, %v4981_v23  ;;  %v13125_v60 = vld [vmem:[#allocation2 + $0x48] sm:$0xff]  ;;  %v13127_v25 = vld [vmem:[#allocation2 + $0x50] sm:$0xff]  ;;  %v15597_v37 = vld [vmem:[#allocation119_spill] sm:$0xff] }
 0x3e6   : > { %v13123_v18 = vsel %vm1819_vm13, %v4981_v23, %v4983_v17  ;;  %4835 = vst.msk [vmem:[#allocation2 + $0x79] sm:$0xff] %vm279_vm0, %v4803_v4  ;;  %v4549_v20 = vadd.f32 %v12804_v48, %v4513_v52  ;;  %v4516_v54 = vmul.f32 %v12795_v44, %v4480_v29  ;;  %v4479_v56 = vadd.f32 %v4368_v36, %v13037_v39  ;;  %v13145_v39 = vpop.f32.mrf.mxu1  ;;  %v15595_v50 = vld [vmem:[#allocation38_spill] sm:$0xff]  ;;  %v15598_v29 = vld [vmem:[#allocation45_spill] sm:$0xff] }
 0x3e7   : > { %v4806_v49 = vmul.f32 %v15594_v47, %v4550_v61  ;;  %9765 = vmatprep.mubr.msk.f32.mxu1 %vm279_vm0, %v13120_v19  ;;  %v4214_v42 = vadd.f32 %v12913_v12, %v13034_v33  ;;  %9818 = vmatprep.mubr.msk.f32.mxu0 %vm279_vm0, %v13125_v60  ;;  %v9732_v58 = vpop.f32.mrf.mxu0  ;;  %v4985_v7 = vrot.slane %v13125_v60, 1  ;;  %v4986_v51 = vrot.slane %v13127_v25, 1  ;;  %v13154_v30 = vld [vmem:[#allocation2 + $0x70] sm:$0x3] }
 0x3e8   : > { %9766 = vmatmul.mubr.msk.f32.gmra.mxu1 %vm279_vm0, %v13123_v18  ;;  %v4805_v55 = vmul.f32 %v15595_v50, %v4549_v20  ;;  %v4552_v12 = vadd.f32 %v12804_v48, %v4516_v54  ;;  %v4515_v33 = vmul.f32 %v12795_v44, %v4479_v56  ;;  %v4482_v1 = vadd.f32 %v9732_v58, %v13054_v57  ;;  %v13190_v56 = vpop.f32.mrf.mxu1  ;;  %v15600_v58 = vld [vmem:[#allocation65_spill] sm:$0xff] }
 0x3e9   : > { %4838 = vst.msk [vmem:[#allocation2 + $0x99] sm:$0xff] %vm279_vm0, %v4806_v49  ;;  %9819 = vmatmul.mubr.msk.f32.gmra.mxu0 %vm279_vm0, %v13127_v25  ;;  %v13158_v23 = vadd.f32 %v15597_v37, %v15596_v13  ;;  %v4217_v17 = vadd.f32 %v12944_v41, %v13041_v38  ;;  %v4378_v35 = vpop.f32.mrf.mxu0  ;;  %v13163_v4 = vsel %vm1819_vm13, %v4985_v7, %v4986_v51  ;;  %v13168_v57 = vld [vmem:[#allocation2 + $0x60] sm:$0xff]  ;;  %v13170_v52 = vld [vmem:[#allocation2 + $0x68] sm:$0xff]  ;;  %v15599_v38 = vld [vmem:[#allocation122_spill] sm:$0xff] }
 0x3ea   : > { %v13166_v61 = vsel %vm1819_vm13, %v4986_v51, %v4988_v14  ;;  %4837 = vst.msk [vmem:[#allocation2 + $0x91] sm:$0xff] %vm279_vm0, %v4805_v55  ;;  %v4808_v11 = vmul.f32 %v15598_v29, %v4552_v12  ;;  %v4551_v15 = vadd.f32 %v12804_v48, %v4515_v33  ;;  %v4518_v36 = vmul.f32 %v12795_v44, %v4482_v1  ;;  %v15601_v12 = vld [vmem:[#allocation125_spill] sm:$0xff] }
 0x3eb   : > { %v4481_v41 = vadd.f32 %v4378_v35, %v13074_v16  ;;  %9768 = vmatprep.mubr.msk.f32.mxu1 %vm279_vm0, %v13163_v4  ;;  %v13181_v47 = vadd.f32 %v15599_v38, %v12916_v63  ;;  %9821 = vmatprep.mubr.msk.f32.mxu0 %vm279_vm0, %v13168_v57  ;;  %v9735_v49 = vpop.f32.mrf.mxu0  ;;  %v4990_v20 = vrot.slane %v13168_v57, 1  ;;  %v4991_v54 = vrot.slane %v13170_v52, 1  ;;  %v13198_v50 = vld [vmem:[#allocation2 + $0x88] sm:$0x3] }
 0x3ec   : > { %9769 = vmatmul.mubr.msk.f32.gmra.mxu1 %vm279_vm0, %v13166_v61  ;;  %v4993_v16 = vrot.slane %v13154_v30, 1  ;;  %4840 = vst.msk [vmem:[#allocation2 + $0xb1] sm:$0xff] %vm279_vm0, %v4808_v11  ;;  %v4807_v63 = vmul.f32 %v15600_v58, %v4551_v15  ;;  %v4554_v7 = vadd.f32 %v12804_v48, %v4518_v36  ;;  %v4484_v14 = vadd.f32 %v9735_v49, %v4215_v31  ;;  %v15604_v29 = vld [vmem:[#allocation13_spill] sm:$0xff] }
 0x3ed   : > { %v4517_v51 = vmul.f32 %v12795_v44, %v4481_v41  ;;  %9822 = vmatmul.mubr.msk.f32.gmra.mxu0 %vm279_vm0, %v13170_v52  ;;  %v4216_v55 = vadd.f32 %v12970_v59, %v13071_v6  ;;  %v13204_v33 = vadd.f32 %v15601_v12, %v12920_v62  ;;  %v4388_v1 = vpop.f32.mrf.mxu0  ;;  %v13207_v13 = vsel %vm1819_vm13, %v4990_v20, %v4991_v54  ;;  %v13212_v31 = vld [vmem:[#allocation2 + $0x78] sm:$0xff]  ;;  %v13214_v35 = vld [vmem:[#allocation2 + $0x80] sm:$0xff] }
 0x3ee   : > { %15602 = vst [vmem:[#allocation78_spill] sm:$0xff] %v13207_v13  ;;  %v13210_v37 = vsel %vm1819_vm13, %v4991_v54, %v4993_v16  ;;  %4839 = vst.msk [vmem:[#allocation2 + $0xa9] sm:$0xff] %vm279_vm0, %v4807_v63  ;;  %v4810_v11 = vmul.f32 %v15604_v29, %v4554_v7  ;;  %v4520_v62 = vmul.f32 %v12795_v44, %v4484_v14  ;;  %9771 = vmatprep.mubr.msk.f32.mxu1 %vm279_vm0, %v13207_v13  ;;  %v15605_v20 = vld [vmem:[#allocation15_spill] sm:$0xff]  ;;  %v15606_v63 = vld [vmem:[#allocation81_spill] sm:$0xff] }
 0x3ef   : > { %15603 = vst [vmem:[#allocation85_spill] sm:$0xff] %v13210_v37  ;;  %v4553_v59 = vadd.f32 %v12804_v48, %v4517_v51  ;;  %v4483_v6 = vadd.f32 %v4388_v1, %v4214_v42  ;;  %v4219_v15 = vadd.f32 %v12993_v34, %v13094_v3  ;;  %9824 = vmatprep.mubr.msk.f32.mxu0 %vm279_vm0, %v13212_v31  ;;  %v9738_v36 = vpop.f32.mrf.mxu0  ;;  %v4995_v41 = vrot.slane %v13212_v31, 1  ;;  %v13231_v42 = vpop.f32.mrf.mxu1  ;;  %v15607_v7 = vld [vmem:[#allocation39_spill] sm:$0xff] }
 0x3f0   : > { %9772 = vmatmul.mubr.msk.f32.gmra.mxu1 %vm279_vm0, %v13210_v37  ;;  %v4996_v38 = vrot.slane %v13214_v35, 1  ;;  %v4998_v49 = vrot.slane %v13198_v50, 1  ;;  %4842 = vst.msk [vmem:[#allocation2 + $0xc9] sm:$0xff] %vm279_vm0, %v4810_v11  ;;  %v4556_v34 = vadd.f32 %v12804_v48, %v4520_v62  ;;  %v4486_v16 = vadd.f32 %v9738_v36, %v4217_v17  ;;  %v13239_v58 = vld [vmem:[#allocation2 + $0xa0] sm:$0x3] }
 0x3f1   : > { %v4809_v54 = vmul.f32 %v15605_v20, %v4553_v59  ;;  %v4519_v3 = vmul.f32 %v12795_v44, %v4483_v6  ;;  %9825 = vmatmul.mubr.msk.f32.gmra.mxu0 %vm279_vm0, %v13214_v35  ;;  %v13243_v51 = vadd.f32 %v15607_v7, %v15606_v63  ;;  %v4218_v14 = vadd.f32 %v13023_v8, %v13117_v43  ;;  %v4398_v12 = vpop.f32.mrf.mxu0  ;;  %v13253_v17 = vld [vmem:[#allocation2 + $0x90] sm:$0xff]  ;;  %v13255_v11 = vld [vmem:[#allocation2 + $0x98] sm:$0xff]  ;;  %v15610_v59 = vld [vmem:[#allocation9_spill] sm:$0xff] }
 0x3f2   : > { %v13248_v1 = vsel %vm1819_vm13, %v4995_v41, %v4996_v38  ;;  %v13251_v29 = vsel %vm1819_vm13, %v4996_v38, %v4998_v49  ;;  %v4812_v62 = vmul.f32 %v15610_v59, %v4556_v34  ;;  %v4522_v36 = vmul.f32 %v12795_v44, %v4486_v16  ;;  %v15611_v43 = vld [vmem:[#allocation83_spill] sm:$0xff]  ;;  %v15612_v41 = vld [vmem:[#allocation48_spill] sm:$0xff]  ;;  %9827 = vmatprep.mubr.msk.f32.mxu0 %vm279_vm0, %v13253_v17  ;;  %v13274_v34 = vpop.f32.mrf.mxu1 }
 0x3f3   : > { %15608 = vst [vmem:[#allocation87_spill] sm:$0xff] %v13248_v1  ;;  %15609 = vst [vmem:[#allocation88_spill] sm:$0xff] %v13251_v29  ;;  %v4555_v6 = vadd.f32 %v12804_v48, %v4519_v3  ;;  %v4485_v8 = vadd.f32 %v4398_v12, %v4216_v55  ;;  %9774 = vmatprep.mubr.msk.f32.mxu1 %vm279_vm0, %v13248_v1  ;;  %v13265_v38 = vadd.f32 %v15612_v41, %v15611_v43  ;;  %v9741_v49 = vpop.f32.mrf.mxu0  ;;  %v15613_v3 = vld [vmem:[#allocation12_spill] sm:$0xff]  ;;  %v13282_v59 = vld [vmem:[#allocation2 + $0xb8] sm:$0x3] }
 0x3f4   : > { %4841 = vst.msk [vmem:[#allocation2 + $0xc1] sm:$0xff] %vm279_vm0, %v4809_v54  ;;  %9775 = vmatmul.mubr.msk.f32.gmra.mxu1 %vm279_vm0, %v13251_v29  ;;  %v5000_v20 = vrot.slane %v13253_v17, 1  ;;  %v5001_v54 = vrot.slane %v13255_v11, 1  ;;  %v5003_v55 = vrot.slane %v13239_v58, 1  ;;  %4844 = vst.msk [vmem:[#allocation2 + $0xe1] sm:$0xff] %vm279_vm0, %v4812_v62  ;;  %v4558_v63 = vadd.f32 %v12804_v48, %v4522_v36  ;;  %v15614_v41 = vld [vmem:[#allocation51_spill] sm:$0xff] }
 0x3f5   : > { %v4811_v16 = vmul.f32 %v15613_v3, %v4555_v6  ;;  %v4521_v7 = vmul.f32 %v12795_v44, %v4485_v8  ;;  %v4488_v12 = vadd.f32 %v9741_v49, %v4219_v15  ;;  %9828 = vmatmul.mubr.msk.f32.gmra.mxu0 %vm279_vm0, %v13255_v11  ;;  %v4221_v43 = vadd.f32 %v13061_v21, %v13158_v23  ;;  %v4408_v62 = vpop.f32.mrf.mxu0  ;;  %v13296_v15 = vld [vmem:[#allocation2 + $0xa8] sm:$0xff]  ;;  %v13298_v8 = vld [vmem:[#allocation2 + $0xb0] sm:$0xff] }
 0x3f6   : > { %v13288_v29 = vadd.f32 %v15614_v41, %v12936_v2  ;;  %v13291_v6 = vsel %vm1819_vm13, %v5000_v20, %v5001_v54  ;;  %v13294_v36 = vsel %vm1819_vm13, %v5001_v54, %v5003_v55  ;;  %v15617_v49 = vld [vmem:[#allocation14_spill] sm:$0xff]  ;;  %v4487_v23 = vadd.f32 %v4408_v62, %v4218_v14  ;;  %9830 = vmatprep.mubr.msk.f32.mxu0 %vm279_vm0, %v13296_v15  ;;  %v13315_v14 = vpop.f32.mrf.mxu1 }
 0x3f7   : > { %15615 = vst [vmem:[#allocation82_spill] sm:$0xff] %v13291_v6  ;;  %15616 = vst [vmem:[#allocation89_spill] sm:$0xff] %v13294_v36  ;;  %v4814_v3 = vmul.f32 %v15617_v49, %v4558_v63  ;;  %v4557_v21 = vadd.f32 %v12804_v48, %v4521_v7  ;;  %v4524_v2 = vmul.f32 %v12795_v44, %v4488_v12  ;;  %9777 = vmatprep.mubr.msk.f32.mxu1 %vm279_vm0, %v13291_v6  ;;  %v9744_v54 = vpop.f32.mrf.mxu0  ;;  %v15618_v7 = vld [vmem:[#allocation8_spill] sm:$0xff]  ;;  %v13323_v62 = vld [vmem:[#allocation2 + $0xd0] sm:$0x3] }
 0x3f8   : > { %4843 = vst.msk [vmem:[#allocation2 + $0xd9] sm:$0xff] %vm279_vm0, %v4811_v16  ;;  %v4220_v20 = vadd.f32 %v13103_v24, %v13181_v47  ;;  %9778 = vmatmul.mubr.msk.f32.gmra.mxu1 %vm279_vm0, %v13294_v36  ;;  %v5005_v55 = vrot.slane %v13296_v15, 1  ;;  %v5006_v16 = vrot.slane %v13298_v8, 1  ;;  %v5008_v63 = vrot.slane %v13282_v59, 1  ;;  %v15619_v49 = vld [vmem:[#allocation84_spill] sm:$0xff]  ;;  %v15620_v36 = vld [vmem:[#allocation69_spill] sm:$0xff] }
 0x3f9   : > { %4846 = vst.msk [vmem:[#allocation2 + $0xf9] sm:$0xff] %vm279_vm0, %v4814_v3  ;;  %v4813_v12 = vmul.f32 %v15618_v7, %v4557_v21  ;;  %v4560_v24 = vadd.f32 %v12804_v48, %v4524_v2  ;;  %v4523_v47 = vmul.f32 %v12795_v44, %v4487_v23  ;;  %v4490_v41 = vadd.f32 %v9744_v54, %v4221_v43  ;;  %v4418_v37 = vpop.f32.mrf.mxu0  ;;  %v15623_v23 = vld [vmem:[#allocation115_spill] sm:$0xff] }
 0x3fa   : > { %9831 = vmatmul.mubr.msk.f32.gmra.mxu0 %vm279_vm0, %v13298_v8  ;;  %v3957_v6 = vadd.f32 %v15620_v36, %v15619_v49  ;;  %v4223_v1 = vadd.f32 %v13145_v39, %v13204_v33  ;;  %v13330_v3 = vsel %vm1819_vm13, %v5005_v55, %v5006_v16  ;;  %v13333_v21 = vsel %vm1819_vm13, %v5006_v16, %v5008_v63  ;;  %v15625_v49 = vld [vmem:[#allocation75_spill] sm:$0xff] }
 0x3fb   : > { %15621 = vst [vmem:[#allocation91_spill] sm:$0xff] %v13330_v3  ;;  %15622 = vst [vmem:[#allocation100_spill] sm:$0xff] %v13333_v21  ;;  %v13335_v2 = vld [vmem:[#allocation2 + $0xc0] sm:$0xff]  ;;  %v13337_v43 = vld [vmem:[#allocation2 + $0xc8] sm:$0xff]  ;;  %v4816_v54 = vmul.f32 %v15623_v23, %v4560_v24  ;;  %v4559_v36 = vadd.f32 %v12804_v48, %v4523_v47  ;;  %v4526_v7 = vmul.f32 %v12795_v44, %v4490_v41  ;;  %9780 = vmatprep.mubr.msk.f32.mxu1 %vm279_vm0, %v13330_v3  ;;  %v9747_v55 = vpop.f32.mrf.mxu0 }
 0x3fc   : > { %4845 = vst.msk [vmem:[#allocation2 + $0xf1] sm:$0xff] %vm279_vm0, %v4813_v12  ;;  %v4489_v39 = vadd.f32 %v4418_v37, %v4220_v20  ;;  %v4222_v33 = vadd.f32 %v13190_v56, %v13243_v51  ;;  %9781 = vmatmul.mubr.msk.f32.gmra.mxu1 %vm279_vm0, %v13333_v21  ;;  %9833 = vmatprep.mubr.msk.f32.mxu0 %vm279_vm0, %v13335_v2  ;;  %v5010_v16 = vrot.slane %v13335_v2, 1  ;;  %v5011_v63 = vrot.slane %v13337_v43, 1  ;;  %v4179_v37 = vpop.f32.mrf.mxu1  ;;  %v15624_v20 = vld [vmem:[#allocation117_spill] sm:$0xff] }
 0x3fd   : > { %v5013_v12 = vrot.slane %v13323_v62, 1  ;;  %4848 = vst.msk [vmem:[#allocation2 + $0x111] sm:$0xff] %vm279_vm0, %v4816_v54  ;;  %v4815_v24 = vmul.f32 %v15624_v20, %v4559_v36  ;;  %v4562_v56 = vadd.f32 %v12804_v48, %v4526_v7  ;;  %v4492_v47 = vadd.f32 %v9747_v55, %v4223_v1  ;;  %v13360_v41 = vld [vmem:[#allocation2 + $0xe8] sm:$0x3]  ;;  %v4428_v3 = vpop.f32.mrf.mxu0 }
 0x3fe   : > { %v4525_v51 = vmul.f32 %v12795_v44, %v4489_v39  ;;  %9834 = vmatmul.mubr.msk.f32.gmra.mxu0 %vm279_vm0, %v13337_v43  ;;  %v3956_v23 = vadd.f32 %v15625_v49, %v12949_v26  ;;  %v4225_v21 = vadd.f32 %v13231_v42, %v13265_v38  ;;  %v13367_v54 = vsel %vm1819_vm13, %v5010_v16, %v5011_v63  ;;  %v15628_v39 = vld [vmem:[#allocation120_spill] sm:$0xff]  ;;  %v15630_v49 = vld [vmem:[#allocation79_spill] sm:$0xff] }
 0x3ff   : > { %15626 = vst [vmem:[#allocation105_spill] sm:$0xff] %v13367_v54  ;;  %v13370_v36 = vsel %vm1819_vm13, %v5011_v63, %v5013_v12  ;;  %v13372_v7 = vld [vmem:[#allocation2 + $0xd8] sm:$0xff]  ;;  %v13374_v1 = vld [vmem:[#allocation2 + $0xe0] sm:$0xff]  ;;  %4847 = vst.msk [vmem:[#allocation2 + $0x109] sm:$0xff] %vm279_vm0, %v4815_v24  ;;  %v4818_v55 = vmul.f32 %v15628_v39, %v4562_v56  ;;  %v4528_v20 = vmul.f32 %v12795_v44, %v4492_v47  ;;  %9783 = vmatprep.mubr.msk.f32.mxu1 %vm279_vm0, %v13367_v54  ;;  %v9750_v16 = vpop.f32.mrf.mxu0 }
 0x400   : > { %15627 = vst [vmem:[#allocation86_spill] sm:$0xff] %v13370_v36  ;;  %v4561_v26 = vadd.f32 %v12804_v48, %v4525_v51  ;;  %v4491_v42 = vadd.f32 %v4428_v3, %v4222_v33  ;;  %v4224_v38 = vadd.f32 %v13274_v34, %v13288_v29  ;;  %9784 = vmatmul.mubr.msk.f32.gmra.mxu1 %vm279_vm0, %v13370_v36  ;;  %v5015_v63 = vrot.slane %v13372_v7, 1  ;;  %v9706_v3 = vpop.f32.mrf.mxu1  ;;  %v15629_v33 = vld [vmem:[#allocation123_spill] sm:$0xff]  ;;  %v13397_v47 = vld [vmem:[#allocation2 + $0x100] sm:$0x3] }
 0x401   : > { %9836 = vmatprep.mubr.msk.f32.mxu0 %vm279_vm0, %v13372_v7  ;;  %v5016_v12 = vrot.slane %v13374_v1, 1  ;;  %v5018_v24 = vrot.slane %v13360_v41, 1  ;;  %4850 = vst.msk [vmem:[#allocation2 + $0x129] sm:$0xff] %vm279_vm0, %v4818_v55  ;;  %v4564_v29 = vadd.f32 %v12804_v48, %v4528_v20  ;;  %v4494_v51 = vadd.f32 %v9750_v16, %v4225_v21  ;;  %v4438_v54 = vpop.f32.mrf.mxu0 }
 0x402   : > { %v4817_v56 = vmul.f32 %v15629_v33, %v4561_v26  ;;  %v4527_v34 = vmul.f32 %v12795_v44, %v4491_v42  ;;  %9837 = vmatmul.mubr.msk.f32.gmra.mxu0 %vm279_vm0, %v13374_v1  ;;  %v3959_v39 = vadd.f32 %v15630_v49, %v12953_v0  ;;  %v4227_v36 = vadd.f32 %v13315_v14, %v3957_v6  ;;  %v15634_v42 = vld [vmem:[#allocation126_spill] sm:$0xff]  ;;  %v15636_v49 = vld [vmem:[#allocation77_spill] sm:$0xff] }
 0x403   : > { %v13403_v55 = vsel %vm1819_vm13, %v5015_v63, %v5016_v12  ;;  %v13406_v26 = vsel %vm1819_vm13, %v5016_v12, %v5018_v24  ;;  %v13408_v20 = vld [vmem:[#allocation2 + $0xf0] sm:$0xff]  ;;  %v13410_v21 = vld [vmem:[#allocation2 + $0xf8] sm:$0xff]  ;;  %v4820_v16 = vmul.f32 %v15634_v42, %v4564_v29  ;;  %v4530_v0 = vmul.f32 %v12795_v44, %v4494_v51  ;;  %v9753_v63 = vpop.f32.mrf.mxu0  ;;  %v4189_v29 = vpop.f32.mrf.mxu1 }
 0x404   : > { %15631 = vst [vmem:[#allocation103_spill] sm:$0xff] %v13403_v55  ;;  %15632 = vst [vmem:[#allocation106_spill] sm:$0xff] %v13406_v26  ;;  %v4563_v33 = vadd.f32 %v12804_v48, %v4527_v34  ;;  %v4493_v6 = vadd.f32 %v4438_v54, %v4224_v38  ;;  %9786 = vmatprep.mubr.msk.f32.mxu1 %vm279_vm0, %v13403_v55  ;;  %v4226_v14 = vadd.f32 %v4179_v37, %v3956_v23  ;;  %v15635_v54 = vld [vmem:[#allocation42_spill] sm:$0xff]  ;;  %v13431_v51 = vld [vmem:[#allocation2 + $0x118] sm:$0x3] }
 0x405   : > { %15633 = vst [vmem:[#allocation90_spill] sm:$0xff] %v13408_v20  ;;  %4849 = vst.msk [vmem:[#allocation2 + $0x121] sm:$0xff] %vm279_vm0, %v4817_v56  ;;  %9787 = vmatmul.mubr.msk.f32.gmra.mxu1 %vm279_vm0, %v13406_v26  ;;  %9839 = vmatprep.mubr.msk.f32.mxu0 %vm279_vm0, %v13408_v20  ;;  %v5020_v12 = vrot.slane %v13408_v20, 1  ;;  %v5021_v24 = vrot.slane %v13410_v21, 1  ;;  %v5023_v56 = vrot.slane %v13397_v47, 1  ;;  %v4566_v37 = vadd.f32 %v12804_v48, %v4530_v0  ;;  %v4448_v55 = vpop.f32.mrf.mxu0 }
 0x406   : > { %4852 = vst.msk [vmem:[#allocation2 + $0x141] sm:$0xff] %vm279_vm0, %v4820_v16  ;;  %v4819_v38 = vmul.f32 %v15635_v54, %v4563_v33  ;;  %v4529_v23 = vmul.f32 %v12795_v44, %v4493_v6  ;;  %v4496_v34 = vadd.f32 %v9753_v63, %v4227_v36  ;;  %9840 = vmatmul.mubr.msk.f32.gmra.mxu0 %vm279_vm0, %v13410_v21  ;;  %v13441_v33 = vld [vmem:[#allocation2 + $0x108] sm:$0xff]  ;;  %v13443_v0 = vld [vmem:[#allocation2 + $0x110] sm:$0xff]  ;;  %v5028_v54 = vrot.slane %v13431_v51, 1 }
 0x407   : > { %v3958_v42 = vadd.f32 %v15636_v49, %v12963_v5  ;;  %v4229_v26 = vadd.f32 %v9706_v3, %v3959_v39  ;;  %v13436_v13 = vsel %vm1819_vm13, %v5020_v12, %v5021_v24  ;;  %v13439_v16 = vsel %vm1819_vm13, %v5021_v24, %v5023_v56  ;;  %15637 = vst [vmem:[#allocation107_spill] sm:$0xff] %v13441_v33  ;;  %v15638_v36 = vld [vmem:[#allocation54_spill] sm:$0xff]  ;;  %v9756_v12 = vpop.f32.mrf.mxu0 }
 0x408   : > { %4851 = vst.msk [vmem:[#allocation2 + $0x139] sm:$0xff] %vm279_vm0, %v4819_v38  ;;  %v4822_v6 = vmul.f32 %v15638_v36, %v4566_v37  ;;  %v4565_v63 = vadd.f32 %v12804_v48, %v4529_v23  ;;  %v4532_v5 = vmul.f32 %v12795_v44, %v4496_v34  ;;  %v4495_v3 = vadd.f32 %v4448_v55, %v4226_v14  ;;  %v15639_v55 = vld [vmem:[#allocation57_spill] sm:$0xff]  ;;  %v13464_v23 = vld [vmem:[#allocation2 + $0x130] sm:$0x3] }
 0x409   : > { %9789 = vmatprep.mubr.msk.f32.mxu1 %vm279_vm0, %v13436_v13  ;;  %v4228_v39 = vadd.f32 %v4189_v29, %v3958_v42  ;;  %9842 = vmatprep.mubr.msk.f32.mxu0 %vm279_vm0, %v13441_v33  ;;  %v5025_v24 = vrot.slane %v13441_v33, 1  ;;  %v5026_v56 = vrot.slane %v13443_v0, 1  ;;  %v4498_v37 = vadd.f32 %v9756_v12, %v4229_v26  ;;  %v4458_v34 = vpop.f32.mrf.mxu0 }
 0x40a   : > { %9790 = vmatmul.mubr.msk.f32.gmra.mxu1 %vm279_vm0, %v13439_v16  ;;  %4854 = vst.msk [vmem:[#allocation2 + $0x159] sm:$0xff] %vm279_vm0, %v4822_v6  ;;  %v4821_v14 = vmul.f32 %v15639_v55, %v4565_v63  ;;  %v4568_v38 = vadd.f32 %v12804_v48, %v4532_v5  ;;  %v4531_v29 = vmul.f32 %v12795_v44, %v4495_v3  ;;  %v15642_v63 = vld [vmem:[#allocation66_spill] sm:$0xff] }
 0x40b   : > { %9843 = vmatmul.mubr.msk.f32.gmra.mxu0 %vm279_vm0, %v13443_v0  ;;  %v13467_v49 = vsel %vm1819_vm13, %v5025_v24, %v5026_v56  ;;  %v13470_v42 = vsel %vm1819_vm13, %v5026_v56, %v5028_v54  ;;  %v4534_v3 = vmul.f32 %v12795_v44, %v4498_v37  ;;  %v4497_v12 = vadd.f32 %v4458_v34, %v4228_v39  ;;  %v15643_v39 = vld [vmem:[#allocation70_spill] sm:$0xff] }
 0x40c   : > { %15640 = vst [vmem:[#allocation109_spill] sm:$0xff] %v13470_v42  ;;  %v13472_v36 = vld [vmem:[#allocation2 + $0x120] sm:$0xff]  ;;  %v13474_v6 = vld [vmem:[#allocation2 + $0x128] sm:$0xff]  ;;  %4853 = vst.msk [vmem:[#allocation2 + $0x151] sm:$0xff] %vm279_vm0, %v4821_v14  ;;  %v4824_v26 = vmul.f32 %v15642_v63, %v4568_v38  ;;  %v4567_v5 = vadd.f32 %v12804_v48, %v4531_v29  ;;  %9792 = vmatprep.mubr.msk.f32.mxu1 %vm279_vm0, %v13467_v49  ;;  %v5033_v54 = vrot.slane %v13464_v23, 1 }
 0x40d   : > { %15641 = vst [vmem:[#allocation110_spill] sm:$0xff] %v13472_v36  ;;  %9845 = vmatprep.mubr.msk.f32.mxu0 %vm279_vm0, %v13472_v36  ;;  %v5030_v24 = vrot.slane %v13472_v36, 1  ;;  %v5031_v56 = vrot.slane %v13474_v6, 1  ;;  %v13489_v55 = vld [vmem:[#allocation2 + $0x148] sm:$0x3]  ;;  %v4570_v38 = vadd.f32 %v12804_v48, %v4534_v3  ;;  %v4533_v29 = vmul.f32 %v12795_v44, %v4497_v12 }
 0x40e   : > { %9793 = vmatmul.mubr.msk.f32.gmra.mxu1 %vm279_vm0, %v13470_v42  ;;  %4856 = vst.msk [vmem:[#allocation2 + $0x171] sm:$0xff] %vm279_vm0, %v4824_v26  ;;  %v4823_v14 = vmul.f32 %v15643_v39, %v4567_v5  ;;  %v5038_v26 = vrot.slane %v13489_v55, 1  ;;  %v15645_v5 = vld [vmem:[#allocation73_spill] sm:$0xff] }
 0x40f   : > { %9846 = vmatmul.mubr.msk.f32.gmra.mxu0 %vm279_vm0, %v13474_v6  ;;  %v13498_v37 = vsel %vm1819_vm13, %v5030_v24, %v5031_v56  ;;  %v13501_v34 = vsel %vm1819_vm13, %v5031_v56, %v5033_v54  ;;  %v13503_v63 = vld [vmem:[#allocation2 + $0x138] sm:$0xff]  ;;  %v13505_v42 = vld [vmem:[#allocation2 + $0x140] sm:$0xff]  ;;  %v4826_v3 = vmul.f32 %v15645_v5, %v4570_v38  ;;  %v4569_v44 = vadd.f32 %v12804_v48, %v4533_v29 }
 0x410   : > { %15644 = vst [vmem:[#allocation104_spill] sm:$0xff] %v13503_v63  ;;  %4855 = vst.msk [vmem:[#allocation2 + $0x169] sm:$0xff] %vm279_vm0, %v4823_v14  ;;  %9795 = vmatprep.mubr.msk.f32.mxu1 %vm279_vm0, %v13498_v37  ;;  %9848 = vmatprep.mubr.msk.f32.mxu0 %vm279_vm0, %v13503_v63  ;;  %v5035_v12 = vrot.slane %v13503_v63, 1  ;;  %v5036_v24 = vrot.slane %v13505_v42, 1  ;;  %v15646_v54 = vld [vmem:[#allocation76_spill] sm:$0xff] }
 0x411   : > { %v13519_v56 = vld [vmem:[#allocation2 + $0x160] sm:$0x3]  ;;  %4858 = vst.msk [vmem:[#allocation2 + $0x189] sm:$0xff] %vm279_vm0, %v4826_v3  ;;  %v4825_v39 = vmul.f32 %v15646_v54, %v4569_v44 }
 0x412   : > { %9796 = vmatmul.mubr.msk.f32.gmra.mxu1 %vm279_vm0, %v13501_v34  ;;  %v13526_v48 = vsel %vm1819_vm13, %v5035_v12, %v5036_v24  ;;  %v13529_v14 = vsel %vm1819_vm13, %v5036_v24, %v5038_v26  ;;  %v5043_v44 = vrot.slane %v13519_v56, 1 }
 0x413   : > { %9849 = vmatmul.mubr.msk.f32.gmra.mxu0 %vm279_vm0, %v13505_v42  ;;  %15647 = vst [vmem:[#allocation111_spill] sm:$0xff] %v13526_v48  ;;  %15648 = vst [vmem:[#allocation113_spill] sm:$0xff] %v13529_v14  ;;  %9798 = vmatprep.mubr.msk.f32.mxu1 %vm279_vm0, %v13526_v48  ;;  %v13533_v38 = vld [vmem:[#allocation2 + $0x150] sm:$0xff]  ;;  %v13535_v29 = vld [vmem:[#allocation2 + $0x158] sm:$0xff] }
 0x414   : > { %15649 = vst [vmem:[#allocation114_spill] sm:$0xff] %v13533_v38  ;;  %4857 = vst.msk [vmem:[#allocation2 + $0x181] sm:$0xff] %vm279_vm0, %v4825_v39  ;;  %9851 = vmatprep.mubr.msk.f32.mxu0 %vm279_vm0, %v13533_v38  ;;  %v5040_v5 = vrot.slane %v13533_v38, 1  ;;  %v5041_v3 = vrot.slane %v13535_v29, 1 }
 0x415   : > { %v13545_v26 = vld [vmem:[#allocation2 + $0x178] sm:$0x3] }
 0x416   : > { %9799 = vmatmul.mubr.msk.f32.gmra.mxu1 %vm279_vm0, %v13529_v14  ;;  %v13550_v12 = vsel %vm1819_vm13, %v5040_v5, %v5041_v3  ;;  %v13553_v24 = vsel %vm1819_vm13, %v5041_v3, %v5043_v44  ;;  %v5048_v5 = vrot.slane %v13545_v26, 1 }
 0x417   : > { %9852 = vmatmul.mubr.msk.f32.gmra.mxu0 %vm279_vm0, %v13535_v29  ;;  %15650 = vst [vmem:[#allocation108_spill] sm:$0xff] %v13550_v12  ;;  %15651 = vst [vmem:[#allocation33_spill] sm:$0xff] %v13553_v24  ;;  %9801 = vmatprep.mubr.msk.f32.mxu1 %vm279_vm0, %v13550_v12  ;;  %v13557_v54 = vld [vmem:[#allocation2 + $0x168] sm:$0xff]  ;;  %v13559_v39 = vld [vmem:[#allocation2 + $0x170] sm:$0xff]  ;;  %v5639_v12 = vrot.slane %v13043_v22, 2 }
 0x418   : > { %15652 = vst [vmem:[#allocation5_spill] sm:$0xff] %v13557_v54  ;;  %9854 = vmatprep.mubr.msk.f32.mxu0 %vm279_vm0, %v13557_v54  ;;  %v5045_v14 = vrot.slane %v13557_v54, 1  ;;  %v5046_v48 = vrot.slane %v13559_v39, 1 }
 0x41a   : > { %9802 = vmatmul.mubr.msk.f32.gmra.mxu1 %vm279_vm0, %v13553_v24  ;;  %v13571_v3 = vsel %vm1819_vm13, %v5045_v14, %v5046_v48  ;;  %v13574_v44 = vsel %vm1819_vm13, %v5046_v48, %v5048_v5  ;;  %v5640_v24 = vrot.slane %v13045_v9, 2  ;;  %v13587_v14 = vld [vmem:[%s14909_s5 + $0x1c] sm:$0xf] }
 0x41b   : > { %9855 = vmatmul.mubr.msk.f32.gmra.mxu0 %vm279_vm0, %v13559_v39  ;;  %15653 = vst [vmem:[#allocation41_spill] sm:$0xff] %v13571_v3  ;;  %15654 = vst [vmem:[#allocation112_spill] sm:$0xff] %v13574_v44  ;;  %9804 = vmatprep.mubr.msk.f32.mxu1 %vm279_vm0, %v13571_v3  ;;  %v15655_v48 = vld [vmem:[#allocation11_spill] sm:$0xff] }
 0x41c   : > { %9909 = vmatprep.mubr.msk.f32.mxu0 %vm279_vm0, %v13043_v22  ;;  %v15656_v22 = vld [vmem:[#allocation97_spill] sm:$0xff]  ;;  %v13602_v5 = vsel %vm2484_vm12, %v5639_v12, %v5640_v24  ;;  %v10360_v12 = vld [vmem:[%s14909_s5 + $0x10] sm:$0xf] }
 0x41e   : > { %9805 = vmatmul.mubr.msk.f32.gmra.mxu1 %vm279_vm0, %v13574_v44  ;;  %v5645_v44 = vrot.slane %v13090_v53, 2 }
 0x41f   : > { %9910 = vmatmul.mubr.msk.f32.vlgmr.msra.gmra.mxu0 %vm279_vm0, %v13045_v9  ;;  %9859 = vmatprep.mubr.msk.f32.mxu1 %vm279_vm0, %v15655_v48  ;;  %v5644_v9 = vrot.slane %v13088_v32, 2  ;;  %v13609_v48 = vld [vmem:[%s14909_s5 + $0x18] sm:$0xf] }
 0x420   : > { %9912 = vmatprep.mubr.msk.f32.mxu0 %vm279_vm0, %v13088_v32  ;;  %10008 = vmatpush3.msk.msra.mxu0 %vm514_vm3, %v13007_v28  ;;  %v5642_v28 = vrot.slane %v13029_v10, 2 }
 0x421   : > { %10107 = vmatprep.subr.msk.mxu0 %vm514_vm3, %v13587_v14  ;;  %v13630_v10 = vsel %vm2484_vm12, %v5644_v9, %v5645_v44  ;;  %v5654_v9 = vrot.slane %v13168_v57, 2 }
 0x422   : > { %9860 = vmatmul.mubr.msk.f32.vlgmr.msra.gmra.mxu1 %vm279_vm0, %v15656_v22  ;;  %v13623_v32 = vsel %vm2484_vm12, %v5640_v24, %v5642_v28  ;;  %v5650_v22 = vrot.slane %v13127_v25, 2  ;;  %v5647_v24 = vrot.slane %v13067_v45, 2  ;;  %v5652_v45 = vrot.slane %v13111_v46, 2 }
 0x423   : > { %9862 = vmatprep.mubr.msk.f32.mxu1 %vm279_vm0, %v13602_v5  ;;  %9913 = vmatmul.mubr.msk.f32.gmra.mxu0 %vm279_vm0, %v13090_v53  ;;  %v5649_v53 = vrot.slane %v13125_v60, 2  ;;  %v5657_v46 = vrot.slane %v13154_v30, 2  ;;  %v5662_v30 = vrot.slane %v13198_v50, 2  ;;  %v5667_v50 = vrot.slane %v13239_v58, 2 }
 0x424   : > { %9958 = vmatpush3.msk.msra.mxu1 %vm514_vm3, %v10360_v12  ;;  %9915 = vmatprep.mubr.msk.f32.mxu0 %vm279_vm0, %v13125_v60  ;;  %v13642_v28 = vsel %vm2484_vm12, %v5645_v44, %v5647_v24  ;;  %v5655_v12 = vrot.slane %v13170_v52, 2  ;;  %v9811_v44 = vpop.f32.mrf.mxu0  ;;  %v5659_v24 = vrot.slane %v13212_v31, 2  ;;  %v5672_v58 = vrot.slane %v13282_v59, 2 }
 0x425   : > { %10057 = vmatprep.subr.msk.mxu1 %vm514_vm3, %v13609_v48  ;;  %v13647_v60 = vsel %vm2484_vm12, %v5649_v53, %v5650_v22  ;;  %v5677_v59 = vrot.slane %v13323_v62, 2  ;;  %v5682_v62 = vrot.slane %v13360_v41, 2  ;;  %v5687_v41 = vrot.slane %v13397_v47, 2 }
 0x426   : > { %9863 = vmatmul.mubr.msk.f32.gmra.mxu1 %vm279_vm0, %v13623_v32  ;;  %v9761_v53 = vpop.f32.mrf.mxu1  ;;  %v5692_v47 = vrot.slane %v13431_v51, 2  ;;  %v5697_v51 = vrot.slane %v13464_v23, 2  ;;  %v5702_v23 = vrot.slane %v13489_v55, 2  ;;  %v13844_v55 = vld [vmem:[#allocation2 + $0x180] sm:$0xff] }
 0x427   : > { %9865 = vmatprep.mubr.msk.f32.mxu1 %vm279_vm0, %v13630_v10  ;;  %9916 = vmatmul.mubr.msk.f32.gmra.mxu0 %vm279_vm0, %v13127_v25  ;;  %v13659_v25 = vsel %vm2484_vm12, %v5650_v22, %v5652_v45  ;;  %v13668_v3 = vadd.f32 %v9811_v44, %v9761_v53  ;;  %v13678_v22 = vsel %vm2484_vm12, %v5655_v12, %v5657_v46  ;;  %v5665_v45 = vrot.slane %v13255_v11, 2 }
 0x428   : > { %9918 = vmatprep.mubr.msk.f32.mxu0 %vm279_vm0, %v13168_v57  ;;  %v13664_v57 = vsel %vm2484_vm12, %v5654_v9, %v5655_v12  ;;  %v5664_v9 = vrot.slane %v13253_v17, 2  ;;  %v5669_v44 = vrot.slane %v13296_v15, 2  ;;  %v5670_v53 = vrot.slane %v13298_v8, 2 }
 0x429   : > { %15657 = vst [vmem:[#allocation35_spill] sm:$0xff] %v13668_v3  ;;  %v5674_v46 = vrot.slane %v13335_v2, 2  ;;  %v5685_v3 = vrot.slane %v13410_v21, 2 }
 0x42a   : > { %9866 = vmatmul.mubr.msk.f32.gmra.mxu1 %vm279_vm0, %v13642_v28  ;;  %v13700_v12 = vsel %vm2484_vm12, %v5664_v9, %v5665_v45  ;;  %v5675_v9 = vrot.slane %v13337_v43, 2 }
 0x42b   : > { %9868 = vmatprep.mubr.msk.f32.mxu1 %vm279_vm0, %v13647_v60  ;;  %9919 = vmatmul.mubr.msk.f32.gmra.mxu0 %vm279_vm0, %v13170_v52  ;;  %v5660_v52 = vrot.slane %v13214_v35, 2 }
 0x42c   : > { %9921 = vmatprep.mubr.msk.f32.mxu0 %vm279_vm0, %v13212_v31 }
 0x42d   : > { %v13683_v31 = vsel %vm2484_vm12, %v5659_v24, %v5660_v52  ;;  %v13712_v24 = vsel %vm2484_vm12, %v5665_v45, %v5667_v50  ;;  %v13729_v45 = vsel %vm2484_vm12, %v5670_v53, %v5672_v58  ;;  %v5680_v50 = vrot.slane %v13374_v1, 2 }
 0x42e   : > { %9869 = vmatmul.mubr.msk.f32.gmra.mxu1 %vm279_vm0, %v13659_v25  ;;  %15658 = vst [vmem:[#allocation7_spill] sm:$0xff] %v13712_v24  ;;  %15660 = vst [vmem:[#allocation44_spill] sm:$0xff] %v13729_v45  ;;  %v5684_v58 = vrot.slane %v13408_v20, 2 }
 0x42f   : > { %9871 = vmatprep.mubr.msk.f32.mxu1 %vm279_vm0, %v13664_v57  ;;  %9922 = vmatmul.mubr.msk.f32.gmra.mxu0 %vm279_vm0, %v13214_v35  ;;  %v13695_v35 = vsel %vm2484_vm12, %v5660_v52, %v5662_v30  ;;  %v13717_v52 = vsel %vm2484_vm12, %v5669_v44, %v5670_v53  ;;  %v13734_v30 = vsel %vm2484_vm12, %v5674_v46, %v5675_v9  ;;  %v5679_v44 = vrot.slane %v13372_v7, 2 }
 0x430   : > { %9924 = vmatprep.mubr.msk.f32.mxu0 %vm279_vm0, %v13253_v17  ;;  %15659 = vst [vmem:[#allocation40_spill] sm:$0xff] %v13717_v52  ;;  %15661 = vst [vmem:[#allocation46_spill] sm:$0xff] %v13734_v30  ;;  %v13746_v53 = vsel %vm2484_vm12, %v5675_v9, %v5677_v59  ;;  %v13763_v9 = vsel %vm2484_vm12, %v5680_v50, %v5682_v62  ;;  %v5689_v59 = vrot.slane %v13441_v33, 2  ;;  %v5694_v62 = vrot.slane %v13472_v36, 2 }
 0x431   : > { %15662 = vst [vmem:[#allocation32_spill] sm:$0xff] %v13746_v53  ;;  %v13751_v46 = vsel %vm2484_vm12, %v5679_v44, %v5680_v50  ;;  %15664 = vst [vmem:[#allocation63_spill] sm:$0xff] %v13763_v9  ;;  %v13768_v44 = vsel %vm2484_vm12, %v5684_v58, %v5685_v3  ;;  %v13780_v50 = vsel %vm2484_vm12, %v5685_v3, %v5687_v41  ;;  %v5699_v41 = vrot.slane %v13503_v63, 2 }
 0x432   : > { %9872 = vmatmul.mubr.msk.f32.gmra.mxu1 %vm279_vm0, %v13678_v22  ;;  %15663 = vst [vmem:[#allocation60_spill] sm:$0xff] %v13751_v46  ;;  %15665 = vst [vmem:[#allocation43_spill] sm:$0xff] %v13768_v44 }
 0x433   : > { %9874 = vmatprep.mubr.msk.f32.mxu1 %vm279_vm0, %v13683_v31  ;;  %9925 = vmatmul.mubr.msk.f32.gmra.mxu0 %vm279_vm0, %v13255_v11  ;;  %15666 = vst [vmem:[#allocation47_spill] sm:$0xff] %v13780_v50 }
 0x434   : > { %9927 = vmatprep.mubr.msk.f32.mxu0 %vm279_vm0, %v13296_v15 }
 0x436   : > { %9875 = vmatmul.mubr.msk.f32.gmra.mxu1 %vm279_vm0, %v13695_v35 }
 0x437   : > { %9877 = vmatprep.mubr.msk.f32.mxu1 %vm279_vm0, %v13700_v12  ;;  %9928 = vmatmul.mubr.msk.f32.gmra.mxu0 %vm279_vm0, %v13298_v8 }
 0x438   : > { %9930 = vmatprep.mubr.msk.f32.mxu0 %vm279_vm0, %v13335_v2 }
 0x43a   : > { %9878 = vmatmul.mubr.msk.f32.gmra.mxu1 %vm279_vm0, %v13712_v24 }
 0x43b   : > { %9880 = vmatprep.mubr.msk.f32.mxu1 %vm279_vm0, %v13717_v52  ;;  %9931 = vmatmul.mubr.msk.f32.gmra.mxu0 %vm279_vm0, %v13337_v43 }
 0x43c   : > { %9933 = vmatprep.mubr.msk.f32.mxu0 %vm279_vm0, %v13372_v7 }
 0x43e   : > { %9881 = vmatmul.mubr.msk.f32.gmra.mxu1 %vm279_vm0, %v13729_v45 }
 0x43f   : > { %9883 = vmatprep.mubr.msk.f32.mxu1 %vm279_vm0, %v13734_v30  ;;  %9934 = vmatmul.mubr.msk.f32.gmra.mxu0 %vm279_vm0, %v13374_v1 }
 0x440   : > { %9936 = vmatprep.mubr.msk.f32.mxu0 %vm279_vm0, %v13408_v20  ;;  %v5690_v20 = vrot.slane %v13443_v0, 2 }
 0x442   : > { %9884 = vmatmul.mubr.msk.f32.gmra.mxu1 %vm279_vm0, %v13746_v53  ;;  %v13785_v58 = vsel %vm2484_vm12, %v5689_v59, %v5690_v20  ;;  %v13797_v3 = vsel %vm2484_vm12, %v5690_v20, %v5692_v47  ;;  %v5704_v47 = vrot.slane %v13533_v38, 2 }
 0x443   : > { %9886 = vmatprep.mubr.msk.f32.mxu1 %vm279_vm0, %v13751_v46  ;;  %9937 = vmatmul.mubr.msk.f32.gmra.mxu0 %vm279_vm0, %v13410_v21  ;;  %15667 = vst [vmem:[#allocation49_spill] sm:$0xff] %v13785_v58  ;;  %15668 = vst [vmem:[#allocation34_spill] sm:$0xff] %v13797_v3 }
 0x444   : > { %9939 = vmatprep.mubr.msk.f32.mxu0 %vm279_vm0, %v13441_v33  ;;  %v5695_v33 = vrot.slane %v13474_v6, 2 }
 0x446   : > { %9887 = vmatmul.mubr.msk.f32.gmra.mxu1 %vm279_vm0, %v13763_v9  ;;  %v13802_v59 = vsel %vm2484_vm12, %v5694_v62, %v5695_v33  ;;  %v13814_v20 = vsel %vm2484_vm12, %v5695_v33, %v5697_v51  ;;  %v5709_v51 = vrot.slane %v13557_v54, 2 }
 0x447   : > { %9889 = vmatprep.mubr.msk.f32.mxu1 %vm279_vm0, %v13768_v44  ;;  %9940 = vmatmul.mubr.msk.f32.gmra.mxu0 %vm279_vm0, %v13443_v0  ;;  %15669 = vst [vmem:[#allocation29_spill] sm:$0xff] %v13802_v59  ;;  %15670 = vst [vmem:[#allocation50_spill] sm:$0xff] %v13814_v20 }
 0x448   : > { %9942 = vmatprep.mubr.msk.f32.mxu0 %vm279_vm0, %v13472_v36  ;;  %v5700_v36 = vrot.slane %v13505_v42, 2 }
 0x44a   : > { %9890 = vmatmul.mubr.msk.f32.gmra.mxu1 %vm279_vm0, %v13780_v50  ;;  %v13819_v62 = vsel %vm2484_vm12, %v5699_v41, %v5700_v36  ;;  %v13831_v33 = vsel %vm2484_vm12, %v5700_v36, %v5702_v23  ;;  %v5707_v36 = vrot.slane %v13519_v56, 2  ;;  %v5712_v56 = vrot.slane %v13545_v26, 2  ;;  %v15679_v26 = vld [vmem:[#allocation87_spill] sm:$0xff] }
 0x44b   : > { %9892 = vmatprep.mubr.msk.f32.mxu1 %vm279_vm0, %v13785_v58  ;;  %9943 = vmatmul.mubr.msk.f32.gmra.mxu0 %vm279_vm0, %v13474_v6  ;;  %15671 = vst [vmem:[#allocation52_spill] sm:$0xff] %v13819_v62  ;;  %15672 = vst [vmem:[#allocation61_spill] sm:$0xff] %v13831_v33 }
 0x44c   : > { %9945 = vmatprep.mubr.msk.f32.mxu0 %vm279_vm0, %v13503_v63  ;;  %v5705_v63 = vrot.slane %v13535_v29, 2 }
 0x44e   : > { %9893 = vmatmul.mubr.msk.f32.gmra.mxu1 %vm279_vm0, %v13797_v3  ;;  %v13836_v41 = vsel %vm2484_vm12, %v5704_v47, %v5705_v63  ;;  %v13850_v47 = vsel %vm2484_vm12, %v5705_v63, %v5707_v36  ;;  %v15685_v36 = vld [vmem:[#allocation105_spill] sm:$0xff] }
 0x44f   : > { %9895 = vmatprep.mubr.msk.f32.mxu1 %vm279_vm0, %v13802_v59  ;;  %9946 = vmatmul.mubr.msk.f32.gmra.mxu0 %vm279_vm0, %v13505_v42  ;;  %15673 = vst [vmem:[#allocation64_spill] sm:$0xff] %v13836_v41  ;;  %15674 = vst [vmem:[#allocation28_spill] sm:$0xff] %v13850_v47 }
 0x450   : > { %9948 = vmatprep.mubr.msk.f32.mxu0 %vm279_vm0, %v13533_v38  ;;  %v5710_v38 = vrot.slane %v13559_v39, 2 }
 0x452   : > { %9896 = vmatmul.mubr.msk.f32.gmra.mxu1 %vm279_vm0, %v13814_v20  ;;  %v13855_v23 = vsel %vm2484_vm12, %v5709_v51, %v5710_v38  ;;  %v13867_v63 = vsel %vm2484_vm12, %v5710_v38, %v5712_v56  ;;  %v13884_v38 = vld [vmem:[%s14909_s5 + $0x20] sm:$0xf]  ;;  %v15686_v56 = vld [vmem:[#allocation86_spill] sm:$0xff] }
 0x453   : > { %9898 = vmatprep.mubr.msk.f32.mxu1 %vm279_vm0, %v13819_v62  ;;  %9949 = vmatmul.mubr.msk.f32.gmra.mxu0 %vm279_vm0, %v13535_v29  ;;  %15675 = vst [vmem:[#allocation31_spill] sm:$0xff] %v13855_v23  ;;  %15676 = vst [vmem:[#allocation53_spill] sm:$0xff] %v13867_v63  ;;  %v15684_v51 = vld [vmem:[#allocation100_spill] sm:$0xff] }
 0x454   : > { %9951 = vmatprep.mubr.msk.f32.mxu0 %vm279_vm0, %v13557_v54  ;;  %v13857_v54 = vld [vmem:[#allocation2 + $0x188] sm:$0xff] }
 0x456   : > { %9899 = vmatmul.mubr.msk.f32.gmra.mxu1 %vm279_vm0, %v13831_v33 }
 0x457   : > { %9901 = vmatprep.mubr.msk.f32.mxu1 %vm279_vm0, %v13836_v41  ;;  %9952 = vmatmul.mubr.msk.f32.gmra.mxu0 %vm279_vm0, %v13559_v39 }
 0x458   : > { %9954 = vmatprep.mubr.msk.f32.mxu0 %vm279_vm0, %v13844_v55 }
 0x45a   : > { %9902 = vmatmul.mubr.msk.f32.gmra.mxu1 %vm279_vm0, %v13850_v47 }
 0x45b   : > { %9904 = vmatprep.mubr.msk.f32.mxu1 %vm279_vm0, %v13855_v23  ;;  %9955 = vmatmul.mubr.msk.f32.gmra.mxu0 %vm279_vm0, %v13857_v54 }
 0x45c   : > { %10009 = vmatprep.mubr.msk.f32.mxu0 %vm279_vm0, %v13602_v5  ;;  %v15681_v5 = vld [vmem:[#allocation82_spill] sm:$0xff] }
 0x45e   : > { %9905 = vmatmul.mubr.msk.f32.gmra.mxu1 %vm279_vm0, %v13867_v63 }
 0x45f   : > { %9959 = vmatprep.mubr.msk.f32.mxu1 %vm279_vm0, %v13077_v40  ;;  %10010 = vmatmul.mubr.msk.f32.vlgmr.msra.gmra.mxu0 %vm279_vm0, %v13623_v32  ;;  %v15677_v40 = vld [vmem:[#allocation78_spill] sm:$0xff]  ;;  %v15683_v32 = vld [vmem:[#allocation91_spill] sm:$0xff] }
 0x460   : > { %10012 = vmatprep.mubr.msk.f32.mxu0 %vm279_vm0, %v13630_v10  ;;  %10108 = vmatpush3.msk.msra.mxu0 %vm514_vm3, %v13587_v14  ;;  %v15680_v14 = vld [vmem:[#allocation88_spill] sm:$0xff] }
 0x462   : > { %9960 = vmatmul.mubr.msk.f32.vlgmr.msra.gmra.mxu1 %vm279_vm0, %v13080_v27  ;;  %v15678_v27 = vld [vmem:[#allocation85_spill] sm:$0xff] }
 0x463   : > { %9962 = vmatprep.mubr.msk.f32.mxu1 %vm279_vm0, %v13120_v19  ;;  %10013 = vmatmul.mubr.msk.f32.gmra.mxu0 %vm279_vm0, %v13642_v28 }
 0x464   : > { %10058 = vmatpush3.msk.msra.mxu1 %vm514_vm3, %v13609_v48  ;;  %10015 = vmatprep.mubr.msk.f32.mxu0 %vm279_vm0, %v13647_v60  ;;  %v15682_v48 = vld [vmem:[#allocation89_spill] sm:$0xff] }
 0x465   : > { %10157 = vmatprep.subr.msk.mxu1 %vm514_vm3, %v13884_v38 }
 0x466   : > { %9963 = vmatmul.mubr.msk.f32.gmra.mxu1 %vm279_vm0, %v13123_v18 }
 0x467   : > { %9965 = vmatprep.mubr.msk.f32.mxu1 %vm279_vm0, %v13163_v4  ;;  %10016 = vmatmul.mubr.msk.f32.gmra.mxu0 %vm279_vm0, %v13659_v25 }
 0x468   : > { %10018 = vmatprep.mubr.msk.f32.mxu0 %vm279_vm0, %v13664_v57 }
 0x46a   : > { %9966 = vmatmul.mubr.msk.f32.gmra.mxu1 %vm279_vm0, %v13166_v61 }
 0x46b   : > { %9968 = vmatprep.mubr.msk.f32.mxu1 %vm279_vm0, %v15677_v40  ;;  %10019 = vmatmul.mubr.msk.f32.gmra.mxu0 %vm279_vm0, %v13678_v22 }
 0x46c   : > { %10021 = vmatprep.mubr.msk.f32.mxu0 %vm279_vm0, %v13683_v31 }
 0x46e   : > { %9969 = vmatmul.mubr.msk.f32.gmra.mxu1 %vm279_vm0, %v15678_v27 }
 0x46f   : > { %9971 = vmatprep.mubr.msk.f32.mxu1 %vm279_vm0, %v15679_v26  ;;  %10022 = vmatmul.mubr.msk.f32.gmra.mxu0 %vm279_vm0, %v13695_v35 }
 0x470   : > { %10024 = vmatprep.mubr.msk.f32.mxu0 %vm279_vm0, %v13700_v12 }
 0x472   : > { %9972 = vmatmul.mubr.msk.f32.gmra.mxu1 %vm279_vm0, %v15680_v14 }
 0x473   : > { %9974 = vmatprep.mubr.msk.f32.mxu1 %vm279_vm0, %v15681_v5  ;;  %10025 = vmatmul.mubr.msk.f32.gmra.mxu0 %vm279_vm0, %v13712_v24 }
 0x474   : > { %10027 = vmatprep.mubr.msk.f32.mxu0 %vm279_vm0, %v13717_v52  ;;  %v15687_v52 = vld [vmem:[#allocation103_spill] sm:$0xff] }
 0x476   : > { %9975 = vmatmul.mubr.msk.f32.gmra.mxu1 %vm279_vm0, %v15682_v48 }
 0x477   : > { %9977 = vmatprep.mubr.msk.f32.mxu1 %vm279_vm0, %v15683_v32  ;;  %10028 = vmatmul.mubr.msk.f32.gmra.mxu0 %vm279_vm0, %v13729_v45 }
 0x478   : > { %10030 = vmatprep.mubr.msk.f32.mxu0 %vm279_vm0, %v13734_v30  ;;  %v15688_v30 = vld [vmem:[#allocation106_spill] sm:$0xff] }
 0x47a   : > { %9978 = vmatmul.mubr.msk.f32.gmra.mxu1 %vm279_vm0, %v15684_v51 }
 0x47b   : > { %9980 = vmatprep.mubr.msk.f32.mxu1 %vm279_vm0, %v15685_v36  ;;  %10031 = vmatmul.mubr.msk.f32.gmra.mxu0 %vm279_vm0, %v13746_v53  ;;  %v15696_v53 = vld [vmem:[#allocation112_spill] sm:$0xff] }
 0x47c   : > { %10033 = vmatprep.mubr.msk.f32.mxu0 %vm279_vm0, %v13751_v46  ;;  %v15694_v46 = vld [vmem:[#allocation41_spill] sm:$0xff] }
 0x47e   : > { %9981 = vmatmul.mubr.msk.f32.gmra.mxu1 %vm279_vm0, %v15686_v56 }
 0x47f   : > { %9983 = vmatprep.mubr.msk.f32.mxu1 %vm279_vm0, %v15687_v52  ;;  %10034 = vmatmul.mubr.msk.f32.gmra.mxu0 %vm279_vm0, %v13763_v9  ;;  %v6306_v9 = vrot.slane %v13857_v54, 1 }
 0x480   : > { %10036 = vmatprep.mubr.msk.f32.mxu0 %vm279_vm0, %v13768_v44  ;;  %v15689_v44 = vld [vmem:[#allocation109_spill] sm:$0xff] }
 0x482   : > { %9984 = vmatmul.mubr.msk.f32.gmra.mxu1 %vm279_vm0, %v15688_v30 }
 0x483   : > { %9986 = vmatprep.mubr.msk.f32.mxu1 %vm279_vm0, %v13436_v13  ;;  %10037 = vmatmul.mubr.msk.f32.gmra.mxu0 %vm279_vm0, %v13780_v50  ;;  %v6305_v50 = vrot.slane %v13844_v55, 1 }
 0x484   : > { %10039 = vmatprep.mubr.msk.f32.mxu0 %vm279_vm0, %v13785_v58  ;;  %v15690_v58 = vld [vmem:[#allocation111_spill] sm:$0xff] }
 0x485   : > { %v14010_v45 = vsel %vm1819_vm13, %v6305_v50, %v6306_v9  ;;  %v14026_v50 = vpop.f32.mrf.mxu0 }
 0x486   : > { %9987 = vmatmul.mubr.msk.f32.gmra.mxu1 %vm279_vm0, %v13439_v16 }
 0x487   : > { %9989 = vmatprep.mubr.msk.f32.mxu1 %vm279_vm0, %v13467_v49  ;;  %10040 = vmatmul.mubr.msk.f32.gmra.mxu0 %vm279_vm0, %v13797_v3  ;;  %v15692_v3 = vld [vmem:[#allocation108_spill] sm:$0xff] }
 0x488   : > { %10042 = vmatprep.mubr.msk.f32.mxu0 %vm279_vm0, %v13802_v59  ;;  %v15691_v59 = vld [vmem:[#allocation113_spill] sm:$0xff] }
 0x48a   : > { %9990 = vmatmul.mubr.msk.f32.gmra.mxu1 %vm279_vm0, %v15689_v44 }
 0x48b   : > { %9992 = vmatprep.mubr.msk.f32.mxu1 %vm279_vm0, %v13498_v37  ;;  %10043 = vmatmul.mubr.msk.f32.gmra.mxu0 %vm279_vm0, %v13814_v20  ;;  %v6574_v20 = vrot.slane %v13844_v55, 2 }
 0x48c   : > { %10045 = vmatprep.mubr.msk.f32.mxu0 %vm279_vm0, %v13819_v62  ;;  %v6575_v62 = vrot.slane %v13857_v54, 2 }
 0x48e   : > { %9993 = vmatmul.mubr.msk.f32.gmra.mxu1 %vm279_vm0, %v13501_v34 }
 0x48f   : > { %9995 = vmatprep.mubr.msk.f32.mxu1 %vm279_vm0, %v15690_v58  ;;  %10046 = vmatmul.mubr.msk.f32.gmra.mxu0 %vm279_vm0, %v13831_v33  ;;  %v4909_v33 = vld [vmem:[#allocation2 + $0x190] sm:$0x3] }
 0x490   : > { %10048 = vmatprep.mubr.msk.f32.mxu0 %vm279_vm0, %v13836_v41  ;;  %v15693_v41 = vld [vmem:[#allocation33_spill] sm:$0xff] }
 0x492   : > { %9996 = vmatmul.mubr.msk.f32.gmra.mxu1 %vm279_vm0, %v15691_v59 }
 0x493   : > { %9998 = vmatprep.mubr.msk.f32.mxu1 %vm279_vm0, %v15692_v3  ;;  %10049 = vmatmul.mubr.msk.f32.gmra.mxu0 %vm279_vm0, %v13850_v47  ;;  %v14003_v47 = vsel %vm2484_vm12, %v6574_v20, %v6575_v62  ;;  %v6308_v20 = vrot.slane %v4909_v33, 1 }
 0x494   : > { %10051 = vmatprep.mubr.msk.f32.mxu0 %vm279_vm0, %v13855_v23  ;;  %15695 = vst [vmem:[#allocation55_spill] sm:$0xff] %v14003_v47  ;;  %v6577_v23 = vrot.slane %v4909_v33, 2  ;;  %v10362_v33 = vld [vmem:[#allocation2 + $0x38] sm:$0xff] }
 0x496   : > { %9999 = vmatmul.mubr.msk.f32.gmra.mxu1 %vm279_vm0, %v15693_v41  ;;  %v14013_v24 = vsel %vm2484_vm12, %v6575_v62, %v6577_v23  ;;  %v10361_v62 = vld [vmem:[#allocation2 + $0x30] sm:$0xff]  ;;  %v14037_v23 = vpop.f32.mrf.mxu1 }
 0x497   : > { %10001 = vmatprep.mubr.msk.f32.mxu1 %vm279_vm0, %v15694_v46  ;;  %10052 = vmatmul.mubr.msk.f32.gmra.mxu0 %vm279_vm0, %v13867_v63  ;;  %15697 = vst [vmem:[#allocation30_spill] sm:$0xff] %v14013_v24  ;;  %v10366_v63 = vld [vmem:[#allocation2 + $0x68] sm:$0xff] }
 0x498   : > { %10054 = vmatprep.mubr.msk.f32.mxu0 %vm279_vm0, %v14003_v47  ;;  %v14022_v47 = vsel %vm1819_vm13, %v6306_v9, %v6308_v20  ;;  %v10363_v9 = vld [vmem:[#allocation2 + $0x48] sm:$0xff]  ;;  %v10364_v20 = vld [vmem:[#allocation2 + $0x50] sm:$0xff] }
 0x49a   : > { %10002 = vmatmul.mubr.msk.f32.gmra.mxu1 %vm279_vm0, %v15696_v53 }
 0x49b   : > { %10004 = vmatprep.mubr.msk.f32.mxu1 %vm279_vm0, %v14010_v45  ;;  %10055 = vmatmul.mubr.msk.f32.gmra.mxu0 %vm279_vm0, %v14013_v24 }
 0x49c   : > { %10109 = vmatprep.mubr.msk.f32.mxu0 %vm279_vm0, %v13120_v19 }
 0x49e   : > { %10005 = vmatmul.mubr.msk.f32.gmra.mxu1 %vm279_vm0, %v14022_v47 }
 0x49f   : > { %10059 = vmatprep.mubr.msk.f32.mxu1 %vm279_vm0, %v10361_v62  ;;  %10110 = vmatmul.mubr.msk.f32.vlgmr.msra.gmra.mxu0 %vm279_vm0, %v13123_v18 }
 0x4a0   : > { %10112 = vmatprep.mubr.msk.f32.mxu0 %vm279_vm0, %v13163_v4  ;;  %v9814_v19 = vpop.f32.mrf.mxu0 }
 0x4a2   : > { %10060 = vmatmul.mubr.msk.f32.vlgmr.msra.gmra.mxu1 %vm279_vm0, %v10362_v33  ;;  %v5485_v18 = vpop.f32.mrf.mxu0 }
 0x4a3   : > { %10062 = vmatprep.mubr.msk.f32.mxu1 %vm279_vm0, %v10363_v9  ;;  %10113 = vmatmul.mubr.msk.f32.gmra.mxu0 %vm279_vm0, %v13166_v61  ;;  %v10365_v9 = vld [vmem:[#allocation2 + $0x60] sm:$0xff] }
 0x4a4   : > { %10158 = vmatpush3.msk.msra.mxu1 %vm514_vm3, %v13884_v38  ;;  %10115 = vmatprep.mubr.msk.f32.mxu0 %vm279_vm0, %v15677_v40  ;;  %v9764_v4 = vpop.f32.mrf.mxu1 }
 0x4a5   : > { %v14044_v62 = vadd.f32 %v9814_v19, %v9764_v4  ;;  %v9817_v33 = vpop.f32.mrf.mxu0 }
 0x4a6   : > { %10063 = vmatmul.mubr.msk.f32.gmra.mxu1 %vm279_vm0, %v10364_v20  ;;  %v5193_v61 = vpop.f32.mrf.mxu1  ;;  %v10367_v20 = vld [vmem:[#allocation2 + $0x78] sm:$0xff] }
 0x4a7   : > { %10065 = vmatprep.mubr.msk.f32.mxu1 %vm279_vm0, %v10365_v9  ;;  %10116 = vmatmul.mubr.msk.f32.gmra.mxu0 %vm279_vm0, %v15678_v27  ;;  %v14051_v38 = vadd.f32 %v5485_v18, %v5193_v61  ;;  %v5495_v40 = vpop.f32.mrf.mxu0  ;;  %v10368_v61 = vld [vmem:[#allocation2 + $0x80] sm:$0xff] }
 0x4a8   : > { %10118 = vmatprep.mubr.msk.f32.mxu0 %vm279_vm0, %v15679_v26  ;;  %v9767_v24 = vpop.f32.mrf.mxu1 }
 0x4a9   : > { %v14054_v19 = vadd.f32 %v9817_v33, %v9767_v24  ;;  %v9820_v4 = vpop.f32.mrf.mxu0 }
 0x4aa   : > { %10066 = vmatmul.mubr.msk.f32.gmra.mxu1 %vm279_vm0, %v10366_v63  ;;  %v5203_v27 = vpop.f32.mrf.mxu1 }
 0x4ab   : > { %10068 = vmatprep.mubr.msk.f32.mxu1 %vm279_vm0, %v10367_v20  ;;  %10119 = vmatmul.mubr.msk.f32.gmra.mxu0 %vm279_vm0, %v15680_v14  ;;  %v14061_v26 = vadd.f32 %v5495_v40, %v5203_v27  ;;  %v5505_v18 = vpop.f32.mrf.mxu0 }
 0x4ac   : > { %10121 = vmatprep.mubr.msk.f32.mxu0 %vm279_vm0, %v15681_v5  ;;  %v9770_v9 = vpop.f32.mrf.mxu1 }
 0x4ad   : > { %v14064_v24 = vadd.f32 %v9820_v4, %v9770_v9  ;;  %v9823_v63 = vpop.f32.mrf.mxu0 }
 0x4ae   : > { %10069 = vmatmul.mubr.msk.f32.gmra.mxu1 %vm279_vm0, %v10368_v61  ;;  %v5213_v14 = vpop.f32.mrf.mxu1 }
 0x4af   : > { %10071 = vmatprep.mubr.msk.f32.mxu1 %vm279_vm0, %v13253_v17  ;;  %10122 = vmatmul.mubr.msk.f32.gmra.mxu0 %vm279_vm0, %v15682_v48  ;;  %v14072_v5 = vadd.f32 %v5505_v18, %v5213_v14  ;;  %v5515_v33 = vpop.f32.mrf.mxu0 }
 0x4b0   : > { %10124 = vmatprep.mubr.msk.f32.mxu0 %vm279_vm0, %v15683_v32  ;;  %v9773_v40 = vpop.f32.mrf.mxu1 }
 0x4b1   : > { %v14076_v4 = vadd.f32 %v9823_v63, %v9773_v40  ;;  %v9826_v20 = vpop.f32.mrf.mxu0 }
 0x4b2   : > { %10072 = vmatmul.mubr.msk.f32.gmra.mxu1 %vm279_vm0, %v13255_v11  ;;  %v5223_v17 = vpop.f32.mrf.mxu1 }
 0x4b3   : > { %10074 = vmatprep.mubr.msk.f32.mxu1 %vm279_vm0, %v13296_v15  ;;  %10125 = vmatmul.mubr.msk.f32.gmra.mxu0 %vm279_vm0, %v15684_v51  ;;  %v14084_v48 = vadd.f32 %v5515_v33, %v5223_v17  ;;  %v5525_v32 = vpop.f32.mrf.mxu0  ;;  %v15698_v33 = vld [vmem:[#allocation90_spill] sm:$0xff]  ;;  %v15699_v17 = vld [vmem:[#allocation107_spill] sm:$0xff] }
 0x4b4   : > { %10127 = vmatprep.mubr.msk.f32.mxu0 %vm279_vm0, %v15685_v36  ;;  %v9776_v27 = vpop.f32.mrf.mxu1 }
 0x4b5   : > { %v14088_v11 = vadd.f32 %v9826_v20, %v9776_v27  ;;  %v9829_v18 = vpop.f32.mrf.mxu0 }
 0x4b6   : > { %10075 = vmatmul.mubr.msk.f32.gmra.mxu1 %vm279_vm0, %v13298_v8  ;;  %v5233_v15 = vpop.f32.mrf.mxu1 }
 0x4b7   : > { %10077 = vmatprep.mubr.msk.f32.mxu1 %vm279_vm0, %v13335_v2  ;;  %10128 = vmatmul.mubr.msk.f32.gmra.mxu0 %vm279_vm0, %v15686_v56  ;;  %v14096_v51 = vadd.f32 %v5525_v32, %v5233_v15  ;;  %v5535_v36 = vpop.f32.mrf.mxu0  ;;  %v15700_v15 = vld [vmem:[#allocation110_spill] sm:$0xff] }
 0x4b8   : > { %10130 = vmatprep.mubr.msk.f32.mxu0 %vm279_vm0, %v15687_v52  ;;  %v9779_v9 = vpop.f32.mrf.mxu1 }
 0x4b9   : > { %v14100_v8 = vadd.f32 %v9829_v18, %v9779_v9 }
 0x4ba   : > { %10078 = vmatmul.mubr.msk.f32.gmra.mxu1 %vm279_vm0, %v13337_v43  ;;  %v9832_v61 = vpop.f32.mrf.mxu0  ;;  %v5243_v2 = vpop.f32.mrf.mxu1 }
 0x4bb   : > { %10080 = vmatprep.mubr.msk.f32.mxu1 %vm279_vm0, %v13372_v7  ;;  %10131 = vmatmul.mubr.msk.f32.gmra.mxu0 %vm279_vm0, %v15688_v30  ;;  %v14108_v52 = vadd.f32 %v5535_v36, %v5243_v2  ;;  %v15701_v2 = vld [vmem:[#allocation104_spill] sm:$0xff] }
 0x4bc   : > { %10133 = vmatprep.mubr.msk.f32.mxu0 %vm279_vm0, %v13436_v13  ;;  %v5545_v56 = vpop.f32.mrf.mxu0  ;;  %v9782_v63 = vpop.f32.mrf.mxu1 }
 0x4bd   : > { %v14112_v43 = vadd.f32 %v9832_v61, %v9782_v63 }
 0x4be   : > { %10081 = vmatmul.mubr.msk.f32.gmra.mxu1 %vm279_vm0, %v13374_v1  ;;  %v9835_v14 = vpop.f32.mrf.mxu0  ;;  %v5253_v7 = vpop.f32.mrf.mxu1 }
 0x4bf   : > { %10083 = vmatprep.mubr.msk.f32.mxu1 %vm279_vm0, %v15698_v33  ;;  %10134 = vmatmul.mubr.msk.f32.gmra.mxu0 %vm279_vm0, %v13439_v16  ;;  %v14120_v13 = vadd.f32 %v5545_v56, %v5253_v7 }
 0x4c0   : > { %10136 = vmatprep.mubr.msk.f32.mxu0 %vm279_vm0, %v13467_v49  ;;  %v5555_v30 = vpop.f32.mrf.mxu0  ;;  %v9785_v40 = vpop.f32.mrf.mxu1 }
 0x4c1   : > { %v14124_v1 = vadd.f32 %v9835_v14, %v9785_v40  ;;  %v14162_v14 = vld [vmem:[#allocation2 + $0x1a0] sm:$0xff] }
 0x4c2   : > { %10084 = vmatmul.mubr.msk.f32.gmra.mxu1 %vm279_vm0, %v13410_v21  ;;  %v9838_v20 = vpop.f32.mrf.mxu0  ;;  %v5263_v16 = vpop.f32.mrf.mxu1 }
 0x4c3   : > { %10086 = vmatprep.mubr.msk.f32.mxu1 %vm279_vm0, %v15699_v17  ;;  %10137 = vmatmul.mubr.msk.f32.gmra.mxu0 %vm279_vm0, %v15689_v44  ;;  %v14132_v49 = vadd.f32 %v5555_v30, %v5263_v16  ;;  %v15702_v30 = vld [vmem:[#allocation114_spill] sm:$0xff]  ;;  %v14176_v17 = vld [vmem:[#allocation2 + $0x1a8] sm:$0x3] }
 0x4c4   : > { %10139 = vmatprep.mubr.msk.f32.mxu0 %vm279_vm0, %v13498_v37  ;;  %v5565_v32 = vpop.f32.mrf.mxu0 }
 0x4c5   : > { %v9788_v27 = vpop.f32.mrf.mxu1 }
 0x4c6   : > { %10087 = vmatmul.mubr.msk.f32.gmra.mxu1 %vm279_vm0, %v13443_v0  ;;  %v14136_v21 = vadd.f32 %v9838_v20, %v9788_v27  ;;  %v9841_v18 = vpop.f32.mrf.mxu0  ;;  %v7111_v20 = vrot.slane %v14162_v14, 1  ;;  %v15703_v27 = vld [vmem:[#allocation5_spill] sm:$0xff] }
 0x4c7   : > { %10089 = vmatprep.mubr.msk.f32.mxu1 %vm279_vm0, %v15700_v15  ;;  %10140 = vmatmul.mubr.msk.f32.gmra.mxu0 %vm279_vm0, %v13501_v34  ;;  %v5273_v44 = vpop.f32.mrf.mxu1 }
 0x4c8   : > { %10142 = vmatprep.mubr.msk.f32.mxu0 %vm279_vm0, %v15690_v58  ;;  %v14144_v37 = vadd.f32 %v5565_v32, %v5273_v44  ;;  %v5575_v36 = vpop.f32.mrf.mxu0 }
 0x4ca   : > { %v9791_v9 = vpop.f32.mrf.mxu1  ;;  %10090 = vmatmul.mubr.msk.f32.gmra.mxu1 %vm279_vm0, %v13474_v6  ;;  %v14160_v6 = vld [vmem:[#allocation2 + $0x198] sm:$0xff] }
 0x4cb   : > { %v14148_v0 = vadd.f32 %v9841_v18, %v9791_v9  ;;  %v9844_v61 = vpop.f32.mrf.mxu0  ;;  %10092 = vmatprep.mubr.msk.f32.mxu1 %vm279_vm0, %v15701_v2  ;;  %10143 = vmatmul.mubr.msk.f32.gmra.mxu0 %vm279_vm0, %v15691_v59  ;;  %v7110_v40 = vrot.slane %v14160_v6, 1  ;;  %v7113_v18 = vrot.slane %v14176_v17, 1 }
 0x4cc   : > { %v5283_v34 = vpop.f32.mrf.mxu1  ;;  %10145 = vmatprep.mubr.msk.f32.mxu0 %vm279_vm0, %v15692_v3 }
 0x4cd   : > { %v14156_v58 = vadd.f32 %v5575_v36, %v5283_v34  ;;  %v5585_v56 = vpop.f32.mrf.mxu0 }
 0x4ce   : > { %v9794_v63 = vpop.f32.mrf.mxu1  ;;  %10093 = vmatmul.mubr.msk.f32.gmra.mxu1 %vm279_vm0, %v13505_v42 }
 0x4cf   : > { %v14164_v33 = vadd.f32 %v9844_v61, %v9794_v63  ;;  %v9847_v7 = vpop.f32.mrf.mxu0  ;;  %10095 = vmatprep.mubr.msk.f32.mxu1 %vm279_vm0, %v15702_v30  ;;  %10146 = vmatmul.mubr.msk.f32.gmra.mxu0 %vm279_vm0, %v15693_v41 }
 0x4d0   : > { %v5293_v3 = vpop.f32.mrf.mxu1  ;;  %10148 = vmatprep.mubr.msk.f32.mxu0 %vm279_vm0, %v15694_v46 }
 0x4d1   : > { %v14172_v59 = vadd.f32 %v5585_v56, %v5293_v3  ;;  %v5595_v42 = vpop.f32.mrf.mxu0 }
 0x4d2   : > { %v9797_v16 = vpop.f32.mrf.mxu1  ;;  %10096 = vmatmul.mubr.msk.f32.gmra.mxu1 %vm279_vm0, %v13535_v29  ;;  %v7112_v29 = vsel %vm1819_vm13, %v7110_v40, %v7111_v20 }
 0x4d3   : > { %v14180_v32 = vadd.f32 %v9847_v7, %v9797_v16  ;;  %v9850_v41 = vpop.f32.mrf.mxu0  ;;  %10098 = vmatprep.mubr.msk.f32.mxu1 %vm279_vm0, %v15703_v27  ;;  %10149 = vmatmul.mubr.msk.f32.gmra.mxu0 %vm279_vm0, %v15696_v53  ;;  %v7114_v53 = vsel %vm1819_vm13, %v7111_v20, %v7113_v18  ;;  %v15704_v27 = vld [vmem:[#allocation35_spill] sm:$0xff] }
 0x4d4   : > { %v5303_v46 = vpop.f32.mrf.mxu1  ;;  %10151 = vmatprep.mubr.msk.f32.mxu0 %vm279_vm0, %v14010_v45 }
 0x4d5   : > { %v14189_v15 = vadd.f32 %v5595_v42, %v5303_v46  ;;  %v5605_v44 = vpop.f32.mrf.mxu0 }
 0x4d6   : > { %v9800_v36 = vpop.f32.mrf.mxu1  ;;  %10099 = vmatmul.mubr.msk.f32.gmra.mxu1 %vm279_vm0, %v13559_v39 }
 0x4d7   : > { %v14194_v9 = vadd.f32 %v9850_v41, %v9800_v36  ;;  %v9853_v61 = vpop.f32.mrf.mxu0  ;;  %10101 = vmatprep.mubr.msk.f32.mxu1 %vm279_vm0, %v13844_v55  ;;  %10152 = vmatmul.mubr.msk.f32.gmra.mxu0 %vm279_vm0, %v14022_v47  ;;  %v5476_v41 = vadd.f32 %v14026_v50, %v14037_v23 }
 0x4d8   : > { %v5313_v45 = vpop.f32.mrf.mxu1  ;;  %10154 = vmatprep.mubr.msk.f32.mxu0 %vm279_vm0, %v7112_v29 }
 0x4d9   : > { %v14202_v2 = vadd.f32 %v5605_v44, %v5313_v45  ;;  %v5615_v34 = vpop.f32.mrf.mxu0 }
 0x4da   : > { %v9803_v56 = vpop.f32.mrf.mxu1  ;;  %10102 = vmatmul.mubr.msk.f32.gmra.mxu1 %vm279_vm0, %v13857_v54 }
 0x4db   : > { %v14206_v39 = vadd.f32 %v9853_v61, %v9803_v56  ;;  %v9856_v63 = vpop.f32.mrf.mxu0  ;;  %10104 = vmatprep.mubr.msk.f32.mxu1 %vm279_vm0, %v14160_v6  ;;  %10155 = vmatmul.mubr.msk.f32.gmra.mxu0 %vm279_vm0, %v7114_v53 }
 0x4dc   : > { %v5323_v55 = vpop.f32.mrf.mxu1 }
 0x4dd   : > { %v14211_v47 = vadd.f32 %v5615_v34, %v5323_v55  ;;  %v5625_v7 = vpop.f32.mrf.mxu0 }
 0x4de   : > { %v9806_v30 = vpop.f32.mrf.mxu1  ;;  %10105 = vmatmul.mubr.msk.f32.gmra.mxu1 %vm279_vm0, %v14162_v14 }
 0x4df   : > { %v14215_v3 = vadd.f32 %v9856_v63, %v9806_v30  ;;  %v9911_v42 = vpop.f32.mrf.mxu0  ;;  %10159 = vmatprep.mubr.msk.f32.mxu1 %vm279_vm0, %v13630_v10 }
 0x4e0   : > { %v5333_v54 = vpop.f32.mrf.mxu1 }
 0x4e1   : > { %v14219_v40 = vadd.f32 %v5625_v7, %v5333_v54  ;;  %v6113_v20 = vpop.f32.mrf.mxu0 }
 0x4e2   : > { %v9861_v16 = vpop.f32.mrf.mxu1  ;;  %10160 = vmatmul.mubr.msk.f32.vlgmr.msra.gmra.mxu1 %vm279_vm0, %v13642_v28 }
 0x4e3   : > { %v6007_v46 = vadd.f32 %v9861_v16, %v15704_v27  ;;  %v9914_v18 = vpop.f32.mrf.mxu0  ;;  %10162 = vmatprep.mubr.msk.f32.mxu1 %vm279_vm0, %v13647_v60 }
 0x4e4   : > { %v5847_v44 = vpop.f32.mrf.mxu1 }
 0x4e5   : > { %v6006_v29 = vadd.f32 %v5847_v44, %v5476_v41  ;;  %v6123_v10 = vpop.f32.mrf.mxu0  ;;  %v14228_v36 = vadd.f32 %v9911_v42, %v6007_v46  ;;  %v15705_v41 = vld [vmem:[#allocation7_spill] sm:$0xff] }
 0x4e6   : > { %v9864_v61 = vpop.f32.mrf.mxu1  ;;  %10163 = vmatmul.mubr.msk.f32.gmra.mxu1 %vm279_vm0, %v13659_v25 }
 0x4e7   : > { %v6009_v28 = vadd.f32 %v9864_v61, %v14044_v62  ;;  %v9917_v45 = vpop.f32.mrf.mxu0  ;;  %10165 = vmatprep.mubr.msk.f32.mxu1 %vm279_vm0, %v13664_v57  ;;  %v14235_v50 = vadd.f32 %v6113_v20, %v6006_v29 }
 0x4e8   : > { %v5857_v23 = vpop.f32.mrf.mxu1 }
 0x4e9   : > { %v6008_v60 = vadd.f32 %v5857_v23, %v14051_v38  ;;  %v6133_v53 = vpop.f32.mrf.mxu0  ;;  %v14238_v34 = vadd.f32 %v9914_v18, %v6009_v28 }
 0x4ea   : > { %v9867_v56 = vpop.f32.mrf.mxu1  ;;  %10166 = vmatmul.mubr.msk.f32.gmra.mxu1 %vm279_vm0, %v13678_v22 }
 0x4eb   : > { %v6011_v25 = vadd.f32 %v9867_v56, %v14054_v19  ;;  %v9920_v63 = vpop.f32.mrf.mxu0  ;;  %10168 = vmatprep.mubr.msk.f32.mxu1 %vm279_vm0, %v13683_v31  ;;  %v14245_v62 = vadd.f32 %v6123_v10, %v6008_v60  ;;  %v15707_v10 = vld [vmem:[#allocation44_spill] sm:$0xff] }
 0x4ec   : > { %v5867_v57 = vpop.f32.mrf.mxu1 }
 0x4ed   : > { %v6010_v55 = vadd.f32 %v5867_v57, %v14061_v26  ;;  %v6143_v7 = vpop.f32.mrf.mxu0  ;;  %v14248_v38 = vadd.f32 %v9917_v45, %v6011_v25  ;;  %v15709_v25 = vld [vmem:[#allocation32_spill] sm:$0xff] }
 0x4ee   : > { %v9870_v30 = vpop.f32.mrf.mxu1  ;;  %10169 = vmatmul.mubr.msk.f32.gmra.mxu1 %vm279_vm0, %v13695_v35 }
 0x4ef   : > { %v6013_v22 = vadd.f32 %v9870_v30, %v14064_v24  ;;  %v9923_v42 = vpop.f32.mrf.mxu0  ;;  %10171 = vmatprep.mubr.msk.f32.mxu1 %vm279_vm0, %v13700_v12  ;;  %v14255_v19 = vadd.f32 %v6133_v53, %v6010_v55  ;;  %v15706_v24 = vld [vmem:[#allocation40_spill] sm:$0xff] }
 0x4f0   : > { %v5877_v31 = vpop.f32.mrf.mxu1 }
 0x4f1   : > { %v6012_v54 = vadd.f32 %v5877_v31, %v14072_v5  ;;  %v6153_v20 = vpop.f32.mrf.mxu0  ;;  %v14258_v26 = vadd.f32 %v9920_v63, %v6013_v22  ;;  %v15711_v31 = vld [vmem:[#allocation63_spill] sm:$0xff] }
 0x4f2   : > { %v9873_v16 = vpop.f32.mrf.mxu1  ;;  %10172 = vmatmul.mubr.msk.f32.gmra.mxu1 %vm279_vm0, %v15705_v41 }
 0x4f3   : > { %v6015_v35 = vadd.f32 %v9873_v16, %v14076_v4  ;;  %v9926_v27 = vpop.f32.mrf.mxu0  ;;  %10174 = vmatprep.mubr.msk.f32.mxu1 %vm279_vm0, %v15706_v24  ;;  %v14265_v46 = vadd.f32 %v6143_v7, %v6012_v54  ;;  %v15708_v4 = vld [vmem:[#allocation46_spill] sm:$0xff] }
 0x4f4   : > { %v5887_v12 = vpop.f32.mrf.mxu1 }
 0x4f5   : > { %v6014_v18 = vadd.f32 %v5887_v12, %v14084_v48  ;;  %v6163_v44 = vpop.f32.mrf.mxu0  ;;  %v14268_v5 = vadd.f32 %v9923_v42, %v6015_v35  ;;  %v15713_v12 = vld [vmem:[#allocation47_spill] sm:$0xff] }
 0x4f6   : > { %v9876_v29 = vpop.f32.mrf.mxu1  ;;  %10175 = vmatmul.mubr.msk.f32.gmra.mxu1 %vm279_vm0, %v15707_v10 }
 0x4f7   : > { %v6017_v61 = vadd.f32 %v9876_v29, %v14088_v11  ;;  %v9929_v28 = vpop.f32.mrf.mxu0  ;;  %10177 = vmatprep.mubr.msk.f32.mxu1 %vm279_vm0, %v15708_v4  ;;  %v14275_v45 = vadd.f32 %v6153_v20, %v6014_v18  ;;  %v15710_v11 = vld [vmem:[#allocation60_spill] sm:$0xff] }
 0x4f8   : > { %v5897_v23 = vpop.f32.mrf.mxu1 }
 0x4f9   : > { %v6016_v60 = vadd.f32 %v5897_v23, %v14096_v51  ;;  %v6173_v53 = vpop.f32.mrf.mxu0  ;;  %v14278_v48 = vadd.f32 %v9926_v27, %v6017_v61  ;;  %v15715_v23 = vld [vmem:[#allocation34_spill] sm:$0xff] }
 0x4fa   : > { %v9879_v56 = vpop.f32.mrf.mxu1  ;;  %10178 = vmatmul.mubr.msk.f32.gmra.mxu1 %vm279_vm0, %v15709_v25 }
 0x4fb   : > { %v6019_v63 = vadd.f32 %v9879_v56, %v14100_v8  ;;  %v9932_v57 = vpop.f32.mrf.mxu0  ;;  %10180 = vmatprep.mubr.msk.f32.mxu1 %vm279_vm0, %v15710_v11  ;;  %v14285_v55 = vadd.f32 %v6163_v44, %v6016_v60  ;;  %v15712_v8 = vld [vmem:[#allocation43_spill] sm:$0xff] }
 0x4fc   : > { %v5907_v7 = vpop.f32.mrf.mxu1 }
 0x4fd   : > { %v6018_v30 = vadd.f32 %v5907_v7, %v14108_v52  ;;  %v6183_v22 = vpop.f32.mrf.mxu0  ;;  %v14288_v51 = vadd.f32 %v9929_v28, %v6019_v63  ;;  %v15717_v7 = vld [vmem:[#allocation50_spill] sm:$0xff] }
 0x4fe   : > { %v9882_v42 = vpop.f32.mrf.mxu1  ;;  %10181 = vmatmul.mubr.msk.f32.gmra.mxu1 %vm279_vm0, %v15711_v31 }
 0x4ff   : > { %v6021_v54 = vadd.f32 %v9882_v42, %v14112_v43  ;;  %v9935_v20 = vpop.f32.mrf.mxu0  ;;  %10183 = vmatprep.mubr.msk.f32.mxu1 %vm279_vm0, %v15712_v8  ;;  %v14295_v16 = vadd.f32 %v6173_v53, %v6018_v30  ;;  %v15714_v43 = vld [vmem:[#allocation49_spill] sm:$0xff] }
 0x500   : > { %v5917_v41 = vpop.f32.mrf.mxu1 }
 0x501   : > { %v6020_v35 = vadd.f32 %v5917_v41, %v14120_v13  ;;  %v6193_v27 = vpop.f32.mrf.mxu0  ;;  %v14298_v52 = vadd.f32 %v9932_v57, %v6021_v54  ;;  %v15719_v41 = vld [vmem:[#allocation61_spill] sm:$0xff] }
 0x502   : > { %v9885_v24 = vpop.f32.mrf.mxu1  ;;  %10184 = vmatmul.mubr.msk.f32.gmra.mxu1 %vm279_vm0, %v15713_v12 }
 0x503   : > { %v6023_v18 = vadd.f32 %v9885_v24, %v14124_v1  ;;  %v9938_v44 = vpop.f32.mrf.mxu0  ;;  %10186 = vmatprep.mubr.msk.f32.mxu1 %vm279_vm0, %v15714_v43  ;;  %v14305_v29 = vadd.f32 %v6183_v22, %v6020_v35  ;;  %v15716_v1 = vld [vmem:[#allocation29_spill] sm:$0xff] }
 0x504   : > { %v5927_v10 = vpop.f32.mrf.mxu1 }
 0x505   : > { %v6022_v61 = vadd.f32 %v5927_v10, %v14132_v49  ;;  %v6203_v28 = vpop.f32.mrf.mxu0  ;;  %v14308_v13 = vadd.f32 %v9935_v20, %v6023_v18  ;;  %v15721_v10 = vld [vmem:[#allocation28_spill] sm:$0xff] }
 0x506   : > { %v9888_v4 = vpop.f32.mrf.mxu1  ;;  %10187 = vmatmul.mubr.msk.f32.gmra.mxu1 %vm279_vm0, %v15715_v23  ;;  %v7379_v23 = vrot.slane %v14160_v6, 2  ;;  %v7382_v6 = vrot.slane %v14176_v17, 2 }
 0x507   : > { %v6025_v60 = vadd.f32 %v9888_v4, %v14136_v21  ;;  %v9941_v53 = vpop.f32.mrf.mxu0  ;;  %10189 = vmatprep.mubr.msk.f32.mxu1 %vm279_vm0, %v15716_v1  ;;  %v14315_v56 = vadd.f32 %v6193_v27, %v6022_v61  ;;  %v15718_v21 = vld [vmem:[#allocation52_spill] sm:$0xff] }
 0x508   : > { %v5937_v25 = vpop.f32.mrf.mxu1 }
 0x509   : > { %v6024_v63 = vadd.f32 %v5937_v25, %v14144_v37  ;;  %v6213_v57 = vpop.f32.mrf.mxu0  ;;  %v14318_v49 = vadd.f32 %v9938_v44, %v6025_v60 }
 0x50a   : > { %v9891_v11 = vpop.f32.mrf.mxu1  ;;  %10190 = vmatmul.mubr.msk.f32.gmra.mxu1 %vm279_vm0, %v15717_v7  ;;  %v15724_v7 = vld [vmem:[#allocation55_spill] sm:$0xff] }
 0x50b   : > { %v6027_v30 = vadd.f32 %v9891_v11, %v14148_v0  ;;  %v9944_v22 = vpop.f32.mrf.mxu0  ;;  %10192 = vmatprep.mubr.msk.f32.mxu1 %vm279_vm0, %v15718_v21  ;;  %v14325_v42 = vadd.f32 %v6203_v28, %v6024_v63  ;;  %v15720_v0 = vld [vmem:[#allocation64_spill] sm:$0xff] }
 0x50c   : > { %v5947_v31 = vpop.f32.mrf.mxu1 }
 0x50d   : > { %v6026_v54 = vadd.f32 %v5947_v31, %v14156_v58  ;;  %v6223_v20 = vpop.f32.mrf.mxu0  ;;  %v14328_v37 = vadd.f32 %v9941_v53, %v6027_v30 }
 0x50e   : > { %v9894_v8 = vpop.f32.mrf.mxu1  ;;  %10193 = vmatmul.mubr.msk.f32.gmra.mxu1 %vm279_vm0, %v15719_v41 }
 0x50f   : > { %v6029_v35 = vadd.f32 %v9894_v8, %v14164_v33  ;;  %v9947_v27 = vpop.f32.mrf.mxu0  ;;  %10195 = vmatprep.mubr.msk.f32.mxu1 %vm279_vm0, %v15720_v0  ;;  %v14335_v24 = vadd.f32 %v6213_v57, %v6026_v54  ;;  %v15722_v33 = vld [vmem:[#allocation31_spill] sm:$0xff]  ;;  %v15723_v57 = vld [vmem:[#allocation53_spill] sm:$0xff] }
 0x510   : > { %v5957_v12 = vpop.f32.mrf.mxu1 }
 0x511   : > { %v6028_v18 = vadd.f32 %v5957_v12, %v14172_v59  ;;  %v6233_v44 = vpop.f32.mrf.mxu0  ;;  %v14338_v58 = vadd.f32 %v9944_v22, %v6029_v35  ;;  %v7380_v59 = vrot.slane %v14162_v14, 2 }
 0x512   : > { %v9897_v43 = vpop.f32.mrf.mxu1  ;;  %10196 = vmatmul.mubr.msk.f32.gmra.mxu1 %vm279_vm0, %v15721_v10 }
 0x513   : > { %v6031_v61 = vadd.f32 %v9897_v43, %v14180_v32  ;;  %v9950_v28 = vpop.f32.mrf.mxu0  ;;  %10198 = vmatprep.mubr.msk.f32.mxu1 %vm279_vm0, %v15722_v33  ;;  %v14345_v4 = vadd.f32 %v6223_v20, %v6028_v18  ;;  %v15725_v20 = vld [vmem:[#allocation30_spill] sm:$0xff]  ;;  %v7383_v17 = vsel %vm2484_vm12, %v7380_v59, %v7382_v6 }
 0x514   : > { %v5967_v60 = vpop.f32.mrf.mxu1 }
 0x515   : > { %v6030_v53 = vadd.f32 %v5967_v60, %v14189_v15  ;;  %v6243_v1 = vpop.f32.mrf.mxu0  ;;  %v14350_v25 = vadd.f32 %v9947_v27, %v6031_v61  ;;  %v7381_v15 = vsel %vm2484_vm12, %v7379_v23, %v7380_v59 }
 0x516   : > { %v9900_v63 = vpop.f32.mrf.mxu1  ;;  %10199 = vmatmul.mubr.msk.f32.gmra.mxu1 %vm279_vm0, %v15723_v57 }
 0x517   : > { %v6033_v32 = vadd.f32 %v9900_v63, %v14194_v9  ;;  %v9953_v11 = vpop.f32.mrf.mxu0  ;;  %10201 = vmatprep.mubr.msk.f32.mxu1 %vm279_vm0, %v15724_v7  ;;  %v14358_v30 = vadd.f32 %v6233_v44, %v6030_v53 }
 0x518   : > { %v5977_v14 = vpop.f32.mrf.mxu1 }
 0x519   : > { %v6032_v22 = vadd.f32 %v5977_v14, %v14202_v2  ;;  %v6253_v21 = vpop.f32.mrf.mxu0  ;;  %v14362_v31 = vadd.f32 %v9950_v28, %v6033_v32 }
 0x51a   : > { %v9903_v54 = vpop.f32.mrf.mxu1  ;;  %10202 = vmatmul.mubr.msk.f32.gmra.mxu1 %vm279_vm0, %v15725_v20 }
 0x51b   : > { %v6035_v9 = vadd.f32 %v9903_v54, %v14206_v39  ;;  %v9956_v8 = vpop.f32.mrf.mxu0  ;;  %10204 = vmatprep.mubr.msk.f32.mxu1 %vm279_vm0, %v7381_v15  ;;  %v14369_v41 = vadd.f32 %v6243_v1, %v6032_v22 }
 0x51c   : > { %v5987_v35 = vpop.f32.mrf.mxu1 }
 0x51d   : > { %v6034_v27 = vadd.f32 %v5987_v35, %v14211_v47  ;;  %v6263_v2 = vpop.f32.mrf.mxu0  ;;  %v14372_v0 = vadd.f32 %v9953_v11, %v6035_v9 }
 0x51e   : > { %v9906_v12 = vpop.f32.mrf.mxu1  ;;  %10205 = vmatmul.mubr.msk.f32.gmra.mxu1 %vm279_vm0, %v7383_v17 }
 0x51f   : > { %v6037_v18 = vadd.f32 %v9906_v12, %v14215_v3  ;;  %v14376_v44 = vpop.f32.mrf.mxu0  ;;  %v14378_v39 = vadd.f32 %v6253_v21, %v6034_v27 }
 0x520   : > { %v5997_v43 = vpop.f32.mrf.mxu1 }
 0x521   : > { %v6036_v10 = vadd.f32 %v5997_v43, %v14219_v40  ;;  %v14381_v61 = vpop.f32.mrf.mxu0  ;;  %v14383_v28 = vadd.f32 %v9956_v8, %v6037_v18 }
 0x522   : > { %v9961_v47 = vpop.f32.mrf.mxu1 }
 0x523   : > { %v14386_v33 = vadd.f32 %v9961_v47, %v14228_v36  ;;  %v14388_v23 = vpop.f32.mrf.mxu0  ;;  %v14390_v60 = vadd.f32 %v6263_v2, %v6036_v10 }
 0x524   : > { %v6383_v3 = vpop.f32.mrf.mxu1 }
 0x525   : > { %v14393_v59 = vadd.f32 %v6383_v3, %v14235_v50  ;;  %v14395_v53 = vpop.f32.mrf.mxu0 }
 0x526   : > { %v9964_v1 = vpop.f32.mrf.mxu1 }
 0x527   : > { %v14398_v40 = vadd.f32 %v9964_v1, %v14238_v34  ;;  %v14400_v63 = vpop.f32.mrf.mxu0 }
 0x528   : > { %v6393_v57 = vpop.f32.mrf.mxu1 }
 0x529   : > { %v14403_v36 = vadd.f32 %v6393_v57, %v14245_v62  ;;  %v14405_v32 = vpop.f32.mrf.mxu0 }
 0x52a   : > { %v9967_v11 = vpop.f32.mrf.mxu1 }
 0x52b   : > { %v14408_v7 = vadd.f32 %v9967_v11, %v14248_v38  ;;  %v14410_v50 = vpop.f32.mrf.mxu0 }
 0x52c   : > { %v6403_v6 = vpop.f32.mrf.mxu1 }
 0x52d   : > { %v14413_v14 = vadd.f32 %v6403_v6, %v14255_v19  ;;  %v14415_v34 = vpop.f32.mrf.mxu0 }
 0x52e   : > { %v9970_v15 = vpop.f32.mrf.mxu1 }
 0x52f   : > { %v14418_v22 = vadd.f32 %v9970_v15, %v14258_v26  ;;  %v14420_v62 = vpop.f32.mrf.mxu0 }
 0x530   : > { %v6413_v21 = vpop.f32.mrf.mxu1 }
 0x531   : > { %v14423_v54 = vadd.f32 %v6413_v21, %v14265_v46  ;;  %v14425_v38 = vpop.f32.mrf.mxu0 }
 0x532   : > { %v9973_v20 = vpop.f32.mrf.mxu1 }
 0x533   : > { %v14428_v9 = vadd.f32 %v9973_v20, %v14268_v5  ;;  %v14430_v19 = vpop.f32.mrf.mxu0 }
 0x534   : > { %v6423_v8 = vpop.f32.mrf.mxu1 }
 0x535   : > { %v14433_v17 = vadd.f32 %v6423_v8, %v14275_v45  ;;  %v14435_v26 = vpop.f32.mrf.mxu0 }
 0x536   : > { %v9976_v35 = vpop.f32.mrf.mxu1 }
 0x537   : > { %v14438_v27 = vadd.f32 %v9976_v35, %v14278_v48  ;;  %v14440_v46 = vpop.f32.mrf.mxu0 }
 0x538   : > { %v6433_v2 = vpop.f32.mrf.mxu1 }
 0x539   : > { %v14443_v12 = vadd.f32 %v6433_v2, %v14285_v55  ;;  %v14445_v5 = vpop.f32.mrf.mxu0 }
 0x53a   : > { %v9979_v18 = vpop.f32.mrf.mxu1 }
 0x53b   : > { %v14448_v43 = vadd.f32 %v9979_v18, %v14288_v51  ;;  %v14450_v45 = vpop.f32.mrf.mxu0 }
 0x53c   : > { %15726 = vst [vmem:[#allocation25_spill] sm:$0xff] %v14450_v45  ;;  %v6443_v10 = vpop.f32.mrf.mxu1 }
 0x53d   : > { %v14453_v47 = vadd.f32 %v6443_v10, %v14295_v16  ;;  %v14455_v48 = vpop.f32.mrf.mxu0 }
 0x53e   : > { %15727 = vst [vmem:[#allocation56_spill] sm:$0xff] %v14455_v48  ;;  %v9982_v3 = vpop.f32.mrf.mxu1 }
 0x53f   : > { %v14458_v1 = vadd.f32 %v9982_v3, %v14298_v52  ;;  %v14460_v55 = vpop.f32.mrf.mxu0 }
 0x540   : > { %15729 = vst [vmem:[#allocation24_spill] sm:$0xff] %v14460_v55  ;;  %v6453_v57 = vpop.f32.mrf.mxu1 }
 0x541   : > { %15728 = vst [vmem:[#allocation58_spill] sm:$0xff] %v14458_v1  ;;  %v14463_v11 = vadd.f32 %v6453_v57, %v14305_v29  ;;  %v14465_v51 = vpop.f32.mrf.mxu0 }
 0x542   : > { %15731 = vst [vmem:[#allocation59_spill] sm:$0xff] %v14465_v51  ;;  %v9985_v6 = vpop.f32.mrf.mxu1 }
 0x543   : > { %15730 = vst [vmem:[#allocation27_spill] sm:$0xff] %v14463_v11  ;;  %v14468_v15 = vadd.f32 %v9985_v6, %v14308_v13  ;;  %v14470_v16 = vpop.f32.mrf.mxu0 }
 0x544   : > { %15733 = vst [vmem:[#allocation20_spill] sm:$0xff] %v14470_v16  ;;  %v6463_v21 = vpop.f32.mrf.mxu1 }
 0x545   : > { %15732 = vst [vmem:[#allocation62_spill] sm:$0xff] %v14468_v15  ;;  %v14473_v20 = vadd.f32 %v6463_v21, %v14315_v56  ;;  %v14475_v52 = vpop.f32.mrf.mxu0 }
 0x546   : > { %15735 = vst [vmem:[#allocation21_spill] sm:$0xff] %v14475_v52  ;;  %v9988_v8 = vpop.f32.mrf.mxu1 }
 0x547   : > { %15734 = vst [vmem:[#allocation23_spill] sm:$0xff] %v14473_v20  ;;  %v14478_v35 = vadd.f32 %v9988_v8, %v14318_v49  ;;  %v14480_v29 = vpop.f32.mrf.mxu0 }
 0x548   : > { %15737 = vst [vmem:[#allocation19_spill] sm:$0xff] %v14480_v29  ;;  %v6473_v2 = vpop.f32.mrf.mxu1 }
 0x549   : > { %15736 = vst [vmem:[#allocation26_spill] sm:$0xff] %v14478_v35  ;;  %v14483_v18 = vadd.f32 %v6473_v2, %v14325_v42  ;;  %v14485_v13 = vpop.f32.mrf.mxu0 }
 0x54a   : > { %15739 = vst [vmem:[#allocation94_spill] sm:$0xff] %v14485_v13  ;;  %v9991_v10 = vpop.f32.mrf.mxu1 }
 0x54b   : > { %15738 = vst [vmem:[#allocation93_spill] sm:$0xff] %v14483_v18  ;;  %v14488_v3 = vadd.f32 %v9991_v10, %v14328_v37  ;;  %v14490_v56 = vpop.f32.mrf.mxu0 }
 0x54c   : > { %15741 = vst [vmem:[#allocation17_spill] sm:$0xff] %v14490_v56  ;;  %v6483_v57 = vpop.f32.mrf.mxu1 }
 0x54d   : > { %15740 = vst [vmem:[#allocation22_spill] sm:$0xff] %v14488_v3  ;;  %v14493_v6 = vadd.f32 %v6483_v57, %v14335_v24  ;;  %v14495_v49 = vpop.f32.mrf.mxu0 }
 0x54e   : > { %15743 = vst [vmem:[#allocation16_spill] sm:$0xff] %v14495_v49  ;;  %v9994_v21 = vpop.f32.mrf.mxu1 }
 0x54f   : > { %15742 = vst [vmem:[#allocation67_spill] sm:$0xff] %v14493_v6  ;;  %v14498_v8 = vadd.f32 %v9994_v21, %v14338_v58  ;;  %v14500_v42 = vpop.f32.mrf.mxu0 }
 0x550   : > { %15745 = vst [vmem:[#allocation18_spill] sm:$0xff] %v14500_v42  ;;  %v6493_v2 = vpop.f32.mrf.mxu1 }
 0x551   : > { %15744 = vst [vmem:[#allocation92_spill] sm:$0xff] %v14498_v8  ;;  %v14503_v13 = vadd.f32 %v6493_v2, %v14345_v4  ;;  %v14505_v37 = vpop.f32.mrf.mxu0 }
 0x552   : > { %15747 = vst [vmem:[#allocation4_spill] sm:$0xff] %v14505_v37  ;;  %v9997_v10 = vpop.f32.mrf.mxu1 }
 0x553   : > { %15746 = vst [vmem:[#allocation68_spill] sm:$0xff] %v14503_v13  ;;  %v14508_v56 = vadd.f32 %v9997_v10, %v14350_v25  ;;  %v14510_v24 = vpop.f32.mrf.mxu0 }
 0x554   : > { %15749 = vst [vmem:[#allocation95_spill] sm:$0xff] %v14510_v24  ;;  %v6503_v57 = vpop.f32.mrf.mxu1 }
 0x555   : > { %15748 = vst [vmem:[#allocation99_spill] sm:$0xff] %v14508_v56  ;;  %v14513_v49 = vadd.f32 %v6503_v57, %v14358_v30  ;;  %v14515_v58 = vpop.f32.mrf.mxu0 }
 0x556   : > { %15751 = vst [vmem:[#allocation10_spill] sm:$0xff] %v14515_v58  ;;  %v10000_v21 = vpop.f32.mrf.mxu1 }
 0x557   : > { %15750 = vst [vmem:[#allocation96_spill] sm:$0xff] %v14513_v49  ;;  %v14518_v42 = vadd.f32 %v10000_v21, %v14362_v31  ;;  %v14520_v4 = vpop.f32.mrf.mxu0 }
 0x558   : > { %15753 = vst [vmem:[#allocation98_spill] sm:$0xff] %v14520_v4  ;;  %v6513_v2 = vpop.f32.mrf.mxu1 }
 0x559   : > { %15752 = vst [vmem:[#allocation101_spill] sm:$0xff] %v14518_v42  ;;  %v14523_v37 = vadd.f32 %v6513_v2, %v14369_v41  ;;  %v14525_v25 = vpop.f32.mrf.mxu0 }
 0x55a   : > { %15755 = vst [vmem:[#allocation6_spill] sm:$0xff] %v14525_v25  ;;  %v10003_v10 = vpop.f32.mrf.mxu1 }
 0x55b   : > { %15754 = vst [vmem:[#allocation102_spill] sm:$0xff] %v14523_v37  ;;  %v14528_v24 = vadd.f32 %v10003_v10, %v14372_v0  ;;  %v14530_v30 = vpop.f32.mrf.mxu0 }
 0x55c   : > { %15757 = vst [vmem:[#allocation118_spill] sm:$0xff] %v14530_v30  ;;  %v6523_v57 = vpop.f32.mrf.mxu1 }
 0x55d   : > { %15756 = vst [vmem:[#allocation72_spill] sm:$0xff] %v14528_v24  ;;  %v14533_v58 = vadd.f32 %v6523_v57, %v14378_v39  ;;  %v14535_v31 = vpop.f32.mrf.mxu0 }
 0x55e   : > { %15759 = vst [vmem:[#allocation37_spill] sm:$0xff] %v14535_v31  ;;  %v10006_v21 = vpop.f32.mrf.mxu1 }
 0x55f   : > { %15758 = vst [vmem:[#allocation80_spill] sm:$0xff] %v14533_v58  ;;  %v14538_v4 = vadd.f32 %v10006_v21, %v14383_v28  ;;  %v10111_v25 = vpop.f32.mrf.mxu0 }
 0x560   : > { %v6533_v41 = vpop.f32.mrf.mxu1 }
 0x561   : > { %15760 = vst [vmem:[#allocation121_spill] sm:$0xff] %v14538_v4  ;;  %v14541_v2 = vadd.f32 %v6533_v41, %v14390_v60  ;;  %v14543_v10 = vpop.f32.mrf.mxu0 }
 0x562   : > { %v10061_v37 = vpop.f32.mrf.mxu1 }
 0x563   : > { %15761 = vst [vmem:[#allocation71_spill] sm:$0xff] %v14541_v2  ;;  %v14545_v42 = vpop.f32.mrf.mxu0 }
 0x564   : > { %v6918_v0 = vpop.f32.mrf.mxu1 }
 0x565   : > { %v14549_v31 = vpop.f32.mrf.mxu0 }
 0x566   : > { %v10064_v30 = vpop.f32.mrf.mxu1 }
 0x567   : > { %v14555_v60 = vpop.f32.mrf.mxu0 }
 0x568   : > { %v6928_v24 = vpop.f32.mrf.mxu1 }
 0x569   : > { %v14561_v4 = vpop.f32.mrf.mxu0 }
 0x56a   : > { %v10067_v39 = vpop.f32.mrf.mxu1 }
 0x56b   : > { %v14567_v56 = vpop.f32.mrf.mxu0 }
 0x56c   : > { %v14547_v57 = vpop.f32.mrf.mxu1 }
 0x56d   : > { %v14573_v6 = vpop.f32.mrf.mxu0 }
 0x56e   : > { %v14551_v28 = vpop.f32.mrf.mxu1 }
 0x56f   : > { %v14579_v52 = vpop.f32.mrf.mxu0 }
 0x570   : > { %v14553_v21 = vpop.f32.mrf.mxu1 }
 0x571   : > { %v14585_v35 = vpop.f32.mrf.mxu0 }
 0x572   : > { %v14557_v41 = vpop.f32.mrf.mxu1 }
 0x573   : > { %v14591_v55 = vpop.f32.mrf.mxu0 }
 0x574   : > { %v14559_v2 = vpop.f32.mrf.mxu1 }
 0x576   : > { %v14563_v58 = vpop.f32.mrf.mxu1 }
 0x578   : > { %v14565_v49 = vpop.f32.mrf.mxu1 }
 0x57a   : > { %v14569_v13 = vpop.f32.mrf.mxu1 }
 0x57c   : > { %v14571_v8 = vpop.f32.mrf.mxu1 }
 0x57d   : > { %15762 = vst [vmem:[#allocation116_spill] sm:$0xff] %v14571_v8 }
 0x57e   : > { %v14575_v29 = vpop.f32.mrf.mxu1 }
 0x57f   : > { %15763 = vst [vmem:[#allocation124_spill] sm:$0xff] %v14575_v29  ;;  %v14597_v29 = vpop.f32.mrf.mxu0 }
 0x580   : > { %v14577_v3 = vpop.f32.mrf.mxu1  ;;  %15771 = vst [vmem:[#allocation13_spill] sm:$0xff] %v14597_v29 }
 0x581   : > { %15764 = vst [vmem:[#allocation38_spill] sm:$0xff] %v14577_v3 }
 0x582   : > { %v14581_v18 = vpop.f32.mrf.mxu1 }
 0x583   : > { %15765 = vst [vmem:[#allocation74_spill] sm:$0xff] %v14581_v18  ;;  %v14603_v18 = vpop.f32.mrf.mxu0 }
 0x584   : > { %v14583_v16 = vpop.f32.mrf.mxu1  ;;  %15774 = vst [vmem:[#allocation39_spill] sm:$0xff] %v14603_v18 }
 0x585   : > { %15766 = vst [vmem:[#allocation119_spill] sm:$0xff] %v14583_v16 }
 0x586   : > { %v14587_v51 = vpop.f32.mrf.mxu1 }
 0x587   : > { %15767 = vst [vmem:[#allocation45_spill] sm:$0xff] %v14587_v51  ;;  %v14609_v51 = vpop.f32.mrf.mxu0 }
 0x588   : > { %v14589_v20 = vpop.f32.mrf.mxu1  ;;  %15777 = vst [vmem:[#allocation48_spill] sm:$0xff] %v14609_v51 }
 0x589   : > { %15768 = vst [vmem:[#allocation122_spill] sm:$0xff] %v14589_v20 }
 0x58a   : > { %v14593_v15 = vpop.f32.mrf.mxu1 }
 0x58b   : > { %15769 = vst [vmem:[#allocation65_spill] sm:$0xff] %v14593_v15  ;;  %v14615_v15 = vpop.f32.mrf.mxu0 }
 0x58c   : > { %v14595_v48 = vpop.f32.mrf.mxu1  ;;  %15780 = vst [vmem:[#allocation14_spill] sm:$0xff] %v14615_v15  ;;  %v6814_v15 = vadd.f32 %v14388_v23, %v14398_v40 }
 0x58d   : > { %15770 = vst [vmem:[#allocation125_spill] sm:$0xff] %v14595_v48  ;;  %v14626_v51 = vpop.f32.mrf.mxu0 }
 0x58e   : > { %v14599_v3 = vpop.f32.mrf.mxu1 }
 0x58f   : > { %15772 = vst [vmem:[#allocation15_spill] sm:$0xff] %v14599_v3  ;;  %v6812_v3 = vadd.f32 %v14376_v44, %v14386_v33  ;;  %v7080_v44 = vadd.f32 %v10064_v30, %v6814_v15  ;;  %v6813_v33 = vadd.f32 %v14395_v53, %v14403_v36  ;;  %v14644_v23 = vpop.f32.mrf.mxu0 }
 0x590   : > { %v14601_v11 = vpop.f32.mrf.mxu1 }
 0x591   : > { %15773 = vst [vmem:[#allocation81_spill] sm:$0xff] %v14601_v11  ;;  %v7078_v18 = vadd.f32 %v10061_v37, %v6812_v3 }
 0x592   : > { %v14605_v16 = vpop.f32.mrf.mxu1 }
 0x593   : > { %15775 = vst [vmem:[#allocation9_spill] sm:$0xff] %v14605_v16  ;;  %v6811_v16 = vadd.f32 %v14381_v61, %v14393_v59  ;;  %v7348_v3 = vadd.f32 %v10111_v25, %v7078_v18  ;;  %v10369_v61 = vld [vmem:[%s14910_s6] sm:$0x3f]  ;;  %v6815_v18 = vadd.f32 %v14405_v32, %v14413_v14 }
 0x594   : > { %v14607_v45 = vpop.f32.mrf.mxu1 }
 0x595   : > { %15776 = vst [vmem:[#allocation83_spill] sm:$0xff] %v14607_v45  ;;  %v15782_v45 = vld [vmem:[#allocation36_spill] sm:$0xff] }
 0x596   : > { %v14611_v20 = vpop.f32.mrf.mxu1  ;;  %v7650_v29 = vsub.s32 4, %v15782_v45 }
 0x597   : > { %15778 = vst [vmem:[#allocation12_spill] sm:$0xff] %v14611_v20 }
 0x598   : > { %v14613_v1 = vpop.f32.mrf.mxu1  ;;  %v14640_v59 = vrot.slane %v10369_v61, %v7650_v29 }
 0x599   : > { %15779 = vst [vmem:[#allocation51_spill] sm:$0xff] %v14613_v1  ;;  %v7077_v1 = vadd.f32 %v6918_v0, %v6811_v16  ;;  %v6816_v16 = vadd.f32 %v14400_v63, %v14408_v7  ;;  %v7350_v0 = vadd.f32 %v14545_v42, %v7080_v44  ;;  %v7081_v63 = vadd.f32 %v14547_v57, %v6815_v18 }
 0x59a   : > { %v14617_v48 = vpop.f32.mrf.mxu1  ;;  %v6818_v7 = vadd.f32 %v14410_v50, %v14418_v22 }
 0x59b   : > { %15781 = vst [vmem:[#allocation8_spill] sm:$0xff] %v14617_v48  ;;  %v7686_v48 = vsub.s32 5, %v15782_v45  ;;  %v7079_v45 = vadd.f32 %v6928_v24, %v6813_v33  ;;  %v7347_v53 = vadd.f32 %v14543_v10, %v7077_v1  ;;  %v7082_v36 = vadd.f32 %v10067_v39, %v6816_v16 }
 0x59c   : > { %v14621_v11 = vpop.f32.mrf.mxu1  ;;  %v6817_v10 = vadd.f32 %v14415_v34, %v14423_v54  ;;  %v7084_v44 = vadd.f32 %v14551_v28, %v6818_v7  ;;  %v7351_v34 = vadd.f32 %v14561_v4, %v7081_v63  ;;  %v6824_v7 = vadd.f32 %v14440_v46, %v14448_v43 }
 0x59d   : > { %v14646_v15 = vrot.slane %v10369_v61, %v7686_v48  ;;  %v14663_v48 = vpop.f32.mrf.mxu0  ;;  %v7349_v24 = vadd.f32 %v14549_v31, %v7079_v45  ;;  %v7352_v57 = vadd.f32 %v14555_v60, %v7082_v36  ;;  %v6822_v36 = vadd.f32 %v14430_v19, %v14438_v27 }
 0x59e   : > { %v14628_v20 = vpop.f32.mrf.mxu1  ;;  %v7083_v54 = vadd.f32 %v14553_v21, %v6817_v10  ;;  %v6823_v46 = vadd.f32 %v14445_v5, %v14453_v47  ;;  %v15783_v10 = vld [vmem:[#allocation116_spill] sm:$0xff] }
 0x59f   : > { %v14678_v31 = vpop.f32.mrf.mxu0  ;;  %v7088_v19 = vadd.f32 %v14563_v58, %v6822_v36 }
 0x5a0   : > { %v14633_v8 = vpop.f32.mrf.mxu1 }
 0x5a2   : > { %v10161_v40 = vpop.f32.mrf.mxu1 }
 0x5a3   : > { %v7617_v37 = vadd.f32 %v10161_v40, %v7348_v3  ;;  %v6820_v3 = vadd.f32 %v14420_v62, %v14428_v9  ;;  %v6819_v62 = vadd.f32 %v14425_v38, %v14433_v17 }
 0x5a4   : > { %v7457_v25 = vpop.f32.mrf.mxu1 }
 0x5a5   : > { %v7653_v29 = vmul.f32 %v14640_v59, %v7617_v37  ;;  %v7616_v30 = vadd.f32 %v7457_v25, %v7347_v53  ;;  %v7086_v40 = vadd.f32 %v14557_v41, %v6820_v3  ;;  %v7354_v37 = vadd.f32 %v14567_v56, %v7084_v44  ;;  %v14697_v41 = vpop.f32.mrf.mxu0  ;;  %v15785_v44 = vld [vmem:[#allocation25_spill] sm:$0xff] }
 0x5a6   : > { %v10164_v32 = vpop.f32.mrf.mxu1  ;;  %v7085_v53 = vadd.f32 %v14559_v2, %v6819_v62  ;;  %v6821_v56 = vadd.f32 %v14435_v26, %v14443_v12  ;;  %v15786_v3 = vld [vmem:[#allocation13_spill] sm:$0xff] }
 0x5a7   : > { %v7689_v14 = vadd.f32 %v14646_v15, %v7653_v29  ;;  %v7652_v1 = vmul.f32 %v14640_v59, %v7616_v30  ;;  %v7619_v42 = vadd.f32 %v10164_v32, %v7350_v0  ;;  %v7353_v29 = vadd.f32 %v14573_v6, %v7083_v54  ;;  %v14714_v6 = vpop.f32.mrf.mxu0 }
 0x5a8   : > { %v7467_v39 = vpop.f32.mrf.mxu1  ;;  %v7356_v30 = vadd.f32 %v14579_v52, %v7086_v40  ;;  %v7355_v26 = vadd.f32 %v14585_v35, %v7085_v53  ;;  %v7087_v12 = vadd.f32 %v14565_v49, %v6821_v56  ;;  %v15790_v40 = vld [vmem:[#allocation124_spill] sm:$0xff] }
 0x5a9   : > { %7721 = vst.msk [vmem:[%s14658_s26 + $0x8] sm:$0xff] %vm279_vm0, %v7689_v14  ;;  %v7688_v50 = vadd.f32 %v14646_v15, %v7652_v1  ;;  %v7655_v22 = vmul.f32 %v14640_v59, %v7619_v42  ;;  %v7618_v33 = vadd.f32 %v7467_v39, %v7349_v24  ;;  %v7090_v1 = vadd.f32 %v14569_v13, %v6824_v7  ;;  %v14733_v13 = vpop.f32.mrf.mxu0 }
 0x5aa   : > { %v10167_v61 = vpop.f32.mrf.mxu1  ;;  %v7358_v24 = vadd.f32 %v14591_v55, %v7088_v19  ;;  %v7089_v39 = vadd.f32 %v15783_v10, %v6823_v46  ;;  %v15788_v55 = vld [vmem:[#allocation56_spill] sm:$0xff]  ;;  %v15795_v19 = vld [vmem:[#allocation74_spill] sm:$0xff] }
 0x5ab   : > { %7720 = vst.msk [vmem:[%s14658_s26] sm:$0xff] %vm279_vm0, %v7688_v50  ;;  %v7691_v28 = vadd.f32 %v14646_v15, %v7655_v22  ;;  %v7654_v60 = vmul.f32 %v14640_v59, %v7618_v33  ;;  %v7621_v16 = vadd.f32 %v10167_v61, %v7352_v57  ;;  %v15784_v57 = vld [vmem:[#allocation58_spill] sm:$0xff]  ;;  %v7357_v61 = vadd.f32 %v15786_v3, %v7087_v12  ;;  %v14750_v36 = vpop.f32.mrf.mxu0  ;;  %v15804_v3 = vld [vmem:[#allocation45_spill] sm:$0xff] }
 0x5ac   : > { %v7477_v9 = vpop.f32.mrf.mxu1  ;;  %v6826_v50 = vadd.f32 %v15785_v44, %v15784_v57 }
 0x5ad   : > { %7723 = vst.msk [vmem:[%s14658_s26 + $0x18] sm:$0xff] %vm279_vm0, %v7691_v28  ;;  %v7690_v4 = vadd.f32 %v14646_v15, %v7654_v60  ;;  %v7657_v21 = vmul.f32 %v14640_v59, %v7621_v16  ;;  %v7620_v45 = vadd.f32 %v7477_v9, %v7351_v34  ;;  %v15787_v34 = vld [vmem:[#allocation27_spill] sm:$0xff] }
 0x5ae   : > { %v10170_v18 = vpop.f32.mrf.mxu1  ;;  %v6825_v54 = vadd.f32 %v15788_v55, %v15787_v34  ;;  %v15789_v60 = vld [vmem:[#allocation39_spill] sm:$0xff]  ;;  %v7092_v62 = vadd.f32 %v15790_v40, %v6826_v50  ;;  %v15802_v50 = vld [vmem:[#allocation93_spill] sm:$0xff] }
 0x5af   : > { %7722 = vst.msk [vmem:[%s14658_s26 + $0x10] sm:$0xff] %vm279_vm0, %v7690_v4  ;;  %v7693_v38 = vadd.f32 %v14646_v15, %v7657_v21  ;;  %v7656_v17 = vmul.f32 %v14640_v59, %v7620_v45  ;;  %v7623_v25 = vadd.f32 %v10170_v18, %v7354_v37  ;;  %v7360_v16 = vadd.f32 %v15789_v60, %v7090_v1  ;;  %v15791_v45 = vld [vmem:[#allocation62_spill] sm:$0xff]  ;;  %v15792_v37 = vld [vmem:[#allocation24_spill] sm:$0xff]  ;;  %v15799_v1 = vld [vmem:[#allocation119_spill] sm:$0xff] }
 0x5b0   : > { %v7487_v2 = vpop.f32.mrf.mxu1  ;;  %v6828_v53 = vadd.f32 %v15792_v37, %v15791_v45  ;;  %v15806_v60 = vld [vmem:[#allocation19_spill] sm:$0xff]  ;;  %v15808_v37 = vld [vmem:[#allocation65_spill] sm:$0xff] }
 0x5b1   : > { %7725 = vst.msk [vmem:[%s14658_s26 + $0x28] sm:$0xff] %vm279_vm0, %v7693_v38  ;;  %v7692_v27 = vadd.f32 %v14646_v15, %v7656_v17  ;;  %v7659_v0 = vmul.f32 %v14640_v59, %v7623_v25  ;;  %v7622_v63 = vadd.f32 %v7487_v2, %v7353_v29  ;;  %v15793_v38 = vld [vmem:[#allocation48_spill] sm:$0xff]  ;;  %v15794_v25 = vld [vmem:[#allocation38_spill] sm:$0xff] }
 0x5b2   : > { %v10173_v32 = vpop.f32.mrf.mxu1  ;;  %v7359_v17 = vadd.f32 %v15793_v38, %v7089_v39  ;;  %v7091_v29 = vadd.f32 %v15794_v25, %v6825_v54  ;;  %v15810_v38 = vld [vmem:[#allocation94_spill] sm:$0xff] }
 0x5b3   : > { %7724 = vst.msk [vmem:[%s14658_s26 + $0x20] sm:$0xff] %vm279_vm0, %v7692_v27  ;;  %v7695_v52 = vadd.f32 %v14646_v15, %v7659_v0  ;;  %v7658_v58 = vmul.f32 %v14640_v59, %v7622_v63  ;;  %v7625_v14 = vadd.f32 %v10173_v32, %v7356_v30  ;;  %v7094_v27 = vadd.f32 %v15795_v19, %v6828_v53  ;;  %v15796_v0 = vld [vmem:[#allocation23_spill] sm:$0xff] }
 0x5b4   : > { %v7497_v43 = vpop.f32.mrf.mxu1  ;;  %v15797_v63 = vld [vmem:[#allocation59_spill] sm:$0xff]  ;;  %v7361_v44 = vadd.f32 %v14626_v51, %v7091_v29 }
 0x5b5   : > { %7727 = vst.msk [vmem:[%s14658_s26 + $0x38] sm:$0xff] %vm279_vm0, %v7695_v52  ;;  %v7694_v35 = vadd.f32 %v14646_v15, %v7658_v58  ;;  %v7661_v49 = vmul.f32 %v14640_v59, %v7625_v14  ;;  %v7624_v42 = vadd.f32 %v7497_v43, %v7355_v26  ;;  %v6827_v7 = vadd.f32 %v15797_v63, %v15796_v0  ;;  %v15798_v58 = vld [vmem:[#allocation14_spill] sm:$0xff]  ;;  %v15813_v0 = vld [vmem:[#allocation17_spill] sm:$0xff] }
 0x5b6   : > { %v10176_v22 = vpop.f32.mrf.mxu1  ;;  %v7362_v14 = vadd.f32 %v15798_v58, %v7092_v62  ;;  %v15800_v43 = vld [vmem:[#allocation26_spill] sm:$0xff] }
 0x5b7   : > { %7726 = vst.msk [vmem:[%s14658_s26 + $0x30] sm:$0xff] %vm279_vm0, %v7694_v35  ;;  %v7697_v5 = vadd.f32 %v14646_v15, %v7661_v49  ;;  %v7660_v47 = vmul.f32 %v14640_v59, %v7624_v42  ;;  %v7627_v33 = vadd.f32 %v10176_v22, %v7358_v24  ;;  %v7093_v46 = vadd.f32 %v15799_v1, %v6827_v7  ;;  %v15801_v35 = vld [vmem:[#allocation20_spill] sm:$0xff]  ;;  %v14769_v42 = vpop.f32.mrf.mxu0  ;;  %v15803_v22 = vld [vmem:[#allocation21_spill] sm:$0xff] }
 0x5b8   : > { %v7507_v28 = vpop.f32.mrf.mxu1  ;;  %v6830_v49 = vadd.f32 %v15801_v35, %v15800_v43  ;;  %v15815_v1 = vld [vmem:[#allocation16_spill] sm:$0xff]  ;;  %v15816_v35 = vld [vmem:[#allocation15_spill] sm:$0xff] }
 0x5b9   : > { %7729 = vst.msk [vmem:[%s14658_s26 + $0x48] sm:$0xff] %vm279_vm0, %v7697_v5  ;;  %v7696_v9 = vadd.f32 %v14646_v15, %v7660_v47  ;;  %v7663_v4 = vmul.f32 %v14640_v59, %v7627_v33  ;;  %v7626_v21 = vadd.f32 %v7507_v28, %v7357_v61  ;;  %v6829_v5 = vadd.f32 %v15803_v22, %v15802_v50  ;;  %v15805_v28 = vld [vmem:[#allocation22_spill] sm:$0xff]  ;;  %v10147_v51 = vpop.f32.mrf.mxu0 }
 0x5ba   : > { %v10179_v18 = vpop.f32.mrf.mxu1  ;;  %v7364_v33 = vadd.f32 %v14644_v23, %v7094_v27  ;;  %v7096_v61 = vadd.f32 %v15804_v3, %v6830_v49  ;;  %v7363_v62 = vadd.f32 %v14663_v48, %v7093_v46  ;;  %v15812_v27 = vld [vmem:[#allocation92_spill] sm:$0xff] }
 0x5bb   : > { %7728 = vst.msk [vmem:[%s14658_s26 + $0x40] sm:$0xff] %vm279_vm0, %v7696_v9  ;;  %v7699_v56 = vadd.f32 %v14646_v15, %v7663_v4  ;;  %v7662_v2 = vmul.f32 %v14640_v59, %v7626_v21  ;;  %v7629_v30 = vadd.f32 %v10179_v18, %v7360_v16  ;;  %v6832_v16 = vadd.f32 %v15806_v60, %v15805_v28  ;;  %v15807_v9 = vld [vmem:[#allocation122_spill] sm:$0xff]  ;;  %v15809_v18 = vld [vmem:[#allocation67_spill] sm:$0xff]  ;;  %v7308_v7 = vpop.f32.mrf.mxu0  ;;  %v15822_v28 = vld [vmem:[#allocation4_spill] sm:$0xff] }
 0x5bc   : > { %v7517_v32 = vpop.f32.mrf.mxu1  ;;  %v7095_v4 = vadd.f32 %v15807_v9, %v6829_v5  ;;  %v6834_v63 = vadd.f32 %v15813_v0, %v15812_v27 }
 0x5bd   : > { %7731 = vst.msk [vmem:[%s14658_s26 + $0x58] sm:$0xff] %vm279_vm0, %v7699_v56  ;;  %v7698_v26 = vadd.f32 %v14646_v15, %v7662_v2  ;;  %v7665_v12 = vmul.f32 %v14640_v59, %v7629_v30  ;;  %v7628_v52 = vadd.f32 %v7517_v32, %v7359_v17  ;;  %v7098_v53 = vadd.f32 %v15808_v37, %v6832_v16  ;;  %v15811_v30 = vld [vmem:[#allocation125_spill] sm:$0xff]  ;;  %v15825_v37 = vld [vmem:[#allocation95_spill] sm:$0xff] }
 0x5be   : > { %v10182_v24 = vpop.f32.mrf.mxu1  ;;  %v6831_v17 = vadd.f32 %v15810_v38, %v15809_v18  ;;  %v7366_v2 = vadd.f32 %v14678_v31, %v7096_v61  ;;  %v7365_v58 = vadd.f32 %v14697_v41, %v7095_v4  ;;  %v7100_v49 = vadd.f32 %v15816_v35, %v6834_v63  ;;  %v10150_v41 = vpop.f32.mrf.mxu0  ;;  %v15823_v4 = vld [vmem:[#allocation83_spill] sm:$0xff]  ;;  %v15832_v35 = vld [vmem:[#allocation8_spill] sm:$0xff] }
 0x5bf   : > { %7730 = vst.msk [vmem:[%s14658_s26 + $0x50] sm:$0xff] %vm279_vm0, %v7698_v26  ;;  %v7701_v10 = vadd.f32 %v14646_v15, %v7665_v12  ;;  %v7664_v39 = vmul.f32 %v14640_v59, %v7628_v52  ;;  %v7631_v57 = vadd.f32 %v10182_v24, %v7362_v14  ;;  %v15814_v14 = vld [vmem:[#allocation68_spill] sm:$0xff]  ;;  %v7368_v43 = vadd.f32 %v14714_v6, %v7098_v53 }
 0x5c0   : > { %v7527_v47 = vpop.f32.mrf.mxu1  ;;  %v7097_v19 = vadd.f32 %v15811_v30, %v6831_v17  ;;  %v6833_v31 = vadd.f32 %v15815_v1, %v15814_v14  ;;  %v7370_v9 = vadd.f32 %v14750_v36, %v7100_v49  ;;  %v15831_v1 = vld [vmem:[#allocation51_spill] sm:$0xff] }
 0x5c1   : > { %7733 = vst.msk [vmem:[%s14658_s26 + $0x68] sm:$0xff] %vm279_vm0, %v7701_v10  ;;  %v7700_v34 = vadd.f32 %v14646_v15, %v7664_v39  ;;  %v7667_v55 = vmul.f32 %v14640_v59, %v7631_v57  ;;  %v7630_v54 = vadd.f32 %v7527_v47, %v7361_v44  ;;  %v15817_v57 = vld [vmem:[#allocation99_spill] sm:$0xff]  ;;  %v15818_v44 = vld [vmem:[#allocation18_spill] sm:$0xff]  ;;  %v15819_v47 = vld [vmem:[#allocation81_spill] sm:$0xff] }
 0x5c2   : > { %v10185_v40 = vpop.f32.mrf.mxu1  ;;  %v6836_v50 = vadd.f32 %v15818_v44, %v15817_v57  ;;  %v7367_v5 = vadd.f32 %v14733_v13, %v7097_v19  ;;  %v15828_v19 = vld [vmem:[#allocation12_spill] sm:$0xff] }
 0x5c3   : > { %7732 = vst.msk [vmem:[%s14658_s26 + $0x60] sm:$0xff] %vm279_vm0, %v7700_v34  ;;  %v7703_v23 = vadd.f32 %v14646_v15, %v7667_v55  ;;  %v7666_v21 = vmul.f32 %v14640_v59, %v7630_v54  ;;  %v7633_v45 = vadd.f32 %v10185_v40, %v7364_v33  ;;  %v7099_v33 = vadd.f32 %v15819_v47, %v6833_v31  ;;  %v15820_v34 = vld [vmem:[#allocation9_spill] sm:$0xff]  ;;  %v15821_v54 = vld [vmem:[#allocation96_spill] sm:$0xff] }
 0x5c4   : > { %v7537_v25 = vpop.f32.mrf.mxu1  ;;  %v7102_v55 = vadd.f32 %v15820_v34, %v6836_v50  ;;  %v6835_v60 = vadd.f32 %v15822_v28, %v15821_v54 }
 0x5c5   : > { %7735 = vst.msk [vmem:[%s14658_s26 + $0x78] sm:$0xff] %vm279_vm0, %v7703_v23  ;;  %v7702_v48 = vadd.f32 %v14646_v15, %v7666_v21  ;;  %v7669_v29 = vmul.f32 %v14640_v59, %v7633_v45  ;;  %v7632_v56 = vadd.f32 %v7537_v25, %v7363_v62  ;;  %v7318_v21 = vpop.f32.mrf.mxu0  ;;  %v15824_v45 = vld [vmem:[#allocation101_spill] sm:$0xff] }
 0x5c6   : > { %v10188_v32 = vpop.f32.mrf.mxu1  ;;  %v7101_v23 = vadd.f32 %v15823_v4, %v6835_v60  ;;  %v6838_v53 = vadd.f32 %v15825_v37, %v15824_v45  ;;  %v7372_v30 = vadd.f32 %v10147_v51, %v7102_v55  ;;  %v15837_v60 = vld [vmem:[#allocation71_spill] sm:$0xff] }
 0x5c7   : > { %7734 = vst.msk [vmem:[%s14658_s26 + $0x70] sm:$0xff] %vm279_vm0, %v7702_v48  ;;  %v7705_v26 = vadd.f32 %v14646_v15, %v7669_v29  ;;  %v7668_v12 = vmul.f32 %v14640_v59, %v7632_v56  ;;  %v7635_v52 = vadd.f32 %v10188_v32, %v7366_v2  ;;  %v7369_v48 = vadd.f32 %v14769_v42, %v7099_v33  ;;  %v15826_v29 = vld [vmem:[#allocation102_spill] sm:$0xff]  ;;  %v15835_v33 = vld [vmem:[#allocation121_spill] sm:$0xff] }
 0x5c8   : > { %v7547_v46 = vpop.f32.mrf.mxu1  ;;  %v15827_v56 = vld [vmem:[#allocation10_spill] sm:$0xff]  ;;  %v7104_v27 = vadd.f32 %v15828_v19, %v6838_v53  ;;  %v7371_v14 = vadd.f32 %v7308_v7, %v7101_v23 }
 0x5c9   : > { %7737 = vst.msk [vmem:[%s14658_s26 + $0x88] sm:$0xff] %vm279_vm0, %v7705_v26  ;;  %v7704_v24 = vadd.f32 %v14646_v15, %v7668_v12  ;;  %v7671_v10 = vmul.f32 %v14640_v59, %v7635_v52  ;;  %v7634_v39 = vadd.f32 %v7547_v46, %v7365_v58  ;;  %v6837_v36 = vadd.f32 %v15827_v56, %v15826_v29  ;;  %v10153_v26 = vpop.f32.mrf.mxu0  ;;  %v15829_v12 = vld [vmem:[#allocation72_spill] sm:$0xff]  ;;  %v15830_v52 = vld [vmem:[#allocation98_spill] sm:$0xff] }
 0x5ca   : > { %v10191_v22 = vpop.f32.mrf.mxu1  ;;  %v6840_v58 = vadd.f32 %v15830_v52, %v15829_v12 }
 0x5cb   : > { %7736 = vst.msk [vmem:[%s14658_s26 + $0x80] sm:$0xff] %vm279_vm0, %v7704_v24  ;;  %v7707_v6 = vadd.f32 %v14646_v15, %v7671_v10  ;;  %v7670_v3 = vmul.f32 %v14640_v59, %v7634_v39  ;;  %v7637_v61 = vadd.f32 %v10191_v22, %v7368_v43  ;;  %v7103_v31 = vadd.f32 %v15831_v1, %v6837_v36  ;;  %v15833_v24 = vld [vmem:[#allocation80_spill] sm:$0xff]  ;;  %v15834_v10 = vld [vmem:[#allocation6_spill] sm:$0xff] }
 0x5cc   : > { %v7557_v16 = vpop.f32.mrf.mxu1  ;;  %v7106_v49 = vadd.f32 %v15832_v35, %v6840_v58  ;;  %v6839_v39 = vadd.f32 %v15834_v10, %v15833_v24  ;;  %v7374_v22 = vadd.f32 %v10150_v41, %v7104_v27 }
 0x5cd   : > { %7739 = vst.msk [vmem:[%s14658_s26 + $0x98] sm:$0xff] %vm279_vm0, %v7707_v6  ;;  %v7706_v13 = vadd.f32 %v14646_v15, %v7670_v3  ;;  %v7673_v40 = vmul.f32 %v14640_v59, %v7637_v61  ;;  %v7636_v62 = vadd.f32 %v7557_v16, %v7367_v5  ;;  %v7328_v5 = vpop.f32.mrf.mxu0  ;;  %v15836_v6 = vld [vmem:[#allocation118_spill] sm:$0xff]  ;;  %v7373_v28 = vadd.f32 %v7318_v21, %v7103_v31  ;;  %v15838_v16 = vld [vmem:[#allocation37_spill] sm:$0xff] }
 0x5ce   : > { %v10194_v18 = vpop.f32.mrf.mxu1  ;;  %v7105_v47 = vadd.f32 %v14621_v11, %v6839_v39  ;;  %v6842_v3 = vadd.f32 %v15836_v6, %v15835_v33 }
 0x5cf   : > { %7738 = vst.msk [vmem:[%s14658_s26 + $0x90] sm:$0xff] %vm279_vm0, %v7706_v13  ;;  %v7709_v38 = vadd.f32 %v14646_v15, %v7673_v40  ;;  %v7672_v17 = vmul.f32 %v14640_v59, %v7636_v62  ;;  %v7639_v25 = vadd.f32 %v10194_v18, %v7370_v9  ;;  %v6841_v13 = vadd.f32 %v15838_v16, %v15837_v60  ;;  %v10156_v41 = vpop.f32.mrf.mxu0 }
 0x5d0   : > { %v7567_v2 = vpop.f32.mrf.mxu1  ;;  %v7376_v62 = vadd.f32 %v10153_v26, %v7106_v49  ;;  %v7108_v11 = vadd.f32 %v14628_v20, %v6842_v3  ;;  %v7375_v37 = vadd.f32 %v7328_v5, %v7105_v47 }
 0x5d1   : > { %7741 = vst.msk [vmem:[%s14658_s26 + $0xa8] sm:$0xff] %vm279_vm0, %v7709_v38  ;;  %v7708_v0 = vadd.f32 %v14646_v15, %v7672_v17  ;;  %v7675_v63 = vmul.f32 %v14640_v59, %v7639_v25  ;;  %v7638_v32 = vadd.f32 %v7567_v2, %v7369_v48  ;;  %v7107_v21 = vadd.f32 %v14633_v8, %v6841_v13  ;;  %v7338_v38 = vpop.f32.mrf.mxu0 }
 0x5d2   : > { %v10197_v42 = vpop.f32.mrf.mxu1  ;;  %v7378_v25 = vadd.f32 %v10156_v41, %v7108_v11 }
 0x5d3   : > { %7740 = vst.msk [vmem:[%s14658_s26 + $0xa0] sm:$0xff] %vm279_vm0, %v7708_v0  ;;  %v7711_v51 = vadd.f32 %v14646_v15, %v7675_v63  ;;  %v7674_v46 = vmul.f32 %v14640_v59, %v7638_v32  ;;  %v7641_v43 = vadd.f32 %v10197_v42, %v7372_v30  ;;  %v7377_v36 = vadd.f32 %v7338_v38, %v7107_v21 }
 0x5d4   : > { %v7577_v57 = vpop.f32.mrf.mxu1 }
 0x5d5   : > { %7743 = vst.msk [vmem:[%s14658_s26 + $0xb8] sm:$0xff] %vm279_vm0, %v7711_v51  ;;  %v7710_v7 = vadd.f32 %v14646_v15, %v7674_v46  ;;  %v7677_v44 = vmul.f32 %v14640_v59, %v7641_v43  ;;  %v7640_v50 = vadd.f32 %v7577_v57, %v7371_v14 }
 0x5d6   : > { %v10200_v61 = vpop.f32.mrf.mxu1 }
 0x5d7   : > { %7742 = vst.msk [vmem:[%s14658_s26 + $0xb0] sm:$0xff] %vm279_vm0, %v7710_v7  ;;  %v7713_v34 = vadd.f32 %v14646_v15, %v7677_v44  ;;  %v7676_v55 = vmul.f32 %v14640_v59, %v7640_v50  ;;  %v7643_v54 = vadd.f32 %v10200_v61, %v7374_v22 }
 0x5d8   : > { %v7587_v40 = vpop.f32.mrf.mxu1 }
 0x5d9   : > { %7745 = vst.msk [vmem:[%s14658_s26 + $0xc8] sm:$0xff] %vm279_vm0, %v7713_v34  ;;  %v7712_v9 = vadd.f32 %v14646_v15, %v7676_v55  ;;  %v7679_v4 = vmul.f32 %v14640_v59, %v7643_v54  ;;  %v7642_v23 = vadd.f32 %v7587_v40, %v7373_v28 }
 0x5da   : > { %v10203_v45 = vpop.f32.mrf.mxu1 }
 0x5db   : > { %7744 = vst.msk [vmem:[%s14658_s26 + $0xc0] sm:$0xff] %vm279_vm0, %v7712_v9  ;;  %v7715_v53 = vadd.f32 %v14646_v15, %v7679_v4  ;;  %v7678_v18 = vmul.f32 %v14640_v59, %v7642_v23  ;;  %v7645_v20 = vadd.f32 %v10203_v45, %v7376_v62 }
 0x5dc   : > { %v7597_v17 = vpop.f32.mrf.mxu1 }
 0x5dd   : > { %7747 = vst.msk [vmem:[%s14658_s26 + $0xd8] sm:$0xff] %vm279_vm0, %v7715_v53  ;;  %v7714_v48 = vadd.f32 %v14646_v15, %v7678_v18  ;;  %v7681_v29 = vmul.f32 %v14640_v59, %v7645_v20  ;;  %v7644_v8 = vadd.f32 %v7597_v17, %v7375_v37 }
 0x5de   : > { %v10206_v56 = vpop.f32.mrf.mxu1 }
 0x5df   : > { %7746 = vst.msk [vmem:[%s14658_s26 + $0xd0] sm:$0xff] %vm279_vm0, %v7714_v48  ;;  %v7717_v2 = vadd.f32 %v14646_v15, %v7681_v29  ;;  %v7680_v30 = vmul.f32 %v14640_v59, %v7644_v8  ;;  %v7647_v19 = vadd.f32 %v10206_v56, %v7378_v25 }
 0x5e0   : > { %v7607_v27 = vpop.f32.mrf.mxu1 }
 0x5e1   : > { %7749 = vst.msk [vmem:[%s14658_s26 + $0xe8] sm:$0xff] %vm279_vm0, %v7717_v2  ;;  %v7716_v0 = vadd.f32 %v14646_v15, %v7680_v30  ;;  %v7683_v63 = vmul.f32 %v14640_v59, %v7647_v19  ;;  %v7646_v32 = vadd.f32 %v7607_v27, %v7377_v36 }
 0x5e3   : > { %7748 = vst.msk [vmem:[%s14658_s26 + $0xe0] sm:$0xff] %vm279_vm0, %v7716_v0  ;;  %v7719_v26 = vadd.f32 %v14646_v15, %v7683_v63  ;;  %v7682_v12 = vmul.f32 %v14640_v59, %v7646_v32 }
 0x5e5   : > { %7751 = vst.msk [vmem:[%s14658_s26 + $0xf8] sm:$0xff] %vm279_vm0, %v7719_v26  ;;  %v7718_v52 = vadd.f32 %v14646_v15, %v7682_v12 }
 0x5e7   : > { %7750 = vst.msk [vmem:[%s14658_s26 + $0xf0] sm:$0xff] %vm279_vm0, %v7718_v52 }
 0x5e8 PF: > { %s17_s24 = sadd.s32 1, %s10376_s24  }
 0x5e9   : > { %p14_p4 = scmp.ge.s32.totalorder %s17_s24, 4  }
 0x5eb   :  { %16 = sbr.rel (!%p14_p4) target bundleno = 1 (0x1), region = 80 }

</bundles_post_ra>
